<compile_context>
chip_gen: v5e
topology: v5e:2x2
jax: 0.10.0
libtpu: 0.0.40
codegen_flags: <defaults>
</compile_context>

<pallas_src>
import functools

import jax
import jax.numpy as jnp
from jax.experimental import pallas as pl
from jax.experimental.pallas import tpu as pltpu

LEAKY_SLOPE = 0.01
BN_EPS = 1e-5


# --------------------------------------------------------------------------------------
# Fused kernel: one grid step = one row-band of one batch image.
#   x1_ref  : (1, (BH+4)*W, 2F)  flattened band (2-row halo) of img_in_1, NHWC pixels
#   wf_ref  : (2F, 4F) bf16      fused 1x1-conv x ConvTranspose weight
#   s2_ref  : (1, BH+6, W, F)    img_in_2 band (3-row halo, vertical edge clamp baked in)
#   s3_ref  : (1, BH+4, W, 4F)   img_in_3 band (2-row halo), space-to-depth packed
#   sc*/sh* : (1, 4F)            eval-mode BN folded to scale/shift (phase-tiled)
#   w3a/w3b : (3, 3, 4F, 4F) bf16  packed 3x3 conv weights, one (C, C) block per tap
#   out_ref : (1, BH, W, 4F)     space-to-depth packed output band
#   pad_ref : VMEM (BH+4, W+2, 4F) bf16  conv input scratch (zero left/right columns)
# --------------------------------------------------------------------------------------
def _up_res_band_kernel(x1_ref, wf_ref, s2_ref, s3_ref,
                        sc1_ref, sh1_ref, w3a_ref,
                        sc2_ref, sh2_ref, w3b_ref,
                        out_ref, pad_ref):
    _, BH, W, C = out_ref.shape
    RE = BH + 4                                  # band rows + 2-packed-row halo each side
    band = pl.program_id(1)
    last_band = pl.num_programs(1) - 1

    # ---- fused 1x1 conv + ConvTranspose2d(k=2, s=2): one bf16 MXU matmul per band ----
    y_up = jnp.dot(x1_ref[0].astype(jnp.bfloat16), wf_ref[...],
                   preferred_element_type=jnp.float32).reshape(RE, W, C)

    # ---- 2x bilinear upsample of img_in_2 (separable, edge clamp), packed output ----
    s2 = s2_ref[0]                               # (RE + 2, W, F), f32
    s2c = s2[1:RE + 1]
    a_u = 0.75 * s2c + 0.25 * s2[0:RE]           # vertical blend, output phase di = 0
    a_d = 0.75 * s2c + 0.25 * s2[2:RE + 2]       # vertical blend, output phase di = 1

    def left(x):                                 # horizontal edge-clamped shifts
        return jnp.concatenate([x[:, :1], x[:, :-1]], axis=1)

    def right(x):
        return jnp.concatenate([x[:, 1:], x[:, -1:]], axis=1)

    s2x2 = jnp.concatenate([0.75 * a_u + 0.25 * left(a_u),    # phase (0, 0)
                            0.75 * a_u + 0.25 * right(a_u),   # phase (0, 1)
                            0.75 * a_d + 0.25 * left(a_d),    # phase (1, 0)
                            0.75 * a_d + 0.25 * right(a_d)],  # phase (1, 1)
                           axis=-1)                           # (RE, W, 4F)

    # img_out (+ resized img_in_2) (+ img_in_3), packed, with a 2-row recomputed halo
    base = y_up + s2x2 + s3_ref[0]               # (RE, W, C), f32

    # left/right zero-padding columns of the conv scratch (tiny, once per band)
    pad_ref[:, 0:1, :] = jnp.zeros((RE, 1, C), jnp.bfloat16)
    pad_ref[:, W + 1:W + 2, :] = jnp.zeros((RE, 1, C), jnp.bfloat16)

    def bn_lrelu(x, sc_ref, sh_ref):             # f32 VPU math
        t = x * sc_ref[...] + sh_ref[...]
        return jnp.where(t > 0, t, LEAKY_SLOPE * t)

    def conv3x3(t, w3_ref, halo):
        # 3x3 conv on the packed band: 9 accumulating bf16 matmuls with K = C,
        # no (rows, 3C) slab materialization; accumulator seeded by the first tap.
        rows_in = t.shape[0]
        rows_out = rows_in - 2
        pad_ref[0:rows_in, 1:W + 1, :] = t.astype(jnp.bfloat16)

        # halo rows that fall outside the image act as the conv's zero padding
        @pl.when(band == 0)
        def _():
            pad_ref[0:halo, 1:W + 1, :] = jnp.zeros((halo, W, C), jnp.bfloat16)

        @pl.when(band == last_band)
        def _():
            pad_ref[rows_in - halo:rows_in, 1:W + 1, :] = jnp.zeros(
                (halo, W, C), jnp.bfloat16)

        acc = None
        for oy in range(3):
            for ox in range(3):
                win = pad_ref[oy:oy + rows_out, ox:ox + W, :].reshape(rows_out * W, C)
                part = jnp.dot(win, w3_ref[oy, ox],
                               preferred_element_type=jnp.float32)
                acc = part if acc is None else acc + part
        return acc.reshape(rows_out, W, C)

    t1 = bn_lrelu(base, sc1_ref, sh1_ref)        # (RE, W, C)
    c1 = conv3x3(t1, w3a_ref, halo=2)            # (BH + 2, W, C)
    t2 = bn_lrelu(c1, sc2_ref, sh2_ref)
    c2 = conv3x3(t2, w3b_ref, halo=1)            # (BH, W, C)

    out_ref[0] = base[2:BH + 2] + c2             # Res residual add (central rows only)


# --------------------------------------------------------------------------------------
# Parameters (deterministic, same shapes as the PyTorch module's __init__; bias=False
# everywhere, matching the spec)
# --------------------------------------------------------------------------------------
def make_up_params(filters, key):
    F = filters
    ks = jax.random.split(key, 6)
    nrm = lambda k, shape: 0.2 * jax.random.normal(k, shape, jnp.float32)
    p = {
        "conv1x1_w": nrm(ks[0], (F, 2 * F, 1, 1)),    # torch Conv2d  (O, I, 1, 1)
        "upconv_w":  nrm(ks[1], (F, F, 2, 2)),         # torch ConvT2d (I, O, 2, 2)
        "res_conv1_w": nrm(ks[2], (F, F, 3, 3)),       # torch Conv2d  (O, I, 3, 3)
        "res_conv2_w": nrm(ks[3], (F, F, 3, 3)),
    }
    for ki, tag in ((4, "bn1"), (5, "bn2")):
        kk = jax.random.split(ks[ki], 4)
        p[f"{tag}_gamma"] = 1.0 + 0.1 * jax.random.normal(kk[0], (F,), jnp.float32)
        p[f"{tag}_beta"] = 0.1 * jax.random.normal(kk[1], (F,), jnp.float32)
        p[f"{tag}_mean"] = 0.1 * jax.random.normal(kk[2], (F,), jnp.float32)
        p[f"{tag}_var"] = 0.5 + jax.random.uniform(kk[3], (F,), jnp.float32)
    return p


def _fold_bn(params, tag, F):
    scale = params[f"{tag}_gamma"] / jnp.sqrt(params[f"{tag}_var"] + BN_EPS)
    shift = params[f"{tag}_beta"] - params[f"{tag}_mean"] * scale
    return scale.reshape(1, F), shift.reshape(1, F)


def _pack_conv3x3_space_to_depth(w_oihw):
    """Torch Conv2d weight (F, F, 3, 3) -> (3, 3, 4F, 4F) weight for the equivalent 3x3
    conv on the space-to-depth packed (H, W, 4F) representation (trace-time only)."""
    F = w_oihw.shape[0]
    C = 4 * F
    w = jnp.transpose(w_oihw, (2, 3, 1, 0))              # (kh, kw, Cin, Cout)
    wp = jnp.zeros((3, 3, C, C), jnp.float32)
    for oy in (-1, 0, 1):                                # coarse row offset
        for ri in (0, 1):                                # input row phase
            for di in (0, 1):                            # output row phase
                dy = 2 * oy + ri - di + 1
                if not 0 <= dy <= 2:
                    continue
                for ox in (-1, 0, 1):                    # coarse col offset
                    for rj in (0, 1):                    # input col phase
                        for dj in (0, 1):                # output col phase
                            dx = 2 * ox + rj - dj + 1
                            if not 0 <= dx <= 2:
                                continue
                            ci0 = (2 * ri + rj) * F
                            co0 = (2 * di + dj) * F
                            wp = wp.at[oy + 1, ox + 1,
                                       ci0:ci0 + F, co0:co0 + F].set(w[dy, dx])
    return wp


def _band_rows_with_halo(x, halo, band_rows, mode):
    """(N, R, ...) -> (N*nb, band_rows + 2*halo, ...) overlapping row bands.
    XLA fuses this gather with the surrounding layout transposes, so the halo
    duplication ((BH+2*halo)/BH, ~12% at BH=32) is not an extra HBM round trip."""
    N, R = x.shape[0], x.shape[1]
    nb = R // band_rows
    pad = [(0, 0), (halo, halo)] + [(0, 0)] * (x.ndim - 2)
    xp = jnp.pad(x, pad, mode=mode)
    bands = jnp.stack(
        [xp[:, b * band_rows: b * band_rows + band_rows + 2 * halo]
         for b in range(nb)], axis=1)
    return bands.reshape((N * nb,) + bands.shape[2:])


# --------------------------------------------------------------------------------------
# Wrapper: NCHW in -> NCHW out (layout conversion + trace-time weight fusion is glue)
# --------------------------------------------------------------------------------------
def up_forward(params, img1_nchw, img2_nchw, img3_nchw, band_rows=None):
    N, C2, H, W = img1_nchw.shape
    F = C2 // 2
    Ho, Wo = 2 * H, 2 * W
    C = 4 * F

    if band_rows is None:                         # packed rows per band
        band_rows = H
        for cand in (32, 16, 8):
            if H % cand == 0:
                band_rows = cand
                break
    BH = band_rows
    assert H % BH == 0, "packed image rows must be a multiple of band_rows"
    nb = H // BH
    RE = BH + 4

    x1 = jnp.transpose(img1_nchw, (0, 2, 3, 1))                       # (N, H, W, 2F)
    s2 = jnp.transpose(img2_nchw, (0, 2, 3, 1))                       # (N, H, W, F)
    s3p = jnp.transpose(img3_nchw.reshape(N, F, H, 2, W, 2),
                        (0, 2, 4, 3, 5, 1)).reshape(N, H, W, C)       # packed img_in_3

    # overlapping row bands: 2-row halo for the two chained 3x3 convs, 3 source rows
    # for the bilinear upsample (vertical edge clamp baked in via mode='edge')
    x1_b = _band_rows_with_halo(x1, 2, BH, "constant").reshape(N * nb, RE * W, 2 * F)
    s2_b = _band_rows_with_halo(s2, 3, BH, "edge")                    # (N*nb, RE+2, W, F)
    s3_b = _band_rows_with_halo(s3p, 2, BH, "constant")               # (N*nb, RE, W, C)

    # Fuse 1x1 conv with ConvTranspose2d(2,2,stride=2): column block (2*di+dj) of the
    # fused weight produces output sub-pixel (di, dj).  bf16 = native MXU dtype.
    w1t = params["conv1x1_w"][:, :, 0, 0].T                                # (2F, F)
    wt = jnp.transpose(params["upconv_w"], (0, 2, 3, 1)).reshape(F, C)     # (F, 4F)
    w_fused = jnp.dot(w1t, wt).astype(jnp.bfloat16)                        # (2F, 4F)

    w3a = _pack_conv3x3_space_to_depth(params["res_conv1_w"]).astype(jnp.bfloat16)
    w3b = _pack_conv3x3_space_to_depth(params["res_conv2_w"]).astype(jnp.bfloat16)

    sc1, sh1 = _fold_bn(params, "bn1", F)
    sc2, sh2 = _fold_bn(params, "bn2", F)
    sc1, sh1 = jnp.tile(sc1, (1, 4)), jnp.tile(sh1, (1, 4))   # repeat per phase block
    sc2, sh2 = jnp.tile(sc2, (1, 4)), jnp.tile(sh2, (1, 4))

    flops = N * nb * (2 * RE * W * (2 * F) * C
                      + 9 * 2 * (BH + 2) * W * C * C
                      + 9 * 2 * BH * W * C * C)
    bytes_accessed = sum(int(a.size) * a.dtype.itemsize
                         for a in (x1_b, s2_b, s3_b, w_fused, w3a, w3b,
                                   sc1, sh1, sc2, sh2)) + N * H * W * C * 4

    nbc = nb  # closure constant for the index maps

    out_packed = pl.pallas_call(
        _up_res_band_kernel,
        out_shape=jax.ShapeDtypeStruct((N, H, W, C), jnp.float32),
        grid=(N, nb),
        in_specs=[
            pl.BlockSpec((1, RE * W, 2 * F), lambda n, b: (n * nbc + b, 0, 0)),
            pl.BlockSpec((2 * F, C), lambda n, b: (0, 0)),
            pl.BlockSpec((1, RE + 2, W, F), lambda n, b: (n * nbc + b, 0, 0, 0)),
            pl.BlockSpec((1, RE, W, C), lambda n, b: (n * nbc + b, 0, 0, 0)),
            pl.BlockSpec((1, C), lambda n, b: (0, 0)),
            pl.BlockSpec((1, C), lambda n, b: (0, 0)),
            pl.BlockSpec((3, 3, C, C), lambda n, b: (0, 0, 0, 0)),
            pl.BlockSpec((1, C), lambda n, b: (0, 0)),
            pl.BlockSpec((1, C), lambda n, b: (0, 0)),
            pl.BlockSpec((3, 3, C, C), lambda n, b: (0, 0, 0, 0)),
        ],
        out_specs=pl.BlockSpec((1, BH, W, C), lambda n, b: (n, b, 0, 0)),
        scratch_shapes=[
            pltpu.VMEM((RE, W + 2, C), jnp.bfloat16),   # zero-column conv pad scratch
        ],
        compiler_params=pltpu.CompilerParams(
            # batch and band are independent -> shard across v7x's two TensorCores;
            # weights use constant index maps so they stay VMEM-resident.
            dimension_semantics=("parallel", "parallel"),
            vmem_limit_bytes=48 * 1024 * 1024,          # < v7x 64 MiB physical, headroom
        ),
        cost_estimate=pl.CostEstimate(flops=int(flops), transcendentals=0,
                                      bytes_accessed=int(bytes_accessed)),
        # If band DMA is still exposed at production sizes, pipeline_mode=pl.Buffered(3)
        # on the x1/s3/out band specs is the next knob.
    )(x1_b, w_fused, s2_b, s3_b, sc1, sh1, w3a, sc2, sh2, w3b)

    # unpack space-to-depth -> NCHW
    out = out_packed.reshape(N, H, W, 2, 2, F)
    return jnp.transpose(out, (0, 5, 1, 3, 2, 4)).reshape(N, F, Ho, Wo)


# --------------------------------------------------------------------------------------
# Pure-JAX reference (same semantics, NCHW, XLA convs) for the self-check
# --------------------------------------------------------------------------------------
def up_forward_reference(params, img1, img2, img3):
    N, C2, H, W = img1.shape
    F = C2 // 2
    Ho, Wo = 2 * H, 2 * W
    dn = ("NCHW", "OIHW", "NCHW")

    y = jax.lax.conv_general_dilated(img1, params["conv1x1_w"], (1, 1), "VALID",
                                     dimension_numbers=dn)
    z = jnp.einsum("ncij,cokl->noikjl", y, params["upconv_w"]).reshape(N, F, Ho, Wo)
    s2r = jax.image.resize(img2, (N, F, Ho, Wo), method="linear")
    base = z + s2r + img3

    def bn(x, tag):
        sc = params[f"{tag}_gamma"] / jnp.sqrt(params[f"{tag}_var"] + BN_EPS)
        sh = params[f"{tag}_beta"] - params[f"{tag}_mean"] * sc
        return x * sc[None, :, None, None] + sh[None, :, None, None]

    lrelu = lambda x: jnp.where(x > 0, x, LEAKY_SLOPE * x)

    t = lrelu(bn(base, "bn1"))
    t = jax.lax.conv_general_dilated(t, params["res_conv1_w"], (1, 1),
                                     ((1, 1), (1, 1)), dimension_numbers=dn)
    t = lrelu(bn(t, "bn2"))
    t = jax.lax.conv_general_dilated(t, params["res_conv2_w"], (1, 1),
                                     ((1, 1), (1, 1)), dimension_numbers=dn)
    return base + t


if __name__ == "__main__":
    # Small but representative config: F=32 is a real Up width in the Unet (filters[1])
    # and gives a lane-dense packed channel axis C = 4F = 128; 2 row-bands of 8 packed
    # rows exercise the halo recompute and the image-boundary zero padding.
    filters = 32
    N, H, W = 2, 16, 16              # Up output spatial size = (2H, 2W) = (32, 32)

    key = jax.random.PRNGKey(0)
    kp, k1, k2, k3 = jax.random.split(key, 4)
    params = make_up_params(filters, kp)

    img_in_1 = jax.random.normal(k1, (N, 2 * filters, H, W), jnp.float32)
    img_in_2 = jax.random.normal(k2, (N, filters, H, W), jnp.float32)
    img_in_3 = jax.random.normal(k3, (N, filters, 2 * H, 2 * W), jnp.float32)

    up_fn = jax.jit(functools.partial(up_forward, band_rows=8))
    out = up_fn(params, img_in_1, img_in_2, img_in_3)
    jax.block_until_ready(out)

    # Reference at HIGHEST matmul/conv precision for a trustworthy baseline.
    with jax.default_matmul_precision("highest"):
        ref = up_forward_reference(params, img_in_1, img_in_2, img_in_3)

    scale = float(jnp.max(jnp.abs(ref)))
    max_err = float(jnp.max(jnp.abs(out - ref)))
    rel_l2 = float(jnp.linalg.norm(out - ref) / (jnp.linalg.norm(ref) + 1e-12))

    assert out.shape == (N, filters, 2 * H, 2 * W), out.shape
    # Layout/indexing bugs give O(1) relative errors; these bounds are far tighter than
    # that while covering the explicit bf16 MXU operands.
    assert max_err < 2.5e-2 * scale + 1e-4, f"max_err={max_err}, scale={scale}"
    assert rel_l2 < 2e-2, f"rel_l2={rel_l2}"

    print("KERNEL_OK")
</pallas_src>

<mosaic_0001>
module attributes {stable_mosaic.version = 11 : i64} {
  func.func @_up_res_band_kernel(%arg0: i32, %arg1: i32, %arg2: memref<1x192x64xf32, #tpu.memory_space<vmem>>, %arg3: memref<64x128xbf16, #tpu.memory_space<vmem>>, %arg4: memref<1x14x16x32xf32, #tpu.memory_space<vmem>>, %arg5: memref<1x12x16x128xf32, #tpu.memory_space<vmem>>, %arg6: memref<1x128xf32, #tpu.memory_space<vmem>>, %arg7: memref<1x128xf32, #tpu.memory_space<vmem>>, %arg8: memref<3x3x128x128xbf16, #tpu.memory_space<vmem>>, %arg9: memref<1x128xf32, #tpu.memory_space<vmem>>, %arg10: memref<1x128xf32, #tpu.memory_space<vmem>>, %arg11: memref<3x3x128x128xbf16, #tpu.memory_space<vmem>>, %arg12: memref<1x8x16x128xf32, #tpu.memory_space<vmem>>, %arg13: memref<12x18x128xbf16, #tpu.memory_space<vmem>>) attributes {dimension_semantics = [#tpu.dimension_semantics<parallel>, #tpu.dimension_semantics<parallel>], iteration_bounds = array<i64: 2, 2>, scalar_prefetch = 0 : i64, scratch_operands = 1 : i64, tpu.core_type = #tpu.core_type<tc>, window_params = [{transform_indices = @transform_0, window_bounds = array<i64: 1, 192, 64>}, {pipeline_mode = #tpu.pipeline_mode<synchronous>, transform_indices = @transform_1, window_bounds = array<i64: 64, 128>}, {transform_indices = @transform_2, window_bounds = array<i64: 1, 14, 16, 32>}, {transform_indices = @transform_3, window_bounds = array<i64: 1, 12, 16, 128>}, {pipeline_mode = #tpu.pipeline_mode<synchronous>, transform_indices = @transform_4, window_bounds = array<i64: 1, 128>}, {pipeline_mode = #tpu.pipeline_mode<synchronous>, transform_indices = @transform_5, window_bounds = array<i64: 1, 128>}, {pipeline_mode = #tpu.pipeline_mode<synchronous>, transform_indices = @transform_6, window_bounds = array<i64: 3, 3, 128, 128>}, {pipeline_mode = #tpu.pipeline_mode<synchronous>, transform_indices = @transform_7, window_bounds = array<i64: 1, 128>}, {pipeline_mode = #tpu.pipeline_mode<synchronous>, transform_indices = @transform_8, window_bounds = array<i64: 1, 128>}, {pipeline_mode = #tpu.pipeline_mode<synchronous>, transform_indices = @transform_9, window_bounds = array<i64: 3, 3, 128, 128>}, {transform_indices = @transform_10, window_bounds = array<i64: 1, 8, 16, 128>}]} {
    %c0 = arith.constant 0 : index
    %c0_0 = arith.constant 0 : index
    %c0_1 = arith.constant 0 : index
    %0 = vector.load %arg2[%c0, %c0_0, %c0_1] : memref<1x192x64xf32, #tpu.memory_space<vmem>>, vector<1x192x64xf32>
    %1 = vector.shape_cast %0 : vector<1x192x64xf32> to vector<192x64xf32>
    %2 = arith.truncf %1 : vector<192x64xf32> to vector<192x64xbf16>
    %c0_2 = arith.constant 0 : index
    %c0_3 = arith.constant 0 : index
    %3 = vector.load %arg3[%c0_2, %c0_3] : memref<64x128xbf16, #tpu.memory_space<vmem>>, vector<64x128xbf16>
    %cst = arith.constant dense<0.000000e+00> : vector<192x128xf32>
    %4 = tpu.matmul %2, %3, %cst {dimension_numbers = #tpu.dot_dimension_numbers<[1], [0], [0], [1], [0, 0, 1, 1], [], []>} : vector<192x64xbf16>, vector<64x128xbf16>, vector<192x128xf32> -> vector<192x128xf32>
    %5 = vector.shape_cast %4 : vector<192x128xf32> to vector<12x16x128xf32>
    %c0_4 = arith.constant 0 : index
    %c0_5 = arith.constant 0 : index
    %c0_6 = arith.constant 0 : index
    %c0_7 = arith.constant 0 : index
    %6 = vector.load %arg4[%c0_4, %c0_5, %c0_6, %c0_7] : memref<1x14x16x32xf32, #tpu.memory_space<vmem>>, vector<1x14x16x32xf32>
    %7 = vector.shape_cast %6 : vector<1x14x16x32xf32> to vector<14x16x32xf32>
    %8 = vector.extract_strided_slice %7 {offsets = [1, 0, 0], sizes = [12, 16, 32], strides = [1, 1, 1]} : vector<14x16x32xf32> to vector<12x16x32xf32>
    %cst_8 = arith.constant 7.500000e-01 : f32
    %9 = vector.broadcast %cst_8 : f32 to vector<12x16x32xf32>
    %10 = arith.mulf %9, %8 : vector<12x16x32xf32>
    %11 = vector.extract_strided_slice %7 {offsets = [0, 0, 0], sizes = [12, 16, 32], strides = [1, 1, 1]} : vector<14x16x32xf32> to vector<12x16x32xf32>
    %cst_9 = arith.constant 2.500000e-01 : f32
    %12 = vector.broadcast %cst_9 : f32 to vector<12x16x32xf32>
    %13 = arith.mulf %12, %11 : vector<12x16x32xf32>
    %14 = arith.addf %10, %13 : vector<12x16x32xf32>
    %cst_10 = arith.constant 7.500000e-01 : f32
    %15 = vector.broadcast %cst_10 : f32 to vector<12x16x32xf32>
    %16 = arith.mulf %15, %8 : vector<12x16x32xf32>
    %17 = vector.extract_strided_slice %7 {offsets = [2, 0, 0], sizes = [12, 16, 32], strides = [1, 1, 1]} : vector<14x16x32xf32> to vector<12x16x32xf32>
    %cst_11 = arith.constant 2.500000e-01 : f32
    %18 = vector.broadcast %cst_11 : f32 to vector<12x16x32xf32>
    %19 = arith.mulf %18, %17 : vector<12x16x32xf32>
    %20 = arith.addf %16, %19 : vector<12x16x32xf32>
    %cst_12 = arith.constant 7.500000e-01 : f32
    %21 = vector.broadcast %cst_12 : f32 to vector<12x16x32xf32>
    %22 = arith.mulf %21, %14 : vector<12x16x32xf32>
    %23 = vector.extract_strided_slice %14 {offsets = [0, 0, 0], sizes = [12, 1, 32], strides = [1, 1, 1]} : vector<12x16x32xf32> to vector<12x1x32xf32>
    %24 = vector.extract_strided_slice %14 {offsets = [0, 0, 0], sizes = [12, 15, 32], strides = [1, 1, 1]} : vector<12x16x32xf32> to vector<12x15x32xf32>
    %25 = tpu.concatenate %23, %24 in 1 : vector<12x1x32xf32>, vector<12x15x32xf32> -> vector<12x16x32xf32>
    %cst_13 = arith.constant 2.500000e-01 : f32
    %26 = vector.broadcast %cst_13 : f32 to vector<12x16x32xf32>
    %27 = arith.mulf %26, %25 : vector<12x16x32xf32>
    %28 = arith.addf %22, %27 : vector<12x16x32xf32>
    %cst_14 = arith.constant 7.500000e-01 : f32
    %29 = vector.broadcast %cst_14 : f32 to vector<12x16x32xf32>
    %30 = arith.mulf %29, %14 : vector<12x16x32xf32>
    %31 = vector.extract_strided_slice %14 {offsets = [0, 1, 0], sizes = [12, 15, 32], strides = [1, 1, 1]} : vector<12x16x32xf32> to vector<12x15x32xf32>
    %32 = vector.extract_strided_slice %14 {offsets = [0, 15, 0], sizes = [12, 1, 32], strides = [1, 1, 1]} : vector<12x16x32xf32> to vector<12x1x32xf32>
    %33 = tpu.concatenate %31, %32 in 1 : vector<12x15x32xf32>, vector<12x1x32xf32> -> vector<12x16x32xf32>
    %cst_15 = arith.constant 2.500000e-01 : f32
    %34 = vector.broadcast %cst_15 : f32 to vector<12x16x32xf32>
    %35 = arith.mulf %34, %33 : vector<12x16x32xf32>
    %36 = arith.addf %30, %35 : vector<12x16x32xf32>
    %cst_16 = arith.constant 7.500000e-01 : f32
    %37 = vector.broadcast %cst_16 : f32 to vector<12x16x32xf32>
    %38 = arith.mulf %37, %20 : vector<12x16x32xf32>
    %39 = vector.extract_strided_slice %20 {offsets = [0, 0, 0], sizes = [12, 1, 32], strides = [1, 1, 1]} : vector<12x16x32xf32> to vector<12x1x32xf32>
    %40 = vector.extract_strided_slice %20 {offsets = [0, 0, 0], sizes = [12, 15, 32], strides = [1, 1, 1]} : vector<12x16x32xf32> to vector<12x15x32xf32>
    %41 = tpu.concatenate %39, %40 in 1 : vector<12x1x32xf32>, vector<12x15x32xf32> -> vector<12x16x32xf32>
    %cst_17 = arith.constant 2.500000e-01 : f32
    %42 = vector.broadcast %cst_17 : f32 to vector<12x16x32xf32>
    %43 = arith.mulf %42, %41 : vector<12x16x32xf32>
    %44 = arith.addf %38, %43 : vector<12x16x32xf32>
    %cst_18 = arith.constant 7.500000e-01 : f32
    %45 = vector.broadcast %cst_18 : f32 to vector<12x16x32xf32>
    %46 = arith.mulf %45, %20 : vector<12x16x32xf32>
    %47 = vector.extract_strided_slice %20 {offsets = [0, 1, 0], sizes = [12, 15, 32], strides = [1, 1, 1]} : vector<12x16x32xf32> to vector<12x15x32xf32>
    %48 = vector.extract_strided_slice %20 {offsets = [0, 15, 0], sizes = [12, 1, 32], strides = [1, 1, 1]} : vector<12x16x32xf32> to vector<12x1x32xf32>
    %49 = tpu.concatenate %47, %48 in 1 : vector<12x15x32xf32>, vector<12x1x32xf32> -> vector<12x16x32xf32>
    %cst_19 = arith.constant 2.500000e-01 : f32
    %50 = vector.broadcast %cst_19 : f32 to vector<12x16x32xf32>
    %51 = arith.mulf %50, %49 : vector<12x16x32xf32>
    %52 = arith.addf %46, %51 : vector<12x16x32xf32>
    %53 = tpu.concatenate %28, %36, %44, %52 in 2 : vector<12x16x32xf32>, vector<12x16x32xf32>, vector<12x16x32xf32>, vector<12x16x32xf32> -> vector<12x16x128xf32>
    %54 = arith.addf %5, %53 : vector<12x16x128xf32>
    %c0_20 = arith.constant 0 : index
    %c0_21 = arith.constant 0 : index
    %c0_22 = arith.constant 0 : index
    %c0_23 = arith.constant 0 : index
    %55 = vector.load %arg5[%c0_20, %c0_21, %c0_22, %c0_23] : memref<1x12x16x128xf32, #tpu.memory_space<vmem>>, vector<1x12x16x128xf32>
    %56 = vector.shape_cast %55 : vector<1x12x16x128xf32> to vector<12x16x128xf32>
    %57 = arith.addf %54, %56 : vector<12x16x128xf32>
    %cst_24 = arith.constant 0.000000e+00 : bf16
    %58 = vector.broadcast %cst_24 : bf16 to vector<12x1x128xbf16>
    %c0_25 = arith.constant 0 : index
    %c0_26 = arith.constant 0 : index
    %c0_27 = arith.constant 0 : index
    %59 = vector.load %arg13[%c0_25, %c0_26, %c0_27] : memref<12x18x128xbf16, #tpu.memory_space<vmem>>, vector<12x1x128xbf16>
    tpu.vector_store %arg13[%c0_25, %c0_26, %c0_27], %58 {strides = array<i32>} : memref<12x18x128xbf16, #tpu.memory_space<vmem>>, vector<12x1x128xbf16>,
    %cst_28 = arith.constant 0.000000e+00 : bf16
    %60 = vector.broadcast %cst_28 : bf16 to vector<12x1x128xbf16>
    %c0_29 = arith.constant 0 : index
    %c17 = arith.constant 17 : index
    %c0_30 = arith.constant 0 : index
    %61 = vector.load %arg13[%c0_29, %c17, %c0_30] : memref<12x18x128xbf16, #tpu.memory_space<vmem>>, vector<12x1x128xbf16>
    tpu.vector_store %arg13[%c0_29, %c17, %c0_30], %60 {strides = array<i32>} : memref<12x18x128xbf16, #tpu.memory_space<vmem>>, vector<12x1x128xbf16>,
    %c0_31 = arith.constant 0 : index
    %c0_32 = arith.constant 0 : index
    %62 = vector.load %arg6[%c0_31, %c0_32] : memref<1x128xf32, #tpu.memory_space<vmem>>, vector<1x128xf32>
    %63 = vector.shape_cast %62 : vector<1x128xf32> to vector<1x1x128xf32>
    %64 = vector.broadcast %63 : vector<1x1x128xf32> to vector<12x16x128xf32>
    %65 = arith.mulf %57, %64 : vector<12x16x128xf32>
    %c0_33 = arith.constant 0 : index
    %c0_34 = arith.constant 0 : index
    %66 = vector.load %arg7[%c0_33, %c0_34] : memref<1x128xf32, #tpu.memory_space<vmem>>, vector<1x128xf32>
    %67 = vector.shape_cast %66 : vector<1x128xf32> to vector<1x1x128xf32>
    %68 = vector.broadcast %67 : vector<1x1x128xf32> to vector<12x16x128xf32>
    %69 = arith.addf %65, %68 : vector<12x16x128xf32>
    %cst_35 = arith.constant 0.000000e+00 : f32
    %70 = vector.broadcast %cst_35 : f32 to vector<12x16x128xf32>
    %71 = arith.cmpf ogt, %69, %70 : vector<12x16x128xf32>
    %cst_36 = arith.constant 0.00999999977 : f32
    %72 = vector.broadcast %cst_36 : f32 to vector<12x16x128xf32>
    %73 = arith.mulf %72, %69 : vector<12x16x128xf32>
    %74 = arith.select %71, %69, %73 : vector<12x16x128xi1>, vector<12x16x128xf32>
    %75 = arith.truncf %74 : vector<12x16x128xf32> to vector<12x16x128xbf16>
    %c0_37 = arith.constant 0 : index
    %c1 = arith.constant 1 : index
    %c0_38 = arith.constant 0 : index
    %76 = vector.load %arg13[%c0_37, %c1, %c0_38] : memref<12x18x128xbf16, #tpu.memory_space<vmem>>, vector<12x16x128xbf16>
    tpu.vector_store %arg13[%c0_37, %c1, %c0_38], %75 {strides = array<i32>} : memref<12x18x128xbf16, #tpu.memory_space<vmem>>, vector<12x16x128xbf16>,
    %c0_i32 = arith.constant 0 : i32
    %77 = arith.cmpi eq, %arg1, %c0_i32 : i32
    %78 = arith.extui %77 : i1 to i32
    %c0_i32_39 = arith.constant 0 : i32
    %79 = arith.cmpi ne, %78, %c0_i32_39 : i32
    scf.if %79 {
      %cst_201 = arith.constant 0.000000e+00 : bf16
      %217 = vector.broadcast %cst_201 : bf16 to vector<2x16x128xbf16>
      %c0_202 = arith.constant 0 : index
      %c1_203 = arith.constant 1 : index
      %c0_204 = arith.constant 0 : index
      %218 = vector.load %arg13[%c0_202, %c1_203, %c0_204] : memref<12x18x128xbf16, #tpu.memory_space<vmem>>, vector<2x16x128xbf16>
      tpu.vector_store %arg13[%c0_202, %c1_203, %c0_204], %217 {strides = array<i32>} : memref<12x18x128xbf16, #tpu.memory_space<vmem>>, vector<2x16x128xbf16>,
    } else {
    }
    %c1_i32 = arith.constant 1 : i32
    %80 = arith.cmpi eq, %arg1, %c1_i32 : i32
    %81 = arith.extui %80 : i1 to i32
    %c0_i32_40 = arith.constant 0 : i32
    %82 = arith.cmpi ne, %81, %c0_i32_40 : i32
    scf.if %82 {
      %cst_201 = arith.constant 0.000000e+00 : bf16
      %217 = vector.broadcast %cst_201 : bf16 to vector<2x16x128xbf16>
      %c10 = arith.constant 10 : index
      %c1_202 = arith.constant 1 : index
      %c0_203 = arith.constant 0 : index
      %218 = vector.load %arg13[%c10, %c1_202, %c0_203] : memref<12x18x128xbf16, #tpu.memory_space<vmem>>, vector<2x16x128xbf16>
      tpu.vector_store %arg13[%c10, %c1_202, %c0_203], %217 {strides = array<i32>} : memref<12x18x128xbf16, #tpu.memory_space<vmem>>, vector<2x16x128xbf16>,
    } else {
    }
    %c0_41 = arith.constant 0 : index
    %c0_42 = arith.constant 0 : index
    %c0_43 = arith.constant 0 : index
    %83 = vector.load %arg13[%c0_41, %c0_42, %c0_43] : memref<12x18x128xbf16, #tpu.memory_space<vmem>>, vector<10x16x128xbf16>
    %84 = vector.shape_cast %83 : vector<10x16x128xbf16> to vector<160x128xbf16>
    %c0_44 = arith.constant 0 : index
    %c0_45 = arith.constant 0 : index
    %c0_46 = arith.constant 0 : index
    %c0_47 = arith.constant 0 : index
    %85 = vector.load %arg8[%c0_44, %c0_45, %c0_46, %c0_47] : memref<3x3x128x128xbf16, #tpu.memory_space<vmem>>, vector<1x1x128x128xbf16>
    %86 = vector.shape_cast %85 : vector<1x1x128x128xbf16> to vector<128x128xbf16>
    %cst_48 = arith.constant dense<0.000000e+00> : vector<160x128xf32>
    %87 = tpu.matmul %84, %86, %cst_48 {dimension_numbers = #tpu.dot_dimension_numbers<[1], [0], [0], [1], [0, 0, 1, 1], [], []>} : vector<160x128xbf16>, vector<128x128xbf16>, vector<160x128xf32> -> vector<160x128xf32>
    %c0_49 = arith.constant 0 : index
    %c1_50 = arith.constant 1 : index
    %c0_51 = arith.constant 0 : index
    %88 = vector.load %arg13[%c0_49, %c1_50, %c0_51] : memref<12x18x128xbf16, #tpu.memory_space<vmem>>, vector<10x16x128xbf16>
    %89 = vector.shape_cast %88 : vector<10x16x128xbf16> to vector<160x128xbf16>
    %c0_52 = arith.constant 0 : index
    %c1_53 = arith.constant 1 : index
    %c0_54 = arith.constant 0 : index
    %c0_55 = arith.constant 0 : index
    %90 = vector.load %arg8[%c0_52, %c1_53, %c0_54, %c0_55] : memref<3x3x128x128xbf16, #tpu.memory_space<vmem>>, vector<1x1x128x128xbf16>
    %91 = vector.shape_cast %90 : vector<1x1x128x128xbf16> to vector<128x128xbf16>
    %cst_56 = arith.constant dense<0.000000e+00> : vector<160x128xf32>
    %92 = tpu.matmul %89, %91, %cst_56 {dimension_numbers = #tpu.dot_dimension_numbers<[1], [0], [0], [1], [0, 0, 1, 1], [], []>} : vector<160x128xbf16>, vector<128x128xbf16>, vector<160x128xf32> -> vector<160x128xf32>
    %93 = arith.addf %87, %92 : vector<160x128xf32>
    %c0_57 = arith.constant 0 : index
    %c2 = arith.constant 2 : index
    %c0_58 = arith.constant 0 : index
    %94 = vector.load %arg13[%c0_57, %c2, %c0_58] : memref<12x18x128xbf16, #tpu.memory_space<vmem>>, vector<10x16x128xbf16>
    %95 = vector.shape_cast %94 : vector<10x16x128xbf16> to vector<160x128xbf16>
    %c0_59 = arith.constant 0 : index
    %c2_60 = arith.constant 2 : index
    %c0_61 = arith.constant 0 : index
    %c0_62 = arith.constant 0 : index
    %96 = vector.load %arg8[%c0_59, %c2_60, %c0_61, %c0_62] : memref<3x3x128x128xbf16, #tpu.memory_space<vmem>>, vector<1x1x128x128xbf16>
    %97 = vector.shape_cast %96 : vector<1x1x128x128xbf16> to vector<128x128xbf16>
    %cst_63 = arith.constant dense<0.000000e+00> : vector<160x128xf32>
    %98 = tpu.matmul %95, %97, %cst_63 {dimension_numbers = #tpu.dot_dimension_numbers<[1], [0], [0], [1], [0, 0, 1, 1], [], []>} : vector<160x128xbf16>, vector<128x128xbf16>, vector<160x128xf32> -> vector<160x128xf32>
    %99 = arith.addf %93, %98 : vector<160x128xf32>
    %c1_64 = arith.constant 1 : index
    %c0_65 = arith.constant 0 : index
    %c0_66 = arith.constant 0 : index
    %100 = vector.load %arg13[%c1_64, %c0_65, %c0_66] : memref<12x18x128xbf16, #tpu.memory_space<vmem>>, vector<10x16x128xbf16>
    %101 = vector.shape_cast %100 : vector<10x16x128xbf16> to vector<160x128xbf16>
    %c1_67 = arith.constant 1 : index
    %c0_68 = arith.constant 0 : index
    %c0_69 = arith.constant 0 : index
    %c0_70 = arith.constant 0 : index
    %102 = vector.load %arg8[%c1_67, %c0_68, %c0_69, %c0_70] : memref<3x3x128x128xbf16, #tpu.memory_space<vmem>>, vector<1x1x128x128xbf16>
    %103 = vector.shape_cast %102 : vector<1x1x128x128xbf16> to vector<128x128xbf16>
    %cst_71 = arith.constant dense<0.000000e+00> : vector<160x128xf32>
    %104 = tpu.matmul %101, %103, %cst_71 {dimension_numbers = #tpu.dot_dimension_numbers<[1], [0], [0], [1], [0, 0, 1, 1], [], []>} : vector<160x128xbf16>, vector<128x128xbf16>, vector<160x128xf32> -> vector<160x128xf32>
    %105 = arith.addf %99, %104 : vector<160x128xf32>
    %c1_72 = arith.constant 1 : index
    %c1_73 = arith.constant 1 : index
    %c0_74 = arith.constant 0 : index
    %106 = vector.load %arg13[%c1_72, %c1_73, %c0_74] : memref<12x18x128xbf16, #tpu.memory_space<vmem>>, vector<10x16x128xbf16>
    %107 = vector.shape_cast %106 : vector<10x16x128xbf16> to vector<160x128xbf16>
    %c1_75 = arith.constant 1 : index
    %c1_76 = arith.constant 1 : index
    %c0_77 = arith.constant 0 : index
    %c0_78 = arith.constant 0 : index
    %108 = vector.load %arg8[%c1_75, %c1_76, %c0_77, %c0_78] : memref<3x3x128x128xbf16, #tpu.memory_space<vmem>>, vector<1x1x128x128xbf16>
    %109 = vector.shape_cast %108 : vector<1x1x128x128xbf16> to vector<128x128xbf16>
    %cst_79 = arith.constant dense<0.000000e+00> : vector<160x128xf32>
    %110 = tpu.matmul %107, %109, %cst_79 {dimension_numbers = #tpu.dot_dimension_numbers<[1], [0], [0], [1], [0, 0, 1, 1], [], []>} : vector<160x128xbf16>, vector<128x128xbf16>, vector<160x128xf32> -> vector<160x128xf32>
    %111 = arith.addf %105, %110 : vector<160x128xf32>
    %c1_80 = arith.constant 1 : index
    %c2_81 = arith.constant 2 : index
    %c0_82 = arith.constant 0 : index
    %112 = vector.load %arg13[%c1_80, %c2_81, %c0_82] : memref<12x18x128xbf16, #tpu.memory_space<vmem>>, vector<10x16x128xbf16>
    %113 = vector.shape_cast %112 : vector<10x16x128xbf16> to vector<160x128xbf16>
    %c1_83 = arith.constant 1 : index
    %c2_84 = arith.constant 2 : index
    %c0_85 = arith.constant 0 : index
    %c0_86 = arith.constant 0 : index
    %114 = vector.load %arg8[%c1_83, %c2_84, %c0_85, %c0_86] : memref<3x3x128x128xbf16, #tpu.memory_space<vmem>>, vector<1x1x128x128xbf16>
    %115 = vector.shape_cast %114 : vector<1x1x128x128xbf16> to vector<128x128xbf16>
    %cst_87 = arith.constant dense<0.000000e+00> : vector<160x128xf32>
    %116 = tpu.matmul %113, %115, %cst_87 {dimension_numbers = #tpu.dot_dimension_numbers<[1], [0], [0], [1], [0, 0, 1, 1], [], []>} : vector<160x128xbf16>, vector<128x128xbf16>, vector<160x128xf32> -> vector<160x128xf32>
    %117 = arith.addf %111, %116 : vector<160x128xf32>
    %c2_88 = arith.constant 2 : index
    %c0_89 = arith.constant 0 : index
    %c0_90 = arith.constant 0 : index
    %118 = vector.load %arg13[%c2_88, %c0_89, %c0_90] : memref<12x18x128xbf16, #tpu.memory_space<vmem>>, vector<10x16x128xbf16>
    %119 = vector.shape_cast %118 : vector<10x16x128xbf16> to vector<160x128xbf16>
    %c2_91 = arith.constant 2 : index
    %c0_92 = arith.constant 0 : index
    %c0_93 = arith.constant 0 : index
    %c0_94 = arith.constant 0 : index
    %120 = vector.load %arg8[%c2_91, %c0_92, %c0_93, %c0_94] : memref<3x3x128x128xbf16, #tpu.memory_space<vmem>>, vector<1x1x128x128xbf16>
    %121 = vector.shape_cast %120 : vector<1x1x128x128xbf16> to vector<128x128xbf16>
    %cst_95 = arith.constant dense<0.000000e+00> : vector<160x128xf32>
    %122 = tpu.matmul %119, %121, %cst_95 {dimension_numbers = #tpu.dot_dimension_numbers<[1], [0], [0], [1], [0, 0, 1, 1], [], []>} : vector<160x128xbf16>, vector<128x128xbf16>, vector<160x128xf32> -> vector<160x128xf32>
    %123 = arith.addf %117, %122 : vector<160x128xf32>
    %c2_96 = arith.constant 2 : index
    %c1_97 = arith.constant 1 : index
    %c0_98 = arith.constant 0 : index
    %124 = vector.load %arg13[%c2_96, %c1_97, %c0_98] : memref<12x18x128xbf16, #tpu.memory_space<vmem>>, vector<10x16x128xbf16>
    %125 = vector.shape_cast %124 : vector<10x16x128xbf16> to vector<160x128xbf16>
    %c2_99 = arith.constant 2 : index
    %c1_100 = arith.constant 1 : index
    %c0_101 = arith.constant 0 : index
    %c0_102 = arith.constant 0 : index
    %126 = vector.load %arg8[%c2_99, %c1_100, %c0_101, %c0_102] : memref<3x3x128x128xbf16, #tpu.memory_space<vmem>>, vector<1x1x128x128xbf16>
    %127 = vector.shape_cast %126 : vector<1x1x128x128xbf16> to vector<128x128xbf16>
    %cst_103 = arith.constant dense<0.000000e+00> : vector<160x128xf32>
    %128 = tpu.matmul %125, %127, %cst_103 {dimension_numbers = #tpu.dot_dimension_numbers<[1], [0], [0], [1], [0, 0, 1, 1], [], []>} : vector<160x128xbf16>, vector<128x128xbf16>, vector<160x128xf32> -> vector<160x128xf32>
    %129 = arith.addf %123, %128 : vector<160x128xf32>
    %c2_104 = arith.constant 2 : index
    %c2_105 = arith.constant 2 : index
    %c0_106 = arith.constant 0 : index
    %130 = vector.load %arg13[%c2_104, %c2_105, %c0_106] : memref<12x18x128xbf16, #tpu.memory_space<vmem>>, vector<10x16x128xbf16>
    %131 = vector.shape_cast %130 : vector<10x16x128xbf16> to vector<160x128xbf16>
    %c2_107 = arith.constant 2 : index
    %c2_108 = arith.constant 2 : index
    %c0_109 = arith.constant 0 : index
    %c0_110 = arith.constant 0 : index
    %132 = vector.load %arg8[%c2_107, %c2_108, %c0_109, %c0_110] : memref<3x3x128x128xbf16, #tpu.memory_space<vmem>>, vector<1x1x128x128xbf16>
    %133 = vector.shape_cast %132 : vector<1x1x128x128xbf16> to vector<128x128xbf16>
    %cst_111 = arith.constant dense<0.000000e+00> : vector<160x128xf32>
    %134 = tpu.matmul %131, %133, %cst_111 {dimension_numbers = #tpu.dot_dimension_numbers<[1], [0], [0], [1], [0, 0, 1, 1], [], []>} : vector<160x128xbf16>, vector<128x128xbf16>, vector<160x128xf32> -> vector<160x128xf32>
    %135 = arith.addf %129, %134 : vector<160x128xf32>
    %136 = vector.shape_cast %135 : vector<160x128xf32> to vector<10x16x128xf32>
    %c0_112 = arith.constant 0 : index
    %c0_113 = arith.constant 0 : index
    %137 = vector.load %arg9[%c0_112, %c0_113] : memref<1x128xf32, #tpu.memory_space<vmem>>, vector<1x128xf32>
    %138 = vector.shape_cast %137 : vector<1x128xf32> to vector<1x1x128xf32>
    %139 = vector.broadcast %138 : vector<1x1x128xf32> to vector<10x16x128xf32>
    %140 = arith.mulf %136, %139 : vector<10x16x128xf32>
    %c0_114 = arith.constant 0 : index
    %c0_115 = arith.constant 0 : index
    %141 = vector.load %arg10[%c0_114, %c0_115] : memref<1x128xf32, #tpu.memory_space<vmem>>, vector<1x128xf32>
    %142 = vector.shape_cast %141 : vector<1x128xf32> to vector<1x1x128xf32>
    %143 = vector.broadcast %142 : vector<1x1x128xf32> to vector<10x16x128xf32>
    %144 = arith.addf %140, %143 : vector<10x16x128xf32>
    %cst_116 = arith.constant 0.000000e+00 : f32
    %145 = vector.broadcast %cst_116 : f32 to vector<10x16x128xf32>
    %146 = arith.cmpf ogt, %144, %145 : vector<10x16x128xf32>
    %cst_117 = arith.constant 0.00999999977 : f32
    %147 = vector.broadcast %cst_117 : f32 to vector<10x16x128xf32>
    %148 = arith.mulf %147, %144 : vector<10x16x128xf32>
    %149 = arith.select %146, %144, %148 : vector<10x16x128xi1>, vector<10x16x128xf32>
    %150 = arith.truncf %149 : vector<10x16x128xf32> to vector<10x16x128xbf16>
    %c0_118 = arith.constant 0 : index
    %c1_119 = arith.constant 1 : index
    %c0_120 = arith.constant 0 : index
    %151 = vector.load %arg13[%c0_118, %c1_119, %c0_120] : memref<12x18x128xbf16, #tpu.memory_space<vmem>>, vector<10x16x128xbf16>
    tpu.vector_store %arg13[%c0_118, %c1_119, %c0_120], %150 {strides = array<i32>} : memref<12x18x128xbf16, #tpu.memory_space<vmem>>, vector<10x16x128xbf16>,
    %c0_i32_121 = arith.constant 0 : i32
    %152 = arith.cmpi eq, %arg1, %c0_i32_121 : i32
    %153 = arith.extui %152 : i1 to i32
    %c0_i32_122 = arith.constant 0 : i32
    %154 = arith.cmpi ne, %153, %c0_i32_122 : i32
    scf.if %154 {
      %cst_201 = arith.constant 0.000000e+00 : bf16
      %217 = vector.broadcast %cst_201 : bf16 to vector<1x16x128xbf16>
      %c0_202 = arith.constant 0 : index
      %c1_203 = arith.constant 1 : index
      %c0_204 = arith.constant 0 : index
      %218 = vector.load %arg13[%c0_202, %c1_203, %c0_204] : memref<12x18x128xbf16, #tpu.memory_space<vmem>>, vector<1x16x128xbf16>
      tpu.vector_store %arg13[%c0_202, %c1_203, %c0_204], %217 {strides = array<i32>} : memref<12x18x128xbf16, #tpu.memory_space<vmem>>, vector<1x16x128xbf16>,
    } else {
    }
    %c1_i32_123 = arith.constant 1 : i32
    %155 = arith.cmpi eq, %arg1, %c1_i32_123 : i32
    %156 = arith.extui %155 : i1 to i32
    %c0_i32_124 = arith.constant 0 : i32
    %157 = arith.cmpi ne, %156, %c0_i32_124 : i32
    scf.if %157 {
      %cst_201 = arith.constant 0.000000e+00 : bf16
      %217 = vector.broadcast %cst_201 : bf16 to vector<1x16x128xbf16>
      %c9 = arith.constant 9 : index
      %c1_202 = arith.constant 1 : index
      %c0_203 = arith.constant 0 : index
      %218 = vector.load %arg13[%c9, %c1_202, %c0_203] : memref<12x18x128xbf16, #tpu.memory_space<vmem>>, vector<1x16x128xbf16>
      tpu.vector_store %arg13[%c9, %c1_202, %c0_203], %217 {strides = array<i32>} : memref<12x18x128xbf16, #tpu.memory_space<vmem>>, vector<1x16x128xbf16>,
    } else {
    }
    %c0_125 = arith.constant 0 : index
    %c0_126 = arith.constant 0 : index
    %c0_127 = arith.constant 0 : index
    %158 = vector.load %arg13[%c0_125, %c0_126, %c0_127] : memref<12x18x128xbf16, #tpu.memory_space<vmem>>, vector<8x16x128xbf16>
    %159 = vector.shape_cast %158 : vector<8x16x128xbf16> to vector<128x128xbf16>
    %c0_128 = arith.constant 0 : index
    %c0_129 = arith.constant 0 : index
    %c0_130 = arith.constant 0 : index
    %c0_131 = arith.constant 0 : index
    %160 = vector.load %arg11[%c0_128, %c0_129, %c0_130, %c0_131] : memref<3x3x128x128xbf16, #tpu.memory_space<vmem>>, vector<1x1x128x128xbf16>
    %161 = vector.shape_cast %160 : vector<1x1x128x128xbf16> to vector<128x128xbf16>
    %cst_132 = arith.constant dense<0.000000e+00> : vector<128x128xf32>
    %162 = tpu.matmul %159, %161, %cst_132 {dimension_numbers = #tpu.dot_dimension_numbers<[1], [0], [0], [1], [0, 0, 1, 1], [], []>} : vector<128x128xbf16>, vector<128x128xbf16>, vector<128x128xf32> -> vector<128x128xf32>
    %c0_133 = arith.constant 0 : index
    %c1_134 = arith.constant 1 : index
    %c0_135 = arith.constant 0 : index
    %163 = vector.load %arg13[%c0_133, %c1_134, %c0_135] : memref<12x18x128xbf16, #tpu.memory_space<vmem>>, vector<8x16x128xbf16>
    %164 = vector.shape_cast %163 : vector<8x16x128xbf16> to vector<128x128xbf16>
    %c0_136 = arith.constant 0 : index
    %c1_137 = arith.constant 1 : index
    %c0_138 = arith.constant 0 : index
    %c0_139 = arith.constant 0 : index
    %165 = vector.load %arg11[%c0_136, %c1_137, %c0_138, %c0_139] : memref<3x3x128x128xbf16, #tpu.memory_space<vmem>>, vector<1x1x128x128xbf16>
    %166 = vector.shape_cast %165 : vector<1x1x128x128xbf16> to vector<128x128xbf16>
    %cst_140 = arith.constant dense<0.000000e+00> : vector<128x128xf32>
    %167 = tpu.matmul %164, %166, %cst_140 {dimension_numbers = #tpu.dot_dimension_numbers<[1], [0], [0], [1], [0, 0, 1, 1], [], []>} : vector<128x128xbf16>, vector<128x128xbf16>, vector<128x128xf32> -> vector<128x128xf32>
    %168 = arith.addf %162, %167 : vector<128x128xf32>
    %c0_141 = arith.constant 0 : index
    %c2_142 = arith.constant 2 : index
    %c0_143 = arith.constant 0 : index
    %169 = vector.load %arg13[%c0_141, %c2_142, %c0_143] : memref<12x18x128xbf16, #tpu.memory_space<vmem>>, vector<8x16x128xbf16>
    %170 = vector.shape_cast %169 : vector<8x16x128xbf16> to vector<128x128xbf16>
    %c0_144 = arith.constant 0 : index
    %c2_145 = arith.constant 2 : index
    %c0_146 = arith.constant 0 : index
    %c0_147 = arith.constant 0 : index
    %171 = vector.load %arg11[%c0_144, %c2_145, %c0_146, %c0_147] : memref<3x3x128x128xbf16, #tpu.memory_space<vmem>>, vector<1x1x128x128xbf16>
    %172 = vector.shape_cast %171 : vector<1x1x128x128xbf16> to vector<128x128xbf16>
    %cst_148 = arith.constant dense<0.000000e+00> : vector<128x128xf32>
    %173 = tpu.matmul %170, %172, %cst_148 {dimension_numbers = #tpu.dot_dimension_numbers<[1], [0], [0], [1], [0, 0, 1, 1], [], []>} : vector<128x128xbf16>, vector<128x128xbf16>, vector<128x128xf32> -> vector<128x128xf32>
    %174 = arith.addf %168, %173 : vector<128x128xf32>
    %c1_149 = arith.constant 1 : index
    %c0_150 = arith.constant 0 : index
    %c0_151 = arith.constant 0 : index
    %175 = vector.load %arg13[%c1_149, %c0_150, %c0_151] : memref<12x18x128xbf16, #tpu.memory_space<vmem>>, vector<8x16x128xbf16>
    %176 = vector.shape_cast %175 : vector<8x16x128xbf16> to vector<128x128xbf16>
    %c1_152 = arith.constant 1 : index
    %c0_153 = arith.constant 0 : index
    %c0_154 = arith.constant 0 : index
    %c0_155 = arith.constant 0 : index
    %177 = vector.load %arg11[%c1_152, %c0_153, %c0_154, %c0_155] : memref<3x3x128x128xbf16, #tpu.memory_space<vmem>>, vector<1x1x128x128xbf16>
    %178 = vector.shape_cast %177 : vector<1x1x128x128xbf16> to vector<128x128xbf16>
    %cst_156 = arith.constant dense<0.000000e+00> : vector<128x128xf32>
    %179 = tpu.matmul %176, %178, %cst_156 {dimension_numbers = #tpu.dot_dimension_numbers<[1], [0], [0], [1], [0, 0, 1, 1], [], []>} : vector<128x128xbf16>, vector<128x128xbf16>, vector<128x128xf32> -> vector<128x128xf32>
    %180 = arith.addf %174, %179 : vector<128x128xf32>
    %c1_157 = arith.constant 1 : index
    %c1_158 = arith.constant 1 : index
    %c0_159 = arith.constant 0 : index
    %181 = vector.load %arg13[%c1_157, %c1_158, %c0_159] : memref<12x18x128xbf16, #tpu.memory_space<vmem>>, vector<8x16x128xbf16>
    %182 = vector.shape_cast %181 : vector<8x16x128xbf16> to vector<128x128xbf16>
    %c1_160 = arith.constant 1 : index
    %c1_161 = arith.constant 1 : index
    %c0_162 = arith.constant 0 : index
    %c0_163 = arith.constant 0 : index
    %183 = vector.load %arg11[%c1_160, %c1_161, %c0_162, %c0_163] : memref<3x3x128x128xbf16, #tpu.memory_space<vmem>>, vector<1x1x128x128xbf16>
    %184 = vector.shape_cast %183 : vector<1x1x128x128xbf16> to vector<128x128xbf16>
    %cst_164 = arith.constant dense<0.000000e+00> : vector<128x128xf32>
    %185 = tpu.matmul %182, %184, %cst_164 {dimension_numbers = #tpu.dot_dimension_numbers<[1], [0], [0], [1], [0, 0, 1, 1], [], []>} : vector<128x128xbf16>, vector<128x128xbf16>, vector<128x128xf32> -> vector<128x128xf32>
    %186 = arith.addf %180, %185 : vector<128x128xf32>
    %c1_165 = arith.constant 1 : index
    %c2_166 = arith.constant 2 : index
    %c0_167 = arith.constant 0 : index
    %187 = vector.load %arg13[%c1_165, %c2_166, %c0_167] : memref<12x18x128xbf16, #tpu.memory_space<vmem>>, vector<8x16x128xbf16>
    %188 = vector.shape_cast %187 : vector<8x16x128xbf16> to vector<128x128xbf16>
    %c1_168 = arith.constant 1 : index
    %c2_169 = arith.constant 2 : index
    %c0_170 = arith.constant 0 : index
    %c0_171 = arith.constant 0 : index
    %189 = vector.load %arg11[%c1_168, %c2_169, %c0_170, %c0_171] : memref<3x3x128x128xbf16, #tpu.memory_space<vmem>>, vector<1x1x128x128xbf16>
    %190 = vector.shape_cast %189 : vector<1x1x128x128xbf16> to vector<128x128xbf16>
    %cst_172 = arith.constant dense<0.000000e+00> : vector<128x128xf32>
    %191 = tpu.matmul %188, %190, %cst_172 {dimension_numbers = #tpu.dot_dimension_numbers<[1], [0], [0], [1], [0, 0, 1, 1], [], []>} : vector<128x128xbf16>, vector<128x128xbf16>, vector<128x128xf32> -> vector<128x128xf32>
    %192 = arith.addf %186, %191 : vector<128x128xf32>
    %c2_173 = arith.constant 2 : index
    %c0_174 = arith.constant 0 : index
    %c0_175 = arith.constant 0 : index
    %193 = vector.load %arg13[%c2_173, %c0_174, %c0_175] : memref<12x18x128xbf16, #tpu.memory_space<vmem>>, vector<8x16x128xbf16>
    %194 = vector.shape_cast %193 : vector<8x16x128xbf16> to vector<128x128xbf16>
    %c2_176 = arith.constant 2 : index
    %c0_177 = arith.constant 0 : index
    %c0_178 = arith.constant 0 : index
    %c0_179 = arith.constant 0 : index
    %195 = vector.load %arg11[%c2_176, %c0_177, %c0_178, %c0_179] : memref<3x3x128x128xbf16, #tpu.memory_space<vmem>>, vector<1x1x128x128xbf16>
    %196 = vector.shape_cast %195 : vector<1x1x128x128xbf16> to vector<128x128xbf16>
    %cst_180 = arith.constant dense<0.000000e+00> : vector<128x128xf32>
    %197 = tpu.matmul %194, %196, %cst_180 {dimension_numbers = #tpu.dot_dimension_numbers<[1], [0], [0], [1], [0, 0, 1, 1], [], []>} : vector<128x128xbf16>, vector<128x128xbf16>, vector<128x128xf32> -> vector<128x128xf32>
    %198 = arith.addf %192, %197 : vector<128x128xf32>
    %c2_181 = arith.constant 2 : index
    %c1_182 = arith.constant 1 : index
    %c0_183 = arith.constant 0 : index
    %199 = vector.load %arg13[%c2_181, %c1_182, %c0_183] : memref<12x18x128xbf16, #tpu.memory_space<vmem>>, vector<8x16x128xbf16>
    %200 = vector.shape_cast %199 : vector<8x16x128xbf16> to vector<128x128xbf16>
    %c2_184 = arith.constant 2 : index
    %c1_185 = arith.constant 1 : index
    %c0_186 = arith.constant 0 : index
    %c0_187 = arith.constant 0 : index
    %201 = vector.load %arg11[%c2_184, %c1_185, %c0_186, %c0_187] : memref<3x3x128x128xbf16, #tpu.memory_space<vmem>>, vector<1x1x128x128xbf16>
    %202 = vector.shape_cast %201 : vector<1x1x128x128xbf16> to vector<128x128xbf16>
    %cst_188 = arith.constant dense<0.000000e+00> : vector<128x128xf32>
    %203 = tpu.matmul %200, %202, %cst_188 {dimension_numbers = #tpu.dot_dimension_numbers<[1], [0], [0], [1], [0, 0, 1, 1], [], []>} : vector<128x128xbf16>, vector<128x128xbf16>, vector<128x128xf32> -> vector<128x128xf32>
    %204 = arith.addf %198, %203 : vector<128x128xf32>
    %c2_189 = arith.constant 2 : index
    %c2_190 = arith.constant 2 : index
    %c0_191 = arith.constant 0 : index
    %205 = vector.load %arg13[%c2_189, %c2_190, %c0_191] : memref<12x18x128xbf16, #tpu.memory_space<vmem>>, vector<8x16x128xbf16>
    %206 = vector.shape_cast %205 : vector<8x16x128xbf16> to vector<128x128xbf16>
    %c2_192 = arith.constant 2 : index
    %c2_193 = arith.constant 2 : index
    %c0_194 = arith.constant 0 : index
    %c0_195 = arith.constant 0 : index
    %207 = vector.load %arg11[%c2_192, %c2_193, %c0_194, %c0_195] : memref<3x3x128x128xbf16, #tpu.memory_space<vmem>>, vector<1x1x128x128xbf16>
    %208 = vector.shape_cast %207 : vector<1x1x128x128xbf16> to vector<128x128xbf16>
    %cst_196 = arith.constant dense<0.000000e+00> : vector<128x128xf32>
    %209 = tpu.matmul %206, %208, %cst_196 {dimension_numbers = #tpu.dot_dimension_numbers<[1], [0], [0], [1], [0, 0, 1, 1], [], []>} : vector<128x128xbf16>, vector<128x128xbf16>, vector<128x128xf32> -> vector<128x128xf32>
    %210 = arith.addf %204, %209 : vector<128x128xf32>
    %211 = vector.shape_cast %210 : vector<128x128xf32> to vector<8x16x128xf32>
    %212 = vector.extract_strided_slice %57 {offsets = [2, 0, 0], sizes = [8, 16, 128], strides = [1, 1, 1]} : vector<12x16x128xf32> to vector<8x16x128xf32>
    %213 = arith.addf %212, %211 : vector<8x16x128xf32>
    %c0_197 = arith.constant 0 : index
    %c0_198 = arith.constant 0 : index
    %c0_199 = arith.constant 0 : index
    %c0_200 = arith.constant 0 : index
    %214 = vector.load %arg12[%c0_197, %c0_198, %c0_199, %c0_200] : memref<1x8x16x128xf32, #tpu.memory_space<vmem>>, vector<1x8x16x128xf32>
    %215 = vector.shape_cast %214 : vector<1x8x16x128xf32> to vector<8x16x128xf32>
    %216 = vector.shape_cast %213 : vector<8x16x128xf32> to vector<1x8x16x128xf32>
    tpu.vector_store %arg12[%c0_197, %c0_198, %c0_199, %c0_200], %216 {strides = array<i32>} : memref<1x8x16x128xf32, #tpu.memory_space<vmem>>, vector<1x8x16x128xf32>,
    return
  }
  func.func @transform_0(%arg0: i32, %arg1: i32) -> (i32, i32, i32) {
    %c2_i32 = arith.constant 2 : i32
    %0 = arith.muli %arg0, %c2_i32 : i32
    %1 = arith.addi %0, %arg1 : i32
    %c0_i32 = arith.constant 0 : i32
    %c0_i32_0 = arith.constant 0 : i32
    %c0_i32_1 = arith.constant 0 : i32
    return %1, %c0_i32, %c0_i32_0 : i32, i32, i32
  }
  func.func @transform_1(%arg0: i32, %arg1: i32) -> (i32, i32) {
    %c0_i32 = arith.constant 0 : i32
    %c0_i32_0 = arith.constant 0 : i32
    %c0_i32_1 = arith.constant 0 : i32
    return %c0_i32, %c0_i32_0 : i32, i32
  }
  func.func @transform_2(%arg0: i32, %arg1: i32) -> (i32, i32, i32, i32) {
    %c2_i32 = arith.constant 2 : i32
    %0 = arith.muli %arg0, %c2_i32 : i32
    %1 = arith.addi %0, %arg1 : i32
    %c0_i32 = arith.constant 0 : i32
    %c0_i32_0 = arith.constant 0 : i32
    %c0_i32_1 = arith.constant 0 : i32
    %c0_i32_2 = arith.constant 0 : i32
    return %1, %c0_i32, %c0_i32_0, %c0_i32_1 : i32, i32, i32, i32
  }
  func.func @transform_3(%arg0: i32, %arg1: i32) -> (i32, i32, i32, i32) {
    %c2_i32 = arith.constant 2 : i32
    %0 = arith.muli %arg0, %c2_i32 : i32
    %1 = arith.addi %0, %arg1 : i32
    %c0_i32 = arith.constant 0 : i32
    %c0_i32_0 = arith.constant 0 : i32
    %c0_i32_1 = arith.constant 0 : i32
    %c0_i32_2 = arith.constant 0 : i32
    return %1, %c0_i32, %c0_i32_0, %c0_i32_1 : i32, i32, i32, i32
  }
  func.func @transform_4(%arg0: i32, %arg1: i32) -> (i32, i32) {
    %c0_i32 = arith.constant 0 : i32
    %c0_i32_0 = arith.constant 0 : i32
    %c0_i32_1 = arith.constant 0 : i32
    return %c0_i32, %c0_i32_0 : i32, i32
  }
  func.func @transform_5(%arg0: i32, %arg1: i32) -> (i32, i32) {
    %c0_i32 = arith.constant 0 : i32
    %c0_i32_0 = arith.constant 0 : i32
    %c0_i32_1 = arith.constant 0 : i32
    return %c0_i32, %c0_i32_0 : i32, i32
  }
  func.func @transform_6(%arg0: i32, %arg1: i32) -> (i32, i32, i32, i32) {
    %c0_i32 = arith.constant 0 : i32
    %c0_i32_0 = arith.constant 0 : i32
    %c0_i32_1 = arith.constant 0 : i32
    %c0_i32_2 = arith.constant 0 : i32
    %c0_i32_3 = arith.constant 0 : i32
    return %c0_i32, %c0_i32_0, %c0_i32_1, %c0_i32_2 : i32, i32, i32, i32
  }
  func.func @transform_7(%arg0: i32, %arg1: i32) -> (i32, i32) {
    %c0_i32 = arith.constant 0 : i32
    %c0_i32_0 = arith.constant 0 : i32
    %c0_i32_1 = arith.constant 0 : i32
    return %c0_i32, %c0_i32_0 : i32, i32
  }
  func.func @transform_8(%arg0: i32, %arg1: i32) -> (i32, i32) {
    %c0_i32 = arith.constant 0 : i32
    %c0_i32_0 = arith.constant 0 : i32
    %c0_i32_1 = arith.constant 0 : i32
    return %c0_i32, %c0_i32_0 : i32, i32
  }
  func.func @transform_9(%arg0: i32, %arg1: i32) -> (i32, i32, i32, i32) {
    %c0_i32 = arith.constant 0 : i32
    %c0_i32_0 = arith.constant 0 : i32
    %c0_i32_1 = arith.constant 0 : i32
    %c0_i32_2 = arith.constant 0 : i32
    %c0_i32_3 = arith.constant 0 : i32
    return %c0_i32, %c0_i32_0, %c0_i32_1, %c0_i32_2 : i32, i32, i32, i32
  }
  func.func @transform_10(%arg0: i32, %arg1: i32) -> (i32, i32, i32, i32) {
    %c0_i32 = arith.constant 0 : i32
    %c0_i32_0 = arith.constant 0 : i32
    %c0_i32_1 = arith.constant 0 : i32
    return %arg0, %arg1, %c0_i32, %c0_i32_0 : i32, i32, i32, i32
  }
}

</mosaic_0001>

<bundles_post_ra>
// kernel: up_forward.1
= control target key start
LH: loop header
LB: loop body
LE: loop exit
PB: predicated region body
PF: predicated region fallthrough
CT: control target
= control target key end

     0   :  { %s9739_s13 = smov 0   ;;  %s9741_s14 = smov 0   ;;  %s13258_s0 = inlined_call_operand.vmem [shape: f32[4,192,64], index: 0, kind: input, shape index: {}]   ;;  %s13259_s1 = inlined_call_operand.vmem [shape: bf16[64,128], index: 1, kind: input, shape index: {}]   ;;  %s13260_s2 = inlined_call_operand.vmem [shape: f32[4,14,16,32], index: 2, kind: input, shape index: {}]   ;;  %s13261_s3 = inlined_call_operand.vmem [shape: f32[4,12,16,128], index: 3, kind: input, shape index: {}]   ;;  %s13262_s4 = inlined_call_operand.vmem [shape: f32[1,128], index: 4, kind: input, shape index: {}]   ;;  %s13263_s5 = inlined_call_operand.vmem [shape: f32[1,128], index: 5, kind: input, shape index: {}]   ;;  %s13264_s6 = inlined_call_operand.vmem [shape: bf16[3,3,128,128], index: 6, kind: input, shape index: {}]   ;;  %s13265_s7 = inlined_call_operand.vmem [shape: f32[1,128], index: 7, kind: input, shape index: {}]   ;;  %s13266_s8 = inlined_call_operand.vmem [shape: f32[1,128], index: 8, kind: input, shape index: {}]   ;;  %s13267_s9 = inlined_call_operand.vmem [shape: bf16[3,3,128,128], index: 9, kind: input, shape index: {}]   ;;  %s13268_s10 = inlined_call_operand.vmem [shape: f32[2,16,16,128], index: 10, kind: output, shape index: {}]  }
   0x1   :  { %s9743_s15 = smov 0   ;;  %s9745_s16 = smov 0  }
   0x2   :  { %s9747_s17 = smov 0  }
   0x3 LB: > { %s29_s18 = sadd.s32 1, %s9667_s15  ;;  %s32_s19 = sadd.s32 1, %s9671_s16  ;;  %s9675_s17 = sphi %s9747_s17, %s20_s17   ;;  %s9671_s16 = sphi %s9745_s16, %s13531_s16   ;;  %s9667_s15 = sphi %s9743_s15, %s13530_s15   ;;  %s9663_s14 = sphi %s9741_s14, %s13529_s14   ;;  %s9659_s13 = sphi %s9739_s13, %s13528_s13  }
   0x4   : > { %p30_p0 = scmp.ge.s32.totalorder %s29_s18, 2  ;;  %p8212_p1 = scmp.ge.s32.totalorder %s9675_s17, 1 }
   0x5   : > { %p370_p2 = scmp.lt.s32.totalorder %s9675_s17, 5 }
   0x6   : > { %s13533_s18 = smov (%p30_p0, %s29_s18), 0  ;;  %s13535_s19 = smov (!%p30_p0, %s32_s19), %s9671_s16 }
   0x7   : > { %p371_p3 = pnand %p8212_p1, %p370_p2  ;;  %p34_p4 = scmp.ge.s32.totalorder %s13535_s19, 2 }
   0x9   : > { %s13537_s19 = smov (%p34_p4, %s13535_s19), 0  ;;  %374 = sbr.rel (%p371_p3) target bundleno = 1652 (0x674), region = 60 }
   0xa   : > { %13351 = sst [smem:[#allocation3_spill]] %s13537_s19 }
   0xe   : > { %s8219_s20 = sshll.u32 %s9659_s13, 3  ;;  %p457_p5 = scmp.lt.s32.totalorder %s9663_s14, 1  ;;  %v9362_v0 = vld [vmem:[%s13259_s1 + $0x18] sm:$0xff]  ;;  %v9361_v1 = vld [vmem:[%s13259_s1 + $0x10] sm:$0xff]  ;;  %v9360_v2 = vld [vmem:[%s13259_s1 + $0x8] sm:$0xff]  ;;  %vm536_vm0 = vcmask 523264  }
   0xf   : > { %p459_p6 = scmp.lt.s32.totalorder %s8219_s20, 15  ;;  %s8213_s23 = sshll.u32 %s9663_s14, 1  ;;  %577 = vmatpush.bf16.msra.mxu0 %v9362_v0  ;;  %9561 = vmatpush.bf16.msra.mxu2 %v9362_v0  ;;  %v9359_v3 = vld [vmem:[%s13259_s1] sm:$0xff]  ;;  %vm818_vm1 = vcmask 1040384   ;;  %vm939_vm2 = vcmask 1046528   ;;  %vm1636_vm3 = vcmask 261120  }
  0x10   : > { %s13539_s14 = smov (!%p457_p5, %s9663_s14), 1  ;;  %s430_s27 = sadd.s32 %s9659_s13, %s8213_s23  ;;  %vm1783_vm4 = vsmask.f32 256  ;;  %vm1821_vm6 = vsmask.f32 7938  ;;  %vm1685_vm8 = vcmask 785408  }
  0x11   : > { %s13541_s20 = smov (!%p459_p6, %s8219_s20), 15  ;;  %s8221_s26 = sshll.u32 %s13539_s14, 5  ;;  %vm10800_vm5 = vmand %vm818_vm1, %vm1783_vm4  ;;  %vm2253_vm10 = vcmask 1043456  }
  0x12   : > { %s8220_s28 = sshll.u32 %s13541_s20, 1  ;;  %p431_p7 = scmp.lt.s32.totalorder %s430_s27, 3  ;;  %vm10888_vm7 = vmand %vm818_vm1, %vm1821_vm6 }
  0x13   : > { %s463_s29 = sadd.s32 %s8221_s26, %s8220_s28  ;;  %578 = vmatpush.bf16.msra.mxu0 %v9361_v1  ;;  %9562 = vmatpush.bf16.msra.mxu2 %v9361_v1  ;;  %s9678_s21 = smov 64   ;;  %vm11033_vm11 = vmand %vm2253_vm10, %vm1821_vm6 }
  0x14   : > { %s8222_s12 = sshll.u32 %s463_s29, 3  ;;  %s13543_s27 = smov (!%p431_p7, %s430_s27), 3 }
  0x15   : > { %s9785_s19 = scalar_lea.vmem %s13268_s10, %s8222_s12  ;;  %s9581_s23 = smul.u32 192, %s13543_s27 }
  0x16   : > { %s9582_s24 = smul.u32 224, %s13543_s27  ;;  %s9677_s12 = smov 32  }
  0x17   : > { %579 = vmatpush.bf16.msra.mxu0 %v9360_v2  ;;  %9563 = vmatpush.bf16.msra.mxu2 %v9360_v2  ;;  %s9799_s28 = scalar_lea.vmem %s13258_s0, %s9581_s23  ;;  %s9679_s22 = smov 96  }
  0x18   : > { %s9804_s11 = scalar_lea.vmem %s13260_s2, %s9582_s24  ;;  %v468_v4 = vld [vmem:[%s9799_s28] sm:$0xff]  ;;  %v469_v5 = vld [vmem:[%s9799_s28 + $0x8] sm:$0xff]  ;;  %v470_v1 = vld [vmem:[%s9799_s28 + $0x10] sm:$0xff]  ;;  %s10934_s24 = scalar_lea.vmem %s13261_s3, %s9581_s23 }
  0x19   : > { %v492_v6 = vpack.c.bf16 %v469_v5, %v468_v4  ;;  %v646_v7 = vld [vmem:[%s9804_s11 + $0x20] sm:$0xff]  ;;  %v647_v8 = vld [vmem:[%s9804_s11 + $0x28] sm:$0xff]  ;;  %v648_v9 = vld [vmem:[%s9804_s11 + $0x30] sm:$0xff]  ;;  %p8251_p8 = scmp.ne.s32.totalorder %s9659_s13, 0 }
  0x1a   : > { %v9812_v10 = vld [vmem:[%s9804_s11 + $0x38] sm:$0xff]  ;;  %v9814_v11 = vmul.f32 0.75, %v648_v9  ;;  %v9816_v12 = vmul.f32 0.25, %v646_v7  ;;  %v9818_v13 = vmul.f32 0.25, %v647_v8  ;;  %v644_v15 = vld [vmem:[%s9804_s11 + $0x10] sm:$0xff]  ;;  %v9826_v17 = vmul.f32 0.75, %v646_v7 }
  0x1b   : > { %580 = vmatpush.bf16.msra.mxu0 %v9359_v3  ;;  %9564 = vmatpush.bf16.msra.mxu2 %v9359_v3  ;;  %v9822_v14 = vmul.f32 0.75, %v9812_v10  ;;  %v645_v16 = vld [vmem:[%s9804_s11 + $0x18] sm:$0xff]  ;;  %v9828_v18 = vmul.f32 0.75, %v647_v8  ;;  %v696_v20 = vmul.f32 0.25, %v644_v15  ;;  %v642_v22 = vld [vmem:[%s9804_s11] sm:$0xff]  ;;  %v643_v23 = vld [vmem:[%s9804_s11 + $0x8] sm:$0xff] }
  0x1c   : > { %v9832_v19 = vadd.f32 %v9816_v12, %v9814_v11  ;;  %v697_v21 = vmul.f32 0.25, %v645_v16  ;;  %v9836_v24 = vmul.f32 0.75, %v644_v15  ;;  %v9842_v26 = vmul.f32 0.75, %v645_v16  ;;  %v650_v52 = vld [vmem:[%s9804_s11 + $0x40] sm:$0xff]  ;;  %v471_v2 = vld [vmem:[%s9799_s28 + $0x18] sm:$0xff]  ;;  %v652_v3 = vld [vmem:[%s9804_s11 + $0x50] sm:$0xff] }
  0x1d   : > { %v9840_v25 = vadd.f32 %v9818_v13, %v9822_v14  ;;  %v694_v27 = vmul.f32 0.25, %v642_v22  ;;  %v9844_v28 = vmul.f32 0.25, %v648_v9  ;;  %v9849_v31 = vadd.f32 %v696_v20, %v9826_v17  ;;  %v651_v8 = vld [vmem:[%s9804_s11 + $0x48] sm:$0xff]  ;;  %v653_v9 = vld [vmem:[%s9804_s11 + $0x58] sm:$0xff] }
  0x1e   : > { %8239 = vmatmul.msk.bf16.vlgmr.msra.gmra.mxu0 %vm536_vm0, %v492_v6  ;;  %13352 = vst [vmem:[#allocation4_spill] sm:$0xff] %v9832_v19  ;;  %v13271_v29 = vrot.slane %v9832_v19, 7  ;;  %v946_v30 = vrot.slane %v9832_v19, 1  ;;  %v774_v32 = vmul.f32 0.75, %v9832_v19  ;;  %v9854_v34 = vadd.f32 %v697_v21, %v9828_v18 }
  0x1f   : > { %13353 = vst [vmem:[#allocation5_spill] sm:$0xff] %v9840_v25  ;;  %v947_v33 = vrot.slane %v9840_v25, 1  ;;  %v695_v35 = vmul.f32 0.25, %v643_v23  ;;  %v13270_v37 = vrot.slane %v9849_v31, 7  ;;  %v943_v38 = vrot.slane %v9849_v31, 1 }
  0x20   : > { %13354 = vst [vmem:[#allocation6_spill] sm:$0xff] %v9849_v31  ;;  %v881_v36 = vsel %vm818_vm1, %v9832_v19, %v13271_v29  ;;  %v9863_v39 = vadd.f32 %v694_v27, %v9836_v24  ;;  %v944_v42 = vrot.slane %v9854_v34, 1  ;;  %v772_v45 = vmul.f32 0.75, %v9849_v31 }
  0x21   : > { %13355 = vst [vmem:[#allocation7_spill] sm:$0xff] %v9854_v34  ;;  %v895_v40 = vmul.f32 0.25, %v881_v36  ;;  %v948_v41 = vsel %vm939_vm2, %v946_v30, %v947_v33  ;;  %v9868_v43 = vadd.f32 %v695_v35, %v9842_v26  ;;  %v880_v46 = vsel %vm818_vm1, %v9849_v31, %v13270_v37 }
  0x22   : > { %13356 = vst [vmem:[#allocation8_spill] sm:$0xff] %v9863_v39  ;;  %v1016_v44 = vmul.f32 0.25, %v948_v41  ;;  %v770_v47 = vmul.f32 0.75, %v9863_v39  ;;  %v893_v49 = vmul.f32 0.25, %v880_v46  ;;  %v945_v50 = vsel %vm939_vm2, %v943_v38, %v944_v42 }
  0x23   : > { %13357 = vst [vmem:[#allocation9_spill] sm:$0xff] %v9868_v43  ;;  %v9876_v48 = vadd.f32 %v895_v40, %v774_v32  ;;  %v13269_v51 = vrot.slane %v9863_v39, 7  ;;  %v1014_v54 = vmul.f32 0.25, %v945_v50  ;;  %v940_v55 = vrot.slane %v9863_v39, 1 }
  0x24   : > { %v1040_v53 = vadd.f32 %v1016_v44, %v774_v32  ;;  %v941_v56 = vrot.slane %v9868_v43, 1  ;;  %v9883_v57 = vadd.f32 %v893_v49, %v772_v45  ;;  %v9890_v59 = vmul.f32 0.75, %v9840_v25  ;;  %v655_v32 = vld [vmem:[%s9804_s11 + $0x68] sm:$0xff] }
  0x25   : > { %13358 = vst [vmem:[#allocation10_spill] sm:$0xff] %v9876_v48  ;;  %v879_v58 = vsel %vm818_vm1, %v9863_v39, %v13269_v51  ;;  %v1002_v60 = vsel %vm939_vm2, %v947_v33, %v9840_v25  ;;  %v1038_v61 = vadd.f32 %v1014_v54, %v772_v45  ;;  %v9899_v4 = vmul.f32 0.25, %v650_v52  ;;  %v654_v33 = vld [vmem:[%s9804_s11 + $0x60] sm:$0xff]  ;;  %v663_v39 = vld [vmem:[%s9804_s11 + $0xa8] sm:$0xff] }
  0x26   : > { %13359 = vst [vmem:[#allocation11_spill] sm:$0xff] %v9883_v57  ;;  %1380 = vrot.lane.b32.xlu2 %v1040_v53, %s9677_s12  ;;  %v891_v62 = vmul.f32 0.25, %v879_v58  ;;  %v942_v63 = vsel %vm939_vm2, %v940_v55, %v941_v56  ;;  %v1017_v0 = vmul.f32 0.25, %v1002_v60  ;;  %v9902_v6 = vmul.f32 0.75, %v9854_v34 }
  0x27   : > { %13360 = vst [vmem:[#allocation12_spill] sm:$0xff] %v9890_v59  ;;  %v1012_v5 = vmul.f32 0.25, %v942_v63  ;;  %v1001_v7 = vsel %vm939_vm2, %v944_v42, %v9854_v34  ;;  %1376 = vrot.lane.b32.xlu1 %v1038_v61, %s9677_s12  ;;  %v9912_v20 = vmul.f32 0.75, %v9868_v43  ;;  %v1000_v21 = vsel %vm939_vm2, %v941_v56, %v9868_v43 }
  0x28   : > { %13361 = vst [vmem:[#allocation13_spill] sm:$0xff] %v9902_v6  ;;  %v9909_v15 = vadd.f32 %v891_v62, %v770_v47  ;;  %v1015_v16 = vmul.f32 0.25, %v1001_v7  ;;  %v1041_v23 = vadd.f32 %v1017_v0, %v9890_v59  ;;  %v493_v27 = vpack.c.bf16 %v471_v2, %v470_v1  ;;  %v10116_v59 = vld [vmem:[%s9804_s11 + $0xc8] sm:$0xff] }
  0x29   : > { %13363 = vst [vmem:[#allocation15_spill] sm:$0xff] %v9912_v20  ;;  %v1036_v22 = vadd.f32 %v1012_v5, %v770_v47  ;;  %v9917_v30 = vmul.f32 0.75, %v652_v3  ;;  %v1013_v35 = vmul.f32 0.25, %v1000_v21  ;;  %v9921_v36 = vmul.f32 0.75, %v653_v9 }
  0x2a   : > { %13362 = vst [vmem:[#allocation14_spill] sm:$0xff] %v9909_v15  ;;  %v9923_v38 = vmul.f32 0.25, %v651_v8  ;;  %v9925_v40 = vmul.f32 0.75, %v651_v8  ;;  %v1039_v41 = vadd.f32 %v1015_v16, %v9902_v6  ;;  %v9935_v44 = vmul.f32 0.25, %v9812_v10 }
  0x2b   : > { %1372 = vrot.lane.b32.xlu0 %v1036_v22, %s9677_s12  ;;  %v9932_v42 = vadd.f32 %v9899_v4, %v9917_v30  ;;  %v9937_v45 = vmul.f32 0.75, %v650_v52  ;;  %v9943_v47 = vmul.f32 0.75, %v655_v32  ;;  %v9945_v49 = vmul.f32 0.25, %v653_v9  ;;  %v656_v22 = vld [vmem:[%s9804_s11 + $0x70] sm:$0xff] }
  0x2c   : > { %v9941_v46 = vadd.f32 %v9923_v38, %v9921_v36  ;;  %v9947_v50 = vmul.f32 0.75, %v654_v33  ;;  %v9952_v54 = vadd.f32 %v9935_v44, %v9925_v40  ;;  %v9964_v56 = vmul.f32 0.25, %v652_v3 }
  0x2d   : > { %13364 = vst [vmem:[#allocation16_spill] sm:$0xff] %v9932_v42  ;;  %v952_v53 = vrot.slane %v9932_v42, 1  ;;  %v9956_v10 = vadd.f32 %v9844_v28, %v9937_v45  ;;  %v9962_v55 = vadd.f32 %v9945_v49, %v9943_v47  ;;  %v1037_v58 = vadd.f32 %v1013_v35, %v9912_v20 }
  0x2e   : > { %8240 = vmatmul.msk.bf16.gmra.mxu0 %vm536_vm0, %v493_v27  ;;  %13365 = vst [vmem:[#allocation17_spill] sm:$0xff] %v9941_v46  ;;  %1382 = vrot.lane.b32.xlu2 %v1041_v23, %s9677_s12  ;;  %v953_v52 = vrot.slane %v9941_v46, 1  ;;  %v9968_v60 = vmul.f32 0.75, %v9932_v42  ;;  %v950_v61 = vrot.slane %v9952_v54, 1  ;;  %v9975_v0 = vmul.f32 0.75, %v9952_v54  ;;  %v658_v23 = vld [vmem:[%s9804_s11 + $0x80] sm:$0xff] }
  0x2f   : > { %13366 = vst [vmem:[#allocation18_spill] sm:$0xff] %v9952_v54  ;;  %v949_v62 = vrot.slane %v9956_v10, 1  ;;  %1378 = vrot.lane.b32.xlu1 %v1039_v41, %s9677_s12  ;;  %v956_v1 = vrot.slane %v9962_v55, 1  ;;  %v9980_v2 = vadd.f32 %v9964_v56, %v9947_v50  ;;  %v9986_v9 = vmul.f32 0.75, %v9956_v10  ;;  %v659_v27 = vld [vmem:[%s9804_s11 + $0x88] sm:$0xff]  ;;  %v661_v42 = vld [vmem:[%s9804_s11 + $0x98] sm:$0xff] }
  0x30   : > { %13367 = vst [vmem:[#allocation19_spill] sm:$0xff] %v9956_v10  ;;  %v954_v63 = vsel %vm939_vm2, %v952_v53, %v953_v52  ;;  %v1003_v5 = vsel %vm939_vm2, %v950_v61, %v9952_v54  ;;  %v472_v53 = vld [vmem:[%s9799_s28 + $0x20] sm:$0xff]  ;;  %v10142_v25 = vmul.f32 0.75, %v10116_v59 }
  0x31   : > { %13368 = vst [vmem:[#allocation20_spill] sm:$0xff] %v9962_v55  ;;  %v1020_v3 = vmul.f32 0.25, %v954_v63  ;;  %v951_v7 = vsel %vm939_vm2, %v949_v62, %v950_v61  ;;  %v1019_v8 = vmul.f32 0.25, %v1003_v5  ;;  %v1005_v21 = vsel %vm939_vm2, %v956_v1, %v9962_v55  ;;  %v473_v61 = vld [vmem:[%s9799_s28 + $0x28] sm:$0xff]  ;;  %v657_v62 = vld [vmem:[%s9804_s11 + $0x78] sm:$0xff] }
  0x32   : > { %13369 = vst [vmem:[#allocation21_spill] sm:$0xff] %v9968_v60  ;;  %v1018_v16 = vmul.f32 0.25, %v951_v7  ;;  %v955_v41 = vrot.slane %v9980_v2, 1  ;;  %v10001_v5 = vmul.f32 0.75, %v9962_v55  ;;  %v10004_v7 = vmul.f32 0.75, %v9980_v2 }
  0x33   : > { %13370 = vst [vmem:[#allocation22_spill] sm:$0xff] %v9975_v0  ;;  %1374 = vrot.lane.b32.xlu0 %v1037_v58, %s9677_s12  ;;  %v1044_v35 = vadd.f32 %v1020_v3, %v9968_v60  ;;  %v1043_v63 = vadd.f32 %v1019_v8, %v9975_v0  ;;  %v1023_v51 = vmul.f32 0.25, %v1005_v21  ;;  %v10007_v58 = vmul.f32 0.75, %v658_v23 }
  0x34   : > { %13371 = vst [vmem:[#allocation23_spill] sm:$0xff] %v9980_v2  ;;  %v957_v37 = vsel %vm939_vm2, %v955_v41, %v956_v1  ;;  %v10009_v3 = vmul.f32 0.75, %v659_v27  ;;  %v1042_v29 = vadd.f32 %v1018_v16, %v9986_v9  ;;  %v494_v60 = vpack.c.bf16 %v473_v61, %v472_v53 }
  0x35   : > { %13372 = vst [vmem:[#allocation24_spill] sm:$0xff] %v9986_v9  ;;  %v10013_v8 = vmul.f32 0.25, %v656_v22  ;;  %v10015_v55 = vmul.f32 0.25, %v657_v62  ;;  %v10018_v0 = vmul.f32 0.75, %v657_v62  ;;  %v10020_v21 = vmul.f32 0.25, %v655_v32  ;;  %v660_v32 = vld [vmem:[%s9804_s11 + $0x90] sm:$0xff] }
  0x36   : > { %13373 = vst [vmem:[#allocation25_spill] sm:$0xff] %v10001_v5  ;;  %1388 = vrot.lane.b32.xlu2 %v1044_v35, %s9677_s12  ;;  %v10022_v1 = vmul.f32 0.75, %v656_v22  ;;  %v10024_v41 = vmul.f32 0.25, %v654_v33  ;;  %v1022_v2 = vmul.f32 0.25, %v957_v37  ;;  %v1004_v16 = vsel %vm939_vm2, %v953_v52, %v9941_v46 }
  0x37   : > { %13374 = vst [vmem:[#allocation26_spill] sm:$0xff] %v10004_v7  ;;  %1386 = vrot.lane.b32.xlu1 %v1043_v63, %s9677_s12  ;;  %v10031_v35 = vadd.f32 %v10013_v8, %v10007_v58  ;;  %v10035_v53 = vadd.f32 %v10015_v55, %v10009_v3  ;;  %v10040_v22 = vadd.f32 %v10020_v21, %v10018_v0  ;;  %v10046_v37 = vmul.f32 0.75, %v661_v42 }
  0x38   : > { %13375 = vst [vmem:[#allocation27_spill] sm:$0xff] %v10009_v3  ;;  %v10044_v33 = vadd.f32 %v10024_v41, %v10022_v1  ;;  %v10048_v52 = vmul.f32 0.25, %v659_v27  ;;  %v1047_v61 = vadd.f32 %v1023_v51, %v10001_v5  ;;  %v10052_v62 = vmul.f32 0.75, %v9941_v46 }
  0x39   : > { %13376 = vst [vmem:[#allocation28_spill] sm:$0xff] %v10031_v35  ;;  %v961_v63 = vrot.slane %v10031_v35, 1  ;;  %v962_v9 = vrot.slane %v10035_v53, 1  ;;  %v1021_v54 = vmul.f32 0.25, %v1004_v16  ;;  %v959_v10 = vrot.slane %v10040_v22, 1 }
  0x3a   : > { %13377 = vst [vmem:[#allocation29_spill] sm:$0xff] %v10035_v53  ;;  %v958_v27 = vrot.slane %v10044_v33, 1  ;;  %v10060_v51 = vmul.f32 0.75, %v660_v32  ;;  %v1046_v5 = vadd.f32 %v1022_v2, %v10004_v7  ;;  %v10066_v20 = vadd.f32 %v10048_v52, %v10046_v37  ;;  %v662_v2 = vld [vmem:[%s9804_s11 + $0xa0] sm:$0xff] }
  0x3b   : > { %13378 = vst [vmem:[#allocation30_spill] sm:$0xff] %v10040_v22  ;;  %1384 = vrot.lane.b32.xlu0 %v1042_v29, %s9677_s12  ;;  %v963_v46 = vsel %vm939_vm2, %v961_v63, %v962_v9  ;;  %v10068_v29 = vmul.f32 0.25, %v658_v23  ;;  %v1006_v6 = vsel %vm939_vm2, %v959_v10, %v10040_v22  ;;  %v1045_v63 = vadd.f32 %v1021_v54, %v10052_v62 }
  0x3c   : > { %13379 = vst [vmem:[#allocation31_spill] sm:$0xff] %v10044_v33  ;;  %v1026_v16 = vmul.f32 0.25, %v963_v46  ;;  %v960_v15 = vsel %vm939_vm2, %v958_v27, %v959_v10  ;;  %v965_v7 = vrot.slane %v10066_v20, 1  ;;  %v665_v46 = vld [vmem:[%s9804_s11 + $0xb8] sm:$0xff]  ;;  %v1025_v10 = vmul.f32 0.25, %v1006_v6 }
  0x3d   : > { %13380 = vst [vmem:[#allocation32_spill] sm:$0xff] %v10052_v62  ;;  %v10082_v23 = vadd.f32 %v10068_v29, %v10060_v51  ;;  %v10093_v27 = vmul.f32 0.75, %v10044_v33  ;;  %v1024_v62 = vmul.f32 0.25, %v960_v15  ;;  %v10098_v43 = vmul.f32 0.75, %v665_v46  ;;  %v475_v15 = vld [vmem:[%s9799_s28 + $0x38] sm:$0xff] }
  0x3e   : > { %8241 = vmatmul.msk.bf16.gmra.mxu0 %vm536_vm0, %v494_v60  ;;  %13381 = vst [vmem:[#allocation33_spill] sm:$0xff] %v10066_v20  ;;  %v10071_v60 = vmul.f32 0.75, %v10031_v35  ;;  %1394 = vrot.lane.b32.xlu2 %v1047_v61, %s9677_s12  ;;  %v664_v35 = vld [vmem:[%s9804_s11 + $0xb0] sm:$0xff]  ;;  %v10089_v61 = vmul.f32 0.75, %v10040_v22  ;;  %v10100_v34 = vmul.f32 0.25, %v662_v2  ;;  %v1008_v6 = vsel %vm939_vm2, %v965_v7, %v10066_v20 }
  0x3f   : > { %13383 = vst [vmem:[#allocation35_spill] sm:$0xff] %v10082_v23  ;;  %1392 = vrot.lane.b32.xlu1 %v1046_v5, %s9677_s12  ;;  %v964_v57 = vrot.slane %v10082_v23, 1  ;;  %v10096_v31 = vmul.f32 0.75, %v664_v35  ;;  %v10102_v5 = vmul.f32 0.25, %v663_v39  ;;  %v474_v22 = vld [vmem:[%s9799_s28 + $0x30] sm:$0xff]  ;;  %v10111_v33 = vmul.f32 0.75, %v663_v39 }
  0x40   : > { %13382 = vst [vmem:[#allocation34_spill] sm:$0xff] %v10071_v60  ;;  %v1050_v54 = vadd.f32 %v1026_v16, %v10071_v60  ;;  %v1007_v16 = vsel %vm939_vm2, %v962_v9, %v10035_v53  ;;  %v10113_v60 = vmul.f32 0.25, %v661_v42  ;;  %v1049_v48 = vadd.f32 %v1025_v10, %v10089_v61 }
  0x41   : > { %13384 = vst [vmem:[#allocation36_spill] sm:$0xff] %v10089_v61  ;;  %v10120_v19 = vmul.f32 0.75, %v10066_v20  ;;  %v10128_v9 = vadd.f32 %v10102_v5, %v10098_v43  ;;  %v966_v39 = vsel %vm939_vm2, %v964_v57, %v965_v7  ;;  %v10135_v3 = vmul.f32 0.75, %v662_v2 }
  0x42   : > { %13385 = vst [vmem:[#allocation37_spill] sm:$0xff] %v10093_v27  ;;  %v10133_v42 = vadd.f32 %v10113_v60, %v10111_v33  ;;  %v10137_v10 = vmul.f32 0.25, %v660_v32  ;;  %v1048_v61 = vadd.f32 %v1024_v62, %v10093_v27  ;;  %v1029_v20 = vmul.f32 0.25, %v1008_v6 }
  0x43   : > { %13386 = vst [vmem:[#allocation38_spill] sm:$0xff] %v10096_v31  ;;  %1390 = vrot.lane.b32.xlu0 %v1045_v63, %s9677_s12  ;;  %v10124_v63 = vadd.f32 %v10100_v34, %v10096_v31  ;;  %v495_v31 = vpack.c.bf16 %v475_v15, %v474_v22  ;;  %v10153_v32 = vmul.f32 0.25, %v665_v46  ;;  %v10157_v62 = vmul.f32 0.75, %v10082_v23 }
  0x44   : > { %13387 = vst [vmem:[#allocation39_spill] sm:$0xff] %v10098_v43  ;;  %v10145_v43 = vld [vmem:[%s9804_s11 + $0xc0] sm:$0xff]  ;;  %v10151_v2 = vadd.f32 %v10137_v10, %v10135_v3  ;;  %v1028_v22 = vmul.f32 0.25, %v966_v39  ;;  %v10163_v15 = vmul.f32 0.25, %v664_v35  ;;  %v1053_v7 = vadd.f32 %v1029_v20, %v10120_v19 }
  0x45   : > { %13388 = vst [vmem:[#allocation40_spill] sm:$0xff] %v10120_v19  ;;  %v970_v57 = vrot.slane %v10124_v63, 1  ;;  %v10161_v6 = vmul.f32 0.75, %v10145_v43  ;;  %v10167_v27 = vmul.f32 0.75, %v10035_v53  ;;  %v1027_v46 = vmul.f32 0.25, %v1007_v16 }
  0x46   : > { %13389 = vst [vmem:[#allocation41_spill] sm:$0xff] %v10124_v63  ;;  %1400 = vrot.lane.b32.xlu2 %v1050_v54, %s9677_s12  ;;  %v968_v54 = vrot.slane %v10133_v42, 1  ;;  %v13396_v39 = vrot.slane %v10128_v9, 1  ;;  %v967_v35 = vrot.slane %v10151_v2, 1  ;;  %v10181_v20 = vadd.f32 %v10153_v32, %v10142_v25 }
  0x47   : > { %13390 = vst [vmem:[#allocation42_spill] sm:$0xff] %v10128_v9  ;;  %1398 = vrot.lane.b32.xlu1 %v1049_v48, %s9677_s12  ;;  %v10171_v48 = vadd.f32 %v9816_v12, %v9836_v24  ;;  %v1052_v16 = vadd.f32 %v1028_v22, %v10157_v62  ;;  %v10188_v24 = vadd.f32 %v10163_v15, %v10161_v6 }
  0x48   : > { %13391 = vst [vmem:[#allocation43_spill] sm:$0xff] %v10133_v42  ;;  %v972_v23 = vsel %vm939_vm2, %v970_v57, %v13396_v39  ;;  %v1009_v12 = vsel %vm939_vm2, %v968_v54, %v10133_v42  ;;  %v10197_v57 = vmul.f32 0.75, %v10124_v63  ;;  %v969_v22 = vsel %vm939_vm2, %v967_v35, %v968_v54 }
  0x49   : > { %13392 = vst [vmem:[#allocation44_spill] sm:$0xff] %v10142_v25  ;;  %v1032_v39 = vmul.f32 0.25, %v972_v23  ;;  %v10203_v53 = vadd.f32 %v9818_v13, %v9842_v26  ;;  %v1108_v19 = vrot.slane %v10171_v48, 7  ;;  %v10211_v23 = vmul.f32 0.75, %v10151_v2 }
  0x4a   : > { %13393 = vst [vmem:[#allocation45_spill] sm:$0xff] %v10151_v2  ;;  %v1030_v26 = vmul.f32 0.25, %v969_v22  ;;  %v10221_v35 = vadd.f32 %v9923_v38, %v9822_v14  ;;  %v477_v2 = vld [vmem:[%s9799_s28 + $0x48] sm:$0xff] }
  0x4b   : > { %13394 = vst [vmem:[#allocation46_spill] sm:$0xff] %v10157_v62  ;;  %1396 = vrot.lane.b32.xlu0 %v1048_v61, %s9677_s12  ;;  %v1051_v61 = vadd.f32 %v1027_v46, %v10167_v27  ;;  %v974_v62 = vrot.slane %v10181_v20, 1  ;;  %v1109_v54 = vrot.slane %v10203_v53, 7  ;;  %v1056_v13 = vadd.f32 %v1032_v39, %v10197_v57 }
  0x4c   : > { %13395 = vst [vmem:[#allocation47_spill] sm:$0xff] %v10167_v27  ;;  %v10217_v46 = vmul.f32 0.75, %v10203_v53  ;;  %v1115_v14 = vrot.slane %v10221_v35, 7 }
  0x4d   : > { %13397 = vst [vmem:[#allocation48_spill] sm:$0xff] %v10181_v20  ;;  %v1110_v27 = vsel %vm818_vm1, %v1108_v19, %v1109_v54 }
  0x4e   : > { %8242 = vmatmul.msk.bf16.gmra.mxu0 %vm536_vm0, %v495_v31  ;;  %13398 = vst [vmem:[#allocation49_spill] sm:$0xff] %v10188_v24  ;;  %v10192_v31 = vadd.f32 %v9899_v4, %v9814_v11  ;;  %1406 = vrot.lane.b32.xlu2 %v1053_v7, %s9677_s12  ;;  %v10208_v11 = vmul.f32 0.75, %v10133_v42  ;;  %v1031_v4 = vmul.f32 0.25, %v1009_v12  ;;  %v973_v7 = vrot.slane %v10188_v24, 1  ;;  %v476_v42 = vld [vmem:[%s9799_s28 + $0x40] sm:$0xff] }
  0x4f   : > { %13399 = vst [vmem:[#allocation50_spill] sm:$0xff] %v10197_v57  ;;  %1404 = vrot.lane.b32.xlu1 %v1052_v16, %s9677_s12  ;;  %v1011_v16 = vsel %vm939_vm2, %v974_v62, %v10181_v20  ;;  %v10228_v12 = vadd.f32 %v9844_v28, %v9826_v17  ;;  %v1181_v57 = vmul.f32 0.25, %v1110_v27  ;;  %v10242_v17 = vmul.f32 0.75, %v10181_v20 }
  0x50   : > { %13400 = vst [vmem:[#allocation51_spill] sm:$0xff] %v10208_v11  ;;  %v1114_v39 = vrot.slane %v10192_v31, 7  ;;  %v1055_v22 = vadd.f32 %v1031_v4, %v10208_v11  ;;  %v975_v38 = vsel %vm939_vm2, %v973_v7, %v974_v62  ;;  %v1035_v28 = vmul.f32 0.25, %v1011_v16 }
  0x51   : > { %13401 = vst [vmem:[#allocation52_spill] sm:$0xff] %v10211_v23  ;;  %v1205_v54 = vadd.f32 %v1181_v57, %v10217_v46  ;;  %v1054_v11 = vadd.f32 %v1030_v26, %v10211_v23  ;;  %v496_v27 = vpack.c.bf16 %v477_v2, %v476_v42  ;;  %v1111_v63 = vrot.slane %v10228_v12, 7 }
  0x52   : > { %13402 = vst [vmem:[#allocation53_spill] sm:$0xff] %v10242_v17  ;;  %v1116_v4 = vsel %vm818_vm1, %v1114_v39, %v1115_v14  ;;  %v10250_v62 = vmul.f32 0.75, %v10188_v24  ;;  %v1034_v7 = vmul.f32 0.25, %v975_v38  ;;  %v1059_v14 = vadd.f32 %v1035_v28, %v10242_v17 }
  0x53   : > { %1402 = vrot.lane.b32.xlu0 %v1051_v61, %s9677_s12  ;;  %v10238_v61 = vmul.f32 0.75, %v10221_v35  ;;  %v1185_v25 = vmul.f32 0.25, %v1116_v4  ;;  %v10260_v42 = vmul.f32 0.75, %v10128_v9  ;;  %v1169_v26 = vsel %vm818_vm1, %v10228_v12, %v1111_v63 }
  0x54   : > { %13403 = vst [vmem:[#allocation54_spill] sm:$0xff] %v10250_v62  ;;  %v1182_v38 = vmul.f32 0.25, %v1169_v26  ;;  %v1168_v28 = vsel %vm818_vm1, %v10171_v48, %v1108_v19  ;;  %v10276_v4 = vadd.f32 %v9935_v44, %v9828_v18  ;;  %v479_v19 = vld [vmem:[%s9799_s28 + $0x58] sm:$0xff]  ;;  %v10292_v18 = vadd.f32 %v9964_v56, %v9937_v45 }
  0x55   : > { %v1209_v57 = vadd.f32 %v1185_v25, %v10238_v61  ;;  %13405 = vst [vmem:[#allocation55_spill] sm:$0xff] %v10260_v42  ;;  %v10268_v25 = vmul.f32 0.75, %v10228_v12  ;;  %v1170_v44 = vsel %vm818_vm1, %v10192_v31, %v1114_v39  ;;  %v10298_v26 = vadd.f32 %v9945_v49, %v9925_v40 }
  0x56   : > { %1412 = vrot.lane.b32.xlu2 %v1056_v13, %s9677_s12  ;;  %v13404_v13 = vrot.slane %v10128_v9, 1  ;;  %v10305_v45 = vmul.f32 0.75, %v10192_v31  ;;  %v1184_v56 = vmul.f32 0.25, %v1170_v44  ;;  %v10312_v49 = vadd.f32 %v10013_v8, %v9947_v50 }
  0x57   : > { %1410 = vrot.lane.b32.xlu1 %v1055_v22, %s9677_s12  ;;  %v1058_v22 = vadd.f32 %v1034_v7, %v10250_v62  ;;  %v10281_v7 = vmul.f32 0.75, %v10171_v48  ;;  %v1118_v40 = vrot.slane %v10298_v26, 7  ;;  %v10342_v44 = vadd.f32 %v10020_v21, %v9921_v36 }
  0x58   : > { %v1010_v16 = vsel %vm939_vm2, %v13404_v13, %v10128_v9  ;;  %v1180_v13 = vmul.f32 0.25, %v1168_v28  ;;  %v1123_v8 = vrot.slane %v10312_v49, 7  ;;  %v10360_v36 = vadd.f32 %v10048_v52, %v10018_v0 }
  0x59   : > { %v1033_v2 = vmul.f32 0.25, %v1010_v16  ;;  %v10285_v16 = vadd.f32 %v10024_v41, %v9917_v30  ;;  %v10431_v9 = vadd.f32 %v10163_v15, %v10135_v3 }
  0x5a   : > { %v1204_v30 = vadd.f32 %v1180_v13, %v10281_v7 }
  0x5b   : > { %1408 = vrot.lane.b32.xlu0 %v1054_v11, %s9677_s12  ;;  %v1057_v11 = vadd.f32 %v1033_v2, %v10260_v42  ;;  %v478_v2 = vld [vmem:[%s9799_s28 + $0x50] sm:$0xff] }
  0x5c   : > { %v497_v41 = vpack.c.bf16 %v479_v19, %v478_v2  ;;  %v10338_v19 = vmul.f32 0.75, %v10298_v26 }
  0x5e   : > { %8243 = vmatmul.msk.bf16.gmra.mxu0 %vm536_vm0, %v496_v27  ;;  %1418 = vrot.lane.b32.xlu2 %v1059_v14, %s9677_s12  ;;  %v1206_v27 = vadd.f32 %v1182_v38, %v10268_v25  ;;  %v1112_v14 = vrot.slane %v10276_v4, 7  ;;  %v1117_v38 = vrot.slane %v10292_v18, 7 }
  0x5f   : > { %1416 = vrot.lane.b32.xlu1 %v1058_v22, %s9677_s12  ;;  %v1120_v22 = vrot.slane %v10285_v16, 7 }
  0x60   : > { %v1113_v39 = vsel %vm818_vm1, %v1111_v63, %v1112_v14  ;;  %v1119_v50 = vsel %vm818_vm1, %v1117_v38, %v1118_v40  ;;  %v1171_v2 = vsel %vm818_vm1, %v10292_v18, %v1117_v38 }
  0x61   : > { %v1183_v28 = vmul.f32 0.25, %v1113_v39  ;;  %v1172_v63 = vsel %vm818_vm1, %v10285_v16, %v1120_v22  ;;  %v10354_v39 = vmul.f32 0.75, %v10292_v18  ;;  %v1186_v38 = vmul.f32 0.25, %v1171_v2 }
  0x63   : > { %1414 = vrot.lane.b32.xlu0 %v1057_v11, %s9677_s12  ;;  %v10316_v11 = vadd.f32 %v10015_v55, %v9943_v47  ;;  %v10329_v47 = vmul.f32 0.75, %v10285_v16  ;;  %v1188_v55 = vmul.f32 0.25, %v1172_v63  ;;  %v1210_v0 = vadd.f32 %v1186_v38, %v10354_v39 }
  0x65   : > { %v1124_v13 = vrot.slane %v10316_v11, 7 }
  0x66   : > { %1472 = vrot.lane.b32.xlu2 %v1206_v27, %s9678_s21  ;;  %v1208_v27 = vadd.f32 %v1184_v56, %v10305_v45  ;;  %v1212_v56 = vadd.f32 %v1188_v55, %v10329_v47 }
  0x67   : > { %1470 = vrot.lane.b32.xlu1 %v1205_v54, %s9678_s21  ;;  %v10320_v54 = vmul.f32 0.75, %v10276_v4  ;;  %v1125_v40 = vsel %vm818_vm1, %v1123_v8, %v1124_v13  ;;  %v1127_v13 = vrot.slane %v10360_v36, 7 }
  0x68   : > { %v1191_v63 = vmul.f32 0.25, %v1125_v40 }
  0x69   : > { %v1207_v14 = vadd.f32 %v1183_v28, %v10320_v54  ;;  %v10369_v28 = vmul.f32 0.75, %v10316_v11 }
  0x6b   : > { %1468 = vrot.lane.b32.xlu0 %v1204_v30, %s9678_s21  ;;  %v10346_v30 = vadd.f32 %v10068_v29, %v10022_v1  ;;  %v1121_v1 = vrot.slane %v10342_v44, 7  ;;  %v480_v29 = vld [vmem:[%s9799_s28 + $0x60] sm:$0xff]  ;;  %v1215_v38 = vadd.f32 %v1191_v63, %v10369_v28 }
  0x6d   : > { %v1126_v52 = vrot.slane %v10346_v30, 7  ;;  %v1122_v2 = vsel %vm818_vm1, %v1120_v22, %v1121_v1  ;;  %v13408_v1 = vld [vmem:[#allocation39_spill] sm:$0xff] }
  0x6e   : > { %8244 = vmatmul.msk.bf16.gmra.mxu0 %vm536_vm0, %v497_v41  ;;  %1478 = vrot.lane.b32.xlu2 %v1209_v57, %s9678_s21  ;;  %v1187_v57 = vmul.f32 0.25, %v1119_v50  ;;  %v10350_v41 = vadd.f32 %v10137_v10, %v10007_v58  ;;  %v1173_v58 = vsel %vm818_vm1, %v10312_v49, %v1123_v8  ;;  %v481_v10 = vld [vmem:[%s9799_s28 + $0x68] sm:$0xff]  ;;  %v10376_v50 = vmul.f32 0.75, %v10312_v49 }
  0x6f   : > { %1476 = vrot.lane.b32.xlu1 %v1208_v27, %s9678_s21  ;;  %v1190_v55 = vmul.f32 0.25, %v1173_v58  ;;  %v498_v8 = vpack.c.bf16 %v481_v10, %v480_v29  ;;  %v1189_v29 = vmul.f32 0.25, %v1122_v2  ;;  %v1128_v10 = vsel %vm818_vm1, %v1126_v52, %v1127_v13  ;;  %v13410_v13 = vld [vmem:[#allocation4_spill] sm:$0xff] }
  0x70   : > { %v1211_v21 = vadd.f32 %v1187_v57, %v10338_v19  ;;  %v1129_v27 = vrot.slane %v10350_v41, 7  ;;  %v10387_v57 = vadd.f32 %v10102_v5, %v10046_v37  ;;  %v10406_v5 = vmul.f32 0.75, %v10342_v44 }
  0x71   : > { %v10411_v63 = vmul.f32 0.75, %v10350_v41  ;;  %v10420_v2 = vmul.f32 0.75, %v10346_v30 }
  0x72   : > { %v1175_v40 = vsel %vm818_vm1, %v10350_v41, %v1129_v27  ;;  %v1213_v62 = vadd.f32 %v1189_v29, %v10406_v5  ;;  %v10452_v20 = vmul.f32 0.75, %v10387_v57 }
  0x73   : > { %1474 = vrot.lane.b32.xlu0 %v1207_v14, %s9678_s21  ;;  %v10381_v14 = vadd.f32 %v10100_v34, %v10060_v51  ;;  %v1174_v34 = vsel %vm818_vm1, %v10346_v30, %v1126_v52  ;;  %v13406_v51 = vld [vmem:[#allocation5_spill] sm:$0xff]  ;;  %v1193_v52 = vmul.f32 0.25, %v1128_v10 }
  0x74   : > { %v826_v58 = vrot.slane %v13406_v51, 7  ;;  %v668_v51 = vld [vmem:[%s9804_s11 + $0xd0] sm:$0xff]  ;;  %13409 = vst [vmem:[#allocation5_spill] sm:$0xff] %v10420_v2 }
  0x75   : > { %v744_v23 = vmul.f32 0.25, %v668_v51 }
  0x76   : > { %1484 = vrot.lane.b32.xlu2 %v1212_v56, %s9678_s21  ;;  %v743_v56 = vmul.f32 0.25, %v10116_v59  ;;  %v1214_v59 = vadd.f32 %v1190_v55, %v10376_v50  ;;  %v10417_v55 = vmul.f32 0.75, %v10360_v36 }
  0x77   : > { %1482 = vrot.lane.b32.xlu1 %v1211_v21, %s9678_s21  ;;  %v13407_v21 = vld [vmem:[#allocation27_spill] sm:$0xff] }
  0x78   : > { %v10398_v22 = vadd.f32 %v10113_v60, %v13407_v21  ;;  %v10401_v37 = vadd.f32 %v743_v56, %v13408_v1  ;;  %v1132_v60 = vrot.slane %v10381_v14, 7  ;;  %v1133_v56 = vrot.slane %v10387_v57, 7 }
  0x79   : > { %v13411_v21 = vrot.slane %v13410_v13, 7  ;;  %v489_v13 = vld [vmem:[%s9799_s28 + $0xa8] sm:$0xff] }
  0x7a   : > { %v1130_v42 = vrot.slane %v10398_v22, 7  ;;  %v1176_v10 = vsel %vm818_vm1, %v10381_v14, %v1132_v60 }
  0x7b   : > { %1480 = vrot.lane.b32.xlu0 %v1210_v0, %s9678_s21  ;;  %v1194_v0 = vmul.f32 0.25, %v1175_v40  ;;  %v827_v1 = vsel %vm818_vm1, %v13411_v21, %v826_v58  ;;  %v742_v40 = vmul.f32 0.25, %v10145_v43  ;;  %v488_v58 = vld [vmem:[%s9799_s28 + $0xa0] sm:$0xff] }
  0x7c   : > { %v13412_v21 = vld [vmem:[#allocation10_spill] sm:$0xff]  ;;  %v896_v15 = vmul.f32 0.25, %v827_v1  ;;  %v502_v29 = vpack.c.bf16 %v489_v13, %v488_v58  ;;  %v1131_v51 = vsel %vm818_vm1, %v1129_v27, %v1130_v42  ;;  %v669_v1 = vld [vmem:[%s9804_s11 + $0xd8] sm:$0xff]  ;;  %v10463_v42 = vadd.f32 %v10153_v32, %v10111_v33 }
  0x7d   : > { %v1218_v3 = vadd.f32 %v1194_v0, %v10411_v63  ;;  %v1196_v0 = vmul.f32 0.25, %v1176_v10  ;;  %v1231_v27 = vrot.slane %v10228_v12, 1  ;;  %v10470_v13 = vmul.f32 0.75, %v10398_v22 }
  0x7e   : > { %8245 = vmatmul.msk.bf16.gmra.mxu0 %vm536_vm0, %v498_v8  ;;  %v1192_v8 = vmul.f32 0.25, %v1174_v34  ;;  %1490 = vrot.lane.b32.xlu2 %v1215_v38, %s9678_s21  ;;  %v1134_v38 = vsel %vm818_vm1, %v1132_v60, %v1133_v56  ;;  %v13414_v60 = vld [vmem:[#allocation38_spill] sm:$0xff]  ;;  %v1195_v10 = vmul.f32 0.25, %v1131_v51  ;;  %v745_v33 = vmul.f32 0.25, %v669_v1 }
  0x7f   : > { %1488 = vrot.lane.b32.xlu1 %v1214_v59, %s9678_s21  ;;  %v1217_v59 = vadd.f32 %v1193_v52, %v10417_v55  ;;  %v10448_v17 = vadd.f32 %v742_v40, %v13414_v60  ;;  %8249 = vmatmul.msk.bf16.vlgmr.msra.gmra.mxu2 %vm536_vm0, %v502_v29  ;;  %v482_v52 = vld [vmem:[%s9799_s28 + $0x70] sm:$0xff]  ;;  %v1229_v40 = vrot.slane %v10203_v53, 1  ;;  %v1228_v29 = vrot.slane %v10171_v48, 1 }
  0x80   : > { %v1381_v34 = vpop.permute.xlu2 %1380  ;;  %v1216_v56 = vadd.f32 %v1192_v8, %v10420_v2  ;;  %v483_v8 = vld [vmem:[%s9799_s28 + $0x78] sm:$0xff]  ;;  %v1135_v48 = vrot.slane %v10431_v9, 7  ;;  %v10483_v1 = vadd.f32 %v744_v23, %v10161_v6 }
  0x81   : > { %v10441_v43 = vsel %vm1636_vm3, %v13412_v21, %v1381_v34  ;;  %v1197_v34 = vmul.f32 0.25, %v1134_v38  ;;  %v10455_v21 = vmul.f32 0.75, %v10381_v14  ;;  %v13415_v38 = vld [vmem:[#allocation12_spill] sm:$0xff]  ;;  %v1138_v60 = vrot.slane %v10448_v17, 7 }
  0x82   : > { %13413 = vst [vmem:[#allocation27_spill] sm:$0xff] %v10441_v43  ;;  %v920_v58 = vadd.f32 %v896_v15, %v13415_v38  ;;  %v1288_v12 = vsel %vm939_vm2, %v1229_v40, %v10203_v53  ;;  %v499_v24 = vpack.c.bf16 %v483_v8, %v482_v52  ;;  %v1230_v15 = vsel %vm939_vm2, %v1228_v29, %v1229_v40  ;;  %v13416_v40 = vld [vmem:[#allocation44_spill] sm:$0xff] }
  0x83   : > { %1486 = vrot.lane.b32.xlu0 %v1213_v62, %s9678_s21  ;;  %v1232_v62 = vrot.slane %v10276_v4, 1  ;;  %v1301_v2 = vmul.f32 0.25, %v1288_v12  ;;  %v1300_v38 = vmul.f32 0.25, %v1230_v15  ;;  %v1178_v8 = vsel %vm818_vm1, %v10448_v17, %v1138_v60 }
  0x84   : > { %v10500_v29 = vadd.f32 %v745_v33, %v13416_v40  ;;  %v1220_v23 = vadd.f32 %v1196_v0, %v10455_v21 }
  0x85   : > { %v1233_v32 = vsel %vm939_vm2, %v1231_v27, %v1232_v62  ;;  %v10492_v52 = vadd.f32 %v1301_v2, %v10217_v46  ;;  %v10503_v6 = vadd.f32 %v1300_v38, %v10281_v7  ;;  %v1219_v46 = vadd.f32 %v1195_v10, %v10470_v13  ;;  %v490_v38 = vld [vmem:[%s9799_s28 + $0xb0] sm:$0xff] }
  0x86   : > { %1496 = vrot.lane.b32.xlu2 %v1218_v3, %s9678_s21  ;;  %v1302_v43 = vmul.f32 0.25, %v1233_v32  ;;  %v1136_v3 = vrot.slane %v10463_v42, 7  ;;  %v10516_v7 = vmul.f32 0.75, %v10463_v42  ;;  %v1142_v0 = vrot.slane %v10500_v29, 7 }
  0x87   : > { %1494 = vrot.lane.b32.xlu1 %v1217_v59, %s9678_s21  ;;  %v1221_v59 = vadd.f32 %v1197_v34, %v10452_v20  ;;  %v1234_v34 = vrot.slane %v10192_v31, 1  ;;  %v1289_v33 = vsel %vm939_vm2, %v1232_v62, %v10276_v4 }
  0x88   : > { %v1383_v51 = vpop.permute.xlu2 %1382  ;;  %v10489_v53 = vadd.f32 %v1302_v43, %v10268_v25  ;;  %v10510_v25 = vmul.f32 0.75, %v10448_v17  ;;  %v1137_v2 = vsel %vm818_vm1, %v1135_v48, %v1136_v3  ;;  %v1235_v43 = vrot.slane %v10221_v35, 1 }
  0x89   : > { %v10486_v27 = vsel %vm1636_vm3, %v920_v58, %v1383_v51  ;;  %v1200_v58 = vmul.f32 0.25, %v1178_v8  ;;  %v1199_v32 = vmul.f32 0.25, %v1137_v2  ;;  %v1303_v51 = vmul.f32 0.25, %v1289_v33 }
  0x8a   : > { %v1290_v10 = vsel %vm939_vm2, %v1235_v43, %v10221_v35  ;;  %v1236_v31 = vsel %vm939_vm2, %v1234_v34, %v1235_v43  ;;  %v10532_v3 = vmul.f32 0.75, %v10431_v9  ;;  %v491_v35 = vld [vmem:[%s9799_s28 + $0xb8] sm:$0xff]  ;;  %v1139_v34 = vrot.slane %v10401_v37, 7 }
  0x8b   : > { %1492 = vrot.lane.b32.xlu0 %v1216_v56, %s9678_s21  ;;  %v1177_v56 = vsel %vm818_vm1, %v10431_v9, %v1135_v48  ;;  %v1305_v12 = vmul.f32 0.25, %v1290_v10  ;;  %v1304_v15 = vmul.f32 0.25, %v1236_v31  ;;  %v10543_v62 = vadd.f32 %v1303_v51, %v10320_v54  ;;  %v484_v10 = vld [vmem:[%s9799_s28 + $0x80] sm:$0xff]  ;;  %v485_v31 = vld [vmem:[%s9799_s28 + $0x88] sm:$0xff] }
  0x8c   : > { %v1224_v40 = vadd.f32 %v1200_v58, %v10510_v25  ;;  %v503_v2 = vpack.c.bf16 %v491_v35, %v490_v38  ;;  %v1223_v43 = vadd.f32 %v1199_v32, %v10516_v7  ;;  %v1241_v54 = vrot.slane %v10342_v44, 1 }
  0x8d   : > { %v10537_v8 = vadd.f32 %v1305_v12, %v10238_v61  ;;  %v10540_v4 = vadd.f32 %v1304_v15, %v10305_v45  ;;  %v1240_v45 = vrot.slane %v10285_v16, 1  ;;  %v1238_v58 = vrot.slane %v10298_v26, 1  ;;  %v13418_v15 = vld [vmem:[#allocation9_spill] sm:$0xff] }
  0x8e   : > { %8246 = vmatmul.msk.bf16.gmra.mxu0 %vm536_vm0, %v499_v24  ;;  %v1141_v24 = vrot.slane %v10483_v1, 7  ;;  %1502 = vrot.lane.b32.xlu2 %v1221_v59, %s9678_s21  ;;  %v1198_v59 = vmul.f32 0.25, %v1177_v56  ;;  %v13417_v56 = vld [vmem:[#allocation7_spill] sm:$0xff]  ;;  %v10560_v33 = vmul.f32 0.75, %v10500_v29  ;;  %v820_v51 = vrot.slane %v13418_v15, 7  ;;  %v13419_v15 = vld [vmem:[#allocation6_spill] sm:$0xff] }
  0x8f   : > { %1500 = vrot.lane.b32.xlu1 %v1220_v23, %s9678_s21  ;;  %v823_v61 = vrot.slane %v13417_v56, 7  ;;  %8250 = vmatmul.msk.bf16.gmra.mxu2 %vm536_vm0, %v503_v2  ;;  %v1242_v16 = vsel %vm939_vm2, %v1240_v45, %v1241_v54  ;;  %v500_v35 = vpack.c.bf16 %v485_v31, %v484_v10  ;;  %v1140_v45 = vsel %vm818_vm1, %v1138_v60, %v1139_v34  ;;  %v13421_v60 = vld [vmem:[#allocation11_spill] sm:$0xff] }
  0x90   : > { %v10529_v48 = vpop.permute.xlu2 %1388  ;;  %v1143_v23 = vsel %vm818_vm1, %v1141_v24, %v1142_v0  ;;  %v1237_v0 = vrot.slane %v10292_v18, 1  ;;  %v1179_v12 = vsel %vm818_vm1, %v10483_v1, %v1141_v24  ;;  %v1291_v18 = vsel %vm939_vm2, %v1238_v58, %v10298_v26 }
  0x91   : > { %v1203_v32 = vmul.f32 0.25, %v1143_v23  ;;  %v1307_v2 = vmul.f32 0.25, %v1291_v18  ;;  %v1202_v56 = vmul.f32 0.25, %v1179_v12  ;;  %v13420_v26 = vrot.slane %v13419_v15, 7  ;;  %v13425_v15 = vld [vmem:[#allocation13_spill] sm:$0xff] }
  0x92   : > { %v1239_v38 = vsel %vm939_vm2, %v1237_v0, %v1238_v58  ;;  %v10595_v18 = vmul.f32 0.75, %v10401_v37 }
  0x93   : > { %1498 = vrot.lane.b32.xlu0 %v1219_v46, %s9678_s21  ;;  %v1222_v46 = vadd.f32 %v1198_v59, %v10532_v3  ;;  %v1308_v59 = vmul.f32 0.25, %v1242_v16  ;;  %v1306_v23 = vmul.f32 0.25, %v1239_v38  ;;  %v824_v58 = vsel %vm818_vm1, %v13420_v26, %v823_v61  ;;  %v13422_v38 = vld [vmem:[#allocation8_spill] sm:$0xff] }
  0x94   : > { %v1227_v12 = vadd.f32 %v1203_v32, %v10560_v33  ;;  %v1201_v61 = vmul.f32 0.25, %v1140_v45 }
  0x95   : > { %v1332_v31 = vadd.f32 %v1308_v59, %v10329_v47  ;;  %v10591_v0 = vadd.f32 %v1306_v23, %v10354_v39  ;;  %v894_v47 = vmul.f32 0.25, %v824_v58  ;;  %v13426_v58 = vld [vmem:[#allocation15_spill] sm:$0xff] }
  0x96   : > { %1508 = vrot.lane.b32.xlu2 %v1224_v40, %s9678_s21  ;;  %v10576_v40 = vmul.f32 0.75, %v10483_v1  ;;  %v1225_v45 = vadd.f32 %v1201_v61, %v10595_v18  ;;  %v1250_v61 = vrot.slane %v10398_v22, 1 }
  0x97   : > { %1506 = vrot.lane.b32.xlu1 %v1223_v43, %s9678_s21  ;;  %v10588_v43 = vadd.f32 %v1307_v2, %v10338_v19  ;;  %v13423_v19 = vrot.slane %v13422_v38, 7  ;;  %v13424_v2 = vld [vmem:[#allocation14_spill] sm:$0xff]  ;;  %v918_v26 = vadd.f32 %v894_v47, %v13425_v15 }
  0x98   : > { %v10573_v24 = vpop.permute.xlu2 %1394  ;;  %v1226_v39 = vadd.f32 %v1202_v56, %v10576_v40 }
  0x99   : > { %v1377_v16 = vpop.permute.xlu1 %1376  ;;  %v821_v59 = vsel %vm818_vm1, %v13423_v19, %v820_v51  ;;  %v486_v19 = vld [vmem:[%s9799_s28 + $0x90] sm:$0xff] }
  0x9a   : > { %v10600_v34 = vsel %vm1636_vm3, %v13421_v60, %v1377_v16  ;;  %v1249_v60 = vrot.slane %v10350_v41, 1 }
  0x9b   : > { %v10584_v10 = vpop.f32.mrf.mxu0  ;;  %1504 = vrot.lane.b32.xlu0 %v1222_v46, %s9678_s21  ;;  %v892_v46 = vmul.f32 0.25, %v821_v59  ;;  %v487_v59 = vld [vmem:[%s9799_s28 + $0x98] sm:$0xff] }
  0x9d   : > { %v1373_v32 = vpop.permute.xlu0 %1372  ;;  %v916_v16 = vadd.f32 %v892_v46, %v13426_v58 }
  0x9e   : > { %8247 = vmatmul.msk.bf16.gmra.mxu0 %vm536_vm0, %v500_v35  ;;  %v10609_v23 = vsel %vm1636_vm3, %v13424_v2, %v1373_v32  ;;  %1514 = vrot.lane.b32.xlu2 %v1227_v12, %s9678_s21  ;;  %v501_v32 = vpack.c.bf16 %v487_v59, %v486_v19 }
  0x9f   : > { %1512 = vrot.lane.b32.xlu1 %v1226_v39, %s9678_s21  ;;  %v1251_v39 = vsel %vm939_vm2, %v1249_v60, %v1250_v61  ;;  %v1255_v60 = vrot.slane %v10431_v9, 1 }
  0xa0   : > { %v10615_v51 = vpop.permute.xlu2 %1400  ;;  %v1314_v2 = vmul.f32 0.25, %v1251_v39 }
  0xa1   : > { %v1379_v56 = vpop.permute.xlu1 %1378 }
  0xa2   : > { %v10622_v12 = vsel %vm1636_vm3, %v918_v26, %v1379_v56  ;;  %v1243_v56 = vrot.slane %v10312_v49, 1 }
  0xa3   : > { %v10617_v35 = vpop.f32.mrf.mxu0  ;;  %1510 = vrot.lane.b32.xlu0 %v1225_v45, %s9678_s21  ;;  %v10643_v45 = vadd.f32 %v1314_v2, %v10411_v63  ;;  %v1247_v2 = vrot.slane %v10360_v36, 1 }
  0xa5   : > { %v1375_v38 = vpop.permute.xlu0 %1374 }
  0xa6   : > { %v10627_v47 = vsel %vm1636_vm3, %v916_v16, %v1375_v38  ;;  %1568 = vrot.lane.b32.xlu2 %v10489_v53, %s9679_s22  ;;  %v1259_v16 = vrot.slane %v10401_v37, 1 }
  0xa7   : > { %1566 = vrot.lane.b32.xlu1 %v10492_v52, %s9679_s22  ;;  %v1244_v52 = vrot.slane %v10316_v11, 1 }
  0xa8   : > { %v10638_v41 = vpop.permute.xlu2 %1406 }
  0xa9   : > { %v10645_v15 = vpop.permute.xlu1 %1386  ;;  %v1245_v49 = vsel %vm939_vm2, %v1243_v56, %v1244_v52 }
  0xaa   : > { %v1310_v9 = vmul.f32 0.25, %v1245_v49  ;;  %v1261_v49 = vrot.slane %v10483_v1, 1 }
  0xab   : > { %v10640_v46 = vpop.f32.mrf.mxu0  ;;  %1564 = vrot.lane.b32.xlu0 %v10503_v6, %s9679_s22  ;;  %v1293_v6 = vsel %vm939_vm2, %v1244_v52, %v10316_v11 }
  0xac   : > { %v1311_v19 = vmul.f32 0.25, %v1293_v6 }
  0xad   : > { %v10650_v53 = vpop.permute.xlu0 %1384 }
  0xae   : > { %8248 = vmatmul.msk.bf16.gmra.mxu0 %vm536_vm0, %v501_v32  ;;  %1574 = vrot.lane.b32.xlu2 %v10537_v8, %s9679_s22  ;;  %v1258_v8 = vrot.slane %v10448_v17, 1 }
  0xaf   : > { %1572 = vrot.lane.b32.xlu1 %v10540_v4, %s9679_s22  ;;  %v1256_v4 = vrot.slane %v10463_v42, 1 }
  0xb0   : > { %v10657_v26 = vpop.permute.xlu2 %1412 }
  0xb1   : > { %v10662_v58 = vpop.permute.xlu1 %1392  ;;  %v1257_v11 = vsel %vm939_vm2, %v1255_v60, %v1256_v4  ;;  %v1334_v60 = vadd.f32 %v1310_v9, %v10376_v50 }
  0xb2   : > { %v1318_v59 = vmul.f32 0.25, %v1257_v11 }
  0xb3   : > { %v10659_v63 = vpop.f32.mrf.mxu0  ;;  %1570 = vrot.lane.b32.xlu0 %v10543_v62, %s9679_s22  ;;  %v1260_v62 = vsel %vm939_vm2, %v1258_v8, %v1259_v16 }
  0xb4   : > { %v1320_v17 = vmul.f32 0.25, %v1260_v62  ;;  %v10693_v56 = vadd.f32 %v1318_v59, %v10532_v3  ;;  %v1294_v3 = vsel %vm939_vm2, %v1247_v2, %v10360_v36  ;;  %v1252_v36 = vrot.slane %v10381_v14, 1 }
  0xb5   : > { %v10672_v38 = vpop.permute.xlu0 %1390  ;;  %v1313_v62 = vmul.f32 0.25, %v1294_v3 }
  0xb6   : > { %1580 = vrot.lane.b32.xlu2 %v1332_v31, %s9679_s22  ;;  %v1292_v31 = vsel %vm939_vm2, %v1241_v54, %v10342_v44  ;;  %v1344_v52 = vadd.f32 %v1320_v17, %v10510_v25  ;;  %v1246_v44 = vrot.slane %v10346_v30, 1  ;;  %v1262_v54 = vrot.slane %v10500_v29, 1 }
  0xb7   : > { %1578 = vrot.lane.b32.xlu1 %v10588_v43, %s9679_s22  ;;  %v1335_v43 = vadd.f32 %v1311_v19, %v10369_v28  ;;  %v1309_v8 = vmul.f32 0.25, %v1292_v31  ;;  %v1253_v19 = vrot.slane %v10387_v57, 1  ;;  %v1337_v31 = vadd.f32 %v1313_v62, %v10417_v55  ;;  %v13430_v62 = vld [vmem:[#allocation28_spill] sm:$0xff] }
  0xb8   : > { %v10682_v39 = vpop.permute.xlu2 %1418  ;;  %v1263_v28 = vsel %vm939_vm2, %v1261_v49, %v1262_v54  ;;  %v1248_v1 = vsel %vm939_vm2, %v1246_v44, %v1247_v2 }
  0xb9   : > { %v10695_v6 = vpop.permute.xlu1 %1398  ;;  %v1322_v50 = vmul.f32 0.25, %v1263_v28  ;;  %v1296_v9 = vsel %vm939_vm2, %v1253_v19, %v10387_v57  ;;  %v1254_v2 = vsel %vm939_vm2, %v1252_v36, %v1253_v19  ;;  %v1295_v57 = vsel %vm939_vm2, %v1250_v61, %v10398_v22 }
  0xba   : > { %v1317_v14 = vmul.f32 0.25, %v1296_v9  ;;  %v1316_v44 = vmul.f32 0.25, %v1254_v2  ;;  %v1297_v19 = vsel %vm939_vm2, %v1256_v4, %v10463_v42 }
  0xbb   : > { %v10688_v32 = vpop.f32.mrf.mxu0  ;;  %1576 = vrot.lane.b32.xlu0 %v10591_v0, %s9679_s22  ;;  %v1333_v0 = vadd.f32 %v1309_v8, %v10406_v5  ;;  %v1346_v17 = vadd.f32 %v1322_v50, %v10576_v40  ;;  %v1312_v5 = vmul.f32 0.25, %v1248_v1  ;;  %v13427_v8 = vld [vmem:[#allocation5_spill] sm:$0xff]  ;;  %v1319_v50 = vmul.f32 0.25, %v1297_v19  ;;  %v13435_v19 = vld [vmem:[#allocation34_spill] sm:$0xff] }
  0xbc   : > { %v1341_v3 = vadd.f32 %v1317_v14, %v10452_v20  ;;  %v1340_v28 = vadd.f32 %v1316_v44, %v10455_v21  ;;  %v13332_v1 = vrot.slane %v13430_v62, 7  ;;  %v1299_v21 = vsel %vm939_vm2, %v1262_v54, %v10500_v29  ;;  %v13431_v54 = vld [vmem:[#allocation35_spill] sm:$0xff]  ;;  %v13432_v14 = vld [vmem:[#allocation33_spill] sm:$0xff] }
  0xbd   : > { %v10704_v25 = vpop.permute.xlu0 %1396  ;;  %v1336_v40 = vadd.f32 %v1312_v5, %v13427_v8  ;;  %v1343_v42 = vadd.f32 %v1319_v50, %v10516_v7  ;;  %v1323_v5 = vmul.f32 0.25, %v1299_v21  ;;  %v1298_v29 = vsel %vm939_vm2, %v1259_v16, %v10401_v37  ;;  %v13433_v44 = vld [vmem:[#allocation19_spill] sm:$0xff] }
  0xbe   : > { %1586 = vrot.lane.b32.xlu2 %v1335_v43, %s9679_s22  ;;  %v13333_v2 = vrot.slane %v13431_v54, 7  ;;  %v844_v8 = vrot.slane %v13432_v14, 7  ;;  %v13439_v14 = vld [vmem:[#allocation41_spill] sm:$0xff] }
  0xbf   : > { %1584 = vrot.lane.b32.xlu1 %v1334_v60, %s9679_s22 }
  0xc0   : > { %v10713_v30 = vpop.permute.xlu2 %1472  ;;  %v845_v16 = vsel %vm818_vm1, %v13333_v2, %v844_v8  ;;  %v13448_v2 = vld [vmem:[#allocation48_spill] sm:$0xff] }
  0xc1   : > { %v10720_v59 = vpop.permute.xlu1 %1404 }
  0xc3   : > { %v10716_v11 = vpop.f32.mrf.mxu0  ;;  %1582 = vrot.lane.b32.xlu0 %v1333_v0, %s9679_s22 }
  0xc5   : > { %v10726_v43 = vpop.permute.xlu0 %1402 }
  0xc6   : > { %1592 = vrot.lane.b32.xlu2 %v10643_v45, %s9679_s22  ;;  %v1315_v45 = vmul.f32 0.25, %v1295_v57  ;;  %v828_v57 = vrot.slane %v13433_v44, 7 }
  0xc7   : > { %1590 = vrot.lane.b32.xlu1 %v1337_v31, %s9679_s22 }
  0xc8   : > { %v10733_v60 = vpop.permute.xlu2 %1478  ;;  %v1339_v22 = vadd.f32 %v1315_v45, %v10470_v13  ;;  %v886_v13 = vsel %vm818_vm1, %v13430_v62, %v13332_v1  ;;  %v13446_v1 = vld [vmem:[#allocation24_spill] sm:$0xff] }
  0xc9   : > { %v10741_v49 = vpop.permute.xlu1 %1410  ;;  %v905_v9 = vmul.f32 0.25, %v886_v13  ;;  %v908_v13 = vmul.f32 0.25, %v845_v16 }
  0xcb   : > { %v10739_v55 = vpop.f32.mrf.mxu0  ;;  %1588 = vrot.lane.b32.xlu0 %v1336_v40, %s9679_s22  ;;  %v929_v37 = vadd.f32 %v905_v9, %v13435_v19 }
  0xcc   : > { %13428 = vst [vmem:[#allocation39_spill] sm:$0xff] %v10739_v55 }
  0xcd   : > { %v10746_v0 = vpop.permute.xlu0 %1408 }
  0xce   : > { %1598 = vrot.lane.b32.xlu2 %v1341_v3, %s9679_s22  ;;  %v13434_v3 = vld [vmem:[#allocation18_spill] sm:$0xff] }
  0xcf   : > { %1596 = vrot.lane.b32.xlu1 %v1340_v28, %s9679_s22  ;;  %v829_v45 = vrot.slane %v13434_v3, 7  ;;  %v1321_v28 = vmul.f32 0.25, %v1298_v29  ;;  %v882_v3 = vsel %vm818_vm1, %v13433_v44, %v828_v57 }
  0xd0   : > { %v10753_v61 = vpop.permute.xlu2 %1484 }
  0xd1   : > { %v10758_v36 = vpop.permute.xlu1 %1416  ;;  %v830_v50 = vsel %vm818_vm1, %v828_v57, %v829_v45  ;;  %v1345_v21 = vadd.f32 %v1321_v28, %v10595_v18  ;;  %v13331_v18 = vrot.slane %v13439_v14, 7  ;;  %v13440_v45 = vld [vmem:[#allocation23_spill] sm:$0xff]  ;;  %v13444_v57 = vld [vmem:[#allocation17_spill] sm:$0xff] }
  0xd2   : > { %v13334_v28 = vrot.slane %v13440_v45, 7 }
  0xd3   : > { %v10755_v20 = vpop.f32.mrf.mxu0  ;;  %1594 = vrot.lane.b32.xlu0 %v1339_v22, %s9679_s22 }
  0xd4   : > { %13429 = vst [vmem:[#allocation4_spill] sm:$0xff] %v10755_v20 }
  0xd5   : > { %v10768_v4 = vpop.permute.xlu0 %1414 }
  0xd6   : > { %1604 = vrot.lane.b32.xlu2 %v1344_v52, %s9679_s22  ;;  %v1347_v52 = vadd.f32 %v1323_v5, %v10560_v33  ;;  %v1788_v33 = vld [vmem:[#allocation2 + $0xc] sm:$0x1] }
  0xd7   : > { %1602 = vrot.lane.b32.xlu1 %v1343_v42, %s9679_s22  ;;  %v1651_v42 = vsel %vm1636_vm3, %v929_v37, %v10615_v51  ;;  %v1789_v29 = vsel %vm10800_vm5, 0, %v1788_v33  ;;  %v13442_v37 = vld [vmem:[#allocation40_spill] sm:$0xff]  ;;  %v897_v33 = vmul.f32 0.25, %v882_v3 }
  0xd8   : > { %v10772_v31 = vpop.permute.xlu2 %1490  ;;  %1790 = vst [vmem:[#allocation2 + $0xc] sm:$0x1] %v1789_v29  ;;  %v932_v16 = vadd.f32 %v908_v13, %v13442_v37  ;;  %v832_v29 = vrot.slane %v13444_v57, 7  ;;  %v884_v13 = vsel %vm818_vm1, %v13440_v45, %v13334_v28  ;;  %v13445_v3 = vld [vmem:[#allocation16_spill] sm:$0xff] }
  0xd9   : > { %v10782_v40 = vpop.permute.xlu1 %1470  ;;  %v13451_v55 = vrot.slane %v13445_v3, 7 }
  0xdb   : > { %v10778_v7 = vpop.f32.mrf.mxu0  ;;  %1600 = vrot.lane.b32.xlu0 %v10693_v56, %s9679_s22 }
  0xdd   : > { %v10793_v22 = vpop.permute.xlu0 %1468 }
  0xde   : > { %1610 = vrot.lane.b32.xlu2 %v1347_v52, %s9679_s22  ;;  %v898_v52 = vmul.f32 0.25, %v830_v50  ;;  %v889_v50 = vsel %vm818_vm1, %v13439_v14, %v13331_v18 }
  0xdf   : > { %1608 = vrot.lane.b32.xlu1 %v1346_v17, %s9679_s22  ;;  %v13441_v17 = vld [vmem:[#allocation27_spill] sm:$0xff]  ;;  %v911_v37 = vmul.f32 0.25, %v889_v50 }
  0xe0   : > { %v1497_v5 = vpop.permute.xlu2 %1496  ;;  %v13452_v50 = vld [vmem:[#allocation31_spill] sm:$0xff] }
  0xe1   : > { %v10813_v8 = vsel %vm536_vm0, %v1651_v42, %v1497_v5  ;;  %v1477_v51 = vpop.permute.xlu1 %1476  ;;  %v13443_v5 = vld [vmem:[#allocation22_spill] sm:$0xff] }
  0xe2   : > { %v10821_v19 = vsel %vm536_vm0, %v13441_v17, %v1477_v51  ;;  %v922_v44 = vadd.f32 %v898_v52, %v13443_v5  ;;  %v1654_v17 = vsel %vm1636_vm3, %v932_v16, %v10638_v41  ;;  %v921_v52 = vadd.f32 %v897_v33, %v13446_v1  ;;  %v13447_v5 = vld [vmem:[#allocation49_spill] sm:$0xff]  ;;  %v13453_v33 = vld [vmem:[#allocation30_spill] sm:$0xff] }
  0xe3   : > { %v10807_v9 = vpop.f32.mrf.mxu0  ;;  %1606 = vrot.lane.b32.xlu0 %v1345_v21, %s9679_s22  ;;  %v901_v51 = vmul.f32 0.25, %v884_v13  ;;  %v833_v41 = vsel %vm818_vm1, %v13451_v55, %v832_v29  ;;  %v837_v1 = vrot.slane %v13452_v50, 7  ;;  %v838_v57 = vrot.slane %v13453_v33, 7  ;;  %v13456_v55 = vld [vmem:[#allocation26_spill] sm:$0xff] }
  0xe4   : > { %13438 = vst [vmem:[#allocation10_spill] sm:$0xff] %v10807_v9  ;;  %v853_v9 = vrot.slane %v13448_v2, 7  ;;  %v1644_v28 = vsel %vm1636_vm3, %v922_v44, %v10645_v15  ;;  %v900_v20 = vmul.f32 0.25, %v833_v41  ;;  %v13455_v15 = vrot.slane %v13447_v5, 7 }
  0xe5   : > { %v1475_v42 = vpop.permute.xlu0 %1474  ;;  %v925_v29 = vadd.f32 %v901_v51, %v13456_v55  ;;  %v839_v33 = vsel %vm818_vm1, %v837_v1, %v838_v57  ;;  %v13462_v55 = vld [vmem:[#allocation29_spill] sm:$0xff] }
  0xe6   : > { %v10832_v21 = vsel %vm536_vm0, %v10622_v12, %v1475_v42  ;;  %v854_v44 = vsel %vm818_vm1, %v13455_v15, %v853_v9  ;;  %v904_v51 = vmul.f32 0.25, %v839_v33 }
  0xe7   : > { %v1647_v9 = vsel %vm1636_vm3, %v925_v29, %v10662_v58  ;;  %v841_v29 = vrot.slane %v13462_v55, 7 }
  0xe8   : > { %v1503_v18 = vpop.permute.xlu2 %1502 }
  0xe9   : > { %v10845_v12 = vsel %vm536_vm0, %v1654_v17, %v1503_v18  ;;  %v1483_v16 = vpop.permute.xlu1 %1482  ;;  %v13454_v18 = vld [vmem:[#allocation50_spill] sm:$0xff] }
  0xea   : > { %13449 = vst [vmem:[#allocation38_spill] sm:$0xff] %v10845_v12  ;;  %v10857_v2 = vsel %vm536_vm0, %v1644_v28, %v1483_v16  ;;  %v935_v17 = vadd.f32 %v911_v37, %v13454_v18  ;;  %v914_v37 = vmul.f32 0.25, %v854_v44  ;;  %v13457_v18 = vld [vmem:[#allocation32_spill] sm:$0xff] }
  0xeb   : > { %v10847_v42 = vpop.f32.mrf.mxu0 }
  0xec   : > { %13450 = vst [vmem:[#allocation12_spill] sm:$0xff] %v10847_v42  ;;  %v1643_v42 = vsel %vm1636_vm3, %v921_v52, %v10650_v53  ;;  %v1657_v28 = vsel %vm1636_vm3, %v935_v17, %v10657_v26  ;;  %v924_v53 = vadd.f32 %v900_v20, %v13457_v18  ;;  %v13458_v17 = vld [vmem:[#allocation53_spill] sm:$0xff] }
  0xed   : > { %v1481_v13 = vpop.permute.xlu0 %1480  ;;  %v938_v15 = vadd.f32 %v914_v37, %v13458_v17  ;;  %v13463_v37 = vrot.slane %v13431_v54, 7 }
  0xee   : > { %v10867_v12 = vsel %vm536_vm0, %v1643_v42, %v1481_v13  ;;  %v885_v42 = vsel %vm818_vm1, %v13452_v50, %v837_v1  ;;  %v1646_v58 = vsel %vm1636_vm3, %v924_v53, %v10672_v38  ;;  %v13461_v50 = vld [vmem:[#allocation36_spill] sm:$0xff] }
  0xef   : > { %v903_v44 = vmul.f32 0.25, %v885_v42  ;;  %v928_v1 = vadd.f32 %v904_v51, %v13461_v50  ;;  %v1660_v38 = vsel %vm1636_vm3, %v938_v15, %v10682_v39  ;;  %v13466_v50 = vld [vmem:[#allocation45_spill] sm:$0xff]  ;;  %v13467_v39 = vld [vmem:[#allocation43_spill] sm:$0xff] }
  0xf0   : > { %v1509_v16 = vpop.permute.xlu2 %1508  ;;  %v846_v55 = vrot.slane %v13466_v50, 7  ;;  %v847_v15 = vrot.slane %v13467_v39, 7 }
  0xf1   : > { %v10874_v52 = vsel %vm536_vm0, %v1657_v28, %v1509_v16  ;;  %v1489_v41 = vpop.permute.xlu1 %1488  ;;  %v1829_v28 = vld [vmem:[#allocation2 + $0x20] sm:$0x1]  ;;  %v887_v16 = vsel %vm818_vm1, %v13431_v54, %v13463_v37  ;;  %v13465_v54 = vrot.slane %v13430_v62, 7 }
  0xf2   : > { %v10881_v57 = vsel %vm536_vm0, %v1647_v9, %v1489_v41  ;;  %v1830_v18 = vsel %vm10888_vm7, 0, %v1829_v28  ;;  %v13464_v9 = vld [vmem:[#allocation37_spill] sm:$0xff]  ;;  %v1650_v41 = vsel %vm1636_vm3, %v928_v1, %v10695_v6  ;;  %v907_v17 = vmul.f32 0.25, %v887_v16  ;;  %v13468_v6 = vld [vmem:[#allocation46_spill] sm:$0xff] }
  0xf3   : > { %v10883_v26 = vpop.f32.mrf.mxu0  ;;  %1831 = vst [vmem:[#allocation2 + $0x20] sm:$0x1] %v1830_v18  ;;  %v927_v51 = vadd.f32 %v903_v44, %v13464_v9 }
  0xf4   : > { %v931_v1 = vadd.f32 %v907_v17, %v13468_v6  ;;  %v888_v17 = vsel %vm818_vm1, %v13466_v50, %v846_v55  ;;  %v13470_v50 = vrot.slane %v13445_v3, 7  ;;  %v10966_v6 = vld [vmem:[%s13263_s5] ss:$0 sm:$0xff] }
  0xf5   : > { %v1487_v13 = vpop.permute.xlu0 %1486  ;;  %v1649_v44 = vsel %vm1636_vm3, %v927_v51, %v10704_v25  ;;  %v848_v25 = vsel %vm818_vm1, %v846_v55, %v847_v15  ;;  %v13469_v51 = vld [vmem:[#allocation47_spill] sm:$0xff]  ;;  %v10952_v15 = vld [vmem:[%s13262_s4] ss:$0 sm:$0xff] }
  0xf6   : > { %v10897_v33 = vsel %vm536_vm0, %v1646_v58, %v1487_v13  ;;  %v842_v58 = vsel %vm818_vm1, %v13465_v54, %v841_v29  ;;  %v1797_v29 = vld [vmem:[#allocation2 + $0x30] sm:$0x1]  ;;  %v910_v39 = vmul.f32 0.25, %v848_v25  ;;  %v883_v55 = vsel %vm818_vm1, %v13445_v3, %v13470_v50  ;;  %v13472_v25 = vld [vmem:[#allocation51_spill] sm:$0xff] }
  0xf7   : > { %v906_v37 = vmul.f32 0.25, %v842_v58  ;;  %v1798_v16 = vsel %vm10800_vm5, 0, %v1797_v29  ;;  %v1736_v58 = vld [vmem:[%s10934_s24 + $0x10] sm:$0xff] }
  0xf8   : > { %v1515_v53 = vpop.permute.xlu2 %1514  ;;  %1799 = vst [vmem:[#allocation2 + $0x30] sm:$0x1] %v1798_v16  ;;  %v934_v16 = vadd.f32 %v910_v39, %v13472_v25 }
  0xf9   : > { %v10909_v42 = vsel %vm536_vm0, %v1660_v38, %v1515_v53  ;;  %v1495_v13 = vpop.permute.xlu1 %1494  ;;  %v1663_v53 = vsel %vm536_vm0, %v10600_v34, %v10713_v30 }
  0xfa   : > { %v10919_v28 = vsel %vm536_vm0, %v1650_v41, %v1495_v13  ;;  %v930_v41 = vadd.f32 %v906_v37, %v13469_v51  ;;  %v1653_v13 = vsel %vm1636_vm3, %v931_v1, %v10720_v59  ;;  %v909_v37 = vmul.f32 0.25, %v888_v17  ;;  %v1838_v17 = vld [vmem:[#allocation2 + $0x44] sm:$0x1] }
  0xfb   : > { %v10923_v38 = vpop.f32.mrf.mxu0 }
  0xfd   : > { %v1493_v18 = vpop.permute.xlu0 %1492 }
  0xfe   : > { %v10927_v62 = vsel %vm536_vm0, %v1649_v44, %v1493_v18  ;;  %v13471_v18 = vld [vmem:[#allocation42_spill] sm:$0xff] }
  0xff   : > { %v850_v59 = vrot.slane %v13471_v18, 7 }
 0x100   : > { %v1569_v9 = vpop.permute.xlu2 %1568 }
 0x101   : > { %v1688_v54 = vsel %vm1685_vm8, %v1663_v53, %v1569_v9  ;;  %v1501_v30 = vpop.permute.xlu1 %1500  ;;  %v13473_v53 = vrot.slane %v13447_v5, 7 }
 0x102   : > { %v1712_v34 = vadd.f32 %v1688_v54, %v10640_v46  ;;  %v10956_v44 = vsel %vm536_vm0, %v1653_v13, %v1501_v30  ;;  %v1652_v46 = vsel %vm1636_vm3, %v930_v41, %v10726_v43  ;;  %v899_v54 = vmul.f32 0.25, %v883_v55 }
 0x103   : > { %v890_v3 = vsel %vm818_vm1, %v13447_v5, %v13473_v53  ;;  %v1839_v43 = vsel %vm10888_vm7, 0, %v1838_v17  ;;  %v1666_v41 = vsel %vm536_vm0, %v10486_v27, %v10733_v60  ;;  %v13475_v5 = vld [vmem:[#allocation52_spill] sm:$0xff]  ;;  %v13476_v30 = vrot.slane %v13439_v14, 7  ;;  %v1739_v53 = vld [vmem:[%s10934_s24 + $0x28] sm:$0xff] }
 0x104   : > { %v1760_v1 = vadd.f32 %v1736_v58, %v1712_v34  ;;  %v13474_v58 = vld [vmem:[#allocation20_spill] sm:$0xff]  ;;  %v10980_v34 = vpop.f32.mrf.mxu0  ;;  %v933_v39 = vadd.f32 %v909_v37, %v13475_v5  ;;  %1840 = vst [vmem:[#allocation2 + $0x44] sm:$0x1] %v1839_v43  ;;  %v1656_v60 = vsel %vm1636_vm3, %v934_v16, %v10741_v49  ;;  %v13478_v43 = vrot.slane %v13440_v45, 7 }
 0x105   : > { %v1499_v29 = vpop.permute.xlu0 %1498  ;;  %v835_v13 = vrot.slane %v13474_v58, 7  ;;  %v851_v50 = vsel %vm818_vm1, %v13476_v30, %v850_v59 }
 0x106   : > { %v1865_v9 = vmul.f32 %v10952_v15, %v1760_v1  ;;  %v10977_v51 = vsel %vm536_vm0, %v1652_v46, %v1499_v29  ;;  %v1823_v1 = vld [vmem:[#allocation2 + $0x8] sm:$0x1]  ;;  %v1785_v46 = vld [vmem:[#allocation2] sm:$0x1]  ;;  %v913_v29 = vmul.f32 0.25, %v890_v3  ;;  %v1655_v49 = vsel %vm1636_vm3, %v933_v39, %v10746_v0 }
 0x107   : > { %v1824_v17 = vsel %vm10888_vm7, 0, %v1823_v1  ;;  %v1786_v27 = vsel %vm10800_vm5, 0, %v1785_v46  ;;  %v912_v16 = vmul.f32 0.25, %v851_v50  ;;  %v13480_v1 = vld [vmem:[#allocation54_spill] sm:$0xff] }
 0x108   : > { %v1893_v18 = vadd.f32 %v10966_v6, %v1865_v9  ;;  %v1575_v55 = vpop.permute.xlu2 %1574  ;;  %1825 = vst [vmem:[#allocation2 + $0x8] sm:$0x1] %v1824_v17  ;;  %v13477_v9 = vld [vmem:[#allocation21_spill] sm:$0xff] }
 0x109   : > { %v1691_v25 = vsel %vm1685_vm8, %v1666_v41, %v1575_v55  ;;  %v1507_v59 = vpop.permute.xlu1 %1506  ;;  %v923_v3 = vadd.f32 %v899_v54, %v13477_v9  ;;  %1787 = vst [vmem:[#allocation2] sm:$0x1] %v1786_v27  ;;  %v836_v41 = vsel %vm818_vm1, %v13478_v43, %v835_v13  ;;  %v937_v54 = vadd.f32 %v913_v29, %v13480_v1 }
 0x10a   : > { %vm1917_vm9 = vcmp.gt.f32.partialorder %v1893_v18, 0.0  ;;  %v1941_v14 = vmul.f32 0.01, %v1893_v18  ;;  %v1715_v37 = vadd.f32 %v1691_v25, %v10716_v11  ;;  %v11003_v58 = vsel %vm536_vm0, %v1656_v60, %v1507_v59 }
 0x10b   : > { %v1645_v45 = vsel %vm1636_vm3, %v923_v3, %v10529_v48  ;;  %v902_v13 = vmul.f32 0.25, %v836_v41  ;;  %v1659_v48 = vsel %vm1636_vm3, %v937_v54, %v10758_v36  ;;  %v13484_v41 = vld [vmem:[#allocation25_spill] sm:$0xff] }
 0x10c   : > { %v1965_v5 = vsel %vm1917_vm9, %v1893_v18, %v1941_v14  ;;  %v11008_v30 = vadd.f32 %v1739_v53, %v1715_v37  ;;  %v1669_v0 = vsel %vm536_vm0, %v1645_v45, %v10753_v61  ;;  %v13481_v53 = vld [vmem:[#allocation55_spill] sm:$0xff]  ;;  %v1742_v14 = vld [vmem:[%s10934_s24 + $0x40] sm:$0xff]  ;;  %v11028_v37 = vpop.f32.mrf.mxu0  ;;  %v1791_v36 = vld [vmem:[#allocation2 + $0x18] sm:$0x1] }
 0x10d   : > { %v1989_v11 = vpack.c.bf16 %v1965_v5, %v1965_v5  ;;  %v1505_v55 = vpop.permute.xlu0 %1504  ;;  %v936_v29 = vadd.f32 %v912_v16, %v13481_v53  ;;  %v2262_v61 = vld [vmem:[#allocation2 + $0xc] sm:$0xf]  ;;  %v926_v5 = vadd.f32 %v902_v13, %v13484_v41 }
 0x10e   : > { %13479 = vst [vmem:[#allocation44_spill] sm:$0xff] %v11008_v30  ;;  %v1868_v46 = vmul.f32 %v10952_v15, %v11008_v30  ;;  %v11016_v25 = vsel %vm536_vm0, %v1655_v49, %v1505_v55 }
 0x10f   : > { %v2031_v18 = vshrl.u32 %v1989_v11, 16  ;;  %v2034_v27 = vshll.u32 %v1989_v11, 16  ;;  %v1806_v11 = vld [vmem:[#allocation2 + $0x54] sm:$0x1]  ;;  %v1658_v45 = vsel %vm1636_vm3, %v936_v29, %v10768_v4  ;;  %v1648_v4 = vsel %vm1636_vm3, %v926_v5, %v10573_v24 }
 0x110   : > { %v1896_v39 = vadd.f32 %v10966_v6, %v1868_v46  ;;  %v1581_v50 = vpop.permute.xlu2 %1580  ;;  %v1807_v54 = vsel %vm10800_vm5, 0, %v1806_v11  ;;  %v1792_v46 = vsel %vm10800_vm5, 0, %v1791_v36  ;;  %v1662_v24 = vsel %vm536_vm0, %v10627_v47, %v10782_v40  ;;  %v1735_v11 = vld [vmem:[%s10934_s24 + $0x8] sm:$0xff] }
 0x111   : > { %v11024_v17 = vrot.slane %v2031_v18, 7  ;;  %v1694_v60 = vsel %vm1685_vm8, %v1669_v0, %v1581_v50  ;;  %v1513_v43 = vpop.permute.xlu1 %1512  ;;  %1808 = vst [vmem:[#allocation2 + $0x54] sm:$0x1] %v1807_v54  ;;  %v1661_v47 = vsel %vm536_vm0, %v10609_v23, %v10793_v22 }
 0x112   : > { %vm1920_vm12 = vcmp.gt.f32.partialorder %v1896_v39, 0.0  ;;  %v1944_v9 = vmul.f32 0.01, %v1896_v39  ;;  %v1718_v3 = vadd.f32 %v1694_v60, %v10778_v7  ;;  %v11041_v16 = vsel %vm536_vm0, %v1659_v48, %v1513_v43  ;;  %v1826_v7 = vld [vmem:[#allocation2 + $0x14] sm:$0x1] }
 0x113   : > { %v2036_v49 = vor.u32 %v2034_v27, %v11024_v17  ;;  %1793 = vst [vmem:[#allocation2 + $0x18] sm:$0x1] %v1792_v46  ;;  %v1672_v27 = vsel %vm536_vm0, %v1648_v4, %v10772_v31  ;;  %v2037_v22 = vrot.slane %v11024_v17, 4 }
 0x114   : > { %v1968_v55 = vsel %vm1920_vm12, %v1896_v39, %v1944_v9  ;;  %v11043_v1 = vadd.f32 %v1742_v14, %v1718_v3  ;;  %v1827_v39 = vsel %vm10888_vm7, 0, %v1826_v7  ;;  %v1745_v9 = vld [vmem:[%s10934_s24 + $0x58] sm:$0xff]  ;;  %v2273_v3 = vld [vmem:[#allocation2 + $0x20] sm:$0x1]  ;;  %v11079_v36 = vpop.f32.mrf.mxu0 }
 0x115   : > { %v2263_v13 = vsel %vm11033_vm11, %v2036_v49, %v2262_v61  ;;  %v11053_v18 = vpack.c.bf16 %v1968_v55, %v1968_v55  ;;  %v1511_v0 = vpop.permute.xlu0 %1510  ;;  %1828 = vst [vmem:[#allocation2 + $0x14] sm:$0x1] %v1827_v39  ;;  %v1734_v39 = vld [vmem:[%s10934_s24] sm:$0xff] }
 0x116   : > { %13485 = vst [vmem:[#allocation7_spill] sm:$0xff] %v11043_v1  ;;  %v1871_v50 = vmul.f32 %v10952_v15, %v11043_v1  ;;  %v11060_v53 = vsel %vm536_vm0, %v1658_v45, %v1511_v0  ;;  %vm2011_vm0 = vsmask.f32 4368 }
 0x117   : > { %2264 = vst [vmem:[#allocation2 + $0xc] sm:$0xf] %v2263_v13  ;;  %v2056_v29 = vshrl.u32 %v11053_v18, 16  ;;  %vm11161_vm6 = vmor %vm1783_vm4, %vm2011_vm0 }
 0x118   : > { %v1899_v60 = vadd.f32 %v10966_v6, %v1871_v50  ;;  %v1587_v14 = vpop.permute.xlu2 %1586  ;;  %v1832_v50 = vld [vmem:[#allocation2 + $0x2c] sm:$0x1] }
 0x119   : > { %v11068_v48 = vrot.slane %v2056_v29, 7  ;;  %v1697_v61 = vsel %vm1685_vm8, %v1672_v27, %v1587_v14  ;;  %v1567_v5 = vpop.permute.xlu1 %1566  ;;  %v1833_v23 = vsel %vm10888_vm7, 0, %v1832_v50 }
 0x11a   : > { %vm1923_vm13 = vcmp.gt.f32.partialorder %v1899_v60, 0.0  ;;  %v1947_v43 = vmul.f32 0.01, %v1899_v60  ;;  %v1721_v41 = vadd.f32 %v1697_v61, %v10883_v26  ;;  %v1687_v49 = vsel %vm1685_vm8, %v1662_v24, %v1567_v5  ;;  %1834 = vst [vmem:[#allocation2 + $0x2c] sm:$0x1] %v1833_v23 }
 0x11b   : > { %v2063_v31 = vrot.slane %v11068_v48, 4  ;;  %v1711_v46 = vadd.f32 %v1687_v49, %v10617_v35  ;;  %v1794_v61 = vld [vmem:[#allocation2 + $0x24] sm:$0x1] }
 0x11c   : > { %v1971_v55 = vsel %vm1923_vm13, %v1899_v60, %v1947_v43  ;;  %v11081_v54 = vadd.f32 %v1745_v9, %v1721_v41  ;;  %v2283_v9 = vld [vmem:[#allocation2 + $0x30] sm:$0xf]  ;;  %v1795_v41 = vsel %vm10800_vm5, 0, %v1794_v61 }
 0x11d   : > { %v2274_v40 = vsel %vm10800_vm5, %v2063_v31, %v2273_v3  ;;  %v1995_v26 = vpack.c.bf16 %v1971_v55, %v1971_v55  ;;  %v1565_v7 = vpop.permute.xlu0 %1564  ;;  %v1759_v13 = vadd.f32 %v1735_v11, %v1711_v46  ;;  %v1748_v43 = vld [vmem:[%s10934_s24 + $0x70] sm:$0xff]  ;;  %1796 = vst [vmem:[#allocation2 + $0x24] sm:$0x1] %v1795_v41  ;;  %v2059_v55 = vshll.u32 %v11053_v18, 16 }
 0x11e   : > { %13486 = vst [vmem:[#allocation9_spill] sm:$0xff] %v11081_v54  ;;  %v1874_v45 = vmul.f32 %v10952_v15, %v11081_v54  ;;  %v1686_v0 = vsel %vm1685_vm8, %v1661_v47, %v1565_v7 }
 0x11f   : > { %2275 = vst [vmem:[#allocation2 + $0x20] sm:$0x1] %v2274_v40  ;;  %v2082_v35 = vshrl.u32 %v1995_v26, 16  ;;  %v1710_v4 = vadd.f32 %v1686_v0, %v10584_v10  ;;  %v2085_v29 = vshll.u32 %v1995_v26, 16  ;;  %v1864_v60 = vmul.f32 %v10952_v15, %v1759_v13  ;;  %v1847_v40 = vld [vmem:[#allocation2 + $0x68] sm:$0x1] }
 0x120   : > { %v1902_v27 = vadd.f32 %v10966_v6, %v1874_v45  ;;  %v1593_v14 = vpop.permute.xlu2 %1592 }
 0x121   : > { %v11099_v24 = vrot.slane %v2082_v35, 7  ;;  %v1758_v3 = vadd.f32 %v1734_v39, %v1710_v4  ;;  %v1700_v10 = vsel %vm1685_vm8, %v10813_v8, %v1593_v14  ;;  %v1892_v31 = vadd.f32 %v10966_v6, %v1864_v60  ;;  %v1573_v11 = vpop.permute.xlu1 %1572  ;;  %v1738_v39 = vld [vmem:[%s10934_s24 + $0x20] sm:$0xff]  ;;  %v11122_v35 = vpop.f32.mrf.mxu0 }
 0x122   : > { %vm1926_vm14 = vcmp.gt.f32.partialorder %v1902_v27, 0.0  ;;  %v1950_v5 = vmul.f32 0.01, %v1902_v27  ;;  %v1724_v49 = vadd.f32 %v1700_v10, %v11028_v37  ;;  %v1690_v8 = vsel %vm1685_vm8, %v10821_v19, %v1573_v11 }
 0x123   : > { %v2087_v46 = vor.u32 %v2085_v29, %v11099_v24  ;;  %v1863_v47 = vmul.f32 %v10952_v15, %v1758_v3  ;;  %vm1916_vm15 = vcmp.gt.f32.partialorder %v1892_v31, 0.0  ;;  %v1940_v7 = vmul.f32 0.01, %v1892_v31 }
 0x124   : > { %v1974_v26 = vsel %vm1926_vm14, %v1902_v27, %v1950_v5  ;;  %v11113_v45 = vadd.f32 %v1748_v43, %v1724_v49  ;;  %v1714_v0 = vadd.f32 %v1690_v8, %v10688_v32  ;;  %v1848_v29 = vsel %vm10888_vm7, 0, %v1847_v40  ;;  %v1737_v5 = vld [vmem:[%s10934_s24 + $0x18] sm:$0xff]  ;;  %v11145_v40 = vpop.f32.mrf.mxu2 }
 0x125   : > { %v2284_v37 = vsel %vm11033_vm11, %v2087_v46, %v2283_v9  ;;  %v11117_v13 = vpack.c.bf16 %v1974_v26, %v1974_v26  ;;  %v1891_v18 = vadd.f32 %v10966_v6, %v1863_v47  ;;  %v1571_v50 = vpop.permute.xlu0 %1570  ;;  %v1964_v19 = vsel %vm1916_vm15, %v1892_v31, %v1940_v7  ;;  %1849 = vst [vmem:[#allocation2 + $0x68] sm:$0x1] %v1848_v29  ;;  %v2294_v31 = vld [vmem:[#allocation2 + $0x44] sm:$0x1] }
 0x126   : > { %13487 = vst [vmem:[#allocation6_spill] sm:$0xff] %v11113_v45  ;;  %v1877_v4 = vmul.f32 %v10952_v15, %v11113_v45  ;;  %v1689_v23 = vsel %vm1685_vm8, %v10832_v21, %v1571_v50  ;;  %v11131_v27 = vor.u32 %v2059_v55, %v11068_v48  ;;  %v1988_v60 = vpack.c.bf16 %v1964_v19, %v1964_v19  ;;  %v13489_v26 = vld [vmem:[#allocation38_spill] sm:$0xff] }
 0x127   : > { %2285 = vst [vmem:[#allocation2 + $0x30] sm:$0xf] %v2284_v37  ;;  %v2107_v32 = vshrl.u32 %v11117_v13, 16  ;;  %vm1915_vm1 = vcmp.gt.f32.partialorder %v1891_v18, 0.0  ;;  %v1939_v14 = vmul.f32 0.01, %v1891_v18  ;;  %v11135_v9 = vadd.f32 %v1738_v39, %v1714_v0 }
 0x128   : > { %v1905_v61 = vadd.f32 %v10966_v6, %v1877_v4  ;;  %v1713_v3 = vadd.f32 %v1689_v23, %v10659_v63  ;;  %v1599_v10 = vpop.permute.xlu2 %1598  ;;  %v2088_v21 = vrot.slane %v11099_v24, 4  ;;  %v2022_v41 = vshrl.u32 %v1988_v60, 16  ;;  %v2259_v37 = vld [vmem:[#allocation2 + $0x8] sm:$0x1] }
 0x129   : > { %13488 = vst [vmem:[#allocation11_spill] sm:$0xff] %v11135_v9  ;;  %v11139_v43 = vrot.slane %v2107_v32, 7  ;;  %v2025_v48 = vshll.u32 %v1988_v60, 16  ;;  %v1963_v49 = vsel %vm1915_vm1, %v1891_v18, %v1939_v14  ;;  %v1867_v55 = vmul.f32 %v10952_v15, %v11135_v9  ;;  %v1579_v46 = vpop.permute.xlu1 %1578 }
 0x12a   : > { %vm1929_vm2 = vcmp.gt.f32.partialorder %v1905_v61, 0.0  ;;  %v1953_v11 = vmul.f32 0.01, %v1905_v61  ;;  %v2024_v63 = vrot.slane %v2022_v41, 7  ;;  %v1987_v8 = vpack.c.bf16 %v1963_v49, %v1963_v49  ;;  %v1741_v49 = vld [vmem:[%s10934_s24 + $0x38] sm:$0xff] }
 0x12b   : > { %v2114_v47 = vrot.slane %v11139_v43, 4  ;;  %v1703_v7 = vsel %vm1685_vm8, %v13489_v26, %v1599_v10  ;;  %v1895_v39 = vadd.f32 %v10966_v6, %v1867_v55  ;;  %v1761_v18 = vadd.f32 %v1737_v5, %v1713_v3  ;;  %v13490_v5 = vld [vmem:[#allocation4_spill] sm:$0xff] }
 0x12c   : > { %v1977_v0 = vsel %vm1929_vm2, %v1905_v61, %v1953_v11  ;;  %v1693_v50 = vsel %vm1685_vm8, %v10857_v2, %v1579_v46  ;;  %v2027_v4 = vor.u32 %v2025_v48, %v2024_v63  ;;  %v2029_v23 = vrot.slane %v2024_v63, 4  ;;  %v2255_v11 = vld [vmem:[#allocation2] sm:$0xf] }
 0x12d   : > { %v2295_v19 = vsel %vm10800_vm5, %v2114_v47, %v2294_v31  ;;  %v2014_v29 = vshrl.u32 %v1987_v8, 16  ;;  %v1577_v32 = vpop.permute.xlu0 %1576  ;;  %v2017_v60 = vshll.u32 %v1987_v8, 16  ;;  %v2001_v14 = vpack.c.bf16 %v1977_v0, %v1977_v0  ;;  %v624_v31 = vpop.f32.mrf.mxu0 }
 0x12e   : > { %2296 = vst [vmem:[#allocation2 + $0x44] sm:$0x1] %v2295_v19  ;;  %vm1919_vm3 = vcmp.gt.f32.partialorder %v1895_v39, 0.0  ;;  %v1943_v10 = vmul.f32 0.01, %v1895_v39  ;;  %v2260_v61 = vsel %vm10800_vm5, %v2029_v23, %v2259_v37  ;;  %v1866_v41 = vmul.f32 %v10952_v15, %v1761_v18  ;;  %v13494_v19 = vld [vmem:[#allocation39_spill] sm:$0xff] }
 0x12f   : > { %v2016_v3 = vrot.slane %v2014_v29, 7  ;;  %v1717_v2 = vadd.f32 %v1693_v50, %v13490_v5  ;;  %2261 = vst [vmem:[#allocation2 + $0x8] sm:$0x1] %v2260_v61  ;;  %v2133_v55 = vshrl.u32 %v2001_v14, 16  ;;  %v2136_v46 = vshll.u32 %v2001_v14, 16  ;;  %v1740_v29 = vld [vmem:[%s10934_s24 + $0x30] sm:$0xff] }
 0x130   : > { %v1967_v47 = vsel %vm1919_vm3, %v1895_v39, %v1943_v10  ;;  %v1692_v63 = vsel %vm1685_vm8, %v10867_v12, %v1577_v32  ;;  %v1894_v0 = vadd.f32 %v10966_v6, %v1866_v41  ;;  %v1727_v61 = vadd.f32 %v1703_v7, %v624_v31  ;;  %v1751_v5 = vld [vmem:[%s10934_s24 + $0x88] sm:$0xff]  ;;  %v2304_v32 = vld [vmem:[#allocation2 + $0x54] sm:$0xf]  ;;  %v1815_v10 = vld [vmem:[#allocation2 + $0x78] sm:$0x1] }
 0x131   : > { %v2019_v8 = vor.u32 %v2017_v60, %v2016_v3  ;;  %v2020_v26 = vrot.slane %v2016_v3, 4  ;;  %v1991_v37 = vpack.c.bf16 %v1967_v47, %v1967_v47  ;;  %v11168_v18 = vrot.slane %v2133_v55, 7  ;;  %v1605_v3 = vpop.permute.xlu2 %1604  ;;  %v1800_v47 = vld [vmem:[#allocation2 + $0x3c] sm:$0x1] }
 0x132   : > { %v11170_v50 = vadd.f32 %v1741_v49, %v1717_v2  ;;  %v1716_v23 = vadd.f32 %v1692_v63, %v13494_v19  ;;  %v2110_v14 = vshll.u32 %v11117_v13, 16  ;;  %vm1918_vm4 = vcmp.gt.f32.partialorder %v1894_v0, 0.0 }
 0x133   : > { %v2028_v39 = vsel %vm11161_vm6, %v2020_v26, %v2027_v4  ;;  %v2256_v12 = vsel %vm11033_vm11, %v2019_v8, %v2255_v11  ;;  %v2048_v60 = vshrl.u32 %v1991_v37, 16  ;;  %v2138_v41 = vor.u32 %v2136_v46, %v11168_v18  ;;  %v11187_v11 = vpop.f32.mrf.mxu2  ;;  %v2269_v46 = vld [vmem:[#allocation2 + $0x18] sm:$0xf] }
 0x134   : > { %13493 = vst [vmem:[#allocation8_spill] sm:$0xff] %v11170_v50  ;;  %v2051_v2 = vshll.u32 %v1991_v37, 16  ;;  %v1942_v49 = vmul.f32 0.01, %v1894_v0  ;;  %v1870_v31 = vmul.f32 %v10952_v15, %v11170_v50  ;;  %v11183_v55 = vadd.f32 %v1740_v29, %v1716_v23 }
 0x135   : > { %2257 = vst [vmem:[#allocation2] sm:$0xf] %v2256_v12  ;;  %v2050_v7 = vrot.slane %v2048_v60, 7  ;;  %v11185_v4 = vadd.f32 %v1751_v5, %v1727_v61  ;;  %v2305_v63 = vsel %vm11033_vm11, %v2138_v41, %v2304_v32  ;;  %v1816_v26 = vsel %vm10800_vm5, 0, %v1815_v10  ;;  %v1754_v12 = vld [vmem:[%s10934_s24 + $0xa0] sm:$0xff]  ;;  %v1583_v10 = vpop.permute.xlu0 %1582 }
 0x136   : > { %2258 = vst [vmem:[#allocation2 + $0x4] sm:$0xf] %v2028_v39  ;;  %v1966_v8 = vsel %vm1918_vm4, %v1894_v0, %v1942_v49  ;;  %v1706_v37 = vsel %vm1685_vm8, %v10874_v52, %v1605_v3  ;;  %v1898_v61 = vadd.f32 %v10966_v6, %v1870_v31  ;;  %v1869_v5 = vmul.f32 %v10952_v15, %v11183_v55  ;;  %v1585_v52 = vpop.permute.xlu1 %1584  ;;  %v1835_v60 = vld [vmem:[#allocation2 + $0x38] sm:$0x1] }
 0x137   : > { %13495 = vst [vmem:[#allocation14_spill] sm:$0xff] %v11183_v55  ;;  %v2053_v19 = vor.u32 %v2051_v2, %v2050_v7  ;;  %v2054_v23 = vrot.slane %v2050_v7, 4  ;;  %v1990_v29 = vpack.c.bf16 %v1966_v8, %v1966_v8  ;;  %v1880_v39 = vmul.f32 %v10952_v15, %v11185_v4 }
 0x138   : > { %13496 = vst [vmem:[#allocation13_spill] sm:$0xff] %v11185_v4  ;;  %v1730_v0 = vadd.f32 %v1706_v37, %v11145_v40  ;;  %v1801_v32 = vsel %vm10800_vm5, 0, %v1800_v47  ;;  %vm1922_vm9 = vcmp.gt.f32.partialorder %v1898_v61, 0.0  ;;  %v1946_v40 = vmul.f32 0.01, %v1898_v61 }
 0x139   : > { %2306 = vst [vmem:[#allocation2 + $0x54] sm:$0xf] %v2305_v63  ;;  %v2062_v3 = vsel %vm11161_vm6, %v2054_v23, %v11131_v27  ;;  %v2270_v41 = vsel %vm11033_vm11, %v2053_v19, %v2269_v46  ;;  %v2039_v2 = vshrl.u32 %v1990_v29, 16  ;;  %v2042_v49 = vshll.u32 %v1990_v29, 16  ;;  %v2266_v47 = vld [vmem:[#allocation2 + $0x14] sm:$0x1] }
 0x13a   : > { %1817 = vst [vmem:[#allocation2 + $0x78] sm:$0x1] %v1816_v26  ;;  %v1897_v7 = vadd.f32 %v10966_v6, %v1869_v5  ;;  %v1908_v31 = vadd.f32 %v10966_v6, %v1880_v39  ;;  %v1778_v8 = vadd.f32 %v1754_v12, %v1730_v0  ;;  %v1696_v27 = vsel %vm1685_vm8, %v10881_v57, %v1585_v52  ;;  %v1744_v39 = vld [vmem:[%s10934_s24 + $0x50] sm:$0xff] }
 0x13b   : > { %1802 = vst [vmem:[#allocation2 + $0x3c] sm:$0x1] %v1801_v32  ;;  %v2041_v63 = vrot.slane %v2039_v2, 7  ;;  %v1836_v46 = vsel %vm10888_vm7, 0, %v1835_v60  ;;  %v1970_v26 = vsel %vm1922_vm9, %v1898_v61, %v1946_v40  ;;  %v13497_v0 = vld [vmem:[#allocation12_spill] sm:$0xff]  ;;  %v1695_v57 = vsel %vm1685_vm8, %v10897_v33, %v1583_v10 }
 0x13c   : > { %2271 = vst [vmem:[#allocation2 + $0x18] sm:$0xf] %v2270_v41  ;;  %vm1921_vm10 = vcmp.gt.f32.partialorder %v1897_v7, 0.0  ;;  %v1945_v37 = vmul.f32 0.01, %v1897_v7  ;;  %vm1932_vm12 = vcmp.gt.f32.partialorder %v1908_v31, 0.0  ;;  %v1994_v29 = vpack.c.bf16 %v1970_v26, %v1970_v26 }
 0x13d   : > { %2272 = vst [vmem:[#allocation2 + $0x1c] sm:$0xf] %v2062_v3  ;;  %v2044_v19 = vor.u32 %v2042_v49, %v2041_v63  ;;  %v2046_v23 = vrot.slane %v2041_v63, 4  ;;  %v1956_v5 = vmul.f32 0.01, %v1908_v31  ;;  %v1883_v3 = vmul.f32 %v10952_v15, %v1778_v8  ;;  %v11226_v49 = vpop.f32.mrf.mxu2 }
 0x13e   : > { %1837 = vst [vmem:[#allocation2 + $0x38] sm:$0x1] %v1836_v46  ;;  %v1969_v32 = vsel %vm1921_vm10, %v1897_v7, %v1945_v37  ;;  %v1720_v12 = vadd.f32 %v1696_v27, %v13497_v0  ;;  %v1841_v52 = vld [vmem:[#allocation2 + $0x50] sm:$0x1]  ;;  %v2073_v41 = vshrl.u32 %v1994_v29, 16  ;;  %v2076_v2 = vshll.u32 %v1994_v29, 16 }
 0x13f   : > { %v2045_v61 = vsel %vm11161_vm6, %v2037_v22, %v2044_v19  ;;  %v2267_v60 = vsel %vm10800_vm5, %v2046_v23, %v2266_v47  ;;  %v1993_v40 = vpack.c.bf16 %v1969_v32, %v1969_v32  ;;  %v1980_v7 = vsel %vm1932_vm12, %v1908_v31, %v1956_v5  ;;  %v13499_v22 = vld [vmem:[#allocation10_spill] sm:$0xff]  ;;  %v1743_v27 = vld [vmem:[%s10934_s24 + $0x48] sm:$0xff]  ;;  %v1591_v19 = vpop.permute.xlu1 %1590  ;;  %v1589_v31 = vpop.permute.xlu0 %1588 }
 0x140   : > { %2265 = vst [vmem:[#allocation2 + $0x10] sm:$0xf] %v2045_v61  ;;  %v1911_v33 = vadd.f32 %v10966_v6, %v1883_v3  ;;  %v11230_v10 = vadd.f32 %v1744_v39, %v1720_v12  ;;  %v2075_v17 = vrot.slane %v2073_v41, 7  ;;  %v11232_v63 = vpack.c.bf16 %v1980_v7, %v1980_v7  ;;  %v2280_v46 = vld [vmem:[#allocation2 + $0x2c] sm:$0x1] }
 0x141   : > { %2268 = vst [vmem:[#allocation2 + $0x14] sm:$0x1] %v2267_v60  ;;  %v1719_v8 = vadd.f32 %v1695_v57, %v13499_v22  ;;  %v1842_v47 = vsel %vm10888_vm7, 0, %v1841_v52  ;;  %v2065_v26 = vshrl.u32 %v1993_v40, 16  ;;  %v2068_v5 = vshll.u32 %v1993_v40, 16 }
 0x142   : > { %13498 = vst [vmem:[#allocation15_spill] sm:$0xff] %v11230_v10  ;;  %vm1935_vm13 = vcmp.gt.f32.partialorder %v1911_v33, 0.0  ;;  %v1959_v37 = vmul.f32 0.01, %v1911_v33  ;;  %v2078_v23 = vor.u32 %v2076_v2, %v2075_v17  ;;  %v2080_v29 = vrot.slane %v2075_v17, 4 }
 0x143   : > { %v2158_v39 = vshrl.u32 %v11232_v63, 16  ;;  %v2067_v32 = vrot.slane %v2065_v26, 7  ;;  %v1873_v0 = vmul.f32 %v10952_v15, %v11230_v10  ;;  %v11241_v12 = vadd.f32 %v1743_v27, %v1719_v8  ;;  %1843 = vst [vmem:[#allocation2 + $0x50] sm:$0x1] %v1842_v47  ;;  %v2276_v52 = vld [vmem:[#allocation2 + $0x24] sm:$0xf] }
 0x144   : > { %v1983_v3 = vsel %vm1935_vm13, %v1911_v33, %v1959_v37  ;;  %v2281_v57 = vsel %vm10800_vm5, %v2080_v29, %v2280_v46  ;;  %v1699_v41 = vsel %vm1685_vm8, %v10919_v28, %v1591_v19  ;;  %v2315_v7 = vld [vmem:[#allocation2 + $0x68] sm:$0x1]  ;;  %v11255_v22 = vor.u32 %v2110_v14, %v11139_v43  ;;  %v1611_v28 = vpop.permute.xlu2 %1610 }
 0x145   : > { %13500 = vst [vmem:[#allocation5_spill] sm:$0xff] %v11241_v12  ;;  %v11245_v61 = vrot.slane %v2158_v39, 7  ;;  %v2007_v60 = vpack.c.bf16 %v1983_v3, %v1983_v3  ;;  %v2070_v2 = vor.u32 %v2068_v5, %v2067_v32  ;;  %v2071_v40 = vrot.slane %v2067_v32, 4  ;;  %v1803_v46 = vld [vmem:[#allocation2 + $0x48] sm:$0x1]  ;;  %v639_v39 = vpop.f32.mrf.mxu2 }
 0x146   : > { %2282 = vst [vmem:[#allocation2 + $0x2c] sm:$0x1] %v2281_v57  ;;  %v1901_v33 = vadd.f32 %v10966_v6, %v1873_v0  ;;  %v1872_v17 = vmul.f32 %v10952_v15, %v11241_v12  ;;  %v1723_v29 = vadd.f32 %v1699_v41, %v10980_v34  ;;  %v1747_v5 = vld [vmem:[%s10934_s24 + $0x68] sm:$0xff]  ;;  %v2325_v32 = vld [vmem:[#allocation2 + $0x78] sm:$0xf]  ;;  %v1804_v0 = vsel %vm10800_vm5, 0, %v1803_v46 }
 0x147   : > { %v2165_v8 = vrot.slane %v11245_v61, 4  ;;  %v2184_v27 = vshrl.u32 %v2007_v60, 16  ;;  %v2187_v47 = vshll.u32 %v2007_v60, 16  ;;  %v2079_v26 = vsel %vm11161_vm6, %v2071_v40, %v2078_v23  ;;  %v1856_v23 = vld [vmem:[#allocation2 + $0x8c] sm:$0x1]  ;;  %v1757_v40 = vld [vmem:[%s10934_s24 + $0xb8] sm:$0xff] }
 0x148   : > { %v2277_v37 = vsel %vm11033_vm11, %v2070_v2, %v2276_v52  ;;  %vm1925_vm14 = vcmp.gt.f32.partialorder %v1901_v33, 0.0  ;;  %v1949_v19 = vmul.f32 0.01, %v1901_v33  ;;  %v1900_v14 = vadd.f32 %v10966_v6, %v1872_v17  ;;  %2279 = vst [vmem:[#allocation2 + $0x28] sm:$0xf] %v2079_v26  ;;  %v1746_v2 = vld [vmem:[%s10934_s24 + $0x60] sm:$0xff] }
 0x149   : > { %2278 = vst [vmem:[#allocation2 + $0x24] sm:$0xf] %v2277_v37  ;;  %v2316_v13 = vsel %vm10800_vm5, %v2165_v8, %v2315_v7  ;;  %v11264_v43 = vrot.slane %v2184_v27, 7  ;;  %v1698_v57 = vsel %vm1685_vm8, %v10927_v62, %v1589_v31  ;;  %v1709_v52 = vsel %vm1685_vm8, %v10909_v42, %v1611_v28  ;;  %v1809_v62 = vld [vmem:[#allocation2 + $0x60] sm:$0x1]  ;;  %v1597_v31 = vpop.permute.xlu1 %1596  ;;  %v1595_v27 = vpop.permute.xlu0 %1594 }
 0x14a   : > { %v1973_v3 = vsel %vm1925_vm14, %v1901_v33, %v1949_v19  ;;  %v2161_v60 = vshll.u32 %v11232_v63, 16  ;;  %2317 = vst [vmem:[#allocation2 + $0x68] sm:$0x1] %v2316_v13  ;;  %vm1924_vm15 = vcmp.gt.f32.partialorder %v1900_v14, 0.0  ;;  %v1948_v7 = vmul.f32 0.01, %v1900_v14 }
 0x14b   : > { %v2189_v34 = vor.u32 %v2187_v47, %v11264_v43  ;;  %v1997_v41 = vpack.c.bf16 %v1973_v3, %v1973_v3  ;;  %v11279_v33 = vadd.f32 %v1747_v5, %v1723_v29  ;;  %1805 = vst [vmem:[#allocation2 + $0x48] sm:$0x1] %v1804_v0  ;;  %v1722_v17 = vadd.f32 %v1698_v57, %v10923_v38  ;;  %v1750_v57 = vld [vmem:[%s10934_s24 + $0x80] sm:$0xff] }
 0x14c   : > { %v1733_v8 = vadd.f32 %v1709_v52, %v639_v39  ;;  %v1857_v47 = vsel %vm10888_vm7, 0, %v1856_v23  ;;  %v1972_v26 = vsel %vm1924_vm15, %v1900_v14, %v1948_v7  ;;  %v1810_v5 = vsel %vm10800_vm5, 0, %v1809_v62  ;;  %v2290_v23 = vld [vmem:[#allocation2 + $0x3c] sm:$0xf]  ;;  %v2287_v62 = vld [vmem:[#allocation2 + $0x38] sm:$0x1] }
 0x14d   : > { %13501 = vst [vmem:[#allocation28_spill] sm:$0xff] %v11279_v33  ;;  %v2326_v42 = vsel %vm11033_vm11, %v2189_v34, %v2325_v32  ;;  %v2099_v28 = vshrl.u32 %v1997_v41, 16  ;;  %v2102_v46 = vshll.u32 %v1997_v41, 16  ;;  %v1876_v37 = vmul.f32 %v10952_v15, %v11279_v33 }
 0x14e   : > { %2327 = vst [vmem:[#allocation2 + $0x78] sm:$0xf] %v2326_v42  ;;  %v11289_v38 = vadd.f32 %v1746_v2, %v1722_v17  ;;  %v1781_v19 = vadd.f32 %v1757_v40, %v1733_v8  ;;  %v1996_v29 = vpack.c.bf16 %v1972_v26, %v1972_v26  ;;  %v1702_v39 = vsel %vm1685_vm8, %v10956_v44, %v1597_v31  ;;  %v1844_v42 = vld [vmem:[#allocation2 + $0x5c] sm:$0x1] }
 0x14f   : > { %v2101_v13 = vrot.slane %v2099_v28, 7  ;;  %1858 = vst [vmem:[#allocation2 + $0x8c] sm:$0x1] %v1857_v47  ;;  %v1904_v32 = vadd.f32 %v10966_v6, %v1876_v37  ;;  %v1726_v0 = vadd.f32 %v1702_v39, %v11122_v35  ;;  %v627_v47 = vpop.f32.mrf.mxu0  ;;  %v1701_v39 = vsel %vm1685_vm8, %v10977_v51, %v1595_v27 }
 0x150   : > { %13502 = vst [vmem:[#allocation35_spill] sm:$0xff] %v11289_v38  ;;  %v1875_v14 = vmul.f32 %v10952_v15, %v11289_v38  ;;  %v1886_v3 = vmul.f32 %v10952_v15, %v1781_v19  ;;  %v2090_v41 = vshrl.u32 %v1996_v29, 16  ;;  %v2093_v2 = vshll.u32 %v1996_v29, 16 }
 0x151   : > { %1811 = vst [vmem:[#allocation2 + $0x60] sm:$0x1] %v1810_v5  ;;  %v2104_v52 = vor.u32 %v2102_v46, %v2101_v13  ;;  %v2105_v34 = vrot.slane %v2101_v13, 4  ;;  %vm1928_vm0 = vcmp.gt.f32.partialorder %v1904_v32, 0.0  ;;  %v1952_v40 = vmul.f32 0.01, %v1904_v32 }
 0x152   : > { %v1903_v44 = vadd.f32 %v10966_v6, %v1875_v14  ;;  %v1914_v7 = vadd.f32 %v10966_v6, %v1886_v3  ;;  %v2092_v35 = vrot.slane %v2090_v41, 7  ;;  %v11308_v31 = vadd.f32 %v1750_v57, %v1726_v0  ;;  %v1601_v14 = vpop.permute.xlu0 %1600 }
 0x153   : > { %v2113_v17 = vsel %vm11161_vm6, %v2105_v34, %v11255_v22  ;;  %v2291_v8 = vsel %vm11033_vm11, %v2104_v52, %v2290_v23  ;;  %v1976_v28 = vsel %vm1928_vm0, %v1904_v32, %v1952_v40  ;;  %v1845_v5 = vsel %vm10888_vm7, 0, %v1844_v42  ;;  %v1603_v23 = vpop.permute.xlu1 %1602  ;;  %v1812_v32 = vld [vmem:[#allocation2 + $0x6c] sm:$0x1] }
 0x154   : > { %13503 = vst [vmem:[#allocation33_spill] sm:$0xff] %v11308_v31  ;;  %vm1927_vm1 = vcmp.gt.f32.partialorder %v1903_v44, 0.0  ;;  %v1951_v46 = vmul.f32 0.01, %v1903_v44  ;;  %vm1938_vm2 = vcmp.gt.f32.partialorder %v1914_v7, 0.0  ;;  %v2095_v26 = vor.u32 %v2093_v2, %v2092_v35 }
 0x155   : > { %2292 = vst [vmem:[#allocation2 + $0x3c] sm:$0xf] %v2291_v8  ;;  %v2097_v37 = vrot.slane %v2092_v35, 4  ;;  %v2000_v19 = vpack.c.bf16 %v1976_v28, %v1976_v28  ;;  %v1962_v13 = vmul.f32 0.01, %v1914_v7  ;;  %v1879_v29 = vmul.f32 %v10952_v15, %v11308_v31  ;;  %v1752_v28 = vld [vmem:[%s10934_s24 + $0x90] sm:$0xff] }
 0x156   : > { %2293 = vst [vmem:[#allocation2 + $0x40] sm:$0xf] %v2113_v17  ;;  %v1975_v22 = vsel %vm1927_vm1, %v1903_v44, %v1951_v46  ;;  %v2096_v3 = vsel %vm11161_vm6, %v2088_v21, %v2095_v26  ;;  %v1725_v27 = vadd.f32 %v1701_v39, %v11079_v36  ;;  %v1749_v21 = vld [vmem:[%s10934_s24 + $0x78] sm:$0xff]  ;;  %v1813_v40 = vsel %vm10800_vm5, 0, %v1812_v32  ;;  %v2301_v17 = vld [vmem:[#allocation2 + $0x50] sm:$0x1] }
 0x157   : > { %v2288_v0 = vsel %vm10800_vm5, %v2097_v37, %v2287_v62  ;;  %v2124_v57 = vshrl.u32 %v2000_v19, 16  ;;  %v2127_v52 = vshll.u32 %v2000_v19, 16  ;;  %1846 = vst [vmem:[#allocation2 + $0x5c] sm:$0x1] %v1845_v5  ;;  %v1999_v34 = vpack.c.bf16 %v1975_v22, %v1975_v22  ;;  %v1850_v39 = vld [vmem:[#allocation2 + $0x74] sm:$0x1] }
 0x158   : > { %2286 = vst [vmem:[#allocation2 + $0x34] sm:$0xf] %v2096_v3  ;;  %v1986_v41 = vsel %vm1938_vm2, %v1914_v7, %v1962_v13  ;;  %v1907_v51 = vadd.f32 %v10966_v6, %v1879_v29  ;;  %v1704_v44 = vsel %vm1685_vm8, %v11016_v25, %v1601_v14  ;;  %v11334_v37 = vadd.f32 %v1749_v21, %v1725_v27  ;;  %v2297_v25 = vld [vmem:[#allocation2 + $0x48] sm:$0xf]  ;;  %v2336_v3 = vld [vmem:[#allocation2 + $0x8c] sm:$0x1] }
 0x159   : > { %2289 = vst [vmem:[#allocation2 + $0x38] sm:$0x1] %v2288_v0  ;;  %v2126_v24 = vrot.slane %v2124_v57, 7  ;;  %v11325_v2 = vpack.c.bf16 %v1986_v41, %v1986_v41  ;;  %v2116_v8 = vshrl.u32 %v1999_v34, 16  ;;  %v2119_v42 = vshll.u32 %v1999_v34, 16  ;;  %v629_v57 = vpop.f32.mrf.mxu0 }
 0x15a   : > { %vm1931_vm3 = vcmp.gt.f32.partialorder %v1907_v51, 0.0  ;;  %v1955_v7 = vmul.f32 0.01, %v1907_v51  ;;  %1814 = vst [vmem:[#allocation2 + $0x6c] sm:$0x1] %v1813_v40  ;;  %v1728_v19 = vadd.f32 %v1704_v44, %v627_v47  ;;  %v1705_v5 = vsel %vm1685_vm8, %v11003_v58, %v1603_v23  ;;  %v1753_v40 = vld [vmem:[%s10934_s24 + $0x98] sm:$0xff] }
 0x15b   : > { %v2129_v62 = vor.u32 %v2127_v52, %v2126_v24  ;;  %v2131_v35 = vrot.slane %v2126_v24, 4  ;;  %v2209_v36 = vshrl.u32 %v11325_v2, 16  ;;  %v2118_v46 = vrot.slane %v2116_v8, 7  ;;  %13504 = vst [vmem:[#allocation19_spill] sm:$0xff] %v11334_v37  ;;  %v1818_v23 = vld [vmem:[#allocation2 + $0x84] sm:$0x1]  ;;  %v1609_v44 = vpop.permute.xlu1 %1608 }
 0x15c   : > { %v1979_v26 = vsel %vm1931_vm3, %v1907_v51, %v1955_v7  ;;  %v1878_v0 = vmul.f32 %v10952_v15, %v11334_v37  ;;  %v11344_v47 = vadd.f32 %v1752_v28, %v1728_v19  ;;  %v2163_v52 = vor.u32 %v2161_v60, %v11245_v61  ;;  %v2311_v61 = vld [vmem:[#allocation2 + $0x60] sm:$0xf]  ;;  %v1607_v19 = vpop.permute.xlu0 %1606 }
 0x15d   : > { %v2302_v13 = vsel %vm10800_vm5, %v2131_v35, %v2301_v17  ;;  %v11338_v22 = vrot.slane %v2209_v36, 7  ;;  %v2003_v29 = vpack.c.bf16 %v1979_v26, %v1979_v26  ;;  %v2121_v32 = vor.u32 %v2119_v42, %v2118_v46  ;;  %v1853_v26 = vld [vmem:[#allocation2 + $0x80] sm:$0x1] }
 0x15e   : > { %2303 = vst [vmem:[#allocation2 + $0x50] sm:$0x1] %v2302_v13  ;;  %v2122_v14 = vrot.slane %v2118_v46, 4  ;;  %v1906_v24 = vadd.f32 %v10966_v6, %v1878_v0  ;;  %v1881_v21 = vmul.f32 %v10952_v15, %v11344_v47  ;;  %v1729_v17 = vadd.f32 %v1705_v5, %v629_v57  ;;  %v1756_v46 = vld [vmem:[%s10934_s24 + $0xb0] sm:$0xff] }
 0x15f   : > { %13505 = vst [vmem:[#allocation18_spill] sm:$0xff] %v11344_v47  ;;  %v2216_v34 = vrot.slane %v11338_v22, 4  ;;  %v2150_v41 = vshrl.u32 %v2003_v29, 16  ;;  %v2153_v58 = vshll.u32 %v2003_v29, 16  ;;  %v2298_v27 = vsel %vm11033_vm11, %v2121_v32, %v2297_v25 }
 0x160   : > { %v2130_v51 = vsel %vm11161_vm6, %v2122_v14, %v2129_v62  ;;  %2299 = vst [vmem:[#allocation2 + $0x48] sm:$0xf] %v2298_v27  ;;  %v1851_v8 = vsel %vm10888_vm7, 0, %v1850_v39  ;;  %vm1930_vm4 = vcmp.gt.f32.partialorder %v1906_v24, 0.0  ;;  %v1954_v7 = vmul.f32 0.01, %v1906_v24 }
 0x161   : > { %v2337_v63 = vsel %vm10800_vm5, %v2216_v34, %v2336_v3  ;;  %v2152_v60 = vrot.slane %v2150_v41, 7  ;;  %2300 = vst [vmem:[#allocation2 + $0x4c] sm:$0xf] %v2130_v51  ;;  %v1909_v62 = vadd.f32 %v10966_v6, %v1881_v21  ;;  %v1819_v15 = vsel %vm10800_vm5, 0, %v1818_v23  ;;  %v9633_v34 = vld [vmem:[%s13263_s5] ss:$0 sm:$0xff] }
 0x162   : > { %2338 = vst [vmem:[#allocation2 + $0x8c] sm:$0x1] %v2337_v63  ;;  %v11365_v36 = vadd.f32 %v1753_v40, %v1729_v17  ;;  %v1708_v28 = vsel %vm1685_vm8, %v11041_v16, %v1609_v44  ;;  %v1978_v13 = vsel %vm1930_vm4, %v1906_v24, %v1954_v7  ;;  %v9632_v16 = vld [vmem:[%s13262_s4] ss:$0 sm:$0xff]  ;;  %v1707_v0 = vsel %vm1685_vm8, %v11060_v53, %v1607_v19  ;;  %v2308_v53 = vld [vmem:[#allocation2 + $0x5c] sm:$0x1] }
 0x163   : > { %v2155_v35 = vor.u32 %v2153_v58, %v2152_v60  ;;  %v2156_v42 = vrot.slane %v2152_v60, 4  ;;  %vm1933_vm9 = vcmp.gt.f32.partialorder %v1909_v62, 0.0  ;;  %v1957_v25 = vmul.f32 0.01, %v1909_v62  ;;  %1852 = vst [vmem:[#allocation2 + $0x74] sm:$0x1] %v1851_v8 }
 0x164   : > { %13506 = vst [vmem:[#allocation34_spill] sm:$0xff] %v11365_v36  ;;  %v1732_v6 = vadd.f32 %v1708_v28, %v11226_v49  ;;  %v2002_v39 = vpack.c.bf16 %v1978_v13, %v1978_v13  ;;  %v1882_v32 = vmul.f32 %v9632_v16, %v11365_v36  ;;  %v1854_v49 = vsel %vm10888_vm7, 0, %v1853_v26  ;;  %v1755_v58 = vld [vmem:[%s10934_s24 + $0xa8] sm:$0xff] }
 0x165   : > { %v2164_v29 = vsel %vm11161_vm6, %v2156_v42, %v2163_v52  ;;  %v2312_v5 = vsel %vm11033_vm11, %v2155_v35, %v2311_v61  ;;  %1820 = vst [vmem:[#allocation2 + $0x84] sm:$0x1] %v1819_v15  ;;  %v1981_v14 = vsel %vm1933_vm9, %v1909_v62, %v1957_v25  ;;  %v1731_v51 = vadd.f32 %v1707_v0, %v11187_v11  ;;  %v2318_v7 = vld [vmem:[#allocation2 + $0x6c] sm:$0xf] }
 0x166   : > { %2313 = vst [vmem:[#allocation2 + $0x60] sm:$0xf] %v2312_v5  ;;  %v1780_v3 = vadd.f32 %v1756_v46, %v1732_v6  ;;  %v2141_v57 = vshrl.u32 %v2002_v39, 16  ;;  %v2005_v52 = vpack.c.bf16 %v1981_v14, %v1981_v14  ;;  %v1910_v41 = vadd.f32 %v9633_v34, %v1882_v32 }
 0x167   : > { %2314 = vst [vmem:[#allocation2 + $0x64] sm:$0xf] %v2164_v29  ;;  %v2144_v24 = vshll.u32 %v2002_v39, 16  ;;  %v2139_v21 = vrot.slane %v11168_v18, 4  ;;  %v1779_v63 = vadd.f32 %v1755_v58, %v1731_v51  ;;  %v2212_v32 = vshll.u32 %v11325_v2, 16 }
 0x168   : > { %v1885_v23 = vmul.f32 %v9632_v16, %v1780_v3  ;;  %1855 = vst [vmem:[#allocation2 + $0x80] sm:$0x1] %v1854_v49  ;;  %v2143_v27 = vrot.slane %v2141_v57, 7  ;;  %v2167_v20 = vshrl.u32 %v2005_v52, 16  ;;  %vm1934_vm7 = vcmp.gt.f32.partialorder %v1910_v41, 0.0 }
 0x169   : > { %v1958_v40 = vmul.f32 0.01, %v1910_v41  ;;  %v2170_v8 = vshll.u32 %v2005_v52, 16  ;;  %v1884_v35 = vmul.f32 %v9632_v16, %v1779_v63  ;;  %v2214_v58 = vor.u32 %v2212_v32, %v11338_v22 }
 0x16a   : > { %v1913_v44 = vadd.f32 %v9633_v34, %v1885_v23  ;;  %v2146_v61 = vor.u32 %v2144_v24, %v2143_v27  ;;  %v2148_v60 = vrot.slane %v2143_v27, 4  ;;  %v2169_v17 = vrot.slane %v2167_v20, 7  ;;  %v2322_v14 = vld [vmem:[#allocation2 + $0x74] sm:$0x1] }
 0x16b   : > { %v1982_v62 = vsel %vm1934_vm7, %v1910_v41, %v1958_v40  ;;  %v1912_v26 = vadd.f32 %v9633_v34, %v1884_v35 }
 0x16c   : > { %vm1937_vm8 = vcmp.gt.f32.partialorder %v1913_v44, 0.0  ;;  %v1961_v15 = vmul.f32 0.01, %v1913_v44  ;;  %v2147_v11 = vsel %vm11161_vm6, %v2139_v21, %v2146_v61  ;;  %v2309_v42 = vsel %vm10800_vm5, %v2148_v60, %v2308_v53  ;;  %v2332_v34 = vld [vmem:[#allocation2 + $0x84] sm:$0xf] }
 0x16d   : > { %v2172_v18 = vor.u32 %v2170_v8, %v2169_v17  ;;  %2307 = vst [vmem:[#allocation2 + $0x58] sm:$0xf] %v2147_v11  ;;  %v2006_v28 = vpack.c.bf16 %v1982_v62, %v1982_v62  ;;  %vm1936_vm10 = vcmp.gt.f32.partialorder %v1912_v26, 0.0  ;;  %v1960_v29 = vmul.f32 0.01, %v1912_v26 }
 0x16e   : > { %v1985_v46 = vsel %vm1937_vm8, %v1913_v44, %v1961_v15  ;;  %2310 = vst [vmem:[#allocation2 + $0x5c] sm:$0x1] %v2309_v42  ;;  %v2173_v5 = vrot.slane %v2169_v17, 4  ;;  %v2190_v44 = vrot.slane %v11264_v43, 4 }
 0x16f   : > { %v2319_v19 = vsel %vm11033_vm11, %v2172_v18, %v2318_v7  ;;  %v2009_v13 = vpack.c.bf16 %v1985_v46, %v1985_v46  ;;  %v2175_v25 = vshrl.u32 %v2006_v28, 16  ;;  %v2178_v16 = vshll.u32 %v2006_v28, 16  ;;  %v2329_v22 = vld [vmem:[#allocation2 + $0x80] sm:$0x1] }
 0x170   : > { %2320 = vst [vmem:[#allocation2 + $0x6c] sm:$0xf] %v2319_v19  ;;  %v1984_v0 = vsel %vm1936_vm10, %v1912_v26, %v1960_v29 }
 0x171   : > { %v2201_v6 = vshrl.u32 %v2009_v13, 16  ;;  %v2177_v39 = vrot.slane %v2175_v25, 7  ;;  %v2204_v49 = vshll.u32 %v2009_v13, 16  ;;  %v2008_v41 = vpack.c.bf16 %v1984_v0, %v1984_v0 }
 0x173   : > { %v2203_v3 = vrot.slane %v2201_v6, 7  ;;  %v2180_v57 = vor.u32 %v2178_v16, %v2177_v39  ;;  %v2182_v52 = vrot.slane %v2177_v39, 4  ;;  %v2192_v20 = vshrl.u32 %v2008_v41, 16 }
 0x174   : > { %v2195_v40 = vshll.u32 %v2008_v41, 16 }
 0x175   : > { %v2206_v23 = vor.u32 %v2204_v49, %v2203_v3  ;;  %v2207_v51 = vrot.slane %v2203_v3, 4  ;;  %v2181_v27 = vsel %vm11161_vm6, %v2173_v5, %v2180_v57  ;;  %v2323_v24 = vsel %vm10800_vm5, %v2182_v52, %v2322_v14 }
 0x176   : > { %2321 = vst [vmem:[#allocation2 + $0x70] sm:$0xf] %v2181_v27  ;;  %v2194_v53 = vrot.slane %v2192_v20, 7 }
 0x177   : > { %v2215_v2 = vsel %vm11161_vm6, %v2207_v51, %v2214_v58  ;;  %v2333_v21 = vsel %vm11033_vm11, %v2206_v23, %v2332_v34  ;;  %2324 = vst [vmem:[#allocation2 + $0x74] sm:$0x1] %v2323_v24 }
 0x178   : > { %2334 = vst [vmem:[#allocation2 + $0x84] sm:$0xf] %v2333_v21  ;;  %v2197_v63 = vor.u32 %v2195_v40, %v2194_v53  ;;  %v2199_v61 = vrot.slane %v2194_v53, 4  ;;  %2342 = sbr.rel (%p8251_p8) target bundleno = 388 (0x184), region = 64 }
 0x179   : > { %2335 = vst [vmem:[#allocation2 + $0x88] sm:$0xf] %v2215_v2 }
 0x17a   : > { %v2198_v60 = vsel %vm11161_vm6, %v2190_v44, %v2197_v63  ;;  %v2330_v17 = vsel %vm10800_vm5, %v2199_v61, %v2329_v22 }
 0x17b   : > { %2328 = vst [vmem:[#allocation2 + $0x7c] sm:$0xf] %v2198_v60 }
 0x17c   : > { %2331 = vst [vmem:[#allocation2 + $0x80] sm:$0x1] %v2330_v17 }
 0x17d   : > { %v2343_v8 = vld [vmem:[#allocation2] sm:$0xf]  ;;  %v2347_v7 = vld [vmem:[#allocation2 + $0x8] sm:$0x1]  ;;  %v9680_v62 = vmov 0  }
 0x17e   : > { %v2344_v43 = vsel %vm11033_vm11, 0, %v2343_v8  ;;  %2346 = vst [vmem:[#allocation2 + $0x4] sm:$0xf] %v9680_v62  ;;  %v2348_v15 = vsel %vm10800_vm5, 0, %v2347_v7  ;;  %v2350_v35 = vld [vmem:[#allocation2 + $0xc] sm:$0xf] }
 0x17f   : > { %2345 = vst [vmem:[#allocation2] sm:$0xf] %v2344_v43  ;;  %v2351_v11 = vsel %vm11033_vm11, 0, %v2350_v35  ;;  %v2354_v42 = vld [vmem:[#allocation2 + $0x14] sm:$0x1] }
 0x180   : > { %2353 = vst [vmem:[#allocation2 + $0x10] sm:$0xf] %v9680_v62  ;;  %v2355_v18 = vsel %vm10800_vm5, 0, %v2354_v42 }
 0x181   : > { %2349 = vst [vmem:[#allocation2 + $0x8] sm:$0x1] %v2348_v15 }
 0x182   : > { %2352 = vst [vmem:[#allocation2 + $0xc] sm:$0xf] %v2351_v11 }
 0x183   : > { %2356 = vst [vmem:[#allocation2 + $0x14] sm:$0x1] %v2355_v18 }
 0x184 PF: > { %p8252_p9 = scmp.ne.s32.totalorder %s9659_s13, 1 }
 0x186   : > { %2360 = sbr.rel (%p8252_p9) target bundleno = 402 (0x192), region = 68 }
 0x18b   : > { %v2362_v28 = vld [vmem:[#allocation2 + $0x78] sm:$0xf]  ;;  %v2366_v46 = vld [vmem:[#allocation2 + $0x80] sm:$0x1]  ;;  %v9681_v19 = vmov 0  }
 0x18c   : > { %v2363_v26 = vsel %vm11033_vm11, 0, %v2362_v28  ;;  %2365 = vst [vmem:[#allocation2 + $0x7c] sm:$0xf] %v9681_v19  ;;  %v2367_v13 = vsel %vm10800_vm5, 0, %v2366_v46  ;;  %v2369_v25 = vld [vmem:[#allocation2 + $0x84] sm:$0xf] }
 0x18d   : > { %2364 = vst [vmem:[#allocation2 + $0x78] sm:$0xf] %v2363_v26  ;;  %v2370_v6 = vsel %vm11033_vm11, 0, %v2369_v25  ;;  %v2373_v29 = vld [vmem:[#allocation2 + $0x8c] sm:$0x1] }
 0x18e   : > { %2372 = vst [vmem:[#allocation2 + $0x88] sm:$0xf] %v9681_v19  ;;  %v2374_v5 = vsel %vm10800_vm5, 0, %v2373_v29 }
 0x18f   : > { %2368 = vst [vmem:[#allocation2 + $0x80] sm:$0x1] %v2367_v13 }
 0x190   : > { %2371 = vst [vmem:[#allocation2 + $0x84] sm:$0xf] %v2370_v6 }
 0x191   : > { %2375 = vst [vmem:[#allocation2 + $0x8c] sm:$0x1] %v2374_v5 }
 0x192 PF: > { %v9388_v39 = vld [vmem:[%s13264_s6 + $0x78] sm:$0xff]  ;;  %v9387_v16 = vld [vmem:[%s13264_s6 + $0x70] sm:$0xff]  ;;  %v2376_v32 = vld [vmem:[#allocation2] sm:$0xf]  ;;  %vm2422_vm12 = vsmask.f32 3328 }
 0x193   : > { %2770 = vmatpush.bf16.msra.mxu1 %v9388_v39  ;;  %9565 = vmatpush.bf16.msrb.mxu2 %v9388_v39  ;;  %v11438_v14 = vld [vmem:[#allocation2 + $0x4] sm:$0xf]  ;;  %v2426_v3 = vshrl.u32 %v2376_v32, 16  ;;  %v2429_v49 = vshll.u32 %v2376_v32, 16  ;;  %v2392_v52 = vld [vmem:[#allocation2 + $0x60] sm:$0xf] }
 0x194   : > { %v2435_v0 = vshll.u32 %v11438_v14, 16  ;;  %v2439_v57 = vshrl.u32 %v11438_v14, 16  ;;  %v11442_v34 = vld [vmem:[#allocation2 + $0x64] sm:$0xf]  ;;  %v9386_v41 = vld [vmem:[%s13264_s6 + $0x68] sm:$0xff]  ;;  %v2618_v58 = vshrl.u32 %v2392_v52, 16 }
 0x195   : > { %v9396_v23 = vld [vmem:[%s13264_s6 + $0xb8] sm:$0xff]  ;;  %v2621_v51 = vshll.u32 %v2392_v52, 16  ;;  %v2627_v27 = vshll.u32 %v11442_v34, 16  ;;  %v2631_v24 = vshrl.u32 %v11442_v34, 16  ;;  %v2428_v20 = vrot.slane %v2426_v3, 4  ;;  %v9395_v40 = vld [vmem:[%s13264_s6 + $0xb0] sm:$0xff] }
 0x196   : > { %v2431_v2 = vrot.slane %v2429_v49, 5  ;;  %v2437_v21 = vrot.slane %v2435_v0, 5  ;;  %v2441_v53 = vrot.slane %v2439_v57, 4  ;;  %3204 = vmatpush.bf16.msra.mxu3 %v9396_v23  ;;  %v11455_v22 = vld [vmem:[#allocation2 + $0x8] sm:$0x1]  ;;  %v2620_v44 = vrot.slane %v2618_v58, 4 }
 0x197   : > { %2771 = vmatpush.bf16.msra.mxu1 %v9387_v16  ;;  %9566 = vmatpush.bf16.msrb.mxu2 %v9387_v16  ;;  %v2623_v63 = vrot.slane %v2621_v51, 5  ;;  %v9385_v61 = vld [vmem:[%s13264_s6 + $0x60] sm:$0xff]  ;;  %v2629_v60 = vrot.slane %v2627_v27, 5  ;;  %v2633_v17 = vrot.slane %v2631_v24, 4  ;;  %v11460_v8 = vld [vmem:[#allocation2 + $0x68] sm:$0x1] }
 0x198   : > { %v2432_v7 = vor.u32 %v2431_v2, %v2428_v20  ;;  %v2442_v43 = vor.u32 %v2441_v53, %v2437_v21  ;;  %v2445_v62 = vshll.u32 %v11455_v22, 16  ;;  %v9394_v15 = vld [vmem:[%s13264_s6 + $0xa8] sm:$0xff]  ;;  %v9384_v11 = vld [vmem:[%s13264_s6 + $0x58] sm:$0xff]  ;;  %vm2423_vm13 = vsmask.f32 7440  ;;  %v9393_v19 = vld [vmem:[%s13264_s6 + $0xa0] sm:$0xff] }
 0x199   : > { %v2624_v35 = vor.u32 %v2623_v63, %v2620_v44  ;;  %v2634_v42 = vor.u32 %v2633_v17, %v2629_v60  ;;  %v2637_v18 = vshll.u32 %v11460_v8, 16  ;;  %v2378_v13 = vld [vmem:[#allocation2 + $0xc] sm:$0xf]  ;;  %vm11473_vm14 = vmor %vm2422_vm12, %vm2423_vm13  ;;  %v11477_v29 = vld [vmem:[#allocation2 + $0x10] sm:$0xf]  ;;  %vm3026_vm15 = vcmask 1042432  }
 0x19a   : > { %3205 = vmatpush.bf16.msra.mxu3 %v9395_v40  ;;  %v2433_v28 = vrot.slane %v2432_v7, 4  ;;  %v2443_v46 = vrot.slane %v2442_v43, 4  ;;  %v2447_v26 = vrot.slane %v2445_v62, 5  ;;  %v9383_v5 = vld [vmem:[%s13264_s6 + $0x50] sm:$0xff]  ;;  %v2394_v32 = vld [vmem:[#allocation2 + $0x6c] sm:$0xf] }
 0x19b   : > { %2772 = vmatpush.bf16.msra.mxu1 %v9386_v41  ;;  %9567 = vmatpush.bf16.msrb.mxu2 %v9386_v41  ;;  %v2625_v6 = vrot.slane %v2624_v35, 4  ;;  %v2635_v39 = vrot.slane %v2634_v42, 4  ;;  %v2639_v16 = vrot.slane %v2637_v18, 5  ;;  %v2450_v3 = vshrl.u32 %v2378_v13, 16  ;;  %v11482_v0 = vld [vmem:[#allocation2 + $0x70] sm:$0xf] }
 0x19c   : > { %v2453_v49 = vshll.u32 %v2378_v13, 16  ;;  %v2438_v57 = vsel %vm11473_vm14, %v2433_v28, %v2437_v21  ;;  %v2448_v52 = vsel %vm11473_vm14, %v2443_v46, %v2447_v26  ;;  %v2459_v41 = vshll.u32 %v11477_v29, 16  ;;  %v9392_v58 = vld [vmem:[%s13264_s6 + $0x98] sm:$0xff]  ;;  %v9382_v20 = vld [vmem:[%s13264_s6 + $0x48] sm:$0xff]  ;;  %v11502_v17 = vld [vmem:[#allocation2 + $0x14] sm:$0x1] }
 0x19d   : > { %v2630_v23 = vsel %vm11473_vm14, %v2625_v6, %v2629_v60  ;;  %v2463_v51 = vshrl.u32 %v11477_v29, 16  ;;  %v2642_v27 = vshrl.u32 %v2394_v32, 16  ;;  %v2645_v24 = vshll.u32 %v2394_v32, 16  ;;  %v9391_v43 = vld [vmem:[%s13264_s6 + $0x90] sm:$0xff]  ;;  %v9381_v42 = vld [vmem:[%s13264_s6 + $0x40] sm:$0xff]  ;;  %v9380_v26 = vld [vmem:[%s13264_s6 + $0x38] sm:$0xff] }
 0x19e   : > { %3206 = vmatpush.bf16.msra.mxu3 %v9394_v15  ;;  %v2640_v2 = vsel %vm11473_vm14, %v2635_v39, %v2639_v16  ;;  %v2651_v21 = vshll.u32 %v11482_v0, 16  ;;  %v2655_v53 = vshrl.u32 %v11482_v0, 16  ;;  %v2452_v40 = vrot.slane %v2450_v3, 4  ;;  %v11517_v6 = vld [vmem:[#allocation2 + $0x74] sm:$0x1]  ;;  %v9390_v16 = vld [vmem:[%s13264_s6 + $0x88] sm:$0xff] }
 0x19f   : > { %2773 = vmatpush.bf16.msra.mxu1 %v9385_v61  ;;  %9568 = vmatpush.bf16.msrb.mxu2 %v9385_v61  ;;  %v2455_v44 = vrot.slane %v2453_v49, 5  ;;  %v2682_v63 = vunpack.c.l.b16 %v2438_v57  ;;  %v2683_v61 = vunpack.c.l.b16 %v2448_v52  ;;  %v2698_v60 = vunpack.c.l.b16 %v2630_v23  ;;  %v11986_v37 = vld [vmem:[#allocation2 + $0x1c] sm:$0xf]  ;;  %v12006_v45 = vld [vmem:[#allocation2 + $0x20] sm:$0x1] }
 0x1a0   : > { %v11504_v7 = vrot.slane %v2459_v41, 5  ;;  %v2699_v62 = vunpack.c.l.b16 %v2640_v2  ;;  %v2465_v15 = vrot.slane %v2463_v51, 4  ;;  %v2644_v35 = vrot.slane %v2642_v27, 4  ;;  %v9379_v27 = vld [vmem:[%s13264_s6 + $0x30] sm:$0xff]  ;;  %v4484_v54 = vld [vmem:[#allocation2 + $0x24] sm:$0xf] }
 0x1a1   : > { %v2653_v18 = vrot.slane %v2651_v21, 5  ;;  %v2657_v28 = vrot.slane %v2655_v53, 4  ;;  %v3031_v46 = vrot.slane %v11438_v14, 5  ;;  %v2469_v13 = vshll.u32 %v11502_v17, 16  ;;  %v3970_v12 = vld [vmem:[#allocation2 + $0x6c] sm:$0xe] }
 0x1a2   : > { %3207 = vmatpush.bf16.msra.mxu3 %v9393_v19  ;;  %v2456_v19 = vor.u32 %v2455_v44, %v2452_v40  ;;  %v2702_v39 = vpack.c.b16 %v2683_v61, %v2682_v63  ;;  %vm3027_vm0 = vcmask 1046532   ;;  %v2710_v14 = vpack.c.b16 %v2699_v62, %v2698_v60  ;;  %v2380_v40 = vld [vmem:[#allocation2 + $0x18] sm:$0xf]  ;;  %v9378_v62 = vld [vmem:[%s13264_s6 + $0x28] sm:$0xff]  ;;  %v12145_v9 = vld [vmem:[#allocation2 + $0x44] sm:$0x1] }
 0x1a3   : > { %2774 = vmatpush.bf16.msra.mxu1 %v9384_v11  ;;  %9569 = vmatpush.bf16.msrb.mxu2 %v9384_v11  ;;  %v2647_v11 = vrot.slane %v2645_v24, 5  ;;  %v2466_v3 = vor.u32 %v2465_v15, %v11504_v7  ;;  %vm11523_vm1 = vmor %vm3026_vm15, %vm3027_vm0  ;;  %v3033_v52 = vrot.slane %v3031_v46, 4  ;;  %v2658_v41 = vor.u32 %v2657_v28, %v2653_v18 }
 0x1a4   : > { %v3034_v51 = vrot.slane %v11455_v22, 5  ;;  %v2457_v21 = vrot.slane %v2456_v19, 4  ;;  %v2471_v53 = vrot.slane %v2469_v13, 5 }
 0x1a5   : > { %v2648_v49 = vor.u32 %v2647_v11, %v2644_v35  ;;  %v2467_v44 = vrot.slane %v2466_v3, 4  ;;  %v2659_v61 = vrot.slane %v2658_v41, 4  ;;  %v2474_v35 = vshrl.u32 %v2380_v40, 16  ;;  %v9376_v41 = vld [vmem:[%s13264_s6 + $0x18] sm:$0xff] }
 0x1a6   : > { %3208 = vmatpush.bf16.msra.mxu3 %v9392_v58  ;;  %v2661_v58 = vshll.u32 %v11517_v6, 16  ;;  %v3035_v2 = vsel %vm11523_vm1, %v3033_v52, %v3034_v51  ;;  %v2462_v11 = vsel %vm11473_vm14, %v2457_v21, %v11504_v7 }
 0x1a7   : > { %2775 = vmatpush.bf16.msra.mxu1 %v9383_v5  ;;  %9570 = vmatpush.bf16.msrb.mxu2 %v9383_v5  ;;  %v2996_v5 = vld [vmem:[#allocation2] sm:$0xe]  ;;  %v3117_v22 = vunpack.c.l.b16 %v3035_v2  ;;  %v2649_v63 = vrot.slane %v2648_v49, 4  ;;  %v2684_v7 = vunpack.c.l.b16 %v2462_v11  ;;  %v11573_v11 = vld [vmem:[#allocation2 + $0x28] sm:$0xf] }
 0x1a8   : > { %v8373_v32 = vrot.slane %v2996_v5, 9  ;;  %v2663_v60 = vrot.slane %v2661_v58, 5  ;;  %v9377_v5 = vld [vmem:[%s13264_s6 + $0x20] sm:$0xff] }
 0x1a9   : > { %v2414_v58 = vld [vmem:[#allocation2 + $0x20] sm:$0x1] }
 0x1aa   : > { %3209 = vmatpush.bf16.msra.mxu3 %v9391_v43  ;;  %v3032_v23 = vsel %vm11523_vm1, %v8373_v32, %v3031_v46  ;;  %v11539_v43 = vld [vmem:[#allocation2 + $0x1c] sm:$0xf]  ;;  %v2472_v46 = vsel %vm11473_vm14, %v2467_v44, %v2471_v53  ;;  %v2664_v19 = vsel %vm11473_vm14, %v2659_v61, %v2663_v60  ;;  %v9375_v44 = vld [vmem:[%s13264_s6 + $0x10] sm:$0xff] }
 0x1ab   : > { %2776 = vmatpush.bf16.msra.mxu1 %v9382_v20  ;;  %9571 = vmatpush.bf16.msrb.mxu2 %v9382_v20  ;;  %v3116_v24 = vunpack.c.l.b16 %v3032_v23  ;;  %v9389_v20 = vld [vmem:[%s13264_s6 + $0x80] sm:$0xff]  ;;  %v2483_v28 = vshll.u32 %v11539_v43, 16  ;;  %v2487_v13 = vshrl.u32 %v11539_v43, 16  ;;  %v2997_v23 = vld [vmem:[#allocation2 + $0xc] sm:$0xe] }
 0x1ac   : > { %v8374_v51 = vrot.slane %v2997_v23, 9  ;;  %v2998_v23 = vld [vmem:[#allocation2 + $0x18] sm:$0xe] }
 0x1ad   : > { %v3136_v15 = vpack.c.b16 %v3117_v22, %v3116_v24  ;;  %v2485_v49 = vrot.slane %v2483_v28, 5  ;;  %v2489_v52 = vrot.slane %v2487_v13, 4  ;;  %v3041_v24 = vrot.slane %v11502_v17, 5 }
 0x1ae   : > { %3210 = vmatpush.bf16.msra.mxu3 %v9390_v16  ;;  %v2685_v16 = vunpack.c.l.b16 %v2472_v46  ;;  %v2507_v13 = vshll.u32 %v11573_v11, 16 }
 0x1af   : > { %2777 = vmatpush.bf16.msra.mxu1 %v9381_v42  ;;  %9572 = vmatpush.bf16.msrb.mxu2 %v9381_v42  ;;  %v2477_v42 = vshll.u32 %v2380_v40, 16  ;;  %v2490_v53 = vor.u32 %v2489_v52, %v2485_v49  ;;  %v2493_v40 = vshll.u32 %v2414_v58, 16 }
 0x1b0   : > { %v2509_v52 = vrot.slane %v2507_v13, 5 }
 0x1b1   : > { %v2479_v3 = vrot.slane %v2477_v42, 5  ;;  %v2491_v60 = vrot.slane %v2490_v53, 4 }
 0x1b2   : > { %2778 = vmatmul.bf16.vlgmr.msra.gmra.mxu1 %v2702_v39  ;;  %2818 = vmatmul.bf16.vlgmr.msrb.gmra.mxu2 %v2710_v14  ;;  %v2476_v39 = vrot.slane %v2474_v35, 4  ;;  %v2701_v14 = vunpack.c.l.b16 %v2664_v19  ;;  %v9374_v35 = vld [vmem:[%s13264_s6 + $0x8] sm:$0xff] }
 0x1b3   : > { %2937 = vmatpush.bf16.msra.mxu2 %v9380_v26  ;;  %3211 = vmatpush.bf16.msra.mxu3 %v9389_v20  ;;  %v2654_v26 = vsel %vm11473_vm14, %v2649_v63, %v2653_v18  ;;  %v3038_v18 = vrot.slane %v11477_v29, 5  ;;  %v2703_v20 = vpack.c.b16 %v2685_v16, %v2684_v7  ;;  %v9373_v7 = vld [vmem:[%s13264_s6] sm:$0xff] }
 0x1b4   : > { %v2700_v32 = vunpack.c.l.b16 %v2654_v26  ;;  %v2480_v21 = vor.u32 %v2479_v3, %v2476_v39  ;;  %v9422_v39 = vld [vmem:[%s13264_s6 + $0x138] sm:$0xff]  ;;  %v2415_v3 = vld [vmem:[#allocation2 + $0x2c] sm:$0x1] }
 0x1b5   : > { %v3039_v22 = vsel %vm11523_vm1, %v8374_v51, %v3038_v18  ;;  %v9421_v51 = vld [vmem:[%s13264_s6 + $0x130] sm:$0xff]  ;;  %v2517_v53 = vshll.u32 %v2415_v3, 16 }
 0x1b6   : > { %3212 = vmatmul.bf16.vlgmr.msra.gmra.mxu3 %v3136_v15  ;;  %v2711_v2 = vpack.c.b16 %v2701_v14, %v2700_v32  ;;  %v3118_v63 = vunpack.c.l.b16 %v3039_v22  ;;  %v2481_v17 = vrot.slane %v2480_v21, 4  ;;  %v2382_v15 = vld [vmem:[#allocation2 + $0x24] sm:$0xf] }
 0x1b7   : > { %2938 = vmatpush.bf16.msra.mxu2 %v9379_v27  ;;  %v3040_v27 = vrot.slane %v3038_v18, 4  ;;  %v2498_v46 = vshrl.u32 %v2382_v15, 16  ;;  %v2501_v19 = vshll.u32 %v2382_v15, 16  ;;  %v9363_v21 = vld [vmem:[#allocation2] sm:$0xff]  ;;  %v2384_v15 = vld [vmem:[#allocation2 + $0x30] sm:$0xf] }
 0x1b8   : > { %v2486_v28 = vsel %vm11473_vm14, %v2481_v17, %v2485_v49 }
 0x1b9   : > { %v3042_v29 = vsel %vm11523_vm1, %v3040_v27, %v3041_v24  ;;  %v2686_v16 = vunpack.c.l.b16 %v2486_v28  ;;  %v2500_v14 = vrot.slane %v2498_v46, 4  ;;  %v2503_v49 = vrot.slane %v2501_v19, 5 }
 0x1ba   : > { %v3119_v61 = vunpack.c.l.b16 %v3042_v29  ;;  %v8375_v27 = vrot.slane %v2998_v23, 9  ;;  %v2522_v28 = vshrl.u32 %v2384_v15, 16  ;;  %v2525_v46 = vshll.u32 %v2384_v15, 16  ;;  %v2999_v23 = vld [vmem:[#allocation2 + $0x24] sm:$0xe] }
 0x1bb   : > { %2939 = vmatpush.bf16.msra.mxu2 %v9378_v62  ;;  %v2495_v62 = vrot.slane %v2493_v40, 5  ;;  %v2504_v40 = vor.u32 %v2503_v49, %v2500_v14 }
 0x1bc   : > { %v3137_v42 = vpack.c.b16 %v3119_v61, %v3118_v63  ;;  %v9420_v61 = vld [vmem:[%s13264_s6 + $0x128] sm:$0xff] }
 0x1bd   : > { %v2496_v26 = vsel %vm11473_vm14, %v2491_v60, %v2495_v62  ;;  %v2505_v17 = vrot.slane %v2504_v40, 4  ;;  %v2519_v62 = vrot.slane %v2517_v53, 5 }
 0x1be   : > { %v2687_v32 = vunpack.c.l.b16 %v2496_v26 }
 0x1bf   : > { %2940 = vmatpush.bf16.msra.mxu2 %v9377_v5  ;;  %v2511_v5 = vshrl.u32 %v11573_v11, 16  ;;  %v2510_v26 = vsel %vm11473_vm14, %v2505_v17, %v2509_v52  ;;  %v11620_v17 = vld [vmem:[#allocation2 + $0x40] sm:$0xf] }
 0x1c1   : > { %v2513_v18 = vrot.slane %v2511_v5, 4 }
 0x1c2   : > { %2783 = vmatmul.bf16.gmra.mxu1 %v2703_v20  ;;  %2823 = vmatmul.bf16.gmra.mxu2 %v2711_v2  ;;  %v3048_v20 = vrot.slane %v2414_v58, 5  ;;  %v2704_v2 = vpack.c.b16 %v2687_v32, %v2686_v16  ;;  %v9414_v58 = vld [vmem:[%s13264_s6 + $0xf8] sm:$0xff]  ;;  %v2524_v16 = vrot.slane %v2522_v28, 4  ;;  %v2527_v32 = vrot.slane %v2525_v46, 5 }
 0x1c3   : > { %2941 = vmatpush.bf16.msra.mxu2 %v9376_v41  ;;  %v3045_v41 = vrot.slane %v11539_v43, 5  ;;  %v2514_v22 = vor.u32 %v2513_v18, %v2509_v52  ;;  %3429 = vmatpush.bf16.msrb.mxu1 %v9414_v58  ;;  %v3052_v18 = vrot.slane %v11573_v11, 5  ;;  %v2555_v46 = vshll.u32 %v11620_v17, 16 }
 0x1c5   : > { %v3047_v24 = vrot.slane %v3045_v41, 4  ;;  %v3046_v29 = vsel %vm11523_vm1, %v8375_v27, %v3045_v41  ;;  %v2515_v60 = vrot.slane %v2514_v22, 4  ;;  %v2416_v41 = vld [vmem:[#allocation2 + $0x38] sm:$0x1]  ;;  %v3054_v52 = vrot.slane %v3052_v18, 4 }
 0x1c6   : > { %3217 = vmatmul.bf16.gmra.mxu3 %v3137_v42  ;;  %v3055_v27 = vrot.slane %v2415_v3, 5  ;;  %v2541_v53 = vshll.u32 %v2416_v41, 16  ;;  %v9413_v3 = vld [vmem:[%s13264_s6 + $0xf0] sm:$0xff] }
 0x1c7   : > { %2942 = vmatpush.bf16.msra.mxu2 %v9375_v44  ;;  %v3049_v43 = vsel %vm11523_vm1, %v3047_v24, %v3048_v20  ;;  %v3120_v44 = vunpack.c.l.b16 %v3046_v29  ;;  %v2520_v19 = vsel %vm11473_vm14, %v2515_v60, %v2519_v62  ;;  %v9364_v20 = vld [vmem:[#allocation2 + $0xc] sm:$0xff]  ;;  %3430 = vmatpush.bf16.msrb.mxu1 %v9413_v3 }
 0x1c8   : > { %v3121_v63 = vunpack.c.l.b16 %v3049_v43  ;;  %v3056_v22 = vsel %vm11523_vm1, %v3054_v52, %v3055_v27  ;;  %v2543_v58 = vrot.slane %v2541_v53, 5  ;;  %v9365_v27 = vld [vmem:[#allocation2 + $0x18] sm:$0xff]  ;;  %v11636_v3 = vld [vmem:[#allocation2 + $0x4c] sm:$0xf] }
 0x1c9   : > { %v3123_v43 = vunpack.c.l.b16 %v3056_v22 }
 0x1ca   : > { %v3138_v42 = vpack.c.b16 %v3121_v63, %v3120_v44  ;;  %v9419_v44 = vld [vmem:[%s13264_s6 + $0x120] sm:$0xff] }
 0x1cb   : > { %2943 = vmatpush.bf16.msra.mxu2 %v9374_v35  ;;  %v11601_v35 = vld [vmem:[#allocation2 + $0x34] sm:$0xf] }
 0x1cc   : > { %v2531_v13 = vshll.u32 %v11601_v35, 16  ;;  %v2535_v5 = vshrl.u32 %v11601_v35, 16 }
 0x1ce   : > { %v2533_v14 = vrot.slane %v2531_v13, 5  ;;  %v2537_v49 = vrot.slane %v2535_v5, 4 }
 0x1cf   : > { %2944 = vmatpush.bf16.msra.mxu2 %v9373_v7  ;;  %v2688_v7 = vunpack.c.l.b16 %v2510_v26  ;;  %v2559_v26 = vshrl.u32 %v11620_v17, 16 }
 0x1d2   : > { %2788 = vmatmul.bf16.gmra.mxu1 %v2704_v2  ;;  %2945 = vmatmul.bf16.vlgmr.msra.gmra.mxu2 %v9363_v21  ;;  %v2528_v2 = vor.u32 %v2527_v32, %v2524_v16  ;;  %v2538_v21 = vor.u32 %v2537_v49, %v2533_v14  ;;  %v2557_v16 = vrot.slane %v2555_v46, 5  ;;  %v2561_v32 = vrot.slane %v2559_v26, 4 }
 0x1d3   : > { %3883 = vmatpush.bf16.msrb.mxu2 %v9422_v39  ;;  %v2689_v39 = vunpack.c.l.b16 %v2520_v19  ;;  %v3059_v49 = vrot.slane %v11601_v35, 5  ;;  %v9412_v35 = vld [vmem:[%s13264_s6 + $0xe8] sm:$0xff] }
 0x1d4   : > { %v2529_v11 = vrot.slane %v2528_v2, 4  ;;  %v2539_v63 = vrot.slane %v2538_v21, 4  ;;  %v2562_v2 = vor.u32 %v2561_v32, %v2557_v16  ;;  %3431 = vmatpush.bf16.msrb.mxu1 %v9412_v35  ;;  %v2418_v32 = vld [vmem:[#allocation2 + $0x50] sm:$0x1] }
 0x1d5   : > { %v2705_v24 = vpack.c.b16 %v2689_v39, %v2688_v7  ;;  %v2417_v7 = vld [vmem:[#allocation2 + $0x44] sm:$0x1] }
 0x1d6   : > { %3222 = vmatmul.bf16.gmra.mxu3 %v3138_v42  ;;  %v2534_v62 = vsel %vm11473_vm14, %v2529_v11, %v2533_v14  ;;  %v2544_v42 = vsel %vm11473_vm14, %v2539_v63, %v2543_v58  ;;  %v3000_v14 = vld [vmem:[#allocation2 + $0x30] sm:$0xe]  ;;  %v2388_v11 = vld [vmem:[#allocation2 + $0x48] sm:$0xf]  ;;  %v9411_v63 = vld [vmem:[%s13264_s6 + $0xe0] sm:$0xff] }
 0x1d7   : > { %3884 = vmatpush.bf16.msrb.mxu2 %v9421_v51  ;;  %v8376_v51 = vrot.slane %v2999_v23, 9  ;;  %v2690_v19 = vunpack.c.l.b16 %v2534_v62  ;;  %v2691_v13 = vunpack.c.l.b16 %v2544_v42  ;;  %v3061_v23 = vrot.slane %v3059_v49, 4 }
 0x1d8   : > { %v2570_v58 = vshrl.u32 %v2388_v11, 16  ;;  %v2583_v42 = vshrl.u32 %v11636_v3, 16  ;;  %3432 = vmatpush.bf16.msrb.mxu1 %v9411_v63 }
 0x1d9   : > { %v3053_v40 = vsel %vm11523_vm1, %v8376_v51, %v3052_v18  ;;  %v8377_v18 = vrot.slane %v3000_v14, 9  ;;  %v3062_v51 = vrot.slane %v2416_v41, 5  ;;  %v2706_v52 = vpack.c.b16 %v2691_v13, %v2690_v19 }
 0x1da   : > { %v3122_v29 = vunpack.c.l.b16 %v3053_v40  ;;  %v2572_v26 = vrot.slane %v2570_v58, 4 }
 0x1db   : > { %3885 = vmatpush.bf16.msrb.mxu2 %v9420_v61  ;;  %v2386_v61 = vld [vmem:[#allocation2 + $0x3c] sm:$0xf]  ;;  %v3060_v21 = vsel %vm11523_vm1, %v8377_v18, %v3059_v49  ;;  %v3063_v53 = vsel %vm11523_vm1, %v3061_v23, %v3062_v51  ;;  %v3069_v18 = vrot.slane %v2417_v7, 5  ;;  %v9366_v51 = vld [vmem:[#allocation2 + $0x24] sm:$0xff] }
 0x1dc   : > { %v3139_v60 = vpack.c.b16 %v3123_v43, %v3122_v29  ;;  %v2546_v15 = vshrl.u32 %v2386_v61, 16  ;;  %v2549_v28 = vshll.u32 %v2386_v61, 16  ;;  %v3124_v40 = vunpack.c.l.b16 %v3060_v21  ;;  %v3001_v49 = vld [vmem:[#allocation2 + $0x3c] sm:$0xe] }
 0x1dd   : > { %v3125_v22 = vunpack.c.l.b16 %v3063_v53  ;;  %v2563_v29 = vrot.slane %v2562_v2, 4  ;;  %v2573_v61 = vshll.u32 %v2388_v11, 16 }
 0x1de   : > { %v2548_v5 = vrot.slane %v2546_v15, 4  ;;  %v2551_v39 = vrot.slane %v2549_v28, 5  ;;  %v2579_v15 = vshll.u32 %v11636_v3, 16 }
 0x1df   : > { %3886 = vmatpush.bf16.msrb.mxu2 %v9419_v44  ;;  %v3140_v44 = vpack.c.b16 %v3125_v22, %v3124_v40  ;;  %v2575_v19 = vrot.slane %v2573_v61, 5  ;;  %v9418_v40 = vld [vmem:[%s13264_s6 + $0x118] sm:$0xff] }
 0x1e0   : > { %v2581_v13 = vrot.slane %v2579_v15, 5  ;;  %v9408_v15 = vld [vmem:[%s13264_s6 + $0xc8] sm:$0xff] }
 0x1e2   : > { %2793 = vmatmul.bf16.gmra.mxu1 %v2705_v24  ;;  %2950 = vmatmul.bf16.gmra.mxu2 %v9364_v20  ;;  %v2565_v24 = vshll.u32 %v2417_v7, 16  ;;  %v2552_v20 = vor.u32 %v2551_v39, %v2548_v5  ;;  %v2585_v5 = vrot.slane %v2583_v42, 4  ;;  %v3066_v39 = vrot.slane %v11620_v17, 5  ;;  %v9410_v17 = vld [vmem:[%s13264_s6 + $0xd8] sm:$0xff] }
 0x1e3   : > { %3433 = vmatpush.bf16.msrb.mxu1 %v9410_v17  ;;  %3887 = vmatpush.bf16.msrb.mxu2 %v9418_v40 }
 0x1e4   : > { %v2553_v41 = vrot.slane %v2552_v20, 4  ;;  %v2567_v43 = vrot.slane %v2565_v24, 5  ;;  %v3068_v14 = vrot.slane %v3066_v39, 4  ;;  %v2589_v24 = vshll.u32 %v2418_v32, 16 }
 0x1e6   : > { %3227 = vmatmul.bf16.gmra.mxu3 %v3139_v60  ;;  %v2558_v60 = vsel %vm11473_vm14, %v2553_v41, %v2557_v16  ;;  %v2568_v62 = vsel %vm11473_vm14, %v2563_v29, %v2567_v43  ;;  %v8378_v16 = vrot.slane %v3001_v49, 9  ;;  %v3070_v2 = vsel %vm11523_vm1, %v3068_v14, %v3069_v18  ;;  %v2390_v41 = vld [vmem:[#allocation2 + $0x54] sm:$0xf]  ;;  %v2391_v43 = vld [vmem:[#allocation2 + $0x58] sm:$0xf] }
 0x1e7   : > { %v2692_v28 = vunpack.c.l.b16 %v2558_v60  ;;  %v2693_v46 = vunpack.c.l.b16 %v2568_v62  ;;  %v3127_v53 = vunpack.c.l.b16 %v3070_v2  ;;  %v2591_v35 = vrot.slane %v2589_v24, 5  ;;  %v9409_v29 = vld [vmem:[%s13264_s6 + $0xd0] sm:$0xff]  ;;  %v3002_v49 = vld [vmem:[#allocation2 + $0x48] sm:$0xe] }
 0x1e8   : > { %v3067_v20 = vsel %vm11523_vm1, %v8378_v16, %v3066_v39  ;;  %v2594_v63 = vshrl.u32 %v2390_v41, 16  ;;  %v2597_v61 = vshll.u32 %v2390_v41, 16  ;;  %v2603_v60 = vshll.u32 %v2391_v43, 16  ;;  %3434 = vmatpush.bf16.msrb.mxu1 %v9409_v29  ;;  %v9407_v16 = vld [vmem:[%s13264_s6 + $0xc0] sm:$0xff] }
 0x1e9   : > { %v2707_v23 = vpack.c.b16 %v2693_v46, %v2692_v28  ;;  %v3126_v21 = vunpack.c.l.b16 %v3067_v20  ;;  %v2607_v62 = vshrl.u32 %v2391_v43, 16  ;;  %v3073_v39 = vrot.slane %v11636_v3, 5 }
 0x1ea   : > { %v2596_v46 = vrot.slane %v2594_v63, 4  ;;  %v8379_v14 = vrot.slane %v3002_v49, 9  ;;  %v3003_v63 = vld [vmem:[#allocation2 + $0x54] sm:$0xe] }
 0x1eb   : > { %v3141_v11 = vpack.c.b16 %v3127_v53, %v3126_v21  ;;  %v3075_v18 = vrot.slane %v3073_v39, 4 }
 0x1ec   : > { %3435 = vmatpush.bf16.msrb.mxu1 %v9408_v15  ;;  %v3074_v2 = vsel %vm11523_vm1, %v8379_v14, %v3073_v39  ;;  %v9368_v15 = vld [vmem:[#allocation2 + $0x3c] sm:$0xff]  ;;  %v9369_v14 = vld [vmem:[#allocation2 + $0x48] sm:$0xff] }
 0x1ed   : > { %v3128_v21 = vunpack.c.l.b16 %v3074_v2 }
 0x1f0   : > { %3436 = vmatpush.bf16.msrb.mxu1 %v9407_v16  ;;  %v3090_v16 = vrot.slane %v11460_v8, 5 }
 0x1f2   : > { %2798 = vmatmul.bf16.gmra.mxu1 %v2706_v52  ;;  %2955 = vmatmul.bf16.gmra.mxu2 %v9365_v27  ;;  %v2576_v52 = vor.u32 %v2575_v19, %v2572_v26  ;;  %v2586_v27 = vor.u32 %v2585_v5, %v2581_v13  ;;  %v2419_v26 = vld [vmem:[#allocation2 + $0x5c] sm:$0x1]  ;;  %v2599_v19 = vrot.slane %v2597_v61, 5  ;;  %v2605_v5 = vrot.slane %v2603_v60, 5 }
 0x1f3   : > { %v3083_v60 = vrot.slane %v2419_v26, 5 }
 0x1f4   : > { %v2577_v7 = vrot.slane %v2576_v52, 4  ;;  %v2587_v22 = vrot.slane %v2586_v27, 4  ;;  %v9367_v52 = vld [vmem:[#allocation2 + $0x30] sm:$0xff]  ;;  %v2613_v27 = vshll.u32 %v2419_v26, 16  ;;  %v2600_v24 = vor.u32 %v2599_v19, %v2596_v46 }
 0x1f5   : > { %v3087_v26 = vrot.slane %v11442_v34, 5  ;;  %v9430_v34 = vld [vmem:[%s13264_s6 + $0x178] sm:$0xff] }
 0x1f6   : > { %3232 = vmatmul.bf16.gmra.mxu3 %v3140_v44  ;;  %v2582_v44 = vsel %vm11473_vm14, %v2577_v7, %v2581_v13  ;;  %v2592_v58 = vsel %vm11473_vm14, %v2587_v22, %v2591_v35  ;;  %v2609_v13 = vrot.slane %v2607_v62, 4  ;;  %v2601_v17 = vrot.slane %v2600_v24, 4  ;;  %v9417_v22 = vld [vmem:[%s13264_s6 + $0x110] sm:$0xff] }
 0x1f7   : > { %v2694_v42 = vunpack.c.l.b16 %v2582_v44  ;;  %v2695_v28 = vunpack.c.l.b16 %v2592_v58  ;;  %v2615_v40 = vrot.slane %v2613_v27, 5  ;;  %3888 = vmatpush.bf16.msrb.mxu2 %v9417_v22  ;;  %v3080_v44 = vrot.slane %v2391_v43, 5  ;;  %v9416_v43 = vld [vmem:[%s13264_s6 + $0x108] sm:$0xff]  ;;  %4177 = vmatpush.bf16.msrb.mxu3 %v9430_v34  ;;  %v9371_v34 = vld [vmem:[#allocation2 + $0x60] sm:$0xff] }
 0x1f8   : > { %v2610_v20 = vor.u32 %v2609_v13, %v2605_v5  ;;  %v2606_v35 = vsel %vm11473_vm14, %v2601_v17, %v2605_v5  ;;  %v8380_v58 = vrot.slane %v3003_v63, 9  ;;  %v3004_v13 = vld [vmem:[#allocation2 + $0x60] sm:$0xe]  ;;  %v3089_v49 = vrot.slane %v3087_v26, 4  ;;  %v9448_v17 = vld [vmem:[%s13264_s6 + $0x1b8] sm:$0xff] }
 0x1f9   : > { %v2696_v29 = vunpack.c.l.b16 %v2606_v35  ;;  %v3082_v61 = vrot.slane %v3080_v44, 4  ;;  %v8381_v39 = vrot.slane %v3004_v13, 9  ;;  %4402 = vmatpush.bf16.msrb.mxu0 %v9448_v17  ;;  %v3509_v13 = vld [vmem:[#allocation2 + $0x10] sm:$0xf]  ;;  %v9423_v17 = vld [vmem:[%s13264_s6 + $0x140] sm:$0xff] }
 0x1fa   : > { %v2611_v7 = vrot.slane %v2610_v20, 4 }
 0x1fb   : > { %3889 = vmatpush.bf16.msrb.mxu2 %v9416_v43  ;;  %v9425_v43 = vld [vmem:[%s13264_s6 + $0x150] sm:$0xff] }
 0x1fc   : > { %v2616_v41 = vsel %vm11473_vm14, %v2611_v7, %v2615_v40  ;;  %v3094_v7 = vrot.slane %v11482_v0, 5  ;;  %v3005_v40 = vld [vmem:[#allocation2 + $0x6c] sm:$0xe]  ;;  %v9427_v0 = vld [vmem:[%s13264_s6 + $0x160] sm:$0xff] }
 0x1fd   : > { %v8382_v22 = vrot.slane %v3005_v40, 9 }
 0x1fe   : > { %v3096_v35 = vrot.slane %v3094_v7, 4 }
 0x202   : > { %2803 = vmatmul.bf16.gmra.mxu1 %v2707_v23  ;;  %2960 = vmatmul.bf16.gmra.mxu2 %v9366_v51  ;;  %v3076_v23 = vrot.slane %v2418_v32, 5  ;;  %v2708_v51 = vpack.c.b16 %v2695_v28, %v2694_v42  ;;  %v3081_v42 = vsel %vm11523_vm1, %v8380_v58, %v3080_v44  ;;  %v3084_v28 = vsel %vm11523_vm1, %v3082_v61, %v3083_v60  ;;  %v9415_v44 = vld [vmem:[%s13264_s6 + $0x100] sm:$0xff]  ;;  %v9447_v58 = vld [vmem:[%s13264_s6 + $0x1b0] sm:$0xff] }
 0x203   : > { %v3130_v46 = vunpack.c.l.b16 %v3081_v42  ;;  %v3131_v19 = vunpack.c.l.b16 %v3084_v28  ;;  %v3095_v61 = vsel %vm11523_vm1, %v8382_v22, %v3094_v7  ;;  %3890 = vmatpush.bf16.msrb.mxu2 %v9415_v44  ;;  %4403 = vmatpush.bf16.msrb.mxu0 %v9447_v58  ;;  %v9426_v42 = vld [vmem:[%s13264_s6 + $0x158] sm:$0xff]  ;;  %v9446_v28 = vld [vmem:[%s13264_s6 + $0x1a8] sm:$0xff]  ;;  %v9443_v7 = vld [vmem:[%s13264_s6 + $0x190] sm:$0xff] }
 0x204   : > { %v3077_v3 = vsel %vm11523_vm1, %v3075_v18, %v3076_v23  ;;  %v9397_v18 = vld [vmem:[#allocation2 + $0xc] sm:$0xff]  ;;  %v3134_v60 = vunpack.c.l.b16 %v3095_v61 }
 0x205   : > { %v3129_v53 = vunpack.c.l.b16 %v3077_v3  ;;  %v3143_v5 = vpack.c.b16 %v3131_v19, %v3130_v46  ;;  %v9429_v3 = vld [vmem:[%s13264_s6 + $0x170] sm:$0xff]  ;;  %v3508_v44 = vld [vmem:[#allocation2 + $0xc] sm:$0xf] }
 0x206   : > { %3237 = vmatmul.bf16.gmra.mxu3 %v3141_v11  ;;  %v2697_v11 = vunpack.c.l.b16 %v2616_v41  ;;  %v3097_v41 = vrot.slane %v11517_v6, 5 }
 0x207   : > { %v3142_v32 = vpack.c.b16 %v3129_v53, %v3128_v21  ;;  %4178 = vmatpush.bf16.msrb.mxu3 %v9429_v3  ;;  %v9428_v53 = vld [vmem:[%s13264_s6 + $0x168] sm:$0xff]  ;;  %4404 = vmatpush.bf16.msrb.mxu0 %v9446_v28  ;;  %v3542_v28 = vshll.u32 %v3508_v44, 16 }
 0x208   : > { %v2709_v62 = vpack.c.b16 %v2697_v11, %v2696_v29  ;;  %v9370_v29 = vld [vmem:[#allocation2 + $0x54] sm:$0xff]  ;;  %v3098_v6 = vsel %vm11523_vm1, %v3096_v35, %v3097_v41 }
 0x209   : > { %v9398_v11 = vld [vmem:[#allocation2 + $0x18] sm:$0xff] }
 0x20b   : > { %4179 = vmatpush.bf16.msrb.mxu3 %v9428_v53 }
 0x20f   : > { %4180 = vmatpush.bf16.msrb.mxu3 %v9427_v0  ;;  %v9442_v0 = vld [vmem:[%s13264_s6 + $0x188] sm:$0xff] }
 0x212   : > { %2808 = vmatmul.bf16.gmra.mxu1 %v2708_v51  ;;  %2965 = vmatmul.bf16.gmra.mxu2 %v9367_v52  ;;  %v3088_v51 = vsel %vm11523_vm1, %v8381_v39, %v3087_v26  ;;  %v3091_v52 = vsel %vm11523_vm1, %v3089_v49, %v3090_v16  ;;  %v9445_v26 = vld [vmem:[%s13264_s6 + $0x1a0] sm:$0xff]  ;;  %v9424_v49 = vld [vmem:[%s13264_s6 + $0x148] sm:$0xff]  ;;  %v9444_v16 = vld [vmem:[%s13264_s6 + $0x198] sm:$0xff] }
 0x213   : > { %v3132_v27 = vunpack.c.l.b16 %v3088_v51  ;;  %v3133_v24 = vunpack.c.l.b16 %v3091_v52  ;;  %4181 = vmatpush.bf16.msrb.mxu3 %v9426_v42  ;;  %4405 = vmatpush.bf16.msrb.mxu0 %v9445_v26  ;;  %v11763_v52 = vld [vmem:[#allocation2 + $0x14] sm:$0x1]  ;;  %v9441_v26 = vld [vmem:[%s13264_s6 + $0x180] sm:$0xff] }
 0x214   : > { %v4007_v3 = vrot.slane %v11763_v52, 5 }
 0x215   : > { %v3144_v20 = vpack.c.b16 %v3133_v24, %v3132_v27 }
 0x216   : > { %3242 = vmatmul.bf16.gmra.mxu3 %v3142_v32 }
 0x217   : > { %4182 = vmatpush.bf16.msrb.mxu3 %v9425_v43  ;;  %4406 = vmatpush.bf16.msrb.mxu0 %v9444_v16  ;;  %v3552_v43 = vshrl.u32 %v3509_v13, 16 }
 0x21b   : > { %4183 = vmatpush.bf16.msrb.mxu3 %v9424_v49  ;;  %4407 = vmatpush.bf16.msrb.mxu0 %v9443_v7 }
 0x21f   : > { %4184 = vmatpush.bf16.msrb.mxu3 %v9423_v17  ;;  %4408 = vmatpush.bf16.msrb.mxu0 %v9442_v0  ;;  %v11800_v17 = vld [vmem:[#allocation2 + $0x20] sm:$0x1] }
 0x222   : > { %2813 = vmatmul.bf16.gmra.mxu1 %v2709_v62  ;;  %2970 = vmatmul.bf16.gmra.mxu2 %v9368_v15  ;;  %v3135_v62 = vunpack.c.l.b16 %v3098_v6 }
 0x223   : > { %4409 = vmatpush.bf16.msrb.mxu0 %v9441_v26 }
 0x224   : > { %v3145_v46 = vpack.c.b16 %v3135_v62, %v3134_v60  ;;  %v3539_v60 = vshrl.u32 %v3508_v44, 16  ;;  %v9456_v62 = vld [vmem:[%s13264_s6 + $0x1f8] sm:$0xff] }
 0x225   : > { %4856 = vmatpush.bf16.msra.mxu1 %v9456_v62 }
 0x226   : > { %3247 = vmatmul.bf16.gmra.mxu3 %v3143_v5  ;;  %v3541_v16 = vrot.slane %v3539_v60, 4 }
 0x22f   : > { %v11692_v23 = vpop.f32.mrf.mxu1 }
 0x232   : > { %2975 = vmatmul.bf16.gmra.mxu2 %v9369_v14  ;;  %3437 = vmatmul.bf16.vlgmr.msrb.gmra.mxu1 %v9397_v18  ;;  %v4004_v14 = vrot.slane %v3509_v13, 5  ;;  %v3962_v18 = vld [vmem:[#allocation2 + $0xc] sm:$0xe] }
 0x233   : > { %v8567_v27 = vrot.slane %v3962_v18, 9  ;;  %v3544_v18 = vrot.slane %v3542_v28, 5 }
 0x234   : > { %v4006_v24 = vrot.slane %v4004_v14, 4 }
 0x235   : > { %v11701_v8 = vpop.f32.mrf.mxu2  ;;  %v4005_v40 = vsel %vm11523_vm1, %v8567_v27, %v4004_v14  ;;  %v3512_v14 = vld [vmem:[#allocation2 + $0x1c] sm:$0xf]  ;;  %v3545_v44 = vor.u32 %v3544_v18, %v3541_v16 }
 0x236   : > { %3252 = vmatmul.bf16.gmra.mxu3 %v3144_v20  ;;  %v9399_v20 = vld [vmem:[#allocation2 + $0x24] sm:$0xff]  ;;  %v4008_v22 = vsel %vm11523_vm1, %v4006_v24, %v4007_v3  ;;  %v4089_v35 = vunpack.c.l.b16 %v4005_v40  ;;  %v3554_v24 = vrot.slane %v3552_v43, 4 }
 0x237   : > { %v11703_v2 = vpop.f32.mrf.mxu1  ;;  %v4090_v41 = vunpack.c.l.b16 %v4008_v22  ;;  %v9372_v22 = vld [vmem:[#allocation2 + $0x6c] sm:$0xff]  ;;  %v3546_v28 = vrot.slane %v3545_v44, 4 }
 0x239   : > { %v11708_v21 = vpop.f32.mrf.mxu3  ;;  %v4109_v58 = vpack.c.b16 %v4090_v41, %v4089_v35  ;;  %v9400_v35 = vld [vmem:[#allocation2 + $0x30] sm:$0xff]  ;;  %v4014_v41 = vrot.slane %v11800_v17, 5 }
 0x23d   : > { %v11717_v32 = vpop.f32.mrf.mxu2 }
 0x23f   : > { %v11723_v63 = vpop.f32.mrf.mxu1 }
 0x241   : > { %v11735_v15 = vpop.f32.mrf.mxu3 }
 0x242   : > { %2980 = vmatmul.bf16.gmra.mxu2 %v9370_v29  ;;  %3442 = vmatmul.bf16.gmra.mxu1 %v9398_v11  ;;  %v9464_v29 = vld [vmem:[%s13264_s6 + $0x238] sm:$0xff] }
 0x243   : > { %5150 = vmatpush.bf16.msra.mxu2 %v9464_v29 }
 0x245   : > { %v11743_v19 = vpop.f32.mrf.mxu2 }
 0x246   : > { %3257 = vmatmul.bf16.gmra.mxu3 %v3145_v46  ;;  %v3548_v46 = vshll.u32 %v3509_v13, 16  ;;  %v3963_v13 = vld [vmem:[#allocation2 + $0x18] sm:$0xe] }
 0x247   : > { %v11745_v5 = vpop.f32.mrf.mxu1  ;;  %v8568_v7 = vrot.slane %v3963_v13, 9 }
 0x248   : > { %v3550_v27 = vrot.slane %v3548_v46, 5 }
 0x249   : > { %v11753_v39 = vpop.f32.mrf.mxu3 }
 0x24a   : > { %v3555_v0 = vor.u32 %v3554_v24, %v3550_v27 }
 0x24c   : > { %v3556_v46 = vrot.slane %v3555_v0, 4 }
 0x24d   : > { %v11761_v51 = vpop.f32.mrf.mxu2 }
 0x24f   : > { %v11766_v53 = vpop.f32.mrf.mxu1 }
 0x251   : > { %v11781_v11 = vpop.f32.mrf.mxu3 }
 0x252   : > { %2985 = vmatmul.bf16.gmra.mxu2 %v9371_v34  ;;  %3447 = vmatmul.bf16.gmra.mxu1 %v9399_v20  ;;  %v4011_v20 = vrot.slane %v3512_v14, 5 }
 0x255   : > { %v2946_v61 = vpop.f32.mrf.mxu2 }
 0x256   : > { %v2947_v6 = vadd.f32 %v2946_v61, %v11692_v23  ;;  %4185 = vmatmul.bf16.vlgmr.msrb.gmra.mxu3 %v4109_v58  ;;  %v9431_v23 = vld [vmem:[#allocation2 + $0x18] sm:$0xff]  ;;  %v3558_v58 = vshll.u32 %v11763_v52, 16  ;;  %v4012_v61 = vsel %vm11523_vm1, %v8568_v7, %v4011_v20 }
 0x257   : > { %v11790_v42 = vpop.f32.mrf.mxu1  ;;  %4410 = vmatmul.bf16.vlgmr.msrb.gmra.mxu0 %v9431_v23  ;;  %v3511_v23 = vld [vmem:[#allocation2 + $0x18] sm:$0xf] }
 0x258   : > { %v11796_v49 = vadd.f32 %v11708_v21, %v2947_v6  ;;  %v4013_v21 = vrot.slane %v4011_v20, 4  ;;  %v3560_v43 = vrot.slane %v3558_v58, 5  ;;  %v3563_v24 = vshrl.u32 %v3511_v23, 16  ;;  %v9463_v20 = vld [vmem:[%s13264_s6 + $0x230] sm:$0xff] }
 0x259   : > { %v11798_v34 = vpop.f32.mrf.mxu3  ;;  %5151 = vmatpush.bf16.msra.mxu2 %v9463_v20 }
 0x25a   : > { %v4015_v60 = vsel %vm11523_vm1, %v4013_v21, %v4014_v41  ;;  %v3561_v7 = vsel %vm11473_vm14, %v3556_v46, %v3560_v43  ;;  %v3572_v21 = vshll.u32 %v3512_v14, 16  ;;  %v3565_v0 = vrot.slane %v3563_v24, 4 }
 0x25b   : > { %v4092_v62 = vunpack.c.l.b16 %v4015_v60  ;;  %v3796_v44 = vunpack.c.l.b16 %v3561_v7 }
 0x25d   : > { %v2948_v3 = vpop.f32.mrf.mxu2 }
 0x25e   : > { %v2949_v40 = vadd.f32 %v2948_v3, %v11703_v2  ;;  %v4091_v2 = vunpack.c.l.b16 %v4012_v61  ;;  %v3551_v3 = vsel %vm11473_vm14, %v3546_v28, %v3550_v27  ;;  %v3515_v27 = vld [vmem:[#allocation2 + $0x28] sm:$0xf]  ;;  %v3574_v61 = vrot.slane %v3572_v21, 5  ;;  %v11834_v28 = vld [vmem:[#allocation2 + $0x2c] sm:$0x1] }
 0x25f   : > { %v11804_v29 = vpop.f32.mrf.mxu1  ;;  %v3795_v41 = vunpack.c.l.b16 %v3551_v3  ;;  %v4021_v24 = vrot.slane %v11834_v28, 5  ;;  %v3582_v3 = vshll.u32 %v11800_v17, 16 }
 0x260   : > { %v11810_v6 = vadd.f32 %v11735_v15, %v2949_v40  ;;  %v4110_v52 = vpack.c.b16 %v4092_v62, %v4091_v2  ;;  %v3566_v15 = vshll.u32 %v3511_v23, 16  ;;  %v3576_v40 = vshrl.u32 %v3512_v14, 16 }
 0x261   : > { %v11814_v26 = vpop.f32.mrf.mxu3  ;;  %v4018_v14 = vrot.slane %v3515_v27, 5 }
 0x262   : > { %2990 = vmatmul.bf16.gmra.mxu2 %v9372_v22  ;;  %3452 = vmatmul.bf16.gmra.mxu1 %v9400_v35  ;;  %v9432_v35 = vld [vmem:[#allocation2 + $0x24] sm:$0xff]  ;;  %v3568_v58 = vrot.slane %v3566_v15, 5  ;;  %v3578_v60 = vrot.slane %v3576_v40, 4 }
 0x263   : > { %v4020_v43 = vrot.slane %v4018_v14, 4 }
 0x264   : > { %v3579_v20 = vor.u32 %v3578_v60, %v3574_v61 }
 0x265   : > { %v2951_v16 = vpop.f32.mrf.mxu2  ;;  %v4022_v40 = vsel %vm11523_vm1, %v4020_v43, %v4021_v24 }
 0x266   : > { %v2952_v18 = vadd.f32 %v2951_v16, %v11723_v63  ;;  %4190 = vmatmul.bf16.gmra.mxu3 %v4110_v52  ;;  %v9455_v63 = vld [vmem:[%s13264_s6 + $0x1f0] sm:$0xff]  ;;  %v9401_v52 = vld [vmem:[#allocation2 + $0x3c] sm:$0xff]  ;;  %v3815_v16 = vpack.c.b16 %v3796_v44, %v3795_v41  ;;  %v3580_v41 = vrot.slane %v3579_v20, 4  ;;  %v3584_v44 = vrot.slane %v3582_v3, 5 }
 0x267   : > { %v11820_v13 = vpop.f32.mrf.mxu1  ;;  %4857 = vmatpush.bf16.msra.mxu1 %v9455_v63  ;;  %4415 = vmatmul.bf16.gmra.mxu0 %v9432_v35  ;;  %v4094_v63 = vunpack.c.l.b16 %v4022_v40  ;;  %v3518_v3 = vld [vmem:[#allocation2 + $0x34] sm:$0xf] }
 0x268   : > { %v11827_v22 = vadd.f32 %v11753_v39, %v2952_v18  ;;  %v3964_v39 = vld [vmem:[#allocation2 + $0x24] sm:$0xe]  ;;  %v3569_v18 = vor.u32 %v3568_v58, %v3565_v0 }
 0x269   : > { %v11832_v2 = vpop.f32.mrf.mxu3  ;;  %v8569_v46 = vrot.slane %v3964_v39, 9  ;;  %v3514_v0 = vld [vmem:[#allocation2 + $0x24] sm:$0xf] }
 0x26a   : > { %v3570_v35 = vrot.slane %v3569_v18, 4  ;;  %v3587_v39 = vshrl.u32 %v3514_v0, 16  ;;  %v3590_v43 = vshll.u32 %v3514_v0, 16  ;;  %v9433_v18 = vld [vmem:[#allocation2 + $0x30] sm:$0xff] }
 0x26b   : > { %v4019_v7 = vsel %vm11523_vm1, %v8569_v46, %v4018_v14  ;;  %v3585_v46 = vsel %vm11473_vm14, %v3580_v41, %v3584_v44 }
 0x26c   : > { %v3589_v20 = vrot.slane %v3587_v39, 4 }
 0x26d   : > { %v2953_v62 = vpop.f32.mrf.mxu2 }
 0x26e   : > { %v2954_v23 = vadd.f32 %v2953_v62, %v11745_v5  ;;  %v4093_v5 = vunpack.c.l.b16 %v4019_v7  ;;  %v3592_v7 = vrot.slane %v3590_v43, 5 }
 0x26f   : > { %v11838_v15 = vpop.f32.mrf.mxu1 }
 0x270   : > { %v11844_v21 = vadd.f32 %v11781_v11, %v2954_v23  ;;  %v4111_v58 = vpack.c.b16 %v4094_v63, %v4093_v5  ;;  %v3575_v11 = vsel %vm11473_vm14, %v3570_v35, %v3574_v61  ;;  %v3596_v23 = vshll.u32 %v3515_v27, 16 }
 0x271   : > { %v11848_v17 = vpop.f32.mrf.mxu3  ;;  %v3797_v24 = vunpack.c.l.b16 %v3575_v11  ;;  %v3798_v61 = vunpack.c.l.b16 %v3585_v46  ;;  %v4025_v63 = vrot.slane %v3518_v3, 5  ;;  %v3593_v46 = vor.u32 %v3592_v7, %v3589_v20 }
 0x272   : > { %3457 = vmatmul.bf16.gmra.mxu1 %v9401_v52  ;;  %3891 = vmatmul.bf16.vlgmr.msrb.gmra.mxu2 %v3815_v16  ;;  %v3600_v52 = vshrl.u32 %v3515_v27, 16  ;;  %v3598_v40 = vrot.slane %v3596_v23, 5  ;;  %v3965_v27 = vld [vmem:[#allocation2 + $0x30] sm:$0xe]  ;;  %v3606_v23 = vshll.u32 %v11834_v28, 16 }
 0x273   : > { %v8570_v41 = vrot.slane %v3965_v27, 9  ;;  %v4027_v44 = vrot.slane %v4025_v63, 4  ;;  %v3594_v20 = vrot.slane %v3593_v46, 4  ;;  %v3517_v28 = vld [vmem:[#allocation2 + $0x30] sm:$0xf] }
 0x274   : > { %v3602_v5 = vrot.slane %v3600_v52, 4 }
 0x275   : > { %v2956_v60 = vpop.f32.mrf.mxu2 }
 0x276   : > { %v2957_v14 = vadd.f32 %v2956_v60, %v11766_v53  ;;  %4195 = vmatmul.bf16.gmra.mxu3 %v4111_v58  ;;  %v9462_v53 = vld [vmem:[%s13264_s6 + $0x228] sm:$0xff]  ;;  %v3816_v60 = vpack.c.b16 %v3798_v61, %v3797_v24  ;;  %v3603_v43 = vor.u32 %v3602_v5, %v3598_v40  ;;  %v3608_v5 = vrot.slane %v3606_v23, 5 }
 0x277   : > { %v11853_v62 = vpop.f32.mrf.mxu1  ;;  %5152 = vmatpush.bf16.msra.mxu2 %v9462_v53  ;;  %4420 = vmatmul.bf16.gmra.mxu0 %v9433_v18  ;;  %v9402_v58 = vld [vmem:[#allocation2 + $0x48] sm:$0xff]  ;;  %v4026_v53 = vsel %vm11523_vm1, %v8570_v41, %v4025_v63  ;;  %v3611_v63 = vshrl.u32 %v3517_v28, 16  ;;  %v3614_v41 = vshll.u32 %v3517_v28, 16  ;;  %v9403_v28 = vld [vmem:[#allocation2 + $0x54] sm:$0xff] }
 0x278   : > { %v11858_v16 = vadd.f32 %v11798_v34, %v2957_v14  ;;  %v11863_v34 = vld [vmem:[#allocation2 + $0x38] sm:$0x1]  ;;  %v9454_v14 = vld [vmem:[%s13264_s6 + $0x1e8] sm:$0xff]  ;;  %v4095_v24 = vunpack.c.l.b16 %v4026_v53  ;;  %v3604_v7 = vrot.slane %v3603_v43, 4 }
 0x279   : > { %v4028_v11 = vrot.slane %v11863_v34, 5  ;;  %v11873_v52 = vpop.f32.mrf.mxu3  ;;  %4858 = vmatpush.bf16.msra.mxu1 %v9454_v14  ;;  %v3613_v23 = vrot.slane %v3611_v63, 4  ;;  %v3616_v53 = vrot.slane %v3614_v41, 5  ;;  %v9461_v63 = vld [vmem:[%s13264_s6 + $0x220] sm:$0xff] }
 0x27b   : > { %v4029_v18 = vsel %vm11523_vm1, %v4027_v44, %v4028_v11  ;;  %v3609_v44 = vsel %vm11473_vm14, %v3604_v7, %v3608_v5  ;;  %v9434_v11 = vld [vmem:[#allocation2 + $0x3c] sm:$0xff]  ;;  %v11894_v5 = vld [vmem:[#allocation2 + $0x44] sm:$0x1]  ;;  %5153 = vmatpush.bf16.msra.mxu2 %v9461_v63 }
 0x27c   : > { %v4096_v61 = vunpack.c.l.b16 %v4029_v18  ;;  %v3800_v43 = vunpack.c.l.b16 %v3609_v44  ;;  %v3521_v18 = vld [vmem:[#allocation2 + $0x40] sm:$0xf]  ;;  %v4035_v41 = vrot.slane %v11894_v5, 5 }
 0x27d   : > { %v2958_v35 = vpop.f32.mrf.mxu2  ;;  %v3644_v63 = vshll.u32 %v3521_v18, 16 }
 0x27e   : > { %v2959_v0 = vadd.f32 %v2958_v35, %v11790_v42  ;;  %v4112_v27 = vpack.c.b16 %v4096_v61, %v4095_v24 }
 0x27f   : > { %v11870_v39 = vpop.f32.mrf.mxu1 }
 0x280   : > { %v11878_v42 = vadd.f32 %v11814_v26, %v2959_v0  ;;  %v3599_v0 = vsel %vm11473_vm14, %v3594_v20, %v3598_v40  ;;  %v4032_v40 = vrot.slane %v3521_v18, 5  ;;  %v3966_v20 = vld [vmem:[#allocation2 + $0x3c] sm:$0xe] }
 0x281   : > { %v11892_v46 = vpop.f32.mrf.mxu3 }
 0x282   : > { %3462 = vmatmul.bf16.gmra.mxu1 %v9402_v58  ;;  %3896 = vmatmul.bf16.gmra.mxu2 %v3816_v60  ;;  %v3620_v58 = vshll.u32 %v3518_v3, 16  ;;  %v3624_v60 = vshrl.u32 %v3518_v3, 16  ;;  %v8571_v3 = vrot.slane %v3966_v20, 9 }
 0x284   : > { %v3622_v24 = vrot.slane %v3620_v58, 5  ;;  %v3626_v61 = vrot.slane %v3624_v60, 4  ;;  %v3630_v58 = vshll.u32 %v11863_v34, 16  ;;  %v4033_v60 = vsel %vm11523_vm1, %v8571_v3, %v4032_v40 }
 0x285   : > { %v2961_v35 = vpop.f32.mrf.mxu2 }
 0x286   : > { %v2962_v36 = vadd.f32 %v2961_v35, %v11804_v29  ;;  %4200 = vmatmul.bf16.gmra.mxu3 %v4112_v27  ;;  %v3799_v29 = vunpack.c.l.b16 %v3599_v0  ;;  %v3617_v35 = vor.u32 %v3616_v53, %v3613_v23  ;;  %v3627_v44 = vor.u32 %v3626_v61, %v3622_v24  ;;  %v9453_v53 = vld [vmem:[%s13264_s6 + $0x1e0] sm:$0xff] }
 0x287   : > { %v11883_v26 = vpop.f32.mrf.mxu1  ;;  %4425 = vmatmul.bf16.gmra.mxu0 %v9434_v11  ;;  %v3632_v61 = vrot.slane %v3630_v58, 5  ;;  %4859 = vmatpush.bf16.msra.mxu1 %v9453_v53  ;;  %v9435_v58 = vld [vmem:[#allocation2 + $0x48] sm:$0xff] }
 0x288   : > { %v11890_v14 = vadd.f32 %v11832_v2, %v2962_v36  ;;  %v4034_v36 = vrot.slane %v4032_v40, 4  ;;  %v3817_v27 = vpack.c.b16 %v3800_v43, %v3799_v29  ;;  %v4097_v29 = vunpack.c.l.b16 %v4033_v60  ;;  %v3520_v40 = vld [vmem:[#allocation2 + $0x3c] sm:$0xf] }
 0x289   : > { %v3618_v23 = vrot.slane %v3617_v35, 4  ;;  %v3628_v34 = vrot.slane %v3627_v44, 4  ;;  %v11914_v20 = vpop.f32.mrf.mxu3  ;;  %v3638_v35 = vshll.u32 %v3520_v40, 16 }
 0x28d   : > { %v2963_v7 = vpop.f32.mrf.mxu2 }
 0x28e   : > { %v2964_v2 = vadd.f32 %v2963_v7, %v11820_v13  ;;  %v4036_v13 = vsel %vm11523_vm1, %v4034_v36, %v4035_v41  ;;  %v3623_v36 = vsel %vm11473_vm14, %v3618_v23, %v3622_v24  ;;  %v3648_v41 = vshrl.u32 %v3521_v18, 16 }
 0x28f   : > { %v11901_v0 = vpop.f32.mrf.mxu1  ;;  %v4098_v43 = vunpack.c.l.b16 %v4036_v13  ;;  %v3801_v60 = vunpack.c.l.b16 %v3623_v36  ;;  %v3646_v24 = vrot.slane %v3644_v63, 5  ;;  %v3654_v63 = vshll.u32 %v11894_v5, 16  ;;  %v9460_v5 = vld [vmem:[%s13264_s6 + $0x218] sm:$0xff] }
 0x290   : > { %v11907_v11 = vadd.f32 %v11848_v17, %v2964_v2  ;;  %v3635_v2 = vshrl.u32 %v3520_v40, 16  ;;  %v3650_v23 = vrot.slane %v3648_v41, 4  ;;  %5154 = vmatpush.bf16.msra.mxu2 %v9460_v5 }
 0x291   : > { %v4113_v17 = vpack.c.b16 %v4098_v43, %v4097_v29  ;;  %v3524_v29 = vld [vmem:[#allocation2 + $0x4c] sm:$0xf]  ;;  %v3640_v43 = vrot.slane %v3638_v35, 5 }
 0x292   : > { %3467 = vmatmul.bf16.gmra.mxu1 %v9403_v28  ;;  %3901 = vmatmul.bf16.gmra.mxu2 %v3817_v27  ;;  %v3633_v27 = vsel %vm11473_vm14, %v3628_v34, %v3632_v61  ;;  %v4039_v53 = vrot.slane %v3524_v29, 5  ;;  %v11926_v34 = vpop.f32.mrf.mxu3  ;;  %v11928_v61 = vld [vmem:[#allocation2 + $0x50] sm:$0x1]  ;;  %v3651_v35 = vor.u32 %v3650_v23, %v3646_v24 }
 0x293   : > { %v3802_v13 = vunpack.c.l.b16 %v3633_v27  ;;  %v4042_v36 = vrot.slane %v11928_v61, 5 }
 0x295   : > { %v2966_v7 = vpop.f32.mrf.mxu2 }
 0x296   : > { %v2967_v3 = vadd.f32 %v2966_v7, %v11838_v15  ;;  %4205 = vmatmul.bf16.gmra.mxu3 %v4113_v17  ;;  %v3637_v15 = vrot.slane %v3635_v2, 4  ;;  %v3967_v7 = vld [vmem:[#allocation2 + $0x48] sm:$0xe]  ;;  %v9404_v17 = vld [vmem:[#allocation2 + $0x60] sm:$0xff] }
 0x297   : > { %v11919_v28 = vpop.f32.mrf.mxu1  ;;  %4430 = vmatmul.bf16.gmra.mxu0 %v9435_v58  ;;  %v8572_v18 = vrot.slane %v3967_v7, 9 }
 0x298   : > { %v11924_v44 = vadd.f32 %v11873_v52, %v2967_v3  ;;  %v4041_v52 = vrot.slane %v4039_v53, 4  ;;  %v3818_v3 = vpack.c.b16 %v3802_v13, %v3801_v60  ;;  %v3641_v27 = vor.u32 %v3640_v43, %v3637_v15  ;;  %v9452_v60 = vld [vmem:[%s13264_s6 + $0x1d8] sm:$0xff] }
 0x299   : > { %v4040_v41 = vsel %vm11523_vm1, %v8572_v18, %v4039_v53  ;;  %v3652_v43 = vrot.slane %v3651_v35, 4  ;;  %4860 = vmatpush.bf16.msra.mxu1 %v9452_v60 }
 0x29a   : > { %v4043_v7 = vsel %vm11523_vm1, %v4041_v52, %v4042_v36  ;;  %v3642_v15 = vrot.slane %v3641_v27, 4  ;;  %v3672_v36 = vshrl.u32 %v3524_v29, 16 }
 0x29b   : > { %v4100_v13 = vunpack.c.l.b16 %v4043_v7 }
 0x29c   : > { %v3647_v27 = vsel %vm11473_vm14, %v3642_v15, %v3646_v24  ;;  %v3527_v15 = vld [vmem:[#allocation2 + $0x58] sm:$0xf] }
 0x29d   : > { %v2968_v47 = vpop.f32.mrf.mxu2  ;;  %v3803_v24 = vunpack.c.l.b16 %v3647_v27  ;;  %v9405_v27 = vld [vmem:[#allocation2 + $0x6c] sm:$0xff] }
 0x29e   : > { %v2969_v40 = vadd.f32 %v2968_v47, %v11853_v62  ;;  %v4099_v47 = vunpack.c.l.b16 %v4040_v41  ;;  %v3523_v62 = vld [vmem:[#allocation2 + $0x48] sm:$0xf] }
 0x29f   : > { %v11932_v2 = vpop.f32.mrf.mxu1  ;;  %v3659_v23 = vshrl.u32 %v3523_v62, 16  ;;  %v3662_v53 = vshll.u32 %v3523_v62, 16  ;;  %v9436_v62 = vld [vmem:[#allocation2 + $0x54] sm:$0xff] }
 0x2a0   : > { %v11938_v58 = vadd.f32 %v11892_v46, %v2969_v40  ;;  %v3656_v46 = vrot.slane %v3654_v63, 5  ;;  %v4114_v18 = vpack.c.b16 %v4100_v13, %v4099_v47  ;;  %v3668_v40 = vshll.u32 %v3524_v29, 16  ;;  %v11958_v63 = vpop.f32.mrf.mxu3 }
 0x2a1   : > { %v3661_v29 = vrot.slane %v3659_v23, 4  ;;  %v3664_v47 = vrot.slane %v3662_v53, 5  ;;  %v3674_v13 = vrot.slane %v3672_v36, 4 }
 0x2a2   : > { %3472 = vmatmul.bf16.gmra.mxu1 %v9404_v17  ;;  %3906 = vmatmul.bf16.gmra.mxu2 %v3818_v3  ;;  %v9451_v17 = vld [vmem:[%s13264_s6 + $0x1d0] sm:$0xff]  ;;  %v3657_v35 = vsel %vm11473_vm14, %v3652_v43, %v3656_v46  ;;  %v3670_v60 = vrot.slane %v3668_v40, 5  ;;  %v11966_v46 = vld [vmem:[#allocation2 + $0x5c] sm:$0x1] }
 0x2a3   : > { %4861 = vmatpush.bf16.msra.mxu1 %v9451_v17  ;;  %v3804_v5 = vunpack.c.l.b16 %v3657_v35  ;;  %v3665_v43 = vor.u32 %v3664_v47, %v3661_v29  ;;  %v9449_v17 = vld [vmem:[%s13264_s6 + $0x1c0] sm:$0xff]  ;;  %v4049_v36 = vrot.slane %v11966_v46, 5  ;;  %v3526_v47 = vld [vmem:[#allocation2 + $0x54] sm:$0xf] }
 0x2a4   : > { %v3675_v53 = vor.u32 %v3674_v13, %v3670_v60 }
 0x2a5   : > { %v2971_v52 = vpop.f32.mrf.mxu2  ;;  %v3819_v35 = vpack.c.b16 %v3804_v5, %v3803_v24  ;;  %v3666_v31 = vrot.slane %v3665_v43, 4  ;;  %v3683_v5 = vshrl.u32 %v3526_v47, 16 }
 0x2a6   : > { %v2972_v3 = vadd.f32 %v2971_v52, %v11870_v39  ;;  %4210 = vmatmul.bf16.gmra.mxu3 %v4114_v18  ;;  %v9450_v39 = vld [vmem:[%s13264_s6 + $0x1c8] sm:$0xff]  ;;  %v4046_v52 = vrot.slane %v3527_v15, 5  ;;  %v3678_v18 = vshll.u32 %v11928_v61, 16 }
 0x2a7   : > { %v11952_v41 = vpop.f32.mrf.mxu1  ;;  %4862 = vmatpush.bf16.msra.mxu1 %v9450_v39  ;;  %4435 = vmatmul.bf16.gmra.mxu0 %v9436_v62  ;;  %v3671_v43 = vsel %vm11473_vm14, %v3666_v31, %v3670_v60 }
 0x2a8   : > { %v11961_v7 = vadd.f32 %v11914_v20, %v2972_v3  ;;  %v3968_v20 = vld [vmem:[#allocation2 + $0x54] sm:$0xe]  ;;  %v4048_v62 = vrot.slane %v4046_v52, 4  ;;  %v11982_v4 = vpop.f32.mrf.mxu3 }
 0x2a9   : > { %v8573_v40 = vrot.slane %v3968_v20, 9 }
 0x2aa   : > { %v4050_v24 = vsel %vm11523_vm1, %v4048_v62, %v4049_v36  ;;  %v4521_v62 = vshll.u32 %v11986_v37, 16 }
 0x2ab   : > { %4863 = vmatpush.bf16.msra.mxu1 %v9449_v17  ;;  %v4047_v39 = vsel %vm11523_vm1, %v8573_v40, %v4046_v52  ;;  %v3686_v17 = vshll.u32 %v3526_v47, 16  ;;  %v4481_v52 = vld [vmem:[#allocation2 + $0x18] sm:$0xf]  ;;  %v4102_v40 = vunpack.c.l.b16 %v4050_v24  ;;  %v3805_v24 = vunpack.c.l.b16 %v3671_v43 }
 0x2ac   : > { %v4101_v20 = vunpack.c.l.b16 %v4047_v39  ;;  %v4515_v47 = vshll.u32 %v4481_v52, 16  ;;  %v12008_v33 = vrot.slane %v4521_v62, 5  ;;  %v12014_v62 = vld [vmem:[#allocation2 + $0x68] sm:$0x1] }
 0x2ad   : > { %v2973_v23 = vpop.f32.mrf.mxu2  ;;  %v4056_v38 = vrot.slane %v12014_v62, 5 }
 0x2ae   : > { %v2974_v3 = vadd.f32 %v2973_v23, %v11883_v26  ;;  %v3676_v26 = vrot.slane %v3675_v53, 4  ;;  %v3680_v23 = vrot.slane %v3678_v18, 5  ;;  %v4512_v18 = vshrl.u32 %v4481_v52, 16 }
 0x2af   : > { %v3438_v29 = vpop.f32.mrf.mxu1 }
 0x2b0   : > { %v11977_v61 = vadd.f32 %v11926_v34, %v2974_v3  ;;  %v11980_v13 = vadd.f32 %v3438_v29, %v11796_v49  ;;  %v3692_v34 = vshll.u32 %v3527_v15, 16  ;;  %v3696_v3 = vshrl.u32 %v3527_v15, 16  ;;  %v9459_v15 = vld [vmem:[%s13264_s6 + $0x210] sm:$0xff] }
 0x2b1   : > { %v4115_v49 = vpack.c.b16 %v4102_v40, %v4101_v20  ;;  %v3681_v53 = vsel %vm11473_vm14, %v3676_v26, %v3680_v23  ;;  %v4525_v20 = vshrl.u32 %v11986_v37, 16  ;;  %5155 = vmatpush.bf16.msra.mxu2 %v9459_v15  ;;  %v9437_v23 = vld [vmem:[#allocation2 + $0x60] sm:$0xff]  ;;  %v4514_v52 = vrot.slane %v4512_v18, 4 }
 0x2b2   : > { %3477 = vmatmul.bf16.gmra.mxu1 %v9405_v27  ;;  %3911 = vmatmul.bf16.gmra.mxu2 %v3819_v35  ;;  %v3685_v27 = vrot.slane %v3683_v5, 4  ;;  %v3688_v35 = vrot.slane %v3686_v17, 5  ;;  %v12004_v26 = vrot.slane %v3692_v34, 5  ;;  %v3806_v5 = vunpack.c.l.b16 %v3681_v53 }
 0x2b3   : > { %v4517_v40 = vrot.slane %v4515_v47, 5  ;;  %v3702_v34 = vshll.u32 %v11966_v46, 16 }
 0x2b4   : > { %v3689_v17 = vor.u32 %v3688_v35, %v3685_v27  ;;  %v3820_v43 = vpack.c.b16 %v3806_v5, %v3805_v24  ;;  %v9406_v27 = vld [vmem:[#allocation2 + $0x78] sm:$0xff] }
 0x2b5   : > { %v2976_v29 = vpop.f32.mrf.mxu2  ;;  %v4518_v47 = vor.u32 %v4517_v40, %v4514_v52 }
 0x2b6   : > { %v2977_v36 = vadd.f32 %v2976_v29, %v11901_v0  ;;  %v3698_v0 = vrot.slane %v3696_v3, 4  ;;  %4215 = vmatmul.bf16.gmra.mxu3 %v4115_v49  ;;  %v3248_v29 = vpop.f32.mrf.mxu3  ;;  %v3969_v3 = vld [vmem:[#allocation2 + $0x60] sm:$0xe]  ;;  %v3690_v35 = vrot.slane %v3689_v17, 4  ;;  %v3704_v17 = vrot.slane %v3702_v34, 5 }
 0x2b7   : > { %v3440_v39 = vpop.f32.mrf.mxu1  ;;  %4440 = vmatmul.bf16.gmra.mxu0 %v9437_v23  ;;  %v8574_v53 = vrot.slane %v3969_v3, 9  ;;  %v3529_v3 = vld [vmem:[#allocation2 + $0x60] sm:$0xf] }
 0x2b8   : > { %v11999_v31 = vadd.f32 %v11958_v63, %v2977_v36  ;;  %v12002_v60 = vadd.f32 %v3440_v39, %v11810_v6  ;;  %v4527_v63 = vrot.slane %v4525_v20, 4  ;;  %v3530_v36 = vld [vmem:[#allocation2 + $0x64] sm:$0xf]  ;;  %v3699_v6 = vor.u32 %v3698_v0, %v12004_v26 }
 0x2b9   : > { %v4053_v49 = vrot.slane %v3530_v36, 5  ;;  %v4531_v39 = vshll.u32 %v12006_v45, 16 }
 0x2ba   : > { %v4528_v0 = vor.u32 %v4527_v63, %v12008_v33  ;;  %v3700_v5 = vrot.slane %v3699_v6, 4  ;;  %v4519_v63 = vrot.slane %v4518_v47, 4  ;;  %v12033_v6 = vld [vmem:[#allocation2 + $0x28] sm:$0xf]  ;;  %v3716_v47 = vshll.u32 %v3530_v36, 16 }
 0x2bb   : > { %v4054_v46 = vsel %vm11523_vm1, %v8574_v53, %v4053_v49  ;;  %v4055_v23 = vrot.slane %v4053_v49, 4  ;;  %v4533_v53 = vrot.slane %v4531_v39, 5 }
 0x2bc   : > { %v4103_v40 = vunpack.c.l.b16 %v4054_v46  ;;  %v4529_v49 = vrot.slane %v4528_v0, 4  ;;  %v4524_v39 = vsel %vm11473_vm14, %v4519_v63, %v12008_v33  ;;  %v4536_v46 = vshrl.u32 %v4484_v54, 16  ;;  %v9458_v33 = vld [vmem:[%s13264_s6 + $0x208] sm:$0xff] }
 0x2bd   : > { %v2978_v15 = vpop.f32.mrf.mxu2  ;;  %v4057_v52 = vsel %vm11523_vm1, %v4055_v23, %v4056_v38  ;;  %v4539_v23 = vshll.u32 %v4484_v54, 16  ;;  %v9438_v63 = vld [vmem:[#allocation2 + $0x6c] sm:$0xff]  ;;  %v12051_v54 = vrot.slane %v3716_v47, 5  ;;  %5156 = vmatpush.bf16.msra.mxu2 %v9458_v33  ;;  %v3726_v33 = vshll.u32 %v12014_v62, 16 }
 0x2be   : > { %v2979_v18 = vadd.f32 %v2978_v15, %v11919_v28  ;;  %v4104_v15 = vunpack.c.l.b16 %v4057_v52  ;;  %v3532_v62 = vld [vmem:[#allocation2 + $0x6c] sm:$0xf] }
 0x2bf   : > { %v3443_v20 = vpop.f32.mrf.mxu1 }
 0x2c0   : > { %v12021_v24 = vadd.f32 %v11982_v4, %v2979_v18  ;;  %v12024_v28 = vadd.f32 %v3443_v20, %v11827_v22  ;;  %v3695_v4 = vsel %vm11473_vm14, %v3690_v35, %v12004_v26  ;;  %v3705_v22 = vsel %vm11473_vm14, %v3700_v5, %v3704_v17  ;;  %v3250_v18 = vpop.f32.mrf.mxu3 }
 0x2c1   : > { %v4116_v34 = vpack.c.b16 %v4104_v15, %v4103_v40  ;;  %v3720_v20 = vshrl.u32 %v3530_v36, 16  ;;  %v4534_v35 = vsel %vm11473_vm14, %v4529_v49, %v4533_v53  ;;  %v4545_v5 = vshll.u32 %v12033_v6, 16 }
 0x2c2   : > { %3482 = vmatmul.bf16.gmra.mxu1 %v9406_v27  ;;  %3916 = vmatmul.bf16.gmra.mxu2 %v3820_v43  ;;  %v3707_v27 = vshrl.u32 %v3529_v3, 16  ;;  %v3710_v43 = vshll.u32 %v3529_v3, 16  ;;  %v4549_v17 = vshrl.u32 %v12033_v6, 16  ;;  %v3808_v40 = vunpack.c.l.b16 %v3705_v22 }
 0x2c3   : > { %v3722_v49 = vrot.slane %v3720_v20, 4  ;;  %v4768_v53 = vunpack.c.l.b16 %v4524_v39  ;;  %v12055_v22 = vrot.slane %v4545_v5, 5  ;;  %v8575_v20 = vrot.slane %v3970_v12, 9  ;;  %v12061_v5 = vld [vmem:[#allocation2 + $0x74] sm:$0x1] }
 0x2c4   : > { %v3709_v3 = vrot.slane %v3707_v27, 4  ;;  %v3712_v15 = vrot.slane %v3710_v43, 5  ;;  %v4063_v12 = vrot.slane %v12061_v5, 5 }
 0x2c5   : > { %v2981_v38 = vpop.f32.mrf.mxu2  ;;  %v3723_v47 = vor.u32 %v3722_v49, %v12051_v54 }
 0x2c6   : > { %v2982_v0 = vadd.f32 %v2981_v38, %v11932_v2  ;;  %v3807_v2 = vunpack.c.l.b16 %v3695_v4  ;;  %4220 = vmatmul.bf16.gmra.mxu3 %v4116_v34  ;;  %v4769_v38 = vunpack.c.l.b16 %v4534_v35  ;;  %v4541_v4 = vrot.slane %v4539_v23, 5 }
 0x2c7   : > { %v3445_v26 = vpop.f32.mrf.mxu1  ;;  %v4551_v34 = vrot.slane %v4549_v17, 4  ;;  %4445 = vmatmul.bf16.gmra.mxu0 %v9438_v63  ;;  %v3713_v43 = vor.u32 %v3712_v15, %v3709_v3  ;;  %v3724_v49 = vrot.slane %v3723_v47, 4 }
 0x2c8   : > { %v12043_v52 = vadd.f32 %v3248_v29, %v2982_v0  ;;  %v12046_v36 = vadd.f32 %v3445_v26, %v11844_v21  ;;  %v4538_v29 = vrot.slane %v4536_v46, 4  ;;  %v3533_v0 = vld [vmem:[#allocation2 + $0x70] sm:$0xf]  ;;  %v12053_v21 = vld [vmem:[#allocation2 + $0x2c] sm:$0x1]  ;;  %v3821_v10 = vpack.c.b16 %v3808_v40, %v3807_v2  ;;  %v3253_v1 = vpop.f32.mrf.mxu3 }
 0x2c9   : > { %v4060_v26 = vrot.slane %v3533_v0, 5  ;;  %v4788_v35 = vpack.c.b16 %v4769_v38, %v4768_v53  ;;  %v4555_v23 = vshll.u32 %v12053_v21, 16  ;;  %v4552_v40 = vor.u32 %v4551_v34, %v12055_v22  ;;  %v4487_v34 = vld [vmem:[#allocation2 + $0x30] sm:$0xf] }
 0x2ca   : > { %v4542_v2 = vor.u32 %v4541_v4, %v4538_v29  ;;  %v3714_v15 = vrot.slane %v3713_v43, 4  ;;  %v3728_v29 = vrot.slane %v3726_v33, 5  ;;  %v3744_v50 = vshrl.u32 %v3533_v0, 16 }
 0x2cb   : > { %v4062_v39 = vrot.slane %v4060_v26, 4  ;;  %v4061_v63 = vsel %vm11523_vm1, %v8575_v20, %v4060_v26  ;;  %v4557_v4 = vrot.slane %v4555_v23, 5  ;;  %v12074_v26 = vld [vmem:[#allocation2 + $0x34] sm:$0xf]  ;;  %v4553_v20 = vrot.slane %v4552_v40, 4 }
 0x2cc   : > { %v4105_v38 = vunpack.c.l.b16 %v4061_v63  ;;  %v4560_v55 = vshrl.u32 %v4487_v34, 16  ;;  %v4563_v30 = vshll.u32 %v4487_v34, 16  ;;  %v3719_v33 = vsel %vm11473_vm14, %v3714_v15, %v12051_v54 }
 0x2cd   : > { %v2983_v27 = vpop.f32.mrf.mxu2  ;;  %v4064_v53 = vsel %vm11523_vm1, %v4062_v39, %v4063_v12  ;;  %v4569_v39 = vshll.u32 %v12074_v26, 16  ;;  %v3729_v23 = vsel %vm11473_vm14, %v3724_v49, %v3728_v29  ;;  %v4558_v40 = vsel %vm11473_vm14, %v4553_v20, %v4557_v4  ;;  %v12096_v49 = vld [vmem:[#allocation2 + $0x38] sm:$0x1] }
 0x2ce   : > { %v2984_v46 = vadd.f32 %v2983_v27, %v11952_v41  ;;  %v4106_v27 = vunpack.c.l.b16 %v4064_v53  ;;  %v3746_v54 = vrot.slane %v3744_v50, 4  ;;  %v4565_v29 = vrot.slane %v4563_v30, 5  ;;  %v9439_v20 = vld [vmem:[#allocation2 + $0x78] sm:$0xff] }
 0x2cf   : > { %v3448_v17 = vpop.f32.mrf.mxu1  ;;  %v3809_v4 = vunpack.c.l.b16 %v3719_v33  ;;  %v3971_v30 = vld [vmem:[#allocation2 + $0x78] sm:$0xe] }
 0x2d0   : > { %v12067_v3 = vadd.f32 %v3250_v18, %v2984_v46  ;;  %v12070_v41 = vadd.f32 %v3448_v17, %v11858_v16  ;;  %v4543_v18 = vrot.slane %v4542_v2, 4  ;;  %v3731_v46 = vshrl.u32 %v3532_v62, 16  ;;  %v3255_v15 = vpop.f32.mrf.mxu3 }
 0x2d1   : > { %v3734_v16 = vshll.u32 %v3532_v62, 16  ;;  %v3740_v17 = vshll.u32 %v3533_v0, 16  ;;  %v4117_v43 = vpack.c.b16 %v4106_v27, %v4105_v38  ;;  %v4562_v38 = vrot.slane %v4560_v55, 4 }
 0x2d2   : > { %3921 = vmatmul.bf16.gmra.mxu2 %v3821_v10  ;;  %4864 = vmatmul.bf16.vlgmr.msra.gmra.mxu1 %v4788_v35  ;;  %v4573_v10 = vshrl.u32 %v12074_v26, 16  ;;  %v4548_v0 = vsel %vm11473_vm14, %v4543_v18, %v12055_v22  ;;  %v3733_v63 = vrot.slane %v3731_v46, 4  ;;  %v12098_v22 = vrot.slane %v4569_v39, 5  ;;  %v12100_v46 = vld [vmem:[#allocation2 + $0x7c] sm:$0xf] }
 0x2d3   : > { %v3736_v12 = vrot.slane %v3734_v16, 5  ;;  %v12094_v53 = vrot.slane %v3740_v17, 5  ;;  %v3810_v27 = vunpack.c.l.b16 %v3729_v23  ;;  %v4770_v18 = vunpack.c.l.b16 %v4548_v0  ;;  %v12111_v0 = vld [vmem:[#allocation2 + $0x80] sm:$0x1] }
 0x2d4   : > { %v4575_v34 = vrot.slane %v4573_v10, 4  ;;  %v3750_v16 = vshll.u32 %v12061_v5, 16  ;;  %v4067_v50 = vrot.slane %v12100_v46, 5  ;;  %v4579_v55 = vshll.u32 %v12096_v49, 16  ;;  %v9457_v5 = vld [vmem:[%s13264_s6 + $0x200] sm:$0xff] }
 0x2d5   : > { %v2986_v47 = vpop.f32.mrf.mxu2  ;;  %v3747_v17 = vor.u32 %v3746_v54, %v12094_v53  ;;  %v8576_v10 = vrot.slane %v3971_v30, 9  ;;  %v3822_v23 = vpack.c.b16 %v3810_v27, %v3809_v4  ;;  %5157 = vmatpush.bf16.msra.mxu2 %v9457_v5  ;;  %v12126_v30 = vld [vmem:[#allocation2 + $0x40] sm:$0xf] }
 0x2d6   : > { %v2987_v35 = vadd.f32 %v2986_v47, %v11701_v8  ;;  %4225 = vmatmul.bf16.gmra.mxu3 %v4117_v43  ;;  %v4566_v47 = vor.u32 %v4565_v29, %v4562_v38  ;;  %v4576_v39 = vor.u32 %v4575_v34, %v12098_v22  ;;  %v4070_v38 = vrot.slane %v12111_v0, 5 }
 0x2d7   : > { %v3450_v2 = vpop.f32.mrf.mxu1  ;;  %4450 = vmatmul.bf16.gmra.mxu0 %v9439_v20  ;;  %v4068_v54 = vsel %vm11523_vm1, %v8576_v10, %v4067_v50  ;;  %v3748_v34 = vrot.slane %v3747_v17, 4  ;;  %v4581_v4 = vrot.slane %v4579_v55, 5 }
 0x2d8   : > { %v12089_v62 = vadd.f32 %v3253_v1, %v2987_v35  ;;  %v12092_v8 = vadd.f32 %v3450_v2, %v11878_v42  ;;  %v4771_v1 = vunpack.c.l.b16 %v4558_v40  ;;  %v3737_v42 = vor.u32 %v3736_v12, %v3733_v63 }
 0x2d9   : > { %v4069_v35 = vrot.slane %v4067_v50, 4  ;;  %v3752_v12 = vrot.slane %v3750_v16, 5  ;;  %v4567_v27 = vrot.slane %v4566_v47, 4  ;;  %v4107_v20 = vunpack.c.l.b16 %v4068_v54  ;;  %v3258_v50 = vpop.f32.mrf.mxu3 }
 0x2da   : > { %v4789_v2 = vpack.c.b16 %v4771_v1, %v4770_v18  ;;  %v3738_v63 = vrot.slane %v3737_v42, 4  ;;  %v4577_v18 = vrot.slane %v4576_v39, 4  ;;  %v3535_v42 = vld [vmem:[#allocation2 + $0x78] sm:$0xf] }
 0x2db   : > { %v4071_v1 = vsel %vm11523_vm1, %v4069_v35, %v4070_v38  ;;  %v4572_v47 = vsel %vm11473_vm14, %v4567_v27, %v12098_v22  ;;  %v3755_v10 = vshrl.u32 %v3535_v42, 16 }
 0x2dc   : > { %v4108_v16 = vunpack.c.l.b16 %v4071_v1  ;;  %v4582_v39 = vsel %vm11473_vm14, %v4577_v18, %v4581_v4 }
 0x2dd   : > { %v2988_v43 = vpop.f32.mrf.mxu2  ;;  %v4773_v4 = vunpack.c.l.b16 %v4582_v39  ;;  %v3757_v27 = vrot.slane %v3755_v10, 4 }
 0x2de   : > { %v2989_v33 = vadd.f32 %v2988_v43, %v11717_v32  ;;  %v4118_v17 = vpack.c.b16 %v4108_v16, %v4107_v20  ;;  %v3753_v43 = vsel %vm11473_vm14, %v3748_v34, %v3752_v12  ;;  %v4597_v12 = vshrl.u32 %v12126_v30, 16  ;;  %v9440_v20 = vld [vmem:[#allocation2 + $0x84] sm:$0xff] }
 0x2df   : > { %v3453_v40 = vpop.f32.mrf.mxu1  ;;  %v4772_v34 = vunpack.c.l.b16 %v4572_v47  ;;  %v3774_v47 = vshll.u32 %v12111_v0, 16 }
 0x2e0   : > { %v12116_v29 = vadd.f32 %v3255_v15, %v2989_v33  ;;  %v12119_v32 = vadd.f32 %v3453_v40, %v11890_v14  ;;  %v3743_v15 = vsel %vm11473_vm14, %v3738_v63, %v12094_v53  ;;  %v4490_v14 = vld [vmem:[#allocation2 + $0x3c] sm:$0xf]  ;;  %v3758_v33 = vshll.u32 %v3535_v42, 16 }
 0x2e1   : > { %v3764_v53 = vshll.u32 %v12100_v46, 16  ;;  %v4584_v5 = vshrl.u32 %v4490_v14, 16  ;;  %v4587_v40 = vshll.u32 %v4490_v14, 16  ;;  %v4593_v63 = vshll.u32 %v12126_v30, 16 }
 0x2e2   : > { %3926 = vmatmul.bf16.gmra.mxu2 %v3822_v23  ;;  %4869 = vmatmul.bf16.gmra.mxu1 %v4789_v2  ;;  %v3768_v23 = vshrl.u32 %v12100_v46, 16  ;;  %v3811_v38 = vunpack.c.l.b16 %v3743_v15  ;;  %v3760_v18 = vrot.slane %v3758_v33, 5 }
 0x2e3   : > { %v3766_v46 = vrot.slane %v3764_v53, 5  ;;  %v4586_v42 = vrot.slane %v4584_v5, 4  ;;  %v4589_v16 = vrot.slane %v4587_v40, 5  ;;  %v4595_v14 = vrot.slane %v4593_v63, 5  ;;  %v4493_v40 = vld [vmem:[#allocation2 + $0x48] sm:$0xf] }
 0x2e4   : > { %v3770_v1 = vrot.slane %v3768_v23, 4  ;;  %v4603_v23 = vshll.u32 %v12145_v9, 16 }
 0x2e5   : > { %v2991_v55 = vpop.f32.mrf.mxu2  ;;  %v4590_v33 = vor.u32 %v4589_v16, %v4586_v42 }
 0x2e6   : > { %v2992_v35 = vadd.f32 %v2991_v55, %v11743_v19  ;;  %4230 = vmatmul.bf16.gmra.mxu3 %v4118_v17  ;;  %v3812_v19 = vunpack.c.l.b16 %v3753_v43  ;;  %v4599_v55 = vrot.slane %v4597_v12, 4  ;;  %v4790_v17 = vpack.c.b16 %v4773_v4, %v4772_v34  ;;  %v12155_v12 = vld [vmem:[#allocation2 + $0x4c] sm:$0xf] }
 0x2e7   : > { %v3455_v2 = vpop.f32.mrf.mxu1  ;;  %4455 = vmatmul.bf16.gmra.mxu0 %v9440_v20  ;;  %v3761_v43 = vor.u32 %v3760_v18, %v3757_v27  ;;  %v3771_v10 = vor.u32 %v3770_v1, %v3766_v46  ;;  %v4591_v0 = vrot.slane %v4590_v33, 4  ;;  %v4605_v34 = vrot.slane %v4603_v23, 5 }
 0x2e8   : > { %v12140_v54 = vadd.f32 %v3258_v50, %v2992_v35  ;;  %v12143_v22 = vadd.f32 %v3455_v2, %v11907_v11  ;;  %v3260_v11 = vpop.f32.mrf.mxu3  ;;  %v3823_v35 = vpack.c.b16 %v3812_v19, %v3811_v38  ;;  %v4600_v53 = vor.u32 %v4599_v55, %v4595_v14 }
 0x2e9   : > { %v3762_v63 = vrot.slane %v3761_v43, 4  ;;  %v3772_v38 = vrot.slane %v3771_v10, 4  ;;  %v4608_v4 = vshrl.u32 %v4493_v40, 16  ;;  %v4611_v27 = vshll.u32 %v4493_v40, 16 }
 0x2ea   : > { %v4601_v19 = vrot.slane %v4600_v53, 4  ;;  %v4617_v1 = vshll.u32 %v12155_v12, 16  ;;  %v4621_v20 = vshrl.u32 %v12155_v12, 16 }
 0x2eb   : > { %v3767_v16 = vsel %vm11473_vm14, %v3762_v63, %v3766_v46  ;;  %v4977_v63 = vrot.slane %v11986_v37, 5  ;;  %v4496_v37 = vld [vmem:[#allocation2 + $0x54] sm:$0xf] }
 0x2ec   : > { %v4619_v43 = vrot.slane %v4617_v1, 5 }
 0x2ed   : > { %v2993_v50 = vpop.f32.mrf.mxu2 }
 0x2ee   : > { %v2994_v15 = vadd.f32 %v2993_v50, %v11761_v51  ;;  %v3776_v51 = vrot.slane %v3774_v47, 5  ;;  %v4596_v50 = vsel %vm11473_vm14, %v4591_v0, %v4595_v14  ;;  %v4623_v47 = vrot.slane %v4621_v20, 4  ;;  %v4935_v0 = vld [vmem:[#allocation2 + $0x18] sm:$0xe] }
 0x2ef   : > { %v3458_v39 = vpop.f32.mrf.mxu1  ;;  %v4774_v10 = vunpack.c.l.b16 %v4596_v50  ;;  %v8761_v1 = vrot.slane %v4935_v0, 9  ;;  %v4979_v20 = vrot.slane %v4977_v63, 4 }
 0x2f0   : > { %v12150_v2 = vadd.f32 %v3260_v11, %v2994_v15  ;;  %v12153_v5 = vadd.f32 %v3458_v39, %v11924_v44  ;;  %v3777_v55 = vsel %vm11473_vm14, %v3772_v38, %v3776_v51  ;;  %v4606_v11 = vsel %vm11473_vm14, %v4601_v19, %v4605_v34 }
 0x2f1   : > { %v4610_v15 = vrot.slane %v4608_v4, 4  ;;  %v3813_v39 = vunpack.c.l.b16 %v3767_v16  ;;  %v3814_v46 = vunpack.c.l.b16 %v3777_v55  ;;  %v4775_v33 = vunpack.c.l.b16 %v4606_v11  ;;  %v12184_v16 = vld [vmem:[#allocation2 + $0x58] sm:$0xf] }
 0x2f2   : > { %3931 = vmatmul.bf16.gmra.mxu2 %v3823_v35  ;;  %4874 = vmatmul.bf16.gmra.mxu1 %v4790_v17  ;;  %v4613_v17 = vrot.slane %v4611_v27, 5  ;;  %v4624_v40 = vor.u32 %v4623_v47, %v4619_v43  ;;  %v4978_v50 = vsel %vm11523_vm1, %v8761_v1, %v4977_v63  ;;  %v4641_v47 = vshll.u32 %v12184_v16, 16 }
 0x2f3   : > { %v3824_v51 = vpack.c.b16 %v3814_v46, %v3813_v39  ;;  %v4791_v38 = vpack.c.b16 %v4775_v33, %v4774_v10  ;;  %v4645_v39 = vshrl.u32 %v12184_v16, 16 }
 0x2f4   : > { %v4614_v53 = vor.u32 %v4613_v17, %v4610_v15  ;;  %v4632_v15 = vshrl.u32 %v4496_v37, 16  ;;  %v4635_v17 = vshll.u32 %v4496_v37, 16  ;;  %v4643_v63 = vrot.slane %v4641_v47, 5  ;;  %v4936_v37 = vld [vmem:[#allocation2 + $0x24] sm:$0xe] }
 0x2f5   : > { %v3892_v18 = vpop.f32.mrf.mxu2 }
 0x2f6   : > { %v12160_v44 = vadd.f32 %v3892_v18, %v11980_v13  ;;  %v12173_v13 = vld [vmem:[#allocation2 + $0x50] sm:$0x1]  ;;  %v4615_v4 = vrot.slane %v4614_v53, 4  ;;  %v4625_v18 = vrot.slane %v4624_v40, 4  ;;  %v5062_v53 = vunpack.c.l.b16 %v4978_v50 }
 0x2f7   : > { %v3460_v42 = vpop.f32.mrf.mxu1  ;;  %v4627_v23 = vshll.u32 %v12173_v13, 16  ;;  %v4637_v40 = vrot.slane %v4635_v17, 5  ;;  %v4987_v17 = vrot.slane %v12053_v21, 5 }
 0x2f8   : > { %v12171_v35 = vadd.f32 %v3460_v42, %v11938_v58  ;;  %v4980_v42 = vrot.slane %v12006_v45, 5 }
 0x2f9   : > { %v4629_v27 = vrot.slane %v4627_v23, 5 }
 0x2fa   : > { %v4981_v11 = vsel %vm11523_vm1, %v4979_v20, %v4980_v42  ;;  %v4984_v20 = vrot.slane %v12033_v6, 5 }
 0x2fb   : > { %v5063_v23 = vunpack.c.l.b16 %v4981_v11  ;;  %v8762_v11 = vrot.slane %v4936_v37, 9 }
 0x2fd   : > { %v3894_v14 = vpop.f32.mrf.mxu2  ;;  %v4985_v21 = vsel %vm11523_vm1, %v8762_v11, %v4984_v20  ;;  %v4937_v11 = vld [vmem:[#allocation2 + $0x30] sm:$0xe] }
 0x2fe   : > { %v12178_v58 = vadd.f32 %v3894_v14, %v12002_v60  ;;  %v4620_v60 = vsel %vm11473_vm14, %v4615_v4, %v4619_v43  ;;  %v4634_v14 = vrot.slane %v4632_v15, 4  ;;  %v4986_v15 = vrot.slane %v4984_v20, 4 }
 0x2ff   : > { %v3463_v19 = vpop.f32.mrf.mxu1  ;;  %v4776_v10 = vunpack.c.l.b16 %v4620_v60  ;;  %v4499_v60 = vld [vmem:[#allocation2 + $0x60] sm:$0xf] }
 0x300   : > { %v12181_v34 = vadd.f32 %v3463_v19, %v11961_v7  ;;  %v4630_v7 = vsel %vm11473_vm14, %v4625_v18, %v4629_v27  ;;  %v5082_v19 = vpack.c.b16 %v5063_v23, %v5062_v53  ;;  %v4638_v27 = vor.u32 %v4637_v40, %v4634_v14 }
 0x301   : > { %v4777_v33 = vunpack.c.l.b16 %v4630_v7  ;;  %v4656_v47 = vshrl.u32 %v4499_v60, 16  ;;  %v4988_v14 = vsel %vm11523_vm1, %v4986_v15, %v4987_v17 }
 0x302   : > { %3936 = vmatmul.bf16.gmra.mxu2 %v3824_v51  ;;  %4879 = vmatmul.bf16.gmra.mxu1 %v4791_v38  ;;  %v4647_v51 = vrot.slane %v4645_v39, 4  ;;  %v12202_v38 = vld [vmem:[#allocation2 + $0x5c] sm:$0x1]  ;;  %v4639_v7 = vrot.slane %v4638_v27, 4  ;;  %v4659_v39 = vshll.u32 %v4499_v60, 16 }
 0x303   : > { %v4792_v0 = vpack.c.b16 %v4777_v33, %v4776_v10  ;;  %v4658_v40 = vrot.slane %v4656_v47, 4 }
 0x304   : > { %v4648_v18 = vor.u32 %v4647_v51, %v4643_v63  ;;  %v4644_v33 = vsel %vm11473_vm14, %v4639_v7, %v4643_v63  ;;  %v5064_v63 = vunpack.c.l.b16 %v4985_v21  ;;  %v4991_v7 = vrot.slane %v12074_v26, 5  ;;  %v4502_v26 = vld [vmem:[#allocation2 + $0x6c] sm:$0xf] }
 0x305   : > { %v3897_v55 = vpop.f32.mrf.mxu2 }
 0x306   : > { %v12195_v45 = vadd.f32 %v3897_v55, %v12024_v28  ;;  %v12212_v55 = vld [vmem:[#allocation2 + $0x64] sm:$0xf]  ;;  %v4649_v50 = vrot.slane %v4648_v18, 4  ;;  %v5065_v18 = vunpack.c.l.b16 %v4988_v14 }
 0x307   : > { %v3465_v43 = vpop.f32.mrf.mxu1  ;;  %v4665_v6 = vshll.u32 %v12212_v55, 16 }
 0x308   : > { %v12200_v46 = vadd.f32 %v3465_v43, %v11977_v61  ;;  %v4651_v61 = vshll.u32 %v12202_v38, 16 }
 0x30d   : > { %v3899_v28 = vpop.f32.mrf.mxu2 }
 0x30e   : > { %v12205_v4 = vadd.f32 %v3899_v28, %v12046_v36  ;;  %v4653_v36 = vrot.slane %v4651_v61, 5  ;;  %v4661_v28 = vrot.slane %v4659_v39, 5  ;;  %v12231_v61 = vld [vmem:[#allocation2 + $0x68] sm:$0x1] }
 0x30f   : > { %v3468_v1 = vpop.f32.mrf.mxu1  ;;  %v4675_v20 = vshll.u32 %v12231_v61, 16 }
 0x310   : > { %v12210_v42 = vadd.f32 %v3468_v1, %v11999_v31  ;;  %v4669_v31 = vshrl.u32 %v12212_v55, 16  ;;  %v4654_v23 = vsel %vm11473_vm14, %v4649_v50, %v4653_v36  ;;  %v4662_v1 = vor.u32 %v4661_v28, %v4658_v40 }
 0x311   : > { %v4779_v27 = vunpack.c.l.b16 %v4654_v23  ;;  %v5083_v36 = vpack.c.b16 %v5065_v18, %v5064_v63  ;;  %v4680_v40 = vshrl.u32 %v4502_v26, 16  ;;  %v4683_v28 = vshll.u32 %v4502_v26, 16  ;;  %v4938_v26 = vld [vmem:[#allocation2 + $0x3c] sm:$0xe] }
 0x312   : > { %4884 = vmatmul.bf16.gmra.mxu1 %v4792_v0  ;;  %5158 = vmatmul.bf16.vlgmr.msra.gmra.mxu2 %v5082_v19  ;;  %v4671_v0 = vrot.slane %v4669_v31, 4  ;;  %v4778_v19 = vunpack.c.l.b16 %v4644_v33  ;;  %v4663_v47 = vrot.slane %v4662_v1, 4  ;;  %v8763_v31 = vrot.slane %v4937_v11, 9 }
 0x313   : > { %v4994_v33 = vrot.slane %v12096_v49, 5 }
 0x314   : > { %v4992_v21 = vsel %vm11523_vm1, %v8763_v31, %v4991_v7 }
 0x315   : > { %v3902_v43 = vpop.f32.mrf.mxu2  ;;  %v5066_v1 = vunpack.c.l.b16 %v4992_v21 }
 0x316   : > { %v12218_v10 = vadd.f32 %v3902_v43, %v12070_v41  ;;  %v4667_v41 = vrot.slane %v4665_v6, 5  ;;  %v4677_v6 = vrot.slane %v4675_v20, 5  ;;  %v4993_v43 = vrot.slane %v4991_v7, 4 }
 0x317   : > { %v3470_v53 = vpop.f32.mrf.mxu1  ;;  %v4685_v20 = vrot.slane %v4683_v28, 5  ;;  %v5001_v28 = vrot.slane %v12145_v9, 5 }
 0x318   : > { %v12229_v51 = vadd.f32 %v3470_v53, %v12021_v24  ;;  %v4672_v37 = vor.u32 %v4671_v0, %v4667_v41  ;;  %v4793_v24 = vpack.c.b16 %v4779_v27, %v4778_v19  ;;  %v12242_v53 = vld [vmem:[#allocation2 + $0x70] sm:$0xf]  ;;  %v4995_v14 = vsel %vm11523_vm1, %v4993_v43, %v4994_v33 }
 0x319   : > { %v4689_v0 = vshll.u32 %v12242_v53, 16  ;;  %v4693_v19 = vshrl.u32 %v12242_v53, 16  ;;  %v4998_v43 = vrot.slane %v12126_v30, 5 }
 0x31a   : > { %v4673_v39 = vrot.slane %v4672_v37, 4  ;;  %v5067_v37 = vunpack.c.l.b16 %v4995_v14  ;;  %v8764_v14 = vrot.slane %v4938_v26, 9 }
 0x31b   : > { %v4691_v7 = vrot.slane %v4689_v0, 5 }
 0x31c   : > { %v4999_v9 = vsel %vm11523_vm1, %v8764_v14, %v4998_v43  ;;  %v4939_v14 = vld [vmem:[#allocation2 + $0x48] sm:$0xe] }
 0x31d   : > { %v3904_v60 = vpop.f32.mrf.mxu2 }
 0x31e   : > { %v12236_v50 = vadd.f32 %v3904_v60, %v12092_v8  ;;  %v4668_v8 = vsel %vm11473_vm14, %v4663_v47, %v4667_v41  ;;  %v4682_v60 = vrot.slane %v4680_v40, 4  ;;  %v5000_v40 = vrot.slane %v4998_v43, 4 }
 0x31f   : > { %v3473_v15 = vpop.f32.mrf.mxu1  ;;  %v4780_v63 = vunpack.c.l.b16 %v4668_v8  ;;  %v4505_v8 = vld [vmem:[#allocation2 + $0x78] sm:$0xf] }
 0x320   : > { %v12239_v17 = vadd.f32 %v3473_v15, %v12043_v52  ;;  %v4678_v52 = vsel %vm11473_vm14, %v4673_v39, %v4677_v6  ;;  %v5084_v15 = vpack.c.b16 %v5067_v37, %v5066_v1  ;;  %v4686_v39 = vor.u32 %v4685_v20, %v4682_v60 }
 0x321   : > { %v4781_v18 = vunpack.c.l.b16 %v4678_v52  ;;  %v4704_v0 = vshrl.u32 %v4505_v8, 16  ;;  %v5002_v60 = vsel %vm11523_vm1, %v5000_v40, %v5001_v28 }
 0x322   : > { %4889 = vmatmul.bf16.gmra.mxu1 %v4793_v24  ;;  %5163 = vmatmul.bf16.gmra.mxu2 %v5083_v36  ;;  %v4695_v24 = vrot.slane %v4693_v19, 4  ;;  %v12260_v36 = vld [vmem:[#allocation2 + $0x74] sm:$0x1]  ;;  %v4687_v52 = vrot.slane %v4686_v39, 4  ;;  %v4707_v19 = vshll.u32 %v4505_v8, 16 }
 0x323   : > { %v4794_v11 = vpack.c.b16 %v4781_v18, %v4780_v63  ;;  %v4706_v20 = vrot.slane %v4704_v0, 4 }
 0x324   : > { %v4696_v6 = vor.u32 %v4695_v24, %v4691_v7  ;;  %v4692_v18 = vsel %vm11473_vm14, %v4687_v52, %v4691_v7  ;;  %v5068_v7 = vunpack.c.l.b16 %v4999_v9  ;;  %v5005_v52 = vrot.slane %v12155_v12, 5  ;;  %v4508_v12 = vld [vmem:[#allocation2 + $0x84] sm:$0xf] }
 0x325   : > { %v3907_v23 = vpop.f32.mrf.mxu2 }
 0x326   : > { %v12253_v49 = vadd.f32 %v3907_v23, %v12119_v32  ;;  %v12270_v23 = vld [vmem:[#allocation2 + $0x7c] sm:$0xf]  ;;  %v4697_v21 = vrot.slane %v4696_v6, 4  ;;  %v5069_v6 = vunpack.c.l.b16 %v5002_v60 }
 0x327   : > { %v3475_v41 = vpop.f32.mrf.mxu1  ;;  %v4713_v30 = vshll.u32 %v12270_v23, 16 }
 0x328   : > { %v12258_v27 = vadd.f32 %v3475_v41, %v12067_v3  ;;  %v4699_v3 = vshll.u32 %v12260_v36, 16 }
 0x32d   : > { %v3909_v32 = vpop.f32.mrf.mxu2 }
 0x32e   : > { %v12263_v47 = vadd.f32 %v3909_v32, %v12143_v22  ;;  %v4701_v22 = vrot.slane %v4699_v3, 5  ;;  %v4709_v32 = vrot.slane %v4707_v19, 5  ;;  %v12289_v3 = vld [vmem:[#allocation2 + $0x80] sm:$0x1] }
 0x32f   : > { %v3478_v31 = vpop.f32.mrf.mxu1  ;;  %v4723_v43 = vshll.u32 %v12289_v3, 16 }
 0x330   : > { %v12268_v33 = vadd.f32 %v3478_v31, %v12089_v62  ;;  %v4717_v62 = vshrl.u32 %v12270_v23, 16  ;;  %v4702_v37 = vsel %vm11473_vm14, %v4697_v21, %v4701_v22  ;;  %v4710_v31 = vor.u32 %v4709_v32, %v4706_v20 }
 0x331   : > { %v4783_v39 = vunpack.c.l.b16 %v4702_v37  ;;  %v5085_v22 = vpack.c.b16 %v5069_v6, %v5068_v7  ;;  %v4728_v20 = vshrl.u32 %v4508_v12, 16  ;;  %v4731_v32 = vshll.u32 %v4508_v12, 16 }
 0x332   : > { %4894 = vmatmul.bf16.gmra.mxu1 %v4794_v11  ;;  %5168 = vmatmul.bf16.gmra.mxu2 %v5084_v15  ;;  %v4719_v11 = vrot.slane %v4717_v62, 4  ;;  %v4782_v15 = vunpack.c.l.b16 %v4692_v18  ;;  %v4711_v0 = vrot.slane %v4710_v31, 4  ;;  %v8765_v62 = vrot.slane %v4939_v14, 9 }
 0x333   : > { %v5008_v18 = vrot.slane %v12173_v13, 5 }
 0x334   : > { %v5006_v9 = vsel %vm11523_vm1, %v8765_v62, %v5005_v52  ;;  %v5012_v62 = vrot.slane %v12184_v16, 5 }
 0x335   : > { %v3912_v41 = vpop.f32.mrf.mxu2  ;;  %v5070_v31 = vunpack.c.l.b16 %v5006_v9  ;;  %v5015_v9 = vrot.slane %v12202_v38, 5 }
 0x336   : > { %v12276_v63 = vadd.f32 %v3912_v41, %v12153_v5  ;;  %v4715_v5 = vrot.slane %v4713_v30, 5  ;;  %v4725_v30 = vrot.slane %v4723_v43, 5  ;;  %v5007_v41 = vrot.slane %v5005_v52, 4 }
 0x337   : > { %v3480_v1 = vpop.f32.mrf.mxu1  ;;  %v4733_v43 = vrot.slane %v4731_v32, 5 }
 0x338   : > { %v12287_v24 = vadd.f32 %v3480_v1, %v12116_v29  ;;  %v4720_v26 = vor.u32 %v4719_v11, %v4715_v5  ;;  %v4795_v29 = vpack.c.b16 %v4783_v39, %v4782_v15  ;;  %v12300_v1 = vld [vmem:[#allocation2 + $0x88] sm:$0xf]  ;;  %v5009_v60 = vsel %vm11523_vm1, %v5007_v41, %v5008_v18  ;;  %v4940_v41 = vld [vmem:[#allocation2 + $0x54] sm:$0xe] }
 0x339   : > { %v4737_v11 = vshll.u32 %v12300_v1, 16  ;;  %v4741_v15 = vshrl.u32 %v12300_v1, 16 }
 0x33a   : > { %v4721_v19 = vrot.slane %v4720_v26, 4  ;;  %v5071_v26 = vunpack.c.l.b16 %v5009_v60 }
 0x33b   : > { %v4739_v52 = vrot.slane %v4737_v11, 5 }
 0x33d   : > { %v3914_v8 = vpop.f32.mrf.mxu2 }
 0x33e   : > { %v12294_v21 = vadd.f32 %v3914_v8, %v12171_v35  ;;  %v4716_v35 = vsel %vm11473_vm14, %v4711_v0, %v4715_v5  ;;  %v4730_v8 = vrot.slane %v4728_v20, 4  ;;  %v5086_v0 = vpack.c.b16 %v5071_v26, %v5070_v31 }
 0x33f   : > { %v3483_v40 = vpop.f32.mrf.mxu1  ;;  %v4784_v7 = vunpack.c.l.b16 %v4716_v35 }
 0x340   : > { %v12297_v28 = vadd.f32 %v3483_v40, %v12140_v54  ;;  %v4726_v54 = vsel %vm11473_vm14, %v4721_v19, %v4725_v30  ;;  %v4734_v19 = vor.u32 %v4733_v43, %v4730_v8  ;;  %v5019_v8 = vrot.slane %v12212_v55, 5  ;;  %v4941_v43 = vld [vmem:[#allocation2 + $0x60] sm:$0xe] }
 0x341   : > { %v4785_v6 = vunpack.c.l.b16 %v4726_v54  ;;  %v5014_v54 = vrot.slane %v5012_v62, 4 }
 0x342   : > { %4899 = vmatmul.bf16.gmra.mxu1 %v4795_v29  ;;  %5173 = vmatmul.bf16.gmra.mxu2 %v5085_v22  ;;  %v4743_v29 = vrot.slane %v4741_v15, 4  ;;  %v12318_v22 = vld [vmem:[#allocation2 + $0x8c] sm:$0x1]  ;;  %v4735_v18 = vrot.slane %v4734_v19, 4 }
 0x343   : > { %v4796_v14 = vpack.c.b16 %v4785_v6, %v4784_v7  ;;  %v5016_v11 = vsel %vm11523_vm1, %v5014_v54, %v5015_v9 }
 0x344   : > { %v4744_v30 = vor.u32 %v4743_v29, %v4739_v52  ;;  %v4740_v20 = vsel %vm11473_vm14, %v4735_v18, %v4739_v52  ;;  %v5073_v38 = vunpack.c.l.b16 %v5016_v11  ;;  %v8767_v52 = vrot.slane %v4941_v43, 9 }
 0x345   : > { %v3917_v37 = vpop.f32.mrf.mxu2  ;;  %v4786_v15 = vunpack.c.l.b16 %v4740_v20  ;;  %v5021_v29 = vrot.slane %v5019_v8, 4  ;;  %v5029_v20 = vrot.slane %v12260_v36, 5 }
 0x346   : > { %v12311_v13 = vadd.f32 %v3917_v37, %v12181_v34  ;;  %v4745_v12 = vrot.slane %v4744_v30, 4  ;;  %v8766_v37 = vrot.slane %v4940_v41, 9 }
 0x347   : > { %v3485_v5 = vpop.f32.mrf.mxu1 }
 0x348   : > { %v12316_v39 = vadd.f32 %v3485_v5, %v12150_v2  ;;  %v4747_v2 = vshll.u32 %v12318_v22, 16  ;;  %v5013_v32 = vsel %vm11523_vm1, %v8766_v37, %v5012_v62  ;;  %v5026_v37 = vrot.slane %v12242_v53, 5 }
 0x349   : > { %v5072_v7 = vunpack.c.l.b16 %v5013_v32 }
 0x34a   : > { %v4749_v35 = vrot.slane %v4747_v2, 5  ;;  %v4411_v2 = vpop.f32.mrf.mxu0 }
 0x34b   : > { %v5087_v26 = vpack.c.b16 %v5073_v38, %v5072_v7 }
 0x34c   : > { %v4750_v16 = vsel %vm11473_vm14, %v4745_v12, %v4749_v35 }
 0x34d   : > { %v3919_v34 = vpop.f32.mrf.mxu2  ;;  %v4787_v5 = vunpack.c.l.b16 %v4750_v16 }
 0x34e   : > { %v12321_v40 = vadd.f32 %v3919_v34, %v12200_v46  ;;  %v5022_v34 = vrot.slane %v12231_v61, 5 }
 0x34f   : > { %v4797_v31 = vpack.c.b16 %v4787_v5, %v4786_v15  ;;  %v4865_v41 = vpop.f32.mrf.mxu1 }
 0x350   : > { %v5023_v30 = vsel %vm11523_vm1, %v5021_v29, %v5022_v34  ;;  %v5036_v34 = vrot.slane %v12289_v3, 5 }
 0x351   : > { %v5075_v62 = vunpack.c.l.b16 %v5023_v30 }
 0x352   : > { %4904 = vmatmul.bf16.gmra.mxu1 %v4796_v14  ;;  %5178 = vmatmul.bf16.gmra.mxu2 %v5086_v0  ;;  %v4186_v14 = vpop.f32.mrf.mxu3  ;;  %v4413_v54 = vpop.f32.mrf.mxu0 }
 0x353   : > { %v4236_v3 = vadd.f32 %v4186_v14, %v12160_v44  ;;  %v12396_v44 = vld [vmem:[%s13265_s7] ss:$0 sm:$0xff] }
 0x355   : > { %v3922_v60 = vpop.f32.mrf.mxu2 }
 0x356   : > { %v12327_v46 = vadd.f32 %v3922_v60, %v12210_v42  ;;  %v5028_v60 = vrot.slane %v5026_v37, 4 }
 0x357   : > { %v4867_v16 = vpop.f32.mrf.mxu1 }
 0x358   : > { %v5030_v15 = vsel %vm11523_vm1, %v5028_v60, %v5029_v20  ;;  %v4944_v60 = vld [vmem:[#allocation2 + $0x84] sm:$0xe] }
 0x359   : > { %v5077_v7 = vunpack.c.l.b16 %v5030_v15  ;;  %v8770_v15 = vrot.slane %v4944_v60, 9 }
 0x35a   : > { %v4188_v35 = vpop.f32.mrf.mxu3  ;;  %v4416_v38 = vpop.f32.mrf.mxu0 }
 0x35d   : > { %v3924_v6 = vpop.f32.mrf.mxu2 }
 0x35e   : > { %v12338_v42 = vadd.f32 %v3924_v6, %v12229_v51  ;;  %v5020_v51 = vsel %vm11523_vm1, %v8767_v52, %v5019_v8  ;;  %v4943_v8 = vld [vmem:[#allocation2 + $0x78] sm:$0xe] }
 0x35f   : > { %v5074_v55 = vunpack.c.l.b16 %v5020_v51  ;;  %v8769_v52 = vrot.slane %v4943_v8, 9 }
 0x361   : > { %v5088_v61 = vpack.c.b16 %v5075_v62, %v5074_v55 }
 0x362   : > { %4909 = vmatmul.bf16.gmra.mxu1 %v4797_v31  ;;  %5183 = vmatmul.bf16.gmra.mxu2 %v5087_v26  ;;  %v4191_v5 = vpop.f32.mrf.mxu3  ;;  %v12364_v26 = vpop.f32.mrf.mxu1 }
 0x363   : > { %v12373_v30 = vpop.f32.mrf.mxu0 }
 0x365   : > { %v3927_v0 = vpop.f32.mrf.mxu2 }
 0x366   : > { %v12343_v19 = vadd.f32 %v3927_v0, %v12239_v17  ;;  %v4942_v17 = vld [vmem:[#allocation2 + $0x6c] sm:$0xe] }
 0x367   : > { %v8768_v9 = vrot.slane %v4942_v17, 9 }
 0x36a   : > { %v12367_v43 = vpop.f32.mrf.mxu3  ;;  %v12379_v55 = vpop.f32.mrf.mxu1 }
 0x36b   : > { %v12388_v20 = vpop.f32.mrf.mxu0 }
 0x36d   : > { %v3929_v18 = vpop.f32.mrf.mxu2 }
 0x36e   : > { %v12350_v12 = vadd.f32 %v3929_v18, %v12258_v27  ;;  %v5027_v27 = vsel %vm11523_vm1, %v8768_v9, %v5026_v37  ;;  %v5040_v9 = vrot.slane %v12300_v1, 5  ;;  %v4237_v1 = vadd.f32 %v4188_v35, %v12178_v58 }
 0x36f   : > { %v5076_v53 = vunpack.c.l.b16 %v5027_v27 }
 0x370   : > { %v4462_v8 = vadd.f32 %v4413_v54, %v4237_v1  ;;  %v4239_v1 = vadd.f32 %v12367_v43, %v12205_v4 }
 0x371   : > { %v5089_v36 = vpack.c.b16 %v5077_v7, %v5076_v53  ;;  %v5042_v53 = vrot.slane %v5040_v9, 4  ;;  %v5043_v7 = vrot.slane %v12318_v22, 5  ;;  %v5041_v22 = vsel %vm11523_vm1, %v8770_v15, %v5040_v9 }
 0x372   : > { %5188 = vmatmul.bf16.gmra.mxu2 %v5088_v61  ;;  %v12381_v61 = vpop.f32.mrf.mxu3  ;;  %v12390_v27 = vpop.f32.mrf.mxu1  ;;  %v5080_v58 = vunpack.c.l.b16 %v5041_v22 }
 0x375   : > { %v3932_v32 = vpop.f32.mrf.mxu2 }
 0x376   : > { %v12355_v11 = vadd.f32 %v3932_v32, %v12268_v33  ;;  %v5033_v33 = vrot.slane %v12270_v23, 5  ;;  %v4461_v32 = vadd.f32 %v4411_v2, %v4236_v3  ;;  %v12402_v2 = vld [vmem:[%s13266_s8] ss:$0 sm:$0xff] }
 0x378   : > { %v5035_v29 = vrot.slane %v5033_v33, 4 }
 0x37a   : > { %v5037_v23 = vsel %vm11523_vm1, %v5035_v29, %v5036_v34  ;;  %v12412_v29 = vpop.f32.mrf.mxu0  ;;  %v4916_v34 = vadd.f32 %v4867_v16, %v4462_v8 }
 0x37b   : > { %v5079_v18 = vunpack.c.l.b16 %v5037_v23 }
 0x37d   : > { %v3934_v6 = vpop.f32.mrf.mxu2 }
 0x37e   : > { %v12362_v31 = vadd.f32 %v3934_v6, %v12287_v24  ;;  %v5034_v24 = vsel %vm11523_vm1, %v8769_v52, %v5033_v33  ;;  %v4915_v6 = vadd.f32 %v4865_v41, %v4461_v32  ;;  %v5044_v41 = vsel %vm11523_vm1, %v5042_v53, %v5043_v7 }
 0x37f   : > { %v5078_v62 = vunpack.c.l.b16 %v5034_v24  ;;  %v5081_v35 = vunpack.c.l.b16 %v5044_v41  ;;  %v12414_v24 = vpop.f32.mrf.mxu1 }
 0x381   : > { %v5090_v17 = vpack.c.b16 %v5079_v18, %v5078_v62  ;;  %v4238_v62 = vadd.f32 %v4191_v5, %v12195_v45  ;;  %v5091_v3 = vpack.c.b16 %v5081_v35, %v5080_v58  ;;  %v4464_v58 = vadd.f32 %v12373_v30, %v4239_v1 }
 0x382   : > { %5193 = vmatmul.bf16.gmra.mxu2 %v5089_v36  ;;  %v12404_v36 = vpop.f32.mrf.mxu3  ;;  %v12422_v45 = vpop.f32.mrf.mxu0 }
 0x383   : > { %v4463_v32 = vadd.f32 %v4416_v38, %v4238_v62  ;;  %v9636_v38 = vld [vmem:[#allocation2] sm:$0xf] }
 0x385   : > { %v3937_v0 = vpop.f32.mrf.mxu2  ;;  %v4917_v7 = vadd.f32 %v12364_v26, %v4463_v32 }
 0x386   : > { %v12371_v51 = vadd.f32 %v3937_v0, %v12297_v28 }
 0x387   : > { %v12426_v41 = vpop.f32.mrf.mxu1 }
 0x38a   : > { %v12418_v9 = vpop.f32.mrf.mxu3  ;;  %v12438_v32 = vpop.f32.mrf.mxu0 }
 0x38d   : > { %v3939_v37 = vpop.f32.mrf.mxu2 }
 0x38e   : > { %v12385_v28 = vadd.f32 %v3939_v37, %v12316_v39 }
 0x392   : > { %5198 = vmatmul.bf16.gmra.mxu2 %v5090_v17 }
 0x395   : > { %v5159_v39 = vpop.f32.mrf.mxu2 }
 0x396   : > { %v5209_v14 = vadd.f32 %v5159_v39, %v4915_v6 }
 0x398   : > { %v5233_v33 = vmul.f32 %v12396_v44, %v5209_v14 }
 0x39a   : > { %v5257_v52 = vadd.f32 %v12402_v2, %v5233_v33 }
 0x39c   : > { %vm5277_vm2 = vcmp.gt.f32.partialorder %v5257_v52, 0.0  ;;  %v5297_v0 = vmul.f32 0.01, %v5257_v52 }
 0x39d   : > { %v5161_v23 = vpop.f32.mrf.mxu2 }
 0x39e   : > { %v5317_v18 = vsel %vm5277_vm2, %v5257_v52, %v5297_v0  ;;  %v5210_v37 = vadd.f32 %v5161_v23, %v4916_v34  ;;  %v12433_v34 = vpop.f32.mrf.mxu3  ;;  %v4918_v0 = vadd.f32 %v12379_v55, %v4464_v58  ;;  %v5560_v23 = vld [vmem:[#allocation2 + $0x8] sm:$0x1] }
 0x39f   : > { %v5337_v17 = vpack.c.bf16 %v5317_v18, %v5317_v18 }
 0x3a0   : > { %v5234_v54 = vmul.f32 %v12396_v44, %v5210_v37 }
 0x3a1   : > { %v5358_v60 = vshrl.u32 %v5337_v17, 16  ;;  %v5361_v53 = vshll.u32 %v5337_v17, 16 }
 0x3a2   : > { %v5258_v15 = vadd.f32 %v12402_v2, %v5234_v54  ;;  %5203 = vmatmul.bf16.gmra.mxu2 %v5091_v3  ;;  %v4240_v54 = vadd.f32 %v12381_v61, %v12218_v10 }
 0x3a3   : > { %v5360_v16 = vrot.slane %v5358_v60, 7 }
 0x3a4   : > { %vm5278_vm3 = vcmp.gt.f32.partialorder %v5258_v15, 0.0  ;;  %v5298_v6 = vmul.f32 0.01, %v5258_v15  ;;  %v4465_v10 = vadd.f32 %v12388_v20, %v4240_v54 }
 0x3a5   : > { %v5363_v5 = vor.u32 %v5361_v53, %v5360_v16  ;;  %v5164_v39 = vpop.f32.mrf.mxu2  ;;  %v5364_v18 = vrot.slane %v5360_v16, 4 }
 0x3a6   : > { %v5318_v14 = vsel %vm5278_vm3, %v5258_v15, %v5298_v6  ;;  %v5211_v22 = vadd.f32 %v5164_v39, %v4917_v7  ;;  %v12445_v7 = vpop.f32.mrf.mxu1  ;;  %v4919_v1 = vadd.f32 %v12390_v27, %v4465_v10  ;;  %v12457_v27 = vpop.f32.mrf.mxu0 }
 0x3a7   : > { %v5557_v33 = vsel %vm11033_vm11, %v5363_v5, %v9636_v38  ;;  %v5338_v8 = vpack.c.bf16 %v5318_v14, %v5318_v14  ;;  %v5563_v14 = vld [vmem:[#allocation2 + $0xc] sm:$0xf]  ;;  %v12450_v38 = vpop.f32.mrf.mxu3 }
 0x3a8   : > { %5558 = vst [vmem:[#allocation2] sm:$0xf] %v5557_v33  ;;  %v5235_v26 = vmul.f32 %v12396_v44, %v5211_v22 }
 0x3a9   : > { %v5366_v52 = vshrl.u32 %v5338_v8, 16  ;;  %v5369_v43 = vshll.u32 %v5338_v8, 16 }
 0x3aa   : > { %v5259_v35 = vadd.f32 %v12402_v2, %v5235_v26  ;;  %v4241_v26 = vadd.f32 %v12404_v36, %v12236_v50 }
 0x3ab   : > { %v5368_v4 = vrot.slane %v5366_v52, 7 }
 0x3ac   : > { %vm5279_vm4 = vcmp.gt.f32.partialorder %v5259_v35, 0.0  ;;  %v5299_v62 = vmul.f32 0.01, %v5259_v35 }
 0x3ad   : > { %v5371_v37 = vor.u32 %v5369_v43, %v5368_v4  ;;  %v5373_v3 = vrot.slane %v5368_v4, 4  ;;  %v5166_v17 = vpop.f32.mrf.mxu2 }
 0x3ae   : > { %v5319_v60 = vsel %vm5279_vm4, %v5259_v35, %v5299_v62  ;;  %v5212_v30 = vadd.f32 %v5166_v17, %v4918_v0  ;;  %v4466_v0 = vadd.f32 %v12412_v29, %v4241_v26  ;;  %v12461_v62 = vpop.f32.mrf.mxu1 }
 0x3af   : > { %v5372_v15 = vsel %vm11161_vm6, %v5364_v18, %v5371_v37  ;;  %v5561_v55 = vsel %vm10800_vm5, %v5373_v3, %v5560_v23  ;;  %v5339_v53 = vpack.c.bf16 %v5319_v60, %v5319_v60  ;;  %v5567_v37 = vld [vmem:[#allocation2 + $0x14] sm:$0x1] }
 0x3b0   : > { %5559 = vst [vmem:[#allocation2 + $0x4] sm:$0xf] %v5372_v15  ;;  %v5236_v16 = vmul.f32 %v12396_v44, %v5212_v30  ;;  %v4920_v36 = vadd.f32 %v12414_v24, %v4466_v0  ;;  %v4242_v15 = vadd.f32 %v12418_v9, %v12253_v49  ;;  %v12475_v9 = vpop.f32.mrf.mxu0 }
 0x3b1   : > { %5562 = vst [vmem:[#allocation2 + $0x8] sm:$0x1] %v5561_v55  ;;  %v5375_v6 = vshrl.u32 %v5339_v53, 16  ;;  %v5378_v39 = vshll.u32 %v5339_v53, 16  ;;  %v12466_v53 = vpop.f32.mrf.mxu3 }
 0x3b2   : > { %v5260_v61 = vadd.f32 %v12402_v2, %v5236_v16 }
 0x3b3   : > { %v5377_v5 = vrot.slane %v5375_v6, 7 }
 0x3b4   : > { %vm5280_vm9 = vcmp.gt.f32.partialorder %v5260_v61, 0.0  ;;  %v5300_v22 = vmul.f32 0.01, %v5260_v61 }
 0x3b5   : > { %v5380_v33 = vor.u32 %v5378_v39, %v5377_v5  ;;  %v5169_v8 = vpop.f32.mrf.mxu2  ;;  %v5381_v17 = vrot.slane %v5377_v5, 4  ;;  %v4467_v5 = vadd.f32 %v12422_v45, %v4242_v15  ;;  %v4244_v15 = vadd.f32 %v12450_v38, %v12276_v63 }
 0x3b6   : > { %v5320_v52 = vsel %vm5280_vm9, %v5260_v61, %v5300_v22  ;;  %v5213_v58 = vadd.f32 %v5169_v8, %v4919_v1  ;;  %v5570_v22 = vld [vmem:[#allocation2 + $0x18] sm:$0xf]  ;;  %v4887_v8 = vpop.f32.mrf.mxu1 }
 0x3b7   : > { %v5564_v20 = vsel %vm11033_vm11, %v5380_v33, %v5563_v14  ;;  %v5340_v35 = vpack.c.bf16 %v5320_v52, %v5320_v52  ;;  %v4921_v14 = vadd.f32 %v12426_v41, %v4467_v5 }
 0x3b8   : > { %5565 = vst [vmem:[#allocation2 + $0xc] sm:$0xf] %v5564_v20  ;;  %v5237_v4 = vmul.f32 %v12396_v44, %v5213_v58  ;;  %v4243_v58 = vadd.f32 %v12433_v34, %v12263_v47  ;;  %v5574_v47 = vld [vmem:[#allocation2 + $0x20] sm:$0x1] }
 0x3b9   : > { %v5383_v43 = vshrl.u32 %v5340_v35, 16  ;;  %v5386_v50 = vshll.u32 %v5340_v35, 16  ;;  %v4211_v0 = vpop.f32.mrf.mxu3 }
 0x3ba   : > { %v5261_v23 = vadd.f32 %v12402_v2, %v5237_v4 }
 0x3bb   : > { %v5385_v18 = vrot.slane %v5383_v43, 7 }
 0x3bc   : > { %vm5281_vm7 = vcmp.gt.f32.partialorder %v5261_v23, 0.0  ;;  %v5301_v3 = vmul.f32 0.01, %v5261_v23 }
 0x3bd   : > { %v5388_v54 = vor.u32 %v5386_v50, %v5385_v18  ;;  %v5390_v60 = vrot.slane %v5385_v18, 4  ;;  %v5171_v30 = vpop.f32.mrf.mxu2 }
 0x3be   : > { %v5321_v55 = vsel %vm5281_vm7, %v5261_v23, %v5301_v3  ;;  %v5214_v29 = vadd.f32 %v5171_v30, %v4920_v36  ;;  %v4468_v23 = vadd.f32 %v12438_v32, %v4243_v58  ;;  %v4436_v3 = vpop.f32.mrf.mxu0  ;;  %v4890_v32 = vpop.f32.mrf.mxu1 }
 0x3bf   : > { %v5389_v16 = vsel %vm11161_vm6, %v5381_v17, %v5388_v54  ;;  %v5568_v24 = vsel %vm10800_vm5, %v5390_v60, %v5567_v37  ;;  %v5341_v6 = vpack.c.bf16 %v5321_v55, %v5321_v55 }
 0x3c0   : > { %5566 = vst [vmem:[#allocation2 + $0x10] sm:$0xf] %v5389_v16  ;;  %v5238_v10 = vmul.f32 %v12396_v44, %v5214_v29  ;;  %v4922_v37 = vadd.f32 %v12445_v7, %v4468_v23 }
 0x3c1   : > { %5569 = vst [vmem:[#allocation2 + $0x14] sm:$0x1] %v5568_v24  ;;  %v5392_v61 = vshrl.u32 %v5341_v6, 16  ;;  %v5395_v1 = vshll.u32 %v5341_v6, 16  ;;  %v4213_v63 = vpop.f32.mrf.mxu3 }
 0x3c2   : > { %v5262_v49 = vadd.f32 %v12402_v2, %v5238_v10 }
 0x3c3   : > { %v5394_v39 = vrot.slane %v5392_v61, 7  ;;  %v4469_v61 = vadd.f32 %v12457_v27, %v4244_v15 }
 0x3c4   : > { %vm5282_vm8 = vcmp.gt.f32.partialorder %v5262_v49, 0.0  ;;  %v5302_v33 = vmul.f32 0.01, %v5262_v49 }
 0x3c5   : > { %v5397_v26 = vor.u32 %v5395_v1, %v5394_v39  ;;  %v5174_v52 = vpop.f32.mrf.mxu2  ;;  %v5398_v17 = vrot.slane %v5394_v39, 4  ;;  %v4923_v39 = vadd.f32 %v12461_v62, %v4469_v61  ;;  %v5577_v1 = vld [vmem:[#allocation2 + $0x24] sm:$0xf]  ;;  %v5584_v61 = vld [vmem:[#allocation2 + $0x30] sm:$0xf] }
 0x3c6   : > { %v5322_v20 = vsel %vm5282_vm8, %v5262_v49, %v5302_v33  ;;  %v5215_v35 = vadd.f32 %v5174_v52, %v4921_v14 }
 0x3c7   : > { %v5571_v45 = vsel %vm11033_vm11, %v5397_v26, %v5570_v22  ;;  %v5342_v4 = vpack.c.bf16 %v5322_v20, %v5322_v20  ;;  %v4245_v26 = vadd.f32 %v12466_v53, %v12294_v21  ;;  %v4438_v20 = vpop.f32.mrf.mxu0  ;;  %v5581_v21 = vld [vmem:[#allocation2 + $0x2c] sm:$0x1] }
 0x3c8   : > { %5572 = vst [vmem:[#allocation2 + $0x18] sm:$0xf] %v5571_v45  ;;  %v5239_v43 = vmul.f32 %v12396_v44, %v5215_v35 }
 0x3c9   : > { %v5400_v41 = vshrl.u32 %v5342_v4, 16  ;;  %v5403_v36 = vshll.u32 %v5342_v4, 16  ;;  %v4892_v4 = vpop.f32.mrf.mxu1 }
 0x3ca   : > { %v5263_v18 = vadd.f32 %v12402_v2, %v5239_v43  ;;  %v4470_v43 = vadd.f32 %v12475_v9, %v4245_v26 }
 0x3cb   : > { %v5402_v50 = vrot.slane %v5400_v41, 7 }
 0x3cc   : > { %vm5283_vm10 = vcmp.gt.f32.partialorder %v5263_v18, 0.0  ;;  %v5303_v34 = vmul.f32 0.01, %v5263_v18 }
 0x3cd   : > { %v5405_v54 = vor.u32 %v5403_v36, %v5402_v50  ;;  %v5407_v60 = vrot.slane %v5402_v50, 4  ;;  %v5176_v30 = vpop.f32.mrf.mxu2  ;;  %v4924_v50 = vadd.f32 %v4887_v8, %v4470_v43  ;;  %v4216_v36 = vpop.f32.mrf.mxu3  ;;  %v5588_v43 = vld [vmem:[#allocation2 + $0x38] sm:$0x1] }
 0x3ce   : > { %v5323_v55 = vsel %vm5283_vm10, %v5263_v18, %v5303_v34  ;;  %v5216_v29 = vadd.f32 %v5176_v30, %v4922_v37 }
 0x3cf   : > { %v5406_v16 = vsel %vm11161_vm6, %v5398_v17, %v5405_v54  ;;  %v5575_v7 = vsel %vm10800_vm5, %v5407_v60, %v5574_v47  ;;  %v5343_v24 = vpack.c.bf16 %v5323_v55, %v5323_v55  ;;  %v4246_v54 = vadd.f32 %v4211_v0, %v12311_v13 }
 0x3d0   : > { %5573 = vst [vmem:[#allocation2 + $0x1c] sm:$0xf] %v5406_v16  ;;  %v5240_v6 = vmul.f32 %v12396_v44, %v5216_v29  ;;  %v4441_v29 = vpop.f32.mrf.mxu0 }
 0x3d1   : > { %5576 = vst [vmem:[#allocation2 + $0x20] sm:$0x1] %v5575_v7  ;;  %v5409_v10 = vshrl.u32 %v5343_v24, 16  ;;  %v5412_v49 = vshll.u32 %v5343_v24, 16  ;;  %v4471_v7 = vadd.f32 %v4436_v3, %v4246_v54 }
 0x3d2   : > { %v5264_v5 = vadd.f32 %v12402_v2, %v5240_v6  ;;  %v4895_v6 = vpop.f32.mrf.mxu1 }
 0x3d3   : > { %v5411_v38 = vrot.slane %v5409_v10, 7  ;;  %v4925_v10 = vadd.f32 %v4890_v32, %v4471_v7 }
 0x3d4   : > { %vm5284_vm12 = vcmp.gt.f32.partialorder %v5264_v5, 0.0  ;;  %v5304_v14 = vmul.f32 0.01, %v5264_v5 }
 0x3d5   : > { %v5414_v22 = vor.u32 %v5412_v49, %v5411_v38  ;;  %v5179_v33 = vpop.f32.mrf.mxu2  ;;  %v5415_v37 = vrot.slane %v5411_v38, 4 }
 0x3d6   : > { %v5324_v52 = vsel %vm5284_vm12, %v5264_v5, %v5304_v14  ;;  %v5217_v58 = vadd.f32 %v5179_v33, %v4923_v39  ;;  %v4247_v39 = vadd.f32 %v4213_v63, %v12321_v40 }
 0x3d7   : > { %v5578_v27 = vsel %vm11033_vm11, %v5414_v22, %v5577_v1  ;;  %v5344_v35 = vpack.c.bf16 %v5324_v52, %v5324_v52  ;;  %v4218_v22 = vpop.f32.mrf.mxu3 }
 0x3d8   : > { %5579 = vst [vmem:[#allocation2 + $0x24] sm:$0xf] %v5578_v27  ;;  %v5241_v45 = vmul.f32 %v12396_v44, %v5217_v58  ;;  %v4472_v58 = vadd.f32 %v4438_v20, %v4247_v39  ;;  %v4443_v27 = vpop.f32.mrf.mxu0 }
 0x3d9   : > { %v5417_v62 = vshrl.u32 %v5344_v35, 16  ;;  %v5420_v18 = vshll.u32 %v5344_v35, 16 }
 0x3da   : > { %v5265_v41 = vadd.f32 %v12402_v2, %v5241_v45  ;;  %v4897_v63 = vpop.f32.mrf.mxu1 }
 0x3db   : > { %v5419_v23 = vrot.slane %v5417_v62, 7  ;;  %v4926_v62 = vadd.f32 %v4892_v4, %v4472_v58 }
 0x3dc   : > { %vm5285_vm13 = vcmp.gt.f32.partialorder %v5265_v41, 0.0  ;;  %v5305_v53 = vmul.f32 0.01, %v5265_v41 }
 0x3dd   : > { %v5422_v47 = vor.u32 %v5420_v18, %v5419_v23  ;;  %v5424_v34 = vrot.slane %v5419_v23, 4  ;;  %v5181_v17 = vpop.f32.mrf.mxu2 }
 0x3de   : > { %v5325_v60 = vsel %vm5285_vm13, %v5265_v41, %v5305_v53  ;;  %v5218_v30 = vadd.f32 %v5181_v17, %v4924_v50 }
 0x3df   : > { %v5423_v9 = vsel %vm11161_vm6, %v5415_v37, %v5422_v47  ;;  %v5582_v15 = vsel %vm10800_vm5, %v5424_v34, %v5581_v21  ;;  %v5345_v55 = vpack.c.bf16 %v5325_v60, %v5325_v60  ;;  %v4248_v21 = vadd.f32 %v4216_v36, %v12327_v46  ;;  %v4221_v17 = vpop.f32.mrf.mxu3 }
 0x3e0   : > { %5580 = vst [vmem:[#allocation2 + $0x28] sm:$0xf] %v5423_v9  ;;  %v5242_v8 = vmul.f32 %v12396_v44, %v5218_v30 }
 0x3e1   : > { %5583 = vst [vmem:[#allocation2 + $0x2c] sm:$0x1] %v5582_v15  ;;  %v5426_v16 = vshrl.u32 %v5345_v55, 16  ;;  %v5429_v0 = vshll.u32 %v5345_v55, 16  ;;  %v4473_v60 = vadd.f32 %v4441_v29, %v4248_v21  ;;  %v5591_v15 = vld [vmem:[#allocation2 + $0x3c] sm:$0xf] }
 0x3e2   : > { %v5266_v24 = vadd.f32 %v12402_v2, %v5242_v8  ;;  %v4446_v8 = vpop.f32.mrf.mxu0 }
 0x3e3   : > { %v5428_v13 = vrot.slane %v5426_v16, 7  ;;  %v4927_v36 = vadd.f32 %v4895_v6, %v4473_v60 }
 0x3e4   : > { %vm5286_vm15 = vcmp.gt.f32.partialorder %v5266_v24, 0.0  ;;  %v5306_v5 = vmul.f32 0.01, %v5266_v24 }
 0x3e5   : > { %v5431_v38 = vor.u32 %v5429_v0, %v5428_v13  ;;  %v5184_v49 = vpop.f32.mrf.mxu2  ;;  %v5432_v41 = vrot.slane %v5428_v13, 4 }
 0x3e6   : > { %v5326_v1 = vsel %vm5286_vm15, %v5266_v24, %v5306_v5  ;;  %v5219_v14 = vadd.f32 %v5184_v49, %v4925_v10  ;;  %v4249_v24 = vadd.f32 %v4218_v22, %v12338_v42  ;;  %v4900_v10 = vpop.f32.mrf.mxu1 }
 0x3e7   : > { %v5585_v33 = vsel %vm11033_vm11, %v5431_v38, %v5584_v61  ;;  %v5346_v3 = vpack.c.bf16 %v5326_v1, %v5326_v1  ;;  %v4223_v39 = vpop.f32.mrf.mxu3 }
 0x3e8   : > { %5586 = vst [vmem:[#allocation2 + $0x30] sm:$0xf] %v5585_v33  ;;  %v5243_v26 = vmul.f32 %v12396_v44, %v5219_v14  ;;  %v4474_v6 = vadd.f32 %v4443_v27, %v4249_v24 }
 0x3e9   : > { %v5434_v52 = vshrl.u32 %v5346_v3, 16  ;;  %v5437_v45 = vshll.u32 %v5346_v3, 16  ;;  %v5595_v3 = vld [vmem:[#allocation2 + $0x44] sm:$0x1] }
 0x3ea   : > { %v5267_v32 = vadd.f32 %v12402_v2, %v5243_v26  ;;  %v4928_v33 = vadd.f32 %v4897_v63, %v4474_v6 }
 0x3eb   : > { %v5436_v35 = vrot.slane %v5434_v52, 7 }
 0x3ec   : > { %vm5287_vm0 = vcmp.gt.f32.partialorder %v5267_v32, 0.0  ;;  %v5307_v40 = vmul.f32 0.01, %v5267_v32 }
 0x3ed   : > { %v5439_v23 = vor.u32 %v5437_v45, %v5436_v35  ;;  %v5441_v18 = vrot.slane %v5436_v35, 4  ;;  %v5186_v50 = vpop.f32.mrf.mxu2 }
 0x3ee   : > { %v5327_v53 = vsel %vm5287_vm0, %v5267_v32, %v5307_v40  ;;  %v5220_v37 = vadd.f32 %v5186_v50, %v4926_v62  ;;  %v4250_v32 = vadd.f32 %v4221_v17, %v12343_v19  ;;  %v4448_v62 = vpop.f32.mrf.mxu0  ;;  %v4251_v17 = vadd.f32 %v4223_v39, %v12350_v12 }
 0x3ef   : > { %v5440_v20 = vsel %vm11161_vm6, %v5432_v41, %v5439_v23  ;;  %v5589_v47 = vsel %vm10800_vm5, %v5441_v18, %v5588_v43  ;;  %v5347_v34 = vpack.c.bf16 %v5327_v53, %v5327_v53  ;;  %v4902_v41 = vpop.f32.mrf.mxu1 }
 0x3f0   : > { %5587 = vst [vmem:[#allocation2 + $0x34] sm:$0xf] %v5440_v20  ;;  %v5244_v4 = vmul.f32 %v12396_v44, %v5220_v37  ;;  %v4475_v18 = vadd.f32 %v4446_v8, %v4250_v32  ;;  %v5598_v37 = vld [vmem:[#allocation2 + $0x48] sm:$0xf] }
 0x3f1   : > { %5590 = vst [vmem:[#allocation2 + $0x38] sm:$0x1] %v5589_v47  ;;  %v5443_v54 = vshrl.u32 %v5347_v34, 16  ;;  %v5446_v46 = vshll.u32 %v5347_v34, 16  ;;  %v4226_v47 = vpop.f32.mrf.mxu3 }
 0x3f2   : > { %v5268_v30 = vadd.f32 %v12402_v2, %v5244_v4  ;;  %v4929_v53 = vadd.f32 %v4900_v10, %v4475_v18 }
 0x3f3   : > { %v5445_v9 = vrot.slane %v5443_v54, 7 }
 0x3f4   : > { %vm5288_vm2 = vcmp.gt.f32.partialorder %v5268_v30, 0.0  ;;  %v5308_v55 = vmul.f32 0.01, %v5268_v30 }
 0x3f5   : > { %v5448_v16 = vor.u32 %v5446_v46, %v5445_v9  ;;  %v5189_v7 = vpop.f32.mrf.mxu2  ;;  %v5449_v22 = vrot.slane %v5445_v9, 4 }
 0x3f6   : > { %v5328_v13 = vsel %vm5288_vm2, %v5268_v30, %v5308_v55  ;;  %v5221_v0 = vadd.f32 %v5189_v7, %v4927_v36  ;;  %v4451_v36 = vpop.f32.mrf.mxu0  ;;  %v4476_v55 = vadd.f32 %v4448_v62, %v4251_v17 }
 0x3f7   : > { %v5592_v61 = vsel %vm11033_vm11, %v5448_v16, %v5591_v15  ;;  %v5348_v29 = vpack.c.bf16 %v5328_v13, %v5328_v13  ;;  %v4905_v16 = vpop.f32.mrf.mxu1 }
 0x3f8   : > { %5593 = vst [vmem:[#allocation2 + $0x3c] sm:$0xf] %v5592_v61  ;;  %v5245_v5 = vmul.f32 %v12396_v44, %v5221_v0  ;;  %v4930_v13 = vadd.f32 %v4902_v41, %v4476_v55  ;;  %v5602_v0 = vld [vmem:[#allocation2 + $0x50] sm:$0x1] }
 0x3f9   : > { %v5451_v38 = vshrl.u32 %v5348_v29, 16  ;;  %v5454_v14 = vshll.u32 %v5348_v29, 16  ;;  %v4228_v39 = vpop.f32.mrf.mxu3 }
 0x3fa   : > { %v5269_v49 = vadd.f32 %v12402_v2, %v5245_v5 }
 0x3fb   : > { %v5453_v1 = vrot.slane %v5451_v38, 7  ;;  %v4252_v38 = vadd.f32 %v4226_v47, %v12355_v11 }
 0x3fc   : > { %vm5289_vm3 = vcmp.gt.f32.partialorder %v5269_v49, 0.0  ;;  %v5309_v42 = vmul.f32 0.01, %v5269_v49 }
 0x3fd   : > { %v5456_v26 = vor.u32 %v5454_v14, %v5453_v1  ;;  %v5458_v52 = vrot.slane %v5453_v1, 4  ;;  %v5191_v58 = vpop.f32.mrf.mxu2 }
 0x3fe   : > { %v5329_v35 = vsel %vm5289_vm3, %v5269_v49, %v5309_v42  ;;  %v5222_v45 = vadd.f32 %v5191_v58, %v4928_v33 }
 0x3ff   : > { %v5457_v27 = vsel %vm11161_vm6, %v5449_v22, %v5456_v26  ;;  %v5596_v43 = vsel %vm10800_vm5, %v5458_v52, %v5595_v3  ;;  %v5349_v40 = vpack.c.bf16 %v5329_v35, %v5329_v35  ;;  %v4477_v22 = vadd.f32 %v4451_v36, %v4252_v38  ;;  %v4453_v52 = vpop.f32.mrf.mxu0  ;;  %v5605_v35 = vld [vmem:[#allocation2 + $0x54] sm:$0xf]  ;;  %v4907_v62 = vpop.f32.mrf.mxu1 }
 0x400   : > { %5594 = vst [vmem:[#allocation2 + $0x40] sm:$0xf] %v5457_v27  ;;  %v5246_v63 = vmul.f32 %v12396_v44, %v5222_v45 }
 0x401   : > { %5597 = vst [vmem:[#allocation2 + $0x44] sm:$0x1] %v5596_v43  ;;  %v5460_v23 = vshrl.u32 %v5349_v40, 16  ;;  %v5463_v21 = vshll.u32 %v5349_v40, 16  ;;  %v4931_v32 = vadd.f32 %v4905_v16, %v4477_v22  ;;  %v4253_v40 = vadd.f32 %v4228_v39, %v12362_v31 }
 0x402   : > { %v5270_v50 = vadd.f32 %v12402_v2, %v5246_v63 }
 0x403   : > { %v5462_v19 = vrot.slane %v5460_v23, 7 }
 0x404   : > { %vm5290_vm4 = vcmp.gt.f32.partialorder %v5270_v50, 0.0  ;;  %v5310_v20 = vmul.f32 0.01, %v5270_v50 }
 0x405   : > { %v5465_v34 = vor.u32 %v5463_v21, %v5462_v19  ;;  %v5194_v4 = vpop.f32.mrf.mxu2  ;;  %v5466_v10 = vrot.slane %v5462_v19, 4  ;;  %v4231_v19 = vpop.f32.mrf.mxu3 }
 0x406   : > { %v5330_v54 = vsel %vm5290_vm4, %v5270_v50, %v5310_v20  ;;  %v5223_v60 = vadd.f32 %v5194_v4, %v4929_v53  ;;  %v4478_v53 = vadd.f32 %v4453_v52, %v4253_v40  ;;  %v5609_v4 = vld [vmem:[#allocation2 + $0x5c] sm:$0x1] }
 0x407   : > { %v5599_v30 = vsel %vm11033_vm11, %v5465_v34, %v5598_v37  ;;  %v5350_v9 = vpack.c.bf16 %v5330_v54, %v5330_v54  ;;  %v4456_v17 = vpop.f32.mrf.mxu0  ;;  %v4910_v55 = vpop.f32.mrf.mxu1 }
 0x408   : > { %5600 = vst [vmem:[#allocation2 + $0x48] sm:$0xf] %v5599_v30  ;;  %v5247_v46 = vmul.f32 %v12396_v44, %v5223_v60  ;;  %v4932_v34 = vadd.f32 %v4907_v62, %v4478_v53  ;;  %v5616_v62 = vld [vmem:[#allocation2 + $0x68] sm:$0x1] }
 0x409   : > { %v5468_v15 = vshrl.u32 %v5350_v9, 16  ;;  %v5471_v24 = vshll.u32 %v5350_v9, 16 }
 0x40a   : > { %v5271_v8 = vadd.f32 %v12402_v2, %v5247_v46  ;;  %v4254_v46 = vadd.f32 %v4231_v19, %v12371_v51 }
 0x40b   : > { %v5470_v7 = vrot.slane %v5468_v15, 7 }
 0x40c   : > { %vm5291_vm9 = vcmp.gt.f32.partialorder %v5271_v8, 0.0  ;;  %v5311_v12 = vmul.f32 0.01, %v5271_v8 }
 0x40d   : > { %v5473_v61 = vor.u32 %v5471_v24, %v5470_v7  ;;  %v5475_v29 = vrot.slane %v5470_v7, 4  ;;  %v5196_v5 = vpop.f32.mrf.mxu2 }
 0x40e   : > { %v5331_v6 = vsel %vm5291_vm9, %v5271_v8, %v5311_v12  ;;  %v5224_v49 = vadd.f32 %v5196_v5, %v4930_v13  ;;  %v5612_v5 = vld [vmem:[#allocation2 + $0x60] sm:$0xf] }
 0x40f   : > { %v5474_v1 = vsel %vm11161_vm6, %v5466_v10, %v5473_v61  ;;  %v5603_v14 = vsel %vm10800_vm5, %v5475_v29, %v5602_v0  ;;  %v5351_v33 = vpack.c.bf16 %v5331_v6, %v5331_v6  ;;  %v4479_v0 = vadd.f32 %v4456_v17, %v4254_v46  ;;  %v4233_v10 = vpop.f32.mrf.mxu3 }
 0x410   : > { %5601 = vst [vmem:[#allocation2 + $0x4c] sm:$0xf] %v5474_v1  ;;  %v5248_v3 = vmul.f32 %v12396_v44, %v5224_v49  ;;  %v4255_v39 = vadd.f32 %v4233_v10, %v12385_v28 }
 0x411   : > { %5604 = vst [vmem:[#allocation2 + $0x50] sm:$0x1] %v5603_v14  ;;  %v5477_v42 = vshrl.u32 %v5351_v33, 16  ;;  %v5480_v58 = vshll.u32 %v5351_v33, 16  ;;  %v4933_v29 = vadd.f32 %v4910_v55, %v4479_v0  ;;  %v4458_v33 = vpop.f32.mrf.mxu0 }
 0x412   : > { %v5272_v26 = vadd.f32 %v12402_v2, %v5248_v3 }
 0x413   : > { %v5479_v11 = vrot.slane %v5477_v42, 7 }
 0x414   : > { %vm5292_vm7 = vcmp.gt.f32.partialorder %v5272_v26, 0.0  ;;  %v5312_v45 = vmul.f32 0.01, %v5272_v26 }
 0x415   : > { %v5482_v27 = vor.u32 %v5480_v58, %v5479_v11  ;;  %v5199_v43 = vpop.f32.mrf.mxu2  ;;  %v5483_v54 = vrot.slane %v5479_v11, 4  ;;  %v4480_v11 = vadd.f32 %v4458_v33, %v4255_v39 }
 0x416   : > { %v5332_v63 = vsel %vm5292_vm7, %v5272_v26, %v5312_v45  ;;  %v5225_v41 = vadd.f32 %v5199_v43, %v4931_v32  ;;  %v4912_v26 = vpop.f32.mrf.mxu1 }
 0x417   : > { %v5606_v23 = vsel %vm11033_vm11, %v5482_v27, %v5605_v35  ;;  %v5352_v18 = vpack.c.bf16 %v5332_v63, %v5332_v63  ;;  %v4934_v45 = vadd.f32 %v4912_v26, %v4480_v11 }
 0x418   : > { %5607 = vst [vmem:[#allocation2 + $0x54] sm:$0xf] %v5606_v23  ;;  %v5249_v50 = vmul.f32 %v12396_v44, %v5225_v41 }
 0x419   : > { %v5485_v21 = vshrl.u32 %v5352_v18, 16  ;;  %v5488_v47 = vshll.u32 %v5352_v18, 16 }
 0x41a   : > { %v5273_v37 = vadd.f32 %v12402_v2, %v5249_v50 }
 0x41b   : > { %v5487_v20 = vrot.slane %v5485_v21, 7 }
 0x41c   : > { %vm5293_vm8 = vcmp.gt.f32.partialorder %v5273_v37, 0.0  ;;  %v5313_v31 = vmul.f32 0.01, %v5273_v37 }
 0x41d   : > { %v5490_v60 = vor.u32 %v5488_v47, %v5487_v20  ;;  %v5492_v30 = vrot.slane %v5487_v20, 4  ;;  %v5201_v9 = vpop.f32.mrf.mxu2 }
 0x41e   : > { %v5333_v36 = vsel %vm5293_vm8, %v5273_v37, %v5313_v31  ;;  %v5226_v15 = vadd.f32 %v5201_v9, %v4932_v34  ;;  %v5619_v34 = vld [vmem:[#allocation2 + $0x6c] sm:$0xf] }
 0x41f   : > { %v5491_v8 = vsel %vm11161_vm6, %v5483_v54, %v5490_v60  ;;  %v5610_v16 = vsel %vm10800_vm5, %v5492_v30, %v5609_v4  ;;  %v5353_v7 = vpack.c.bf16 %v5333_v36, %v5333_v36 }
 0x420   : > { %5608 = vst [vmem:[#allocation2 + $0x58] sm:$0xf] %v5491_v8  ;;  %v5250_v24 = vmul.f32 %v12396_v44, %v5226_v15 }
 0x421   : > { %5611 = vst [vmem:[#allocation2 + $0x5c] sm:$0x1] %v5610_v16  ;;  %v5494_v13 = vshrl.u32 %v5353_v7, 16  ;;  %v5497_v61 = vshll.u32 %v5353_v7, 16 }
 0x422   : > { %v5274_v12 = vadd.f32 %v12402_v2, %v5250_v24 }
 0x423   : > { %v5496_v51 = vrot.slane %v5494_v13, 7 }
 0x424   : > { %vm5294_vm10 = vcmp.gt.f32.partialorder %v5274_v12, 0.0  ;;  %v5314_v38 = vmul.f32 0.01, %v5274_v12 }
 0x425   : > { %v5499_v6 = vor.u32 %v5497_v61, %v5496_v51  ;;  %v5204_v49 = vpop.f32.mrf.mxu2  ;;  %v5500_v27 = vrot.slane %v5496_v51, 4 }
 0x426   : > { %v5334_v1 = vsel %vm5294_vm10, %v5274_v12, %v5314_v38  ;;  %v5227_v14 = vadd.f32 %v5204_v49, %v4933_v29 }
 0x427   : > { %v5613_v3 = vsel %vm11033_vm11, %v5499_v6, %v5612_v5  ;;  %v5354_v42 = vpack.c.bf16 %v5334_v1, %v5334_v1 }
 0x428   : > { %5614 = vst [vmem:[#allocation2 + $0x60] sm:$0xf] %v5613_v3  ;;  %v5251_v22 = vmul.f32 %v12396_v44, %v5227_v14 }
 0x429   : > { %v5502_v52 = vshrl.u32 %v5354_v42, 16  ;;  %v5505_v35 = vshll.u32 %v5354_v42, 16 }
 0x42a   : > { %v5275_v58 = vadd.f32 %v12402_v2, %v5251_v22 }
 0x42b   : > { %v5504_v32 = vrot.slane %v5502_v52, 7 }
 0x42c   : > { %vm5295_vm12 = vcmp.gt.f32.partialorder %v5275_v58, 0.0  ;;  %v5315_v28 = vmul.f32 0.01, %v5275_v58 }
 0x42d   : > { %v5507_v43 = vor.u32 %v5505_v35, %v5504_v32  ;;  %v5509_v40 = vrot.slane %v5504_v32, 4  ;;  %v5206_v63 = vpop.f32.mrf.mxu2 }
 0x42e   : > { %v5335_v41 = vsel %vm5295_vm12, %v5275_v58, %v5315_v28  ;;  %v5228_v23 = vadd.f32 %v5206_v63, %v4934_v45 }
 0x42f   : > { %v5508_v18 = vsel %vm11161_vm6, %v5500_v27, %v5507_v43  ;;  %v5617_v50 = vsel %vm10800_vm5, %v5509_v40, %v5616_v62  ;;  %v5355_v19 = vpack.c.bf16 %v5335_v41, %v5335_v41 }
 0x430   : > { %5615 = vst [vmem:[#allocation2 + $0x64] sm:$0xf] %v5508_v18  ;;  %v5252_v21 = vmul.f32 %v12396_v44, %v5228_v23  ;;  %v5623_v44 = vld [vmem:[#allocation2 + $0x74] sm:$0x1] }
 0x431   : > { %5618 = vst [vmem:[#allocation2 + $0x68] sm:$0x1] %v5617_v50  ;;  %v5511_v53 = vshrl.u32 %v5355_v19, 16  ;;  %v5514_v47 = vshll.u32 %v5355_v19, 16 }
 0x432   : > { %v5276_v37 = vadd.f32 %v12402_v2, %v5252_v21 }
 0x433   : > { %v5513_v20 = vrot.slane %v5511_v53, 7 }
 0x434   : > { %vm5296_vm13 = vcmp.gt.f32.partialorder %v5276_v37, 0.0  ;;  %v5316_v4 = vmul.f32 0.01, %v5276_v37 }
 0x435   : > { %v5516_v31 = vor.u32 %v5514_v47, %v5513_v20  ;;  %v5517_v36 = vrot.slane %v5513_v20, 4 }
 0x436   : > { %v5336_v17 = vsel %vm5296_vm13, %v5276_v37, %v5316_v4 }
 0x437   : > { %v5620_v54 = vsel %vm11033_vm11, %v5516_v31, %v5619_v34  ;;  %v5356_v60 = vpack.c.bf16 %v5336_v17, %v5336_v17 }
 0x438   : > { %5621 = vst [vmem:[#allocation2 + $0x6c] sm:$0xf] %v5620_v54 }
 0x439   : > { %v5519_v30 = vshrl.u32 %v5356_v60, 16  ;;  %v5522_v46 = vshll.u32 %v5356_v60, 16 }
 0x43b   : > { %v5521_v9 = vrot.slane %v5519_v30, 7 }
 0x43d   : > { %v5524_v15 = vor.u32 %v5522_v46, %v5521_v9  ;;  %v5526_v55 = vrot.slane %v5521_v9, 4  ;;  %5628 = sbr.rel (%p8251_p8) target bundleno = 1094 (0x446), region = 72 }
 0x43f   : > { %v5525_v2 = vsel %vm11161_vm6, %v5517_v36, %v5524_v15  ;;  %v5624_v8 = vsel %vm10800_vm5, %v5526_v55, %v5623_v44 }
 0x440   : > { %5622 = vst [vmem:[#allocation2 + $0x70] sm:$0xf] %v5525_v2 }
 0x441   : > { %5625 = vst [vmem:[#allocation2 + $0x74] sm:$0x1] %v5624_v8 }
 0x442   : > { %v5629_v16 = vld [vmem:[#allocation2] sm:$0xf]  ;;  %v5633_v7 = vld [vmem:[#allocation2 + $0x8] sm:$0x1]  ;;  %v9682_v13 = vmov 0  }
 0x443   : > { %v5630_v24 = vsel %vm11033_vm11, 0, %v5629_v16  ;;  %5632 = vst [vmem:[#allocation2 + $0x4] sm:$0xf] %v9682_v13  ;;  %v5634_v0 = vsel %vm10800_vm5, 0, %v5633_v7 }
 0x444   : > { %5631 = vst [vmem:[#allocation2] sm:$0xf] %v5630_v24 }
 0x445   : > { %5635 = vst [vmem:[#allocation2 + $0x8] sm:$0x1] %v5634_v0 }
 0x446 PF: > { %5638 = sbr.rel (%p8252_p9) target bundleno = 1103 (0x44f), region = 76 }
 0x44b   : > { %v5640_v48 = vld [vmem:[#allocation2 + $0x6c] sm:$0xf]  ;;  %v9683_v51 = vmov 0  }
 0x44c   : > { %v5644_v12 = vld [vmem:[#allocation2 + $0x74] sm:$0x1]  ;;  %v5641_v10 = vsel %vm11033_vm11, 0, %v5640_v48  ;;  %5643 = vst [vmem:[#allocation2 + $0x70] sm:$0xf] %v9683_v51 }
 0x44d   : > { %v5645_v61 = vsel %vm10800_vm5, 0, %v5644_v12  ;;  %5642 = vst [vmem:[#allocation2 + $0x6c] sm:$0xf] %v5641_v10 }
 0x44e   : > { %5646 = vst [vmem:[#allocation2 + $0x74] sm:$0x1] %v5645_v61 }
 0x44f PF: > { %v9488_v29 = vld [vmem:[%s13267_s9 + $0x78] sm:$0xff]  ;;  %v9487_v59 = vld [vmem:[%s13267_s9 + $0x70] sm:$0xff]  ;;  %v5647_v38 = vld [vmem:[#allocation2] sm:$0xf] }
 0x450   : > { %v9480_v5 = vld [vmem:[%s13267_s9 + $0x38] sm:$0xff]  ;;  %5976 = vmatpush.bf16.msra.mxu3 %v9488_v29  ;;  %v9479_v56 = vld [vmem:[%s13267_s9 + $0x30] sm:$0xff]  ;;  %v12599_v6 = vld [vmem:[#allocation2 + $0x4] sm:$0xf]  ;;  %v5688_v1 = vshrl.u32 %v5647_v38, 16  ;;  %v5691_v14 = vshll.u32 %v5647_v38, 16 }
 0x451   : > { %6121 = vmatpush.bf16.msra.mxu0 %v9480_v5  ;;  %v9486_v49 = vld [vmem:[%s13267_s9 + $0x68] sm:$0xff]  ;;  %v5697_v33 = vshll.u32 %v12599_v6, 16  ;;  %v5701_v3 = vshrl.u32 %v12599_v6, 16  ;;  %v9485_v42 = vld [vmem:[%s13267_s9 + $0x60] sm:$0xff]  ;;  %v9484_v35 = vld [vmem:[%s13267_s9 + $0x58] sm:$0xff] }
 0x452   : > { %v9478_v39 = vld [vmem:[%s13267_s9 + $0x28] sm:$0xff]  ;;  %v9477_v22 = vld [vmem:[%s13267_s9 + $0x20] sm:$0xff]  ;;  %v5690_v26 = vrot.slane %v5688_v1, 4  ;;  %v5693_v52 = vrot.slane %v5691_v14, 5  ;;  %v9476_v45 = vld [vmem:[%s13267_s9 + $0x18] sm:$0xff] }
 0x453   : > { %v5699_v11 = vrot.slane %v5697_v33, 5  ;;  %v5703_v58 = vrot.slane %v5701_v3, 4  ;;  %v12615_v32 = vld [vmem:[#allocation2 + $0x8] sm:$0x1]  ;;  %v9483_v43 = vld [vmem:[%s13267_s9 + $0x50] sm:$0xff]  ;;  %v9481_v30 = vld [vmem:[%s13267_s9 + $0x40] sm:$0xff] }
 0x454   : > { %5977 = vmatpush.bf16.msra.mxu3 %v9487_v59  ;;  %v5694_v62 = vor.u32 %v5693_v52, %v5690_v26  ;;  %v5707_v27 = vshll.u32 %v12615_v32, 16  ;;  %v9475_v40 = vld [vmem:[%s13267_s9 + $0x10] sm:$0xff]  ;;  %v5649_v18 = vld [vmem:[#allocation2 + $0xc] sm:$0xf]  ;;  %v9473_v9 = vld [vmem:[%s13267_s9] sm:$0xff] }
 0x455   : > { %6122 = vmatpush.bf16.msra.mxu0 %v9479_v56  ;;  %v5704_v28 = vor.u32 %v5703_v58, %v5699_v11  ;;  %v12630_v50 = vld [vmem:[#allocation2 + $0x10] sm:$0xf]  ;;  %v5712_v19 = vshrl.u32 %v5649_v18, 16  ;;  %v5715_v21 = vshll.u32 %v5649_v18, 16  ;;  %v9482_v53 = vld [vmem:[%s13267_s9 + $0x48] sm:$0xff]  ;;  %v9496_v36 = vld [vmem:[%s13267_s9 + $0xb8] sm:$0xff] }
 0x456   : > { %v5695_v63 = vrot.slane %v5694_v62, 4  ;;  %v5709_v23 = vrot.slane %v5707_v27, 5  ;;  %v9474_v37 = vld [vmem:[%s13267_s9 + $0x8] sm:$0xff]  ;;  %v5721_v34 = vshll.u32 %v12630_v50, 16  ;;  %v5725_v4 = vshrl.u32 %v12630_v50, 16  ;;  %v9512_v15 = vld [vmem:[%s13267_s9 + $0xf8] sm:$0xff] }
 0x457   : > { %v5705_v41 = vrot.slane %v5704_v28, 4  ;;  %v5714_v54 = vrot.slane %v5712_v19, 4  ;;  %v5717_v60 = vrot.slane %v5715_v21, 5  ;;  %v12656_v55 = vld [vmem:[#allocation2 + $0x14] sm:$0x1]  ;;  %v9465_v8 = vld [vmem:[#allocation2] sm:$0xff] }
 0x458   : > { %5978 = vmatpush.bf16.msra.mxu3 %v9486_v49  ;;  %v5700_v20 = vsel %vm11473_vm14, %v5695_v63, %v5699_v11  ;;  %v5723_v46 = vrot.slane %v5721_v34, 5  ;;  %v5727_v44 = vrot.slane %v5725_v4, 4  ;;  %v5731_v24 = vshll.u32 %v12656_v55, 16  ;;  %v9495_v13 = vld [vmem:[%s13267_s9 + $0xb0] sm:$0xff]  ;;  %v5651_v51 = vld [vmem:[#allocation2 + $0x18] sm:$0xf] }
 0x459   : > { %6123 = vmatpush.bf16.msra.mxu0 %v9478_v39  ;;  %v5710_v47 = vsel %vm11473_vm14, %v5705_v41, %v5709_v23  ;;  %v5896_v31 = vunpack.c.l.b16 %v5700_v20  ;;  %v5718_v16 = vor.u32 %v5717_v60, %v5714_v54  ;;  %v9511_v0 = vld [vmem:[%s13267_s9 + $0xf0] sm:$0xff]  ;;  %v12665_v61 = vld [vmem:[#allocation2 + $0x1c] sm:$0xf]  ;;  %v9494_v29 = vld [vmem:[%s13267_s9 + $0xa8] sm:$0xff]  ;;  %v5736_v56 = vshrl.u32 %v5651_v51, 16 }
 0x45a   : > { %v5897_v17 = vunpack.c.l.b16 %v5710_v47  ;;  %v5728_v7 = vor.u32 %v5727_v44, %v5723_v46  ;;  %v5733_v10 = vrot.slane %v5731_v24, 5  ;;  %v9510_v5 = vld [vmem:[%s13267_s9 + $0xe8] sm:$0xff]  ;;  %v5739_v49 = vshll.u32 %v5651_v51, 16  ;;  %v12679_v52 = vld [vmem:[#allocation2 + $0x20] sm:$0x1] }
 0x45b   : > { %v5719_v48 = vrot.slane %v5718_v16, 4  ;;  %v5745_v39 = vshll.u32 %v12665_v61, 16  ;;  %v5749_v1 = vshrl.u32 %v12665_v61, 16  ;;  %v5738_v3 = vrot.slane %v5736_v56, 4  ;;  %v9466_v58 = vld [vmem:[#allocation2 + $0xc] sm:$0xff]  ;;  %v9492_v16 = vld [vmem:[%s13267_s9 + $0x98] sm:$0xff] }
 0x45c   : > { %5979 = vmatpush.bf16.msra.mxu3 %v9485_v42  ;;  %v5912_v2 = vpack.c.b16 %v5897_v17, %v5896_v31  ;;  %v5729_v12 = vrot.slane %v5728_v7, 4  ;;  %v5741_v42 = vrot.slane %v5739_v49, 5  ;;  %v5755_v62 = vshll.u32 %v12679_v52, 16  ;;  %v5653_v28 = vld [vmem:[#allocation2 + $0x24] sm:$0xf]  ;;  %v9508_v7 = vld [vmem:[%s13267_s9 + $0xd8] sm:$0xff] }
 0x45d   : > { %6124 = vmatpush.bf16.msra.mxu0 %v9477_v22  ;;  %v5724_v59 = vsel %vm11473_vm14, %v5719_v48, %v5723_v46  ;;  %v5747_v22 = vrot.slane %v5745_v39, 5  ;;  %v5751_v26 = vrot.slane %v5749_v1, 4  ;;  %v12682_v27 = vld [vmem:[#allocation2 + $0x28] sm:$0xf]  ;;  %v5760_v18 = vshrl.u32 %v5653_v28, 16 }
 0x45e   : > { %v5734_v38 = vsel %vm11473_vm14, %v5729_v12, %v5733_v10  ;;  %v5898_v14 = vunpack.c.l.b16 %v5724_v59  ;;  %v5757_v23 = vrot.slane %v5755_v62, 5  ;;  %v5763_v19 = vshll.u32 %v5653_v28, 16  ;;  %v12696_v60 = vld [vmem:[#allocation2 + $0x2c] sm:$0x1]  ;;  %v5655_v24 = vld [vmem:[#allocation2 + $0x30] sm:$0xf] }
 0x45f   : > { %v5899_v33 = vunpack.c.l.b16 %v5734_v38  ;;  %v5769_v21 = vshll.u32 %v12682_v27, 16  ;;  %v5762_v47 = vrot.slane %v5760_v18, 4  ;;  %v5779_v46 = vshll.u32 %v12696_v60, 16  ;;  %v12713_v1 = vld [vmem:[#allocation2 + $0x38] sm:$0x1] }
 0x460   : > { %5980 = vmatpush.bf16.msra.mxu3 %v9484_v35  ;;  %v5742_v35 = vor.u32 %v5741_v42, %v5738_v3  ;;  %v5765_v34 = vrot.slane %v5763_v19, 5  ;;  %v5784_v12 = vshrl.u32 %v5655_v24, 16  ;;  %v5787_v10 = vshll.u32 %v5655_v24, 16  ;;  %v5657_v62 = vld [vmem:[#allocation2 + $0x3c] sm:$0xf]  ;;  %v9527_v24 = vld [vmem:[%s13267_s9 + $0x170] sm:$0xff] }
 0x461   : > { %6125 = vmatpush.bf16.msra.mxu0 %v9476_v45  ;;  %v5913_v11 = vpack.c.b16 %v5899_v33, %v5898_v14  ;;  %v5752_v45 = vor.u32 %v5751_v26, %v5747_v22  ;;  %v5771_v4 = vrot.slane %v5769_v21, 5  ;;  %v9468_v33 = vld [vmem:[#allocation2 + $0x24] sm:$0xff]  ;;  %v12722_v28 = vld [vmem:[#allocation2 + $0x40] sm:$0xf] }
 0x462   : > { %v5743_v63 = vrot.slane %v5742_v35, 4  ;;  %v5786_v56 = vrot.slane %v5784_v12, 4  ;;  %v5789_v38 = vrot.slane %v5787_v10, 5  ;;  %v9491_v35 = vld [vmem:[%s13267_s9 + $0x90] sm:$0xff]  ;;  %v5821_v18 = vshrl.u32 %v12722_v28, 16 }
 0x463   : > { %v5753_v41 = vrot.slane %v5752_v45, 4  ;;  %v9507_v45 = vld [vmem:[%s13267_s9 + $0xd0] sm:$0xff] }
 0x464   : > { %5981 = vmatpush.bf16.msra.mxu3 %v9483_v43  ;;  %v9493_v43 = vld [vmem:[%s13267_s9 + $0xa0] sm:$0xff]  ;;  %v5790_v3 = vor.u32 %v5789_v38, %v5786_v56 }
 0x465   : > { %6126 = vmatpush.bf16.msra.mxu0 %v9475_v40  ;;  %v9509_v40 = vld [vmem:[%s13267_s9 + $0xe0] sm:$0xff]  ;;  %v5758_v20 = vsel %vm11473_vm14, %v5753_v41, %v5757_v23  ;;  %v5811_v41 = vshll.u32 %v5657_v62, 16  ;;  %v5817_v23 = vshll.u32 %v12722_v28, 16 }
 0x466   : > { %v5901_v54 = vunpack.c.l.b16 %v5758_v20  ;;  %v5791_v26 = vrot.slane %v5790_v3, 4  ;;  %v12762_v3 = vld [vmem:[#allocation2 + $0x50] sm:$0x1] }
 0x467   : > { %v5819_v20 = vrot.slane %v5817_v23, 5  ;;  %v12774_v23 = vld [vmem:[#allocation2 + $0x58] sm:$0xf] }
 0x468   : > { %5982 = vmatpush.bf16.msra.mxu3 %v9482_v53  ;;  %v5773_v53 = vshrl.u32 %v12682_v27, 16 }
 0x469   : > { %6127 = vmatpush.bf16.msra.mxu0 %v9474_v37  ;;  %v5748_v37 = vsel %vm11473_vm14, %v5743_v63, %v5747_v22  ;;  %v5803_v22 = vshll.u32 %v12713_v1, 16  ;;  %v5808_v63 = vshrl.u32 %v5657_v62, 16 }
 0x46a   : > { %v5775_v31 = vrot.slane %v5773_v53, 4  ;;  %v5900_v17 = vunpack.c.l.b16 %v5748_v37  ;;  %v5813_v37 = vrot.slane %v5811_v41, 5  ;;  %v5661_v41 = vld [vmem:[#allocation2 + $0x54] sm:$0xf] }
 0x46b   : > { %v5810_v53 = vrot.slane %v5808_v63, 4  ;;  %v9525_v63 = vld [vmem:[%s13267_s9 + $0x160] sm:$0xff] }
 0x46c   : > { %5983 = vmatpush.bf16.msra.mxu3 %v9481_v30  ;;  %v5766_v30 = vor.u32 %v5765_v34, %v5762_v47  ;;  %v5914_v44 = vpack.c.b16 %v5901_v54, %v5900_v17  ;;  %v5823_v47 = vrot.slane %v5821_v18, 4  ;;  %v12730_v34 = vld [vmem:[#allocation2 + $0x44] sm:$0x1] }
 0x46d   : > { %6128 = vmatpush.bf16.msra.mxu0 %v9473_v9  ;;  %v5776_v9 = vor.u32 %v5775_v31, %v5771_v4  ;;  %v9469_v31 = vld [vmem:[#allocation2 + $0x30] sm:$0xff]  ;;  %v5814_v17 = vor.u32 %v5813_v37, %v5810_v53  ;;  %v9505_v18 = vld [vmem:[%s13267_s9 + $0xc0] sm:$0xff]  ;;  %v9524_v37 = vld [vmem:[%s13267_s9 + $0x158] sm:$0xff] }
 0x46e   : > { %v5824_v54 = vor.u32 %v5823_v47, %v5819_v20  ;;  %v5859_v47 = vshll.u32 %v5661_v41, 16 }
 0x46f   : > { %5984 = vmatmul.bf16.vlgmr.msra.gmra.mxu3 %v5912_v2  ;;  %v5777_v2 = vrot.slane %v5776_v9, 4  ;;  %v5659_v9 = vld [vmem:[#allocation2 + $0x48] sm:$0xf] }
 0x470   : > { %6347 = vmatpush.bf16.msrb.mxu3 %v9496_v36  ;;  %6129 = vmatmul.bf16.vlgmr.msra.gmra.mxu0 %v9465_v8  ;;  %v9467_v36 = vld [vmem:[#allocation2 + $0x18] sm:$0xff]  ;;  %v5781_v8 = vrot.slane %v5779_v46, 5  ;;  %v12733_v46 = vld [vmem:[#allocation2 + $0x4c] sm:$0xf] }
 0x471   : > { %6541 = vmatpush.bf16.msrb.mxu0 %v9512_v15  ;;  %v5767_v15 = vrot.slane %v5766_v30, 4  ;;  %v5827_v30 = vshll.u32 %v12730_v34, 16  ;;  %v5841_v12 = vshll.u32 %v12733_v46, 16  ;;  %v5845_v10 = vshrl.u32 %v12733_v46, 16 }
 0x472   : > { %v5782_v48 = vsel %vm11473_vm14, %v5777_v2, %v5781_v8  ;;  %v5815_v2 = vrot.slane %v5814_v17, 4  ;;  %v5825_v8 = vrot.slane %v5824_v54, 4  ;;  %v9516_v17 = vld [vmem:[%s13267_s9 + $0x118] sm:$0xff] }
 0x473   : > { %v5903_v59 = vunpack.c.l.b16 %v5782_v48  ;;  %v5835_v48 = vshll.u32 %v5659_v9, 16 }
 0x474   : > { %6348 = vmatpush.bf16.msrb.mxu3 %v9495_v13  ;;  %v12705_v13 = vld [vmem:[#allocation2 + $0x34] sm:$0xf] }
 0x475   : > { %6542 = vmatpush.bf16.msrb.mxu0 %v9511_v0  ;;  %v5772_v0 = vsel %vm11473_vm14, %v5767_v15, %v5771_v4  ;;  %v5793_v51 = vshll.u32 %v12705_v13, 16  ;;  %v9506_v15 = vld [vmem:[%s13267_s9 + $0xc8] sm:$0xff]  ;;  %v5837_v38 = vrot.slane %v5835_v48, 5 }
 0x477   : > { %v5795_v49 = vrot.slane %v5793_v51, 5  ;;  %v9519_v51 = vld [vmem:[%s13267_s9 + $0x130] sm:$0xff] }
 0x478   : > { %6349 = vmatpush.bf16.msrb.mxu3 %v9494_v29  ;;  %v5797_v29 = vshrl.u32 %v12705_v13, 16 }
 0x479   : > { %6543 = vmatpush.bf16.msrb.mxu0 %v9510_v5  ;;  %v5902_v5 = vunpack.c.l.b16 %v5772_v0  ;;  %v5832_v0 = vshrl.u32 %v5659_v9, 16  ;;  %v12794_v9 = vld [vmem:[#allocation2 + $0x5c] sm:$0x1] }
 0x47a   : > { %v5799_v39 = vrot.slane %v5797_v29, 4  ;;  %v5820_v29 = vsel %vm11473_vm14, %v5815_v2, %v5819_v20  ;;  %v5856_v20 = vshrl.u32 %v5661_v41, 16  ;;  %v9521_v41 = vld [vmem:[%s13267_s9 + $0x140] sm:$0xff] }
 0x47b   : > { %v5915_v14 = vpack.c.b16 %v5903_v59, %v5902_v5  ;;  %v9526_v59 = vld [vmem:[%s13267_s9 + $0x168] sm:$0xff]  ;;  %v5834_v56 = vrot.slane %v5832_v0, 4 }
 0x47c   : > { %6350 = vmatpush.bf16.msrb.mxu3 %v9493_v43  ;;  %v5800_v42 = vor.u32 %v5799_v39, %v5795_v49  ;;  %v5796_v43 = vsel %vm11473_vm14, %v5791_v26, %v5795_v49  ;;  %v5843_v49 = vrot.slane %v5841_v12, 5  ;;  %v5847_v39 = vrot.slane %v5845_v10, 4  ;;  %v6607_v12 = vld [vmem:[#allocation2 + $0x10] sm:$0xf]  ;;  %v6606_v10 = vld [vmem:[#allocation2 + $0xc] sm:$0xf] }
 0x47d   : > { %6544 = vmatpush.bf16.msrb.mxu0 %v9509_v40  ;;  %v5904_v19 = vunpack.c.l.b16 %v5796_v43  ;;  %v5851_v26 = vshll.u32 %v12762_v3, 16  ;;  %v9489_v43 = vld [vmem:[%s13267_s9 + $0x80] sm:$0xff] }
 0x47f   : > { %5989 = vmatmul.bf16.gmra.mxu3 %v5913_v11  ;;  %v5801_v11 = vrot.slane %v5800_v42, 4  ;;  %v5838_v42 = vor.u32 %v5837_v38, %v5834_v56  ;;  %v5853_v62 = vrot.slane %v5851_v26, 5  ;;  %v6634_v56 = vshll.u32 %v6606_v10, 16 }
 0x480   : > { %6134 = vmatmul.bf16.gmra.mxu0 %v9466_v58  ;;  %6351 = vmatpush.bf16.msrb.mxu3 %v9492_v16  ;;  %v5805_v58 = vrot.slane %v5803_v22, 5  ;;  %v5829_v16 = vrot.slane %v5827_v30, 5  ;;  %v5848_v22 = vor.u32 %v5847_v39, %v5843_v49  ;;  %v6640_v38 = vshll.u32 %v6607_v12, 16  ;;  %v6608_v39 = vld [vmem:[#allocation2 + $0x14] sm:$0x1] }
 0x481   : > { %6545 = vmatpush.bf16.msrb.mxu0 %v9508_v7  ;;  %v9520_v7 = vld [vmem:[%s13267_s9 + $0x138] sm:$0xff]  ;;  %v7021_v26 = vrot.slane %v6608_v39, 5 }
 0x482   : > { %v5806_v40 = vsel %vm11473_vm14, %v5801_v11, %v5805_v58  ;;  %6919 = vmatpush.bf16.msrb.mxu1 %v9520_v7  ;;  %v5830_v5 = vsel %vm11473_vm14, %v5825_v8, %v5829_v16  ;;  %v9470_v58 = vld [vmem:[#allocation2 + $0x3c] sm:$0xff]  ;;  %v5875_v16 = vshll.u32 %v12794_v9, 16 }
 0x483   : > { %v5905_v21 = vunpack.c.l.b16 %v5806_v40  ;;  %v9518_v40 = vld [vmem:[%s13267_s9 + $0x128] sm:$0xff] }
 0x484   : > { %6352 = vmatpush.bf16.msrb.mxu3 %v9491_v35  ;;  %v5839_v35 = vrot.slane %v5838_v42, 4 }
 0x485   : > { %6546 = vmatpush.bf16.msrb.mxu0 %v9507_v45  ;;  %v5916_v4 = vpack.c.b16 %v5905_v21, %v5904_v19  ;;  %v5849_v45 = vrot.slane %v5848_v22, 4  ;;  %v9517_v19 = vld [vmem:[%s13267_s9 + $0x120] sm:$0xff] }
 0x486   : > { %6920 = vmatpush.bf16.msrb.mxu1 %v9519_v51  ;;  %v5844_v21 = vsel %vm11473_vm14, %v5839_v35, %v5843_v49  ;;  %v9515_v51 = vld [vmem:[%s13267_s9 + $0x110] sm:$0xff]  ;;  %v5877_v49 = vrot.slane %v5875_v16, 5  ;;  %v9544_v35 = vld [vmem:[%s13267_s9 + $0x1b8] sm:$0xff] }
 0x487   : > { %v5854_v53 = vsel %vm11473_vm14, %v5849_v45, %v5853_v62  ;;  %v5908_v54 = vunpack.c.l.b16 %v5844_v21  ;;  %v6636_v45 = vrot.slane %v6634_v56, 5  ;;  %v6642_v62 = vrot.slane %v6640_v38, 5 }
 0x488   : > { %v5909_v30 = vunpack.c.l.b16 %v5854_v53  ;;  %v6650_v21 = vshll.u32 %v6608_v39, 16 }
 0x489   : > { %6547 = vmatpush.bf16.msrb.mxu0 %v9506_v15  ;;  %v5861_v15 = vrot.slane %v5859_v47, 5 }
 0x48a   : > { %6921 = vmatpush.bf16.msrb.mxu1 %v9518_v40  ;;  %v5918_v7 = vpack.c.b16 %v5909_v30, %v5908_v54 }
 0x48d   : > { %6548 = vmatpush.bf16.msrb.mxu0 %v9505_v18 }
 0x48e   : > { %6922 = vmatpush.bf16.msrb.mxu1 %v9517_v19 }
 0x48f   : > { %5994 = vmatmul.bf16.gmra.mxu3 %v5914_v44  ;;  %v9490_v44 = vld [vmem:[%s13267_s9 + $0x88] sm:$0xff] }
 0x490   : > { %6139 = vmatmul.bf16.gmra.mxu0 %v9467_v36  ;;  %v9528_v36 = vld [vmem:[%s13267_s9 + $0x178] sm:$0xff]  ;;  %6353 = vmatpush.bf16.msrb.mxu3 %v9490_v44  ;;  %v9523_v44 = vld [vmem:[%s13267_s9 + $0x150] sm:$0xff] }
 0x491   : > { %7169 = vmatpush.bf16.msrb.mxu2 %v9528_v36  ;;  %v5858_v36 = vrot.slane %v5856_v20, 4 }
 0x492   : > { %6923 = vmatpush.bf16.msrb.mxu1 %v9516_v17 }
 0x493   : > { %v5862_v0 = vor.u32 %v5861_v15, %v5858_v36  ;;  %v9513_v36 = vld [vmem:[%s13267_s9 + $0x100] sm:$0xff]  ;;  %v9552_v15 = vld [vmem:[%s13267_s9 + $0x1f8] sm:$0xff] }
 0x494   : > { %6354 = vmatpush.bf16.msrb.mxu3 %v9489_v43  ;;  %7741 = vmatpush.bf16.msra.mxu0 %v9552_v15 }
 0x495   : > { %7170 = vmatpush.bf16.msrb.mxu2 %v9527_v24  ;;  %v9471_v24 = vld [vmem:[#allocation2 + $0x48] sm:$0xff] }
 0x496   : > { %6924 = vmatpush.bf16.msrb.mxu1 %v9515_v51  ;;  %v9472_v51 = vld [vmem:[#allocation2 + $0x54] sm:$0xff] }
 0x498   : > { %7363 = vmatpush.bf16.msra.mxu3 %v9544_v35 }
 0x499   : > { %7171 = vmatpush.bf16.msrb.mxu2 %v9526_v59  ;;  %v6631_v59 = vshrl.u32 %v6606_v10, 16 }
 0x49d   : > { %7172 = vmatpush.bf16.msrb.mxu2 %v9525_v63  ;;  %v9514_v63 = vld [vmem:[%s13267_s9 + $0x108] sm:$0xff] }
 0x49e   : > { %6925 = vmatpush.bf16.msrb.mxu1 %v9514_v63  ;;  %v6199_v63 = vrot.slane %v12615_v32, 5 }
 0x49f   : > { %5999 = vmatmul.bf16.gmra.mxu3 %v5915_v14  ;;  %v5906_v14 = vunpack.c.l.b16 %v5820_v29  ;;  %v9522_v29 = vld [vmem:[%s13267_s9 + $0x148] sm:$0xff] }
 0x4a0   : > { %6144 = vmatmul.bf16.gmra.mxu0 %v9468_v33  ;;  %v5907_v33 = vunpack.c.l.b16 %v5830_v5  ;;  %v7018_v5 = vrot.slane %v6607_v12, 5 }
 0x4a1   : > { %7173 = vmatpush.bf16.msrb.mxu2 %v9524_v37 }
 0x4a2   : > { %v5917_v11 = vpack.c.b16 %v5907_v33, %v5906_v14  ;;  %v6984_v14 = vld [vmem:[#allocation2 + $0xc] sm:$0xe]  ;;  %v6644_v33 = vshrl.u32 %v6607_v12, 16  ;;  %v7020_v22 = vrot.slane %v7018_v5, 4  ;;  %6926 = vmatpush.bf16.msrb.mxu1 %v9513_v36  ;;  %v6170_v12 = vld [vmem:[#allocation2] sm:$0xe] }
 0x4a3   : > { %v9117_v42 = vrot.slane %v6984_v14, 9  ;;  %v8933_v14 = vrot.slane %v6170_v12, 9  ;;  %v9497_v12 = vld [vmem:[#allocation2 + $0xc] sm:$0xff] }
 0x4a4   : > { %v6646_v43 = vrot.slane %v6644_v33, 4  ;;  %v7022_v19 = vsel %vm11523_vm1, %v7020_v22, %v7021_v26  ;;  %v6611_v33 = vld [vmem:[#allocation2 + $0x20] sm:$0x1] }
 0x4a5   : > { %7174 = vmatpush.bf16.msrb.mxu2 %v9523_v44  ;;  %v7019_v18 = vsel %vm11523_vm1, %v9117_v42, %v7018_v5  ;;  %v7090_v37 = vunpack.c.l.b16 %v7022_v19  ;;  %v6610_v5 = vld [vmem:[#allocation2 + $0x1c] sm:$0xf]  ;;  %v6985_v42 = vld [vmem:[#allocation2 + $0x18] sm:$0xe]  ;;  %v6674_v19 = vshll.u32 %v6611_v33, 16 }
 0x4a6   : > { %v7089_v53 = vunpack.c.l.b16 %v7019_v18  ;;  %v6647_v47 = vor.u32 %v6646_v43, %v6642_v62  ;;  %v7025_v56 = vrot.slane %v6610_v5, 5  ;;  %v6664_v39 = vshll.u32 %v6610_v5, 16 }
 0x4a7   : > { %v6668_v22 = vshrl.u32 %v6610_v5, 16  ;;  %v9118_v26 = vrot.slane %v6985_v42, 9 }
 0x4a8   : > { %v6648_v54 = vrot.slane %v6647_v47, 4  ;;  %v6666_v43 = vrot.slane %v6664_v39, 5  ;;  %v6676_v47 = vrot.slane %v6674_v19, 5 }
 0x4a9   : > { %7175 = vmatpush.bf16.msrb.mxu2 %v9522_v29  ;;  %v6196_v29 = vrot.slane %v12599_v6, 5  ;;  %v9543_v6 = vld [vmem:[%s13267_s9 + $0x1b0] sm:$0xff] }
 0x4aa   : > { %7364 = vmatpush.bf16.msra.mxu3 %v9543_v6 }
 0x4ad   : > { %7176 = vmatpush.bf16.msrb.mxu2 %v9521_v41  ;;  %v7026_v41 = vsel %vm11523_vm1, %v9118_v26, %v7025_v56 }
 0x4af   : > { %6004 = vmatmul.bf16.gmra.mxu3 %v5916_v4  ;;  %v5865_v4 = vshll.u32 %v12774_v23, 16 }
 0x4b0   : > { %6149 = vmatmul.bf16.gmra.mxu0 %v9469_v31  ;;  %v5869_v31 = vshrl.u32 %v12774_v23, 16 }
 0x4b1   : > { %v5867_v2 = vrot.slane %v5865_v4, 5  ;;  %v6652_v4 = vrot.slane %v6650_v21, 5  ;;  %v7091_v21 = vunpack.c.l.b16 %v7026_v41 }
 0x4b2   : > { %v5871_v8 = vrot.slane %v5869_v31, 4  ;;  %v7105_v31 = vpack.c.b16 %v7090_v37, %v7089_v53 }
 0x4b3   : > { %v6653_v16 = vsel %vm11473_vm14, %v6648_v54, %v6652_v4  ;;  %v6197_v54 = vsel %vm11523_vm1, %v8933_v14, %v6196_v29  ;;  %v6614_v14 = vld [vmem:[#allocation2 + $0x2c] sm:$0x1] }
 0x4b4   : > { %v5872_v48 = vor.u32 %v5871_v8, %v5867_v2  ;;  %7177 = vmatmul.bf16.vlgmr.msrb.gmra.mxu2 %v7105_v31  ;;  %v6698_v41 = vshll.u32 %v6614_v14, 16 }
 0x4b6   : > { %v5873_v40 = vrot.slane %v5872_v48, 4 }
 0x4b8   : > { %v5878_v44 = vsel %vm11473_vm14, %v5873_v40, %v5877_v49  ;;  %v6670_v40 = vrot.slane %v6668_v22, 4 }
 0x4bf   : > { %6009 = vmatmul.bf16.gmra.mxu3 %v5917_v11  ;;  %v6633_v11 = vrot.slane %v6631_v59, 4  ;;  %v6609_v59 = vld [vmem:[#allocation2 + $0x18] sm:$0xf] }
 0x4c0   : > { %6154 = vmatmul.bf16.gmra.mxu0 %v9470_v58  ;;  %v5863_v58 = vrot.slane %v5862_v0, 4  ;;  %v5911_v0 = vunpack.c.l.b16 %v5878_v44  ;;  %v6655_v38 = vshrl.u32 %v6609_v59, 16  ;;  %v6658_v49 = vshll.u32 %v6609_v59, 16  ;;  %v9560_v44 = vld [vmem:[%s13267_s9 + $0x238] sm:$0xff] }
 0x4c1   : > { %v6637_v20 = vor.u32 %v6636_v45, %v6633_v11  ;;  %v7027_v11 = vrot.slane %v7025_v56, 4  ;;  %v6198_v45 = vrot.slane %v6196_v29, 4  ;;  %7991 = vmatpush.bf16.msra.mxu1 %v9560_v44  ;;  %9573 = vmatpush.bf16.msra.mxu2 %v9560_v44  ;;  %v6612_v29 = vld [vmem:[#allocation2 + $0x24] sm:$0xf]  ;;  %v9559_v44 = vld [vmem:[%s13267_s9 + $0x230] sm:$0xff] }
 0x4c2   : > { %v5868_v30 = vsel %vm11473_vm14, %v5863_v58, %v5867_v2  ;;  %v7028_v58 = vrot.slane %v6611_v33, 5  ;;  %v6657_v35 = vrot.slane %v6655_v38, 4  ;;  %v6679_v56 = vshrl.u32 %v6612_v29, 16  ;;  %v6986_v33 = vld [vmem:[#allocation2 + $0x24] sm:$0xe] }
 0x4c3   : > { %v6638_v17 = vrot.slane %v6637_v20, 4  ;;  %v6671_v20 = vor.u32 %v6670_v40, %v6666_v43  ;;  %v6200_v32 = vsel %vm11523_vm1, %v6198_v45, %v6199_v63  ;;  %v6682_v38 = vshll.u32 %v6612_v29, 16 }
 0x4c4   : > { %v7029_v18 = vsel %vm11523_vm1, %v7027_v11, %v7028_v58  ;;  %v9119_v22 = vrot.slane %v6986_v33, 9  ;;  %v7035_v11 = vrot.slane %v6614_v14, 5  ;;  %v6681_v58 = vrot.slane %v6679_v56, 4 }
 0x4c5   : > { %v6643_v8 = vsel %vm11473_vm14, %v6638_v17, %v6642_v62  ;;  %v6660_v62 = vrot.slane %v6658_v49, 5  ;;  %v7092_v53 = vunpack.c.l.b16 %v7029_v18  ;;  %v6672_v17 = vrot.slane %v6671_v20, 4  ;;  %7992 = vmatpush.bf16.msra.mxu1 %v9559_v44  ;;  %9574 = vmatpush.bf16.msra.mxu2 %v9559_v44  ;;  %v9549_v44 = vld [vmem:[%s13267_s9 + $0x1e0] sm:$0xff] }
 0x4c6   : > { %v6839_v2 = vunpack.c.l.b16 %v6643_v8  ;;  %v6684_v45 = vrot.slane %v6682_v38, 5  ;;  %v6700_v20 = vrot.slane %v6698_v41, 5  ;;  %v6210_v29 = vrot.slane %v12665_v61, 5  ;;  %v9541_v61 = vld [vmem:[%s13267_s9 + $0x1a0] sm:$0xff] }
 0x4c7   : > { %v6661_v37 = vor.u32 %v6660_v62, %v6657_v35  ;;  %v7106_v4 = vpack.c.b16 %v7092_v53, %v7091_v21  ;;  %v6677_v15 = vsel %vm11473_vm14, %v6672_v17, %v6676_v47 }
 0x4c8   : > { %v6685_v21 = vor.u32 %v6684_v45, %v6681_v58  ;;  %v6212_v45 = vrot.slane %v6210_v29, 4 }
 0x4c9   : > { %v6662_v31 = vrot.slane %v6661_v37, 4  ;;  %7182 = vmatmul.bf16.gmra.mxu2 %v7106_v4 }
 0x4cb   : > { %v6667_v36 = vsel %vm11473_vm14, %v6662_v31, %v6666_v43  ;;  %v6206_v43 = vrot.slane %v12656_v55, 5  ;;  %v6686_v31 = vrot.slane %v6685_v21, 4 }
 0x4cc   : > { %v6841_v8 = vunpack.c.l.b16 %v6667_v36 }
 0x4cf   : > { %6014 = vmatmul.bf16.gmra.mxu3 %v5918_v7  ;;  %v6840_v7 = vunpack.c.l.b16 %v6653_v16  ;;  %v6842_v16 = vunpack.c.l.b16 %v6677_v15 }
 0x4d0   : > { %6159 = vmatmul.bf16.gmra.mxu0 %v9471_v24  ;;  %v5910_v24 = vunpack.c.l.b16 %v5868_v30  ;;  %v9551_v30 = vld [vmem:[%s13267_s9 + $0x1f0] sm:$0xff] }
 0x4d1   : > { %v6855_v48 = vpack.c.b16 %v6840_v7, %v6839_v2  ;;  %7742 = vmatpush.bf16.msra.mxu0 %v9551_v30  ;;  %v6267_v2 = vunpack.c.l.b16 %v6197_v54  ;;  %v6268_v7 = vunpack.c.l.b16 %v6200_v32  ;;  %v9550_v30 = vld [vmem:[%s13267_s9 + $0x1e8] sm:$0xff] }
 0x4d2   : > { %v5919_v10 = vpack.c.b16 %v5911_v0, %v5910_v24  ;;  %v6856_v24 = vpack.c.b16 %v6842_v16, %v6841_v8  ;;  %v6171_v0 = vld [vmem:[#allocation2 + $0xc] sm:$0xe] }
 0x4d3   : > { %6927 = vmatmul.bf16.vlgmr.msrb.gmra.mxu1 %v6855_v48  ;;  %v6283_v48 = vpack.c.b16 %v6268_v7, %v6267_v2  ;;  %v8934_v39 = vrot.slane %v6171_v0, 9 }
 0x4d5   : > { %7743 = vmatpush.bf16.msra.mxu0 %v9550_v30 }
 0x4d9   : > { %7744 = vmatpush.bf16.msra.mxu0 %v9549_v44 }
 0x4df   : > { %6019 = vmatmul.bf16.gmra.mxu3 %v5919_v10  ;;  %v6203_v10 = vrot.slane %v12630_v50, 5  ;;  %v9542_v50 = vld [vmem:[%s13267_s9 + $0x1a8] sm:$0xff] }
 0x4e0   : > { %6164 = vmatmul.bf16.gmra.mxu0 %v9472_v51  ;;  %v6613_v51 = vld [vmem:[#allocation2 + $0x28] sm:$0xf]  ;;  %7365 = vmatpush.bf16.msra.mxu3 %v9542_v50 }
 0x4e1   : > { %v7032_v59 = vrot.slane %v6613_v51, 5  ;;  %v6688_v49 = vshll.u32 %v6613_v51, 16  ;;  %v6692_v42 = vshrl.u32 %v6613_v51, 16  ;;  %v6205_v35 = vrot.slane %v6203_v10, 4  ;;  %v9498_v51 = vld [vmem:[#allocation2 + $0x18] sm:$0xff] }
 0x4e2   : > { %v6204_v54 = vsel %vm11523_vm1, %v8934_v39, %v6203_v10 }
 0x4e3   : > { %6932 = vmatmul.bf16.gmra.mxu1 %v6856_v24  ;;  %v7034_v26 = vrot.slane %v7032_v59, 4  ;;  %v6690_v6 = vrot.slane %v6688_v49, 5  ;;  %v6694_v62 = vrot.slane %v6692_v42, 4  ;;  %v7033_v40 = vsel %vm11523_vm1, %v9119_v22, %v7032_v59  ;;  %v6615_v59 = vld [vmem:[#allocation2 + $0x30] sm:$0xf] }
 0x4e4   : > { %v7093_v18 = vunpack.c.l.b16 %v7033_v40  ;;  %v6207_v32 = vsel %vm11523_vm1, %v6205_v35, %v6206_v43  ;;  %v6269_v2 = vunpack.c.l.b16 %v6204_v54  ;;  %v6703_v49 = vshrl.u32 %v6615_v59, 16  ;;  %v6617_v42 = vld [vmem:[#allocation2 + $0x38] sm:$0x1]  ;;  %v6987_v22 = vld [vmem:[#allocation2 + $0x30] sm:$0xe]  ;;  %7366 = vmatpush.bf16.msra.mxu3 %v9541_v61 }
 0x4e5   : > { %v7036_v63 = vsel %vm11523_vm1, %v7034_v26, %v7035_v11  ;;  %v6695_v53 = vor.u32 %v6694_v62, %v6690_v6  ;;  %v6691_v36 = vsel %vm11473_vm14, %v6686_v31, %v6690_v6  ;;  %v6270_v7 = vunpack.c.l.b16 %v6207_v32 }
 0x4e6   : > { %v7094_v19 = vunpack.c.l.b16 %v7036_v63  ;;  %v6843_v8 = vunpack.c.l.b16 %v6691_v36  ;;  %v6706_v39 = vshll.u32 %v6615_v59, 16  ;;  %v9120_v11 = vrot.slane %v6987_v22, 9  ;;  %v9558_v36 = vld [vmem:[%s13267_s9 + $0x228] sm:$0xff] }
 0x4e7   : > { %v6696_v17 = vrot.slane %v6695_v53, 4  ;;  %v6284_v10 = vpack.c.b16 %v6270_v7, %v6269_v2  ;;  %v7042_v35 = vrot.slane %v6617_v42, 5  ;;  %v6705_v50 = vrot.slane %v6703_v49, 4  ;;  %7993 = vmatpush.bf16.msra.mxu1 %v9558_v36  ;;  %9575 = vmatpush.bf16.msra.mxu2 %v9558_v36  ;;  %v9548_v36 = vld [vmem:[%s13267_s9 + $0x1d8] sm:$0xff] }
 0x4e8   : > { %v7107_v4 = vpack.c.b16 %v7094_v19, %v7093_v18  ;;  %v6708_v6 = vrot.slane %v6706_v39, 5  ;;  %v6213_v40 = vrot.slane %v12679_v52, 5  ;;  %v6722_v18 = vshll.u32 %v6617_v42, 16  ;;  %7745 = vmatpush.bf16.msra.mxu0 %v9548_v36 }
 0x4e9   : > { %v6701_v15 = vsel %vm11473_vm14, %v6696_v17, %v6700_v20  ;;  %v6217_v59 = vrot.slane %v12682_v27, 5  ;;  %v9540_v27 = vld [vmem:[%s13267_s9 + $0x198] sm:$0xff] }
 0x4ea   : > { %7187 = vmatmul.bf16.gmra.mxu2 %v7107_v4  ;;  %v6844_v16 = vunpack.c.l.b16 %v6701_v15  ;;  %v6709_v53 = vor.u32 %v6708_v6, %v6705_v50  ;;  %v6724_v4 = vrot.slane %v6722_v18, 5  ;;  %v6214_v30 = vsel %vm11523_vm1, %v6212_v45, %v6213_v40  ;;  %7367 = vmatpush.bf16.msra.mxu3 %v9540_v27 }
 0x4eb   : > { %v6219_v6 = vrot.slane %v6217_v59, 4 }
 0x4ec   : > { %v6857_v24 = vpack.c.b16 %v6844_v16, %v6843_v8 }
 0x4ed   : > { %v6130_v5 = vpop.f32.mrf.mxu0 }
 0x4ef   : > { %6355 = vmatmul.bf16.vlgmr.msrb.gmra.mxu3 %v6283_v48  ;;  %v6172_v48 = vld [vmem:[#allocation2 + $0x18] sm:$0xe] }
 0x4f0   : > { %6549 = vmatmul.bf16.vlgmr.msrb.gmra.mxu0 %v9497_v12  ;;  %v8935_v33 = vrot.slane %v6172_v48, 9 }
 0x4f2   : > { %v5985_v37 = vpop.f32.mrf.mxu3  ;;  %v6211_v32 = vsel %vm11523_vm1, %v8935_v33, %v6210_v29 }
 0x4f3   : > { %v12865_v47 = vadd.f32 %v6130_v5, %v5985_v37  ;;  %6937 = vmatmul.bf16.gmra.mxu1 %v6857_v24  ;;  %v6616_v5 = vld [vmem:[#allocation2 + $0x34] sm:$0xf]  ;;  %v6271_v7 = vunpack.c.l.b16 %v6211_v32  ;;  %v6272_v24 = vunpack.c.l.b16 %v6214_v30 }
 0x4f4   : > { %v7039_v38 = vrot.slane %v6616_v5, 5  ;;  %v6712_v14 = vshll.u32 %v6616_v5, 16  ;;  %v6716_v26 = vshrl.u32 %v6616_v5, 16  ;;  %v9499_v5 = vld [vmem:[#allocation2 + $0x24] sm:$0xff] }
 0x4f5   : > { %v6132_v55 = vpop.f32.mrf.mxu0  ;;  %v6285_v29 = vpack.c.b16 %v6272_v24, %v6271_v7 }
 0x4f6   : > { %v7041_v58 = vrot.slane %v7039_v38, 4  ;;  %v6714_v62 = vrot.slane %v6712_v14, 5  ;;  %v6718_v43 = vrot.slane %v6716_v26, 4  ;;  %v7040_v63 = vsel %vm11523_vm1, %v9120_v11, %v7039_v38  ;;  %v6618_v38 = vld [vmem:[#allocation2 + $0x3c] sm:$0xf] }
 0x4f7   : > { %v7095_v19 = vunpack.c.l.b16 %v7040_v63  ;;  %v6727_v14 = vshrl.u32 %v6618_v38, 16  ;;  %v6730_v33 = vshll.u32 %v6618_v38, 16  ;;  %v6620_v26 = vld [vmem:[#allocation2 + $0x44] sm:$0x1]  ;;  %v6988_v11 = vld [vmem:[#allocation2 + $0x3c] sm:$0xe] }
 0x4f8   : > { %v7043_v41 = vsel %vm11523_vm1, %v7041_v58, %v7042_v35  ;;  %v6719_v37 = vor.u32 %v6718_v43, %v6714_v62  ;;  %v9121_v35 = vrot.slane %v6988_v11, 9  ;;  %v7049_v45 = vrot.slane %v6620_v26, 5 }
 0x4f9   : > { %v7096_v21 = vunpack.c.l.b16 %v7043_v41  ;;  %v6729_v61 = vrot.slane %v6727_v14, 4  ;;  %v6220_v63 = vrot.slane %v12696_v60, 5  ;;  %v6224_v38 = vrot.slane %v12705_v13, 5  ;;  %v9539_v13 = vld [vmem:[%s13267_s9 + $0x190] sm:$0xff] }
 0x4fa   : > { %v5987_v0 = vpop.f32.mrf.mxu3  ;;  %v6720_v54 = vrot.slane %v6719_v37, 4  ;;  %7368 = vmatpush.bf16.msra.mxu3 %v9539_v13 }
 0x4fb   : > { %v12881_v12 = vadd.f32 %v6132_v55, %v5987_v0  ;;  %v7108_v17 = vpack.c.b16 %v7096_v21, %v7095_v19  ;;  %v6710_v55 = vrot.slane %v6709_v53, 4  ;;  %v6746_v19 = vshll.u32 %v6620_v26, 16 }
 0x4fc   : > { %v6725_v8 = vsel %vm11473_vm14, %v6720_v54, %v6724_v4  ;;  %v6221_v44 = vsel %vm11523_vm1, %v6219_v6, %v6220_v63 }
 0x4fd   : > { %v6135_v56 = vpop.f32.mrf.mxu0  ;;  %7192 = vmatmul.bf16.gmra.mxu2 %v7108_v17  ;;  %v6715_v15 = vsel %vm11473_vm14, %v6710_v55, %v6714_v62  ;;  %v6846_v2 = vunpack.c.l.b16 %v6725_v8  ;;  %v6732_v62 = vrot.slane %v6730_v33, 5  ;;  %v6748_v17 = vrot.slane %v6746_v19, 5 }
 0x4fe   : > { %v6845_v16 = vunpack.c.l.b16 %v6715_v15  ;;  %v9557_v15 = vld [vmem:[%s13267_s9 + $0x220] sm:$0xff] }
 0x4ff   : > { %6360 = vmatmul.bf16.gmra.mxu3 %v6284_v10  ;;  %v6173_v10 = vld [vmem:[#allocation2 + $0x24] sm:$0xe]  ;;  %v6733_v37 = vor.u32 %v6732_v62, %v6729_v61  ;;  %7994 = vmatpush.bf16.msra.mxu1 %v9557_v15  ;;  %v6226_v62 = vrot.slane %v6224_v38, 4 }
 0x500   : > { %6554 = vmatmul.bf16.gmra.mxu0 %v9498_v51  ;;  %v6858_v0 = vpack.c.b16 %v6846_v2, %v6845_v16  ;;  %v8936_v22 = vrot.slane %v6173_v10, 9  ;;  %9576 = vmatpush.bf16.msra.mxu2 %v9557_v15  ;;  %v9547_v15 = vld [vmem:[%s13267_s9 + $0x1d0] sm:$0xff] }
 0x501   : > { %7746 = vmatpush.bf16.msra.mxu0 %v9547_v15 }
 0x502   : > { %v5990_v20 = vpop.f32.mrf.mxu3  ;;  %v6218_v30 = vsel %vm11523_vm1, %v8936_v22, %v6217_v59 }
 0x503   : > { %v12892_v31 = vadd.f32 %v6135_v56, %v5990_v20  ;;  %6942 = vmatmul.bf16.gmra.mxu1 %v6858_v0  ;;  %v6619_v56 = vld [vmem:[#allocation2 + $0x40] sm:$0xf]  ;;  %v6273_v24 = vunpack.c.l.b16 %v6218_v30  ;;  %v6274_v0 = vunpack.c.l.b16 %v6221_v44 }
 0x504   : > { %v7046_v39 = vrot.slane %v6619_v56, 5  ;;  %v6736_v42 = vshll.u32 %v6619_v56, 16  ;;  %v6740_v58 = vshrl.u32 %v6619_v56, 16  ;;  %v9500_v56 = vld [vmem:[#allocation2 + $0x30] sm:$0xff] }
 0x505   : > { %v6137_v52 = vpop.f32.mrf.mxu0  ;;  %v6286_v59 = vpack.c.b16 %v6274_v0, %v6273_v24 }
 0x506   : > { %v7048_v50 = vrot.slane %v7046_v39, 4  ;;  %v6738_v43 = vrot.slane %v6736_v42, 5  ;;  %v6742_v40 = vrot.slane %v6740_v58, 4  ;;  %v7047_v41 = vsel %vm11523_vm1, %v9121_v35, %v7046_v39  ;;  %v6621_v39 = vld [vmem:[#allocation2 + $0x48] sm:$0xf] }
 0x507   : > { %v7097_v21 = vunpack.c.l.b16 %v7047_v41  ;;  %v6751_v42 = vshrl.u32 %v6621_v39, 16  ;;  %v6754_v22 = vshll.u32 %v6621_v39, 16  ;;  %v6623_v58 = vld [vmem:[#allocation2 + $0x50] sm:$0x1]  ;;  %v6989_v35 = vld [vmem:[#allocation2 + $0x48] sm:$0xe] }
 0x508   : > { %v7050_v18 = vsel %vm11523_vm1, %v7048_v50, %v7049_v45  ;;  %v6743_v20 = vor.u32 %v6742_v40, %v6738_v43  ;;  %v9122_v45 = vrot.slane %v6989_v35, 9  ;;  %v7056_v6 = vrot.slane %v6623_v58, 5 }
 0x509   : > { %v7098_v53 = vunpack.c.l.b16 %v7050_v18  ;;  %v6753_v27 = vrot.slane %v6751_v42, 4  ;;  %v6227_v41 = vrot.slane %v12713_v1, 5  ;;  %v6231_v39 = vrot.slane %v12722_v28, 5  ;;  %v9538_v28 = vld [vmem:[%s13267_s9 + $0x188] sm:$0xff] }
 0x50a   : > { %v5992_v48 = vpop.f32.mrf.mxu3  ;;  %v6744_v32 = vrot.slane %v6743_v20, 4  ;;  %7369 = vmatpush.bf16.msra.mxu3 %v9538_v28 }
 0x50b   : > { %v12908_v51 = vadd.f32 %v6137_v52, %v5992_v48  ;;  %v7109_v54 = vpack.c.b16 %v7098_v53, %v7097_v21  ;;  %v6734_v52 = vrot.slane %v6733_v37, 4  ;;  %v6770_v21 = vshll.u32 %v6623_v58, 16 }
 0x50c   : > { %v6749_v16 = vsel %vm11473_vm14, %v6744_v32, %v6748_v17  ;;  %v6228_v36 = vsel %vm11523_vm1, %v6226_v62, %v6227_v41 }
 0x50d   : > { %v6140_v49 = vpop.f32.mrf.mxu0  ;;  %7197 = vmatmul.bf16.gmra.mxu2 %v7109_v54  ;;  %v6739_v8 = vsel %vm11473_vm14, %v6734_v52, %v6738_v43  ;;  %v6848_v7 = vunpack.c.l.b16 %v6749_v16  ;;  %v6756_v43 = vrot.slane %v6754_v22, 5  ;;  %v6772_v54 = vrot.slane %v6770_v21, 5 }
 0x50e   : > { %v6847_v2 = vunpack.c.l.b16 %v6739_v8  ;;  %v9556_v8 = vld [vmem:[%s13267_s9 + $0x218] sm:$0xff] }
 0x50f   : > { %6365 = vmatmul.bf16.gmra.mxu3 %v6285_v29  ;;  %v6174_v29 = vld [vmem:[#allocation2 + $0x30] sm:$0xe]  ;;  %v6757_v20 = vor.u32 %v6756_v43, %v6753_v27  ;;  %7995 = vmatpush.bf16.msra.mxu1 %v9556_v8  ;;  %v6233_v43 = vrot.slane %v6231_v39, 4 }
 0x510   : > { %6559 = vmatmul.bf16.gmra.mxu0 %v9499_v5  ;;  %v6859_v48 = vpack.c.b16 %v6848_v7, %v6847_v2  ;;  %v8937_v11 = vrot.slane %v6174_v29, 9  ;;  %9577 = vmatpush.bf16.msra.mxu2 %v9556_v8  ;;  %v9546_v8 = vld [vmem:[%s13267_s9 + $0x1c8] sm:$0xff] }
 0x511   : > { %7747 = vmatpush.bf16.msra.mxu0 %v9546_v8 }
 0x512   : > { %v5995_v4 = vpop.f32.mrf.mxu3  ;;  %v6225_v44 = vsel %vm11523_vm1, %v8937_v11, %v6224_v38 }
 0x513   : > { %v12919_v55 = vadd.f32 %v6140_v49, %v5995_v4  ;;  %6947 = vmatmul.bf16.gmra.mxu1 %v6859_v48  ;;  %v6622_v49 = vld [vmem:[#allocation2 + $0x4c] sm:$0xf]  ;;  %v6275_v0 = vunpack.c.l.b16 %v6225_v44  ;;  %v6276_v48 = vunpack.c.l.b16 %v6228_v36 }
 0x514   : > { %v7053_v33 = vrot.slane %v6622_v49, 5  ;;  %v6760_v26 = vshll.u32 %v6622_v49, 16  ;;  %v6764_v50 = vshrl.u32 %v6622_v49, 16  ;;  %v9501_v49 = vld [vmem:[#allocation2 + $0x3c] sm:$0xff] }
 0x515   : > { %v6142_v60 = vpop.f32.mrf.mxu0  ;;  %v6287_v38 = vpack.c.b16 %v6276_v48, %v6275_v0 }
 0x516   : > { %v7055_v61 = vrot.slane %v7053_v33, 4  ;;  %v6762_v40 = vrot.slane %v6760_v26, 5  ;;  %v6766_v63 = vrot.slane %v6764_v50, 4  ;;  %v7054_v18 = vsel %vm11523_vm1, %v9122_v45, %v7053_v33  ;;  %v6624_v33 = vld [vmem:[#allocation2 + $0x54] sm:$0xf] }
 0x517   : > { %v7099_v53 = vunpack.c.l.b16 %v7054_v18  ;;  %v6775_v26 = vshrl.u32 %v6624_v33, 16  ;;  %v6778_v11 = vshll.u32 %v6624_v33, 16  ;;  %v6626_v50 = vld [vmem:[#allocation2 + $0x5c] sm:$0x1]  ;;  %v6990_v45 = vld [vmem:[#allocation2 + $0x54] sm:$0xe] }
 0x518   : > { %v7057_v19 = vsel %vm11523_vm1, %v7055_v61, %v7056_v6  ;;  %v6767_v4 = vor.u32 %v6766_v63, %v6762_v40  ;;  %v9123_v6 = vrot.slane %v6990_v45, 9  ;;  %v7063_v62 = vrot.slane %v6626_v50, 5 }
 0x519   : > { %v7100_v37 = vunpack.c.l.b16 %v7057_v19  ;;  %v6777_v13 = vrot.slane %v6775_v26, 4  ;;  %v6234_v18 = vrot.slane %v12730_v34, 5  ;;  %v6238_v33 = vrot.slane %v12733_v46, 5  ;;  %v9537_v46 = vld [vmem:[%s13267_s9 + $0x180] sm:$0xff] }
 0x51a   : > { %v5997_v10 = vpop.f32.mrf.mxu3  ;;  %v6768_v30 = vrot.slane %v6767_v4, 4  ;;  %7370 = vmatpush.bf16.msra.mxu3 %v9537_v46 }
 0x51b   : > { %v12935_v5 = vadd.f32 %v6142_v60, %v5997_v10  ;;  %v7110_v32 = vpack.c.b16 %v7100_v37, %v7099_v53  ;;  %v6758_v60 = vrot.slane %v6757_v20, 4  ;;  %v6794_v53 = vshll.u32 %v6626_v50, 16 }
 0x51c   : > { %v6773_v2 = vsel %vm11473_vm14, %v6768_v30, %v6772_v54  ;;  %v6235_v15 = vsel %vm11523_vm1, %v6233_v43, %v6234_v18 }
 0x51d   : > { %v6145_v14 = vpop.f32.mrf.mxu0  ;;  %7202 = vmatmul.bf16.gmra.mxu2 %v7110_v32  ;;  %v6763_v16 = vsel %vm11473_vm14, %v6758_v60, %v6762_v40  ;;  %v6850_v24 = vunpack.c.l.b16 %v6773_v2  ;;  %v6780_v40 = vrot.slane %v6778_v11, 5  ;;  %v6796_v32 = vrot.slane %v6794_v53, 5 }
 0x51e   : > { %v6849_v7 = vunpack.c.l.b16 %v6763_v16  ;;  %v9555_v16 = vld [vmem:[%s13267_s9 + $0x210] sm:$0xff] }
 0x51f   : > { %6370 = vmatmul.bf16.gmra.mxu3 %v6286_v59  ;;  %v6175_v59 = vld [vmem:[#allocation2 + $0x3c] sm:$0xe]  ;;  %v6781_v4 = vor.u32 %v6780_v40, %v6777_v13  ;;  %7996 = vmatpush.bf16.msra.mxu1 %v9555_v16  ;;  %v6240_v40 = vrot.slane %v6238_v33, 4 }
 0x520   : > { %6564 = vmatmul.bf16.gmra.mxu0 %v9500_v56  ;;  %v6860_v10 = vpack.c.b16 %v6850_v24, %v6849_v7  ;;  %v8938_v35 = vrot.slane %v6175_v59, 9  ;;  %9578 = vmatpush.bf16.msra.mxu2 %v9555_v16  ;;  %v9545_v16 = vld [vmem:[%s13267_s9 + $0x1c0] sm:$0xff] }
 0x521   : > { %7748 = vmatpush.bf16.msra.mxu0 %v9545_v16 }
 0x522   : > { %v6000_v17 = vpop.f32.mrf.mxu3  ;;  %v6232_v36 = vsel %vm11523_vm1, %v8938_v35, %v6231_v39 }
 0x523   : > { %v12946_v52 = vadd.f32 %v6145_v14, %v6000_v17  ;;  %6952 = vmatmul.bf16.gmra.mxu1 %v6860_v10  ;;  %v6625_v14 = vld [vmem:[#allocation2 + $0x58] sm:$0xf]  ;;  %v6277_v48 = vunpack.c.l.b16 %v6232_v36  ;;  %v6278_v10 = vunpack.c.l.b16 %v6235_v15 }
 0x524   : > { %v7060_v22 = vrot.slane %v6625_v14, 5  ;;  %v6784_v58 = vshll.u32 %v6625_v14, 16  ;;  %v6788_v61 = vshrl.u32 %v6625_v14, 16  ;;  %v9502_v14 = vld [vmem:[#allocation2 + $0x48] sm:$0xff] }
 0x525   : > { %v6147_v1 = vpop.f32.mrf.mxu0  ;;  %v6288_v39 = vpack.c.b16 %v6278_v10, %v6277_v48 }
 0x526   : > { %v7062_v27 = vrot.slane %v7060_v22, 4  ;;  %v6786_v63 = vrot.slane %v6784_v58, 5  ;;  %v6790_v41 = vrot.slane %v6788_v61, 4  ;;  %v7061_v19 = vsel %vm11523_vm1, %v9123_v6, %v7060_v22  ;;  %v6627_v22 = vld [vmem:[#allocation2 + $0x60] sm:$0xf] }
 0x527   : > { %v7101_v37 = vunpack.c.l.b16 %v7061_v19  ;;  %v6799_v58 = vshrl.u32 %v6627_v22, 16  ;;  %v6802_v35 = vshll.u32 %v6627_v22, 16  ;;  %v6629_v61 = vld [vmem:[#allocation2 + $0x68] sm:$0x1]  ;;  %v6991_v6 = vld [vmem:[#allocation2 + $0x60] sm:$0xe] }
 0x528   : > { %v7064_v21 = vsel %vm11523_vm1, %v7062_v27, %v7063_v62  ;;  %v6791_v17 = vor.u32 %v6790_v41, %v6786_v63  ;;  %v9124_v62 = vrot.slane %v6991_v6, 9  ;;  %v7070_v43 = vrot.slane %v6629_v61, 5  ;;  %v7430_v6 = vld [vmem:[#allocation2 + $0x20] sm:$0x1] }
 0x529   : > { %v7102_v20 = vunpack.c.l.b16 %v7064_v21  ;;  %v6801_v28 = vrot.slane %v6799_v58, 4  ;;  %v6241_v19 = vrot.slane %v12762_v3, 5  ;;  %v6245_v22 = vrot.slane %v12774_v23, 5 }
 0x52a   : > { %v6002_v29 = vpop.f32.mrf.mxu3  ;;  %v6792_v44 = vrot.slane %v6791_v17, 4 }
 0x52b   : > { %v12962_v56 = vadd.f32 %v6147_v1, %v6002_v29  ;;  %v7111_v30 = vpack.c.b16 %v7102_v20, %v7101_v37  ;;  %v6782_v1 = vrot.slane %v6781_v4, 4  ;;  %v6818_v37 = vshll.u32 %v6629_v61, 16 }
 0x52c   : > { %v6797_v7 = vsel %vm11473_vm14, %v6792_v44, %v6796_v32  ;;  %v6242_v8 = vsel %vm11523_vm1, %v6240_v40, %v6241_v19  ;;  %v6247_v58 = vrot.slane %v6245_v22, 4  ;;  %v7843_v40 = vrot.slane %v7430_v6, 5 }
 0x52d   : > { %v6150_v42 = vpop.f32.mrf.mxu0  ;;  %7207 = vmatmul.bf16.gmra.mxu2 %v7111_v30  ;;  %v6787_v2 = vsel %vm11473_vm14, %v6782_v1, %v6786_v63  ;;  %v6852_v0 = vunpack.c.l.b16 %v6797_v7  ;;  %v6804_v63 = vrot.slane %v6802_v35, 5  ;;  %v6820_v30 = vrot.slane %v6818_v37, 5 }
 0x52e   : > { %v6851_v24 = vunpack.c.l.b16 %v6787_v2  ;;  %v9554_v2 = vld [vmem:[%s13267_s9 + $0x208] sm:$0xff]  ;;  %v6248_v35 = vrot.slane %v12794_v9, 5 }
 0x52f   : > { %6375 = vmatmul.bf16.gmra.mxu3 %v6287_v38  ;;  %v6176_v38 = vld [vmem:[#allocation2 + $0x48] sm:$0xe]  ;;  %v6805_v17 = vor.u32 %v6804_v63, %v6801_v28  ;;  %7997 = vmatpush.bf16.msra.mxu1 %v9554_v2 }
 0x530   : > { %6569 = vmatmul.bf16.gmra.mxu0 %v9501_v49  ;;  %v6861_v29 = vpack.c.b16 %v6852_v0, %v6851_v24  ;;  %v8939_v45 = vrot.slane %v6176_v38, 9  ;;  %9579 = vmatpush.bf16.msra.mxu2 %v9554_v2  ;;  %v6249_v46 = vsel %vm11523_vm1, %v6247_v58, %v6248_v35  ;;  %v9504_v2 = vld [vmem:[#allocation2 + $0x60] sm:$0xff] }
 0x532   : > { %v6005_v54 = vpop.f32.mrf.mxu3  ;;  %v6239_v15 = vsel %vm11523_vm1, %v8939_v45, %v6238_v33  ;;  %v9503_v33 = vld [vmem:[#allocation2 + $0x54] sm:$0xff] }
 0x533   : > { %v12973_v60 = vadd.f32 %v6150_v42, %v6005_v54  ;;  %6957 = vmatmul.bf16.gmra.mxu1 %v6861_v29  ;;  %v6628_v42 = vld [vmem:[#allocation2 + $0x64] sm:$0xf]  ;;  %v6279_v10 = vunpack.c.l.b16 %v6239_v15  ;;  %v6280_v29 = vunpack.c.l.b16 %v6242_v8  ;;  %v7428_v45 = vld [vmem:[#allocation2 + $0x18] sm:$0xf] }
 0x534   : > { %v7067_v11 = vrot.slane %v6628_v42, 5  ;;  %v6808_v50 = vshll.u32 %v6628_v42, 16  ;;  %v6812_v27 = vshrl.u32 %v6628_v42, 16  ;;  %v6177_v42 = vld [vmem:[#allocation2 + $0x54] sm:$0xe]  ;;  %v7453_v63 = vshrl.u32 %v7428_v45, 16 }
 0x535   : > { %v6152_v34 = vpop.f32.mrf.mxu0 }
 0x536   : > { %v7069_v13 = vrot.slane %v7067_v11, 4  ;;  %v6810_v41 = vrot.slane %v6808_v50, 5  ;;  %v6814_v18 = vrot.slane %v6812_v27, 4  ;;  %v7068_v21 = vsel %vm11523_vm1, %v9124_v62, %v7067_v11  ;;  %v7429_v50 = vld [vmem:[#allocation2 + $0x1c] sm:$0xf] }
 0x537   : > { %v7103_v20 = vunpack.c.l.b16 %v7068_v21  ;;  %v8940_v11 = vrot.slane %v6177_v42, 9  ;;  %v7840_v61 = vrot.slane %v7429_v50, 5  ;;  %v7806_v27 = vld [vmem:[#allocation2 + $0x18] sm:$0xe]  ;;  %v7466_v19 = vshrl.u32 %v7429_v50, 16  ;;  %v9553_v21 = vld [vmem:[%s13267_s9 + $0x200] sm:$0xff] }
 0x538   : > { %v7071_v53 = vsel %vm11523_vm1, %v7069_v13, %v7070_v43  ;;  %v6815_v54 = vor.u32 %v6814_v18, %v6810_v41  ;;  %v9301_v43 = vrot.slane %v7806_v27, 9  ;;  %v7462_v18 = vshll.u32 %v7429_v50, 16  ;;  %7998 = vmatpush.bf16.msra.mxu1 %v9553_v21  ;;  %9580 = vmatpush.bf16.msra.mxu2 %v9553_v21 }
 0x539   : > { %v7104_v4 = vunpack.c.l.b16 %v7071_v53  ;;  %v6246_v13 = vsel %vm11523_vm1, %v8940_v11, %v6245_v22  ;;  %v7842_v28 = vrot.slane %v7840_v61, 4  ;;  %v7433_v22 = vld [vmem:[#allocation2 + $0x2c] sm:$0x1]  ;;  %v7807_v11 = vld [vmem:[#allocation2 + $0x24] sm:$0xe] }
 0x53a   : > { %v6007_v59 = vpop.f32.mrf.mxu3  ;;  %v6816_v36 = vrot.slane %v6815_v54, 4  ;;  %v7841_v53 = vsel %vm11523_vm1, %v9301_v43, %v7840_v61  ;;  %v6282_v54 = vunpack.c.l.b16 %v6249_v46  ;;  %v9302_v50 = vrot.slane %v7807_v11, 9 }
 0x53b   : > { %v12989_v49 = vadd.f32 %v6152_v34, %v6007_v59  ;;  %v7112_v44 = vpack.c.b16 %v7104_v4, %v7103_v20  ;;  %v6806_v34 = vrot.slane %v6805_v17, 4  ;;  %v7844_v37 = vsel %vm11523_vm1, %v7842_v28, %v7843_v40 }
 0x53c   : > { %v6821_v24 = vsel %vm11473_vm14, %v6816_v36, %v6820_v30  ;;  %v7911_v20 = vunpack.c.l.b16 %v7841_v53  ;;  %v7912_v4 = vunpack.c.l.b16 %v7844_v37  ;;  %v6281_v17 = vunpack.c.l.b16 %v6246_v13 }
 0x53d   : > { %v6155_v26 = vpop.f32.mrf.mxu0  ;;  %7212 = vmatmul.bf16.gmra.mxu2 %v7112_v44  ;;  %v6811_v7 = vsel %vm11473_vm14, %v6806_v34, %v6810_v41  ;;  %v6854_v48 = vunpack.c.l.b16 %v6821_v24  ;;  %v7456_v41 = vshll.u32 %v7428_v45, 16  ;;  %v7464_v36 = vrot.slane %v7462_v18, 5 }
 0x53e   : > { %v6853_v0 = vunpack.c.l.b16 %v6811_v7  ;;  %v7927_v34 = vpack.c.b16 %v7912_v4, %v7911_v20  ;;  %v6290_v16 = vpack.c.b16 %v6282_v54, %v6281_v17  ;;  %v7850_v61 = vrot.slane %v7433_v22, 5 }
 0x53f   : > { %6380 = vmatmul.bf16.gmra.mxu3 %v6288_v39  ;;  %v7458_v30 = vrot.slane %v7456_v41, 5 }
 0x540   : > { %6574 = vmatmul.bf16.gmra.mxu0 %v9502_v14  ;;  %v6862_v59 = vpack.c.b16 %v6854_v48, %v6853_v0  ;;  %v6289_v14 = vpack.c.b16 %v6280_v29, %v6279_v10  ;;  %v7472_v48 = vshll.u32 %v7430_v6, 16  ;;  %v7431_v10 = vld [vmem:[#allocation2 + $0x24] sm:$0xf] }
 0x541   : > { %v7480_v35 = vshll.u32 %v7431_v10, 16 }
 0x542   : > { %v6010_v32 = vpop.f32.mrf.mxu3 }
 0x543   : > { %v13000_v1 = vadd.f32 %v6155_v26, %v6010_v32  ;;  %6962 = vmatmul.bf16.gmra.mxu1 %v6862_v59  ;;  %v7455_v32 = vrot.slane %v7453_v63, 4 }
 0x545   : > { %v6157_v3 = vpop.f32.mrf.mxu0  ;;  %v7459_v7 = vor.u32 %v7458_v30, %v7455_v32  ;;  %v9529_v30 = vld [vmem:[#allocation2 + $0x18] sm:$0xff] }
 0x547   : > { %v7460_v29 = vrot.slane %v7459_v7, 4 }
 0x549   : > { %v7465_v6 = vsel %vm11473_vm14, %v7460_v29, %v7464_v36 }
 0x54a   : > { %v6012_v38 = vpop.f32.mrf.mxu3 }
 0x54b   : > { %v13016_v39 = vadd.f32 %v6157_v3, %v6012_v38  ;;  %v7468_v3 = vrot.slane %v7466_v19, 4  ;;  %v7432_v38 = vld [vmem:[#allocation2 + $0x28] sm:$0xf]  ;;  %v7482_v19 = vrot.slane %v7480_v35, 5 }
 0x54c   : > { %v7847_v42 = vrot.slane %v7432_v38, 5  ;;  %v7490_v13 = vshrl.u32 %v7432_v38, 16 }
 0x54d   : > { %v6160_v26 = vpop.f32.mrf.mxu0  ;;  %v7469_v0 = vor.u32 %v7468_v3, %v7464_v36  ;;  %v7496_v3 = vshll.u32 %v7433_v22, 16 }
 0x54e   : > { %v7849_v45 = vrot.slane %v7847_v42, 4  ;;  %v7848_v40 = vsel %vm11523_vm1, %v9302_v50, %v7847_v42  ;;  %v7492_v37 = vrot.slane %v7490_v13, 4 }
 0x54f   : > { %6385 = vmatmul.bf16.gmra.mxu3 %v6289_v14  ;;  %v7470_v14 = vrot.slane %v7469_v0, 4  ;;  %v7913_v63 = vunpack.c.l.b16 %v7848_v40 }
 0x550   : > { %6579 = vmatmul.bf16.gmra.mxu0 %v9503_v33  ;;  %v13033_v44 = vpop.f32.mrf.mxu1  ;;  %v7474_v33 = vrot.slane %v7472_v48, 5  ;;  %v7851_v46 = vsel %vm11523_vm1, %v7849_v45, %v7850_v61  ;;  %v7435_v48 = vld [vmem:[#allocation2 + $0x34] sm:$0xf] }
 0x551   : > { %v7914_v41 = vunpack.c.l.b16 %v7851_v46  ;;  %v7854_v29 = vrot.slane %v7435_v48, 5  ;;  %v7510_v45 = vshll.u32 %v7435_v48, 16  ;;  %v7514_v61 = vshrl.u32 %v7435_v48, 16 }
 0x552   : > { %v6015_v62 = vpop.f32.mrf.mxu3  ;;  %v7475_v28 = vsel %vm11473_vm14, %v7470_v14, %v7474_v33  ;;  %v7808_v33 = vld [vmem:[#allocation2 + $0x30] sm:$0xe] }
 0x553   : > { %v13022_v23 = vadd.f32 %v6160_v26, %v6015_v62  ;;  %7999 = vmatmul.bf16.vlgmr.msra.gmra.mxu1 %v7927_v34  ;;  %v7477_v26 = vshrl.u32 %v7431_v10, 16  ;;  %v7486_v62 = vshll.u32 %v7432_v38, 16  ;;  %v7662_v21 = vunpack.c.l.b16 %v7475_v28  ;;  %v7436_v38 = vld [vmem:[#allocation2 + $0x38] sm:$0x1] }
 0x554   : > { %v7928_v4 = vpack.c.b16 %v7914_v41, %v7913_v63  ;;  %v9303_v22 = vrot.slane %v7808_v33, 9  ;;  %v7856_v11 = vrot.slane %v7854_v29, 4  ;;  %v7809_v33 = vld [vmem:[#allocation2 + $0x3c] sm:$0xe] }
 0x555   : > { %v6162_v9 = vpop.f32.mrf.mxu0  ;;  %v7479_v18 = vrot.slane %v7477_v26, 4  ;;  %v7488_v53 = vrot.slane %v7486_v62, 5 }
 0x556   : > { %v7855_v13 = vsel %vm11523_vm1, %v9303_v22, %v7854_v29  ;;  %v9304_v22 = vrot.slane %v7809_v33, 9  ;;  %v7442_v33 = vld [vmem:[#allocation2 + $0x50] sm:$0x1] }
 0x557   : > { %v7483_v54 = vor.u32 %v7482_v19, %v7479_v18  ;;  %v7493_v36 = vor.u32 %v7492_v37, %v7488_v53  ;;  %v7915_v46 = vunpack.c.l.b16 %v7855_v13  ;;  %v7512_v18 = vrot.slane %v7510_v45, 5 }
 0x558   : > { %v13037_v59 = vpop.f32.mrf.mxu1  ;;  %v7516_v19 = vrot.slane %v7514_v61, 4 }
 0x559   : > { %v7494_v7 = vrot.slane %v7493_v36, 4  ;;  %v7520_v36 = vshll.u32 %v7436_v38, 16 }
 0x55a   : > { %v6017_v15 = vpop.f32.mrf.mxu3 }
 0x55b   : > { %v13035_v8 = vadd.f32 %v6162_v9, %v6017_v15  ;;  %v7661_v9 = vunpack.c.l.b16 %v7465_v6 }
 0x55d   : > { %v6165_v24 = vpop.f32.mrf.mxu0  ;;  %v7677_v34 = vpack.c.b16 %v7662_v21, %v7661_v9 }
 0x55f   : > { %6390 = vmatmul.bf16.gmra.mxu3 %v6290_v16  ;;  %v7434_v16 = vld [vmem:[#allocation2 + $0x30] sm:$0xf] }
 0x560   : > { %6584 = vmatmul.bf16.gmra.mxu0 %v9504_v2  ;;  %v13049_v20 = vpop.f32.mrf.mxu1  ;;  %v7484_v2 = vrot.slane %v7483_v54, 4  ;;  %v7501_v10 = vshrl.u32 %v7434_v16, 16  ;;  %v7504_v14 = vshll.u32 %v7434_v16, 16  ;;  %v9530_v54 = vld [vmem:[#allocation2 + $0x24] sm:$0xff] }
 0x562   : > { %v6020_v58 = vpop.f32.mrf.mxu3  ;;  %v7489_v26 = vsel %vm11473_vm14, %v7484_v2, %v7488_v53  ;;  %v7503_v62 = vrot.slane %v7501_v10, 4  ;;  %v7506_v40 = vrot.slane %v7504_v14, 5  ;;  %v7437_v2 = vld [vmem:[#allocation2 + $0x3c] sm:$0xf]  ;;  %v7438_v10 = vld [vmem:[#allocation2 + $0x40] sm:$0xf] }
 0x563   : > { %v13039_v27 = vadd.f32 %v6165_v24, %v6020_v58  ;;  %8004 = vmatmul.bf16.gmra.mxu1 %v7928_v4  ;;  %v7498_v24 = vrot.slane %v7496_v3, 5  ;;  %v7857_v58 = vrot.slane %v7436_v38, 5  ;;  %v7663_v41 = vunpack.c.l.b16 %v7489_v26  ;;  %v7439_v14 = vld [vmem:[#allocation2 + $0x44] sm:$0x1] }
 0x564   : > { %v7507_v37 = vor.u32 %v7506_v40, %v7503_v62  ;;  %v7861_v29 = vrot.slane %v7438_v10, 5  ;;  %v7525_v38 = vshrl.u32 %v7437_v2, 16  ;;  %v7528_v26 = vshll.u32 %v7437_v2, 16  ;;  %v7441_v2 = vld [vmem:[#allocation2 + $0x4c] sm:$0xf] }
 0x565   : > { %v6167_v43 = vpop.f32.mrf.mxu0  ;;  %v7499_v50 = vsel %vm11473_vm14, %v7494_v7, %v7498_v24  ;;  %v7522_v24 = vrot.slane %v7520_v36, 5  ;;  %v7538_v45 = vshrl.u32 %v7438_v10, 16 }
 0x566   : > { %v7664_v9 = vunpack.c.l.b16 %v7499_v50  ;;  %v7508_v16 = vrot.slane %v7507_v37, 4  ;;  %v7534_v50 = vshll.u32 %v7438_v10, 16 }
 0x568   : > { %v13053_v0 = vpop.f32.mrf.mxu1 }
 0x56a   : > { %v6022_v17 = vpop.f32.mrf.mxu3 }
 0x56b   : > { %v13051_v32 = vadd.f32 %v6167_v43, %v6022_v17  ;;  %v7858_v43 = vsel %vm11523_vm1, %v7856_v11, %v7857_v58  ;;  %v7863_v11 = vrot.slane %v7861_v29, 4 }
 0x56c   : > { %v7916_v63 = vunpack.c.l.b16 %v7858_v43 }
 0x56d   : > { %v6550_v15 = vpop.f32.mrf.mxu0 }
 0x56e   : > { %v7929_v53 = vpack.c.b16 %v7916_v63, %v7915_v46  ;;  %v7527_v63 = vrot.slane %v7525_v38, 4  ;;  %v7868_v38 = vrot.slane %v7441_v2, 5 }
 0x56f   : > { %7371 = vmatmul.bf16.vlgmr.msra.gmra.mxu3 %v9529_v30  ;;  %v7678_v30 = vpack.c.b16 %v7664_v9, %v7663_v41  ;;  %v7530_v41 = vrot.slane %v7528_v26, 5  ;;  %v7536_v9 = vrot.slane %v7534_v50, 5  ;;  %v7810_v26 = vld [vmem:[#allocation2 + $0x48] sm:$0xe] }
 0x570   : > { %7749 = vmatmul.bf16.vlgmr.msra.gmra.mxu0 %v7677_v34  ;;  %v13067_v21 = vpop.f32.mrf.mxu1  ;;  %v7517_v34 = vor.u32 %v7516_v19, %v7512_v18 }
 0x572   : > { %v6356_v42 = vpop.f32.mrf.mxu3  ;;  %v7518_v7 = vrot.slane %v7517_v34, 4  ;;  %v7531_v34 = vor.u32 %v7530_v41, %v7527_v63 }
 0x573   : > { %v6396_v35 = vadd.f32 %v6356_v42, %v12865_v47  ;;  %8009 = vmatmul.bf16.gmra.mxu1 %v7929_v53 }
 0x575   : > { %v6552_v6 = vpop.f32.mrf.mxu0  ;;  %v6590_v28 = vadd.f32 %v6550_v15, %v6396_v35  ;;  %v7523_v35 = vsel %vm11473_vm14, %v7518_v7, %v7522_v24  ;;  %v7532_v24 = vrot.slane %v7531_v34, 4  ;;  %v9532_v34 = vld [vmem:[#allocation2 + $0x3c] sm:$0xff] }
 0x576   : > { %v7666_v46 = vunpack.c.l.b16 %v7523_v35 }
 0x577   : > { %v13065_v47 = vadd.f32 %v13033_v44, %v6590_v28  ;;  %v7537_v35 = vsel %vm11473_vm14, %v7532_v24, %v7536_v9 }
 0x578   : > { %v13073_v48 = vpop.f32.mrf.mxu1  ;;  %v7667_v41 = vunpack.c.l.b16 %v7537_v35 }
 0x57a   : > { %v6358_v4 = vpop.f32.mrf.mxu3 }
 0x57b   : > { %v6397_v17 = vadd.f32 %v6358_v4, %v12881_v12  ;;  %v7513_v12 = vsel %vm11473_vm14, %v7508_v16, %v7512_v18  ;;  %v7540_v18 = vrot.slane %v7538_v45, 4  ;;  %v7544_v4 = vshll.u32 %v7439_v14, 16 }
 0x57c   : > { %v7665_v40 = vunpack.c.l.b16 %v7513_v12 }
 0x57d   : > { %v6555_v3 = vpop.f32.mrf.mxu0  ;;  %v6591_v15 = vadd.f32 %v6552_v6, %v6397_v17  ;;  %v7862_v6 = vsel %vm11523_vm1, %v9304_v22, %v7861_v29  ;;  %v7541_v36 = vor.u32 %v7540_v18, %v7536_v9 }
 0x57e   : > { %v7917_v43 = vunpack.c.l.b16 %v7862_v6 }
 0x57f   : > { %v13071_v44 = vadd.f32 %v13037_v59, %v6591_v15  ;;  %7376 = vmatmul.bf16.gmra.mxu3 %v9530_v54  ;;  %v7864_v59 = vrot.slane %v7439_v14, 5  ;;  %v9531_v54 = vld [vmem:[#allocation2 + $0x30] sm:$0xff]  ;;  %v7440_v15 = vld [vmem:[#allocation2 + $0x48] sm:$0xf]  ;;  %v7542_v10 = vrot.slane %v7541_v36, 4  ;;  %v7558_v14 = vshll.u32 %v7441_v2, 16 }
 0x580   : > { %7754 = vmatmul.bf16.gmra.mxu0 %v7678_v30  ;;  %v13087_v19 = vpop.f32.mrf.mxu1  ;;  %v7679_v30 = vpack.c.b16 %v7666_v46, %v7665_v40  ;;  %v7549_v12 = vshrl.u32 %v7440_v15, 16 }
 0x581   : > { %v7865_v62 = vsel %vm11523_vm1, %v7863_v11, %v7864_v59  ;;  %v9305_v11 = vrot.slane %v7810_v26, 9  ;;  %v7870_v59 = vrot.slane %v7868_v38, 4 }
 0x582   : > { %v6361_v42 = vpop.f32.mrf.mxu3  ;;  %v7918_v28 = vunpack.c.l.b16 %v7865_v62  ;;  %v7551_v45 = vrot.slane %v7549_v12, 4  ;;  %v7560_v62 = vrot.slane %v7558_v14, 5 }
 0x583   : > { %v6398_v58 = vadd.f32 %v6361_v42, %v12892_v31  ;;  %v7562_v42 = vshrl.u32 %v7441_v2, 16 }
 0x584   : > { %v7930_v53 = vpack.c.b16 %v7918_v28, %v7917_v43 }
 0x585   : > { %v6557_v61 = vpop.f32.mrf.mxu0  ;;  %v6592_v13 = vadd.f32 %v6555_v3, %v6398_v58  ;;  %v7871_v58 = vrot.slane %v7442_v33, 5  ;;  %v7564_v40 = vrot.slane %v7562_v42, 4 }
 0x586   : > { %8014 = vmatmul.bf16.gmra.mxu1 %v7930_v53 }
 0x587   : > { %v13085_v31 = vadd.f32 %v13049_v20, %v6592_v13  ;;  %v7546_v20 = vrot.slane %v7544_v4, 5  ;;  %v7869_v13 = vsel %vm11523_vm1, %v9305_v11, %v7868_v38  ;;  %v7872_v43 = vsel %vm11523_vm1, %v7870_v59, %v7871_v58  ;;  %v7811_v11 = vld [vmem:[#allocation2 + $0x54] sm:$0xe] }
 0x588   : > { %v13093_v29 = vpop.f32.mrf.mxu1  ;;  %v7919_v46 = vunpack.c.l.b16 %v7869_v13  ;;  %v7565_v4 = vor.u32 %v7564_v40, %v7560_v62 }
 0x589   : > { %v7547_v50 = vsel %vm11473_vm14, %v7542_v10, %v7546_v20 }
 0x58a   : > { %v6363_v37 = vpop.f32.mrf.mxu3  ;;  %v7668_v9 = vunpack.c.l.b16 %v7547_v50  ;;  %v7566_v20 = vrot.slane %v7565_v4, 4 }
 0x58b   : > { %v6399_v17 = vadd.f32 %v6363_v37, %v12908_v51  ;;  %v7552_v51 = vshll.u32 %v7440_v15, 16 }
 0x58c   : > { %v7680_v36 = vpack.c.b16 %v7668_v9, %v7667_v41 }
 0x58d   : > { %v6560_v3 = vpop.f32.mrf.mxu0  ;;  %v6593_v16 = vadd.f32 %v6557_v61, %v6399_v17  ;;  %v7554_v6 = vrot.slane %v7552_v51, 5  ;;  %v7568_v17 = vshll.u32 %v7442_v33, 16 }
 0x58f   : > { %v13091_v7 = vadd.f32 %v13053_v0, %v6593_v16  ;;  %7381 = vmatmul.bf16.gmra.mxu3 %v9531_v54  ;;  %v7555_v37 = vor.u32 %v7554_v6, %v7551_v45  ;;  %v7444_v16 = vld [vmem:[#allocation2 + $0x58] sm:$0xf]  ;;  %v7570_v24 = vrot.slane %v7568_v17, 5 }
 0x590   : > { %7759 = vmatmul.bf16.gmra.mxu0 %v7679_v30  ;;  %v13107_v18 = vpop.f32.mrf.mxu1  ;;  %v7582_v38 = vshll.u32 %v7444_v16, 16  ;;  %v7875_v33 = vrot.slane %v7444_v16, 5 }
 0x591   : > { %v7571_v26 = vsel %vm11473_vm14, %v7566_v20, %v7570_v24  ;;  %v7447_v24 = vld [vmem:[#allocation2 + $0x64] sm:$0xf] }
 0x592   : > { %v6366_v22 = vpop.f32.mrf.mxu3  ;;  %v7670_v41 = vunpack.c.l.b16 %v7571_v26  ;;  %v7882_v26 = vrot.slane %v7447_v24, 5 }
 0x593   : > { %v6400_v0 = vadd.f32 %v6366_v22, %v12919_v55  ;;  %v7920_v55 = vunpack.c.l.b16 %v7872_v43  ;;  %v7445_v22 = vld [vmem:[#allocation2 + $0x5c] sm:$0x1] }
 0x594   : > { %v7878_v35 = vrot.slane %v7445_v22, 5  ;;  %v7592_v9 = vshll.u32 %v7445_v22, 16  ;;  %v7448_v22 = vld [vmem:[#allocation2 + $0x68] sm:$0x1] }
 0x595   : > { %v6562_v61 = vpop.f32.mrf.mxu0  ;;  %v6594_v28 = vadd.f32 %v6560_v3, %v6400_v0  ;;  %v7931_v53 = vpack.c.b16 %v7920_v55, %v7919_v46  ;;  %v7443_v3 = vld [vmem:[#allocation2 + $0x54] sm:$0xf]  ;;  %v7877_v0 = vrot.slane %v7875_v33, 4 }
 0x596   : > { %v7573_v10 = vshrl.u32 %v7443_v3, 16  ;;  %v7576_v14 = vshll.u32 %v7443_v3, 16 }
 0x597   : > { %v13105_v63 = vadd.f32 %v13067_v21, %v6594_v28  ;;  %8019 = vmatmul.bf16.gmra.mxu1 %v7931_v53  ;;  %v7556_v21 = vrot.slane %v7555_v37, 4 }
 0x598   : > { %v13113_v51 = vpop.f32.mrf.mxu1  ;;  %v7575_v58 = vrot.slane %v7573_v10, 4  ;;  %v7578_v45 = vrot.slane %v7576_v14, 5 }
 0x599   : > { %v7561_v42 = vsel %vm11473_vm14, %v7556_v21, %v7560_v62  ;;  %v7879_v62 = vsel %vm11523_vm1, %v7877_v0, %v7878_v35  ;;  %v7446_v21 = vld [vmem:[#allocation2 + $0x60] sm:$0xf]  ;;  %v7885_v0 = vrot.slane %v7448_v22, 5 }
 0x59a   : > { %v6368_v54 = vpop.f32.mrf.mxu3  ;;  %v7922_v46 = vunpack.c.l.b16 %v7879_v62  ;;  %v7669_v55 = vunpack.c.l.b16 %v7561_v42  ;;  %v7610_v42 = vshrl.u32 %v7447_v24, 16 }
 0x59b   : > { %v6401_v30 = vadd.f32 %v6368_v54, %v12935_v5  ;;  %v7586_v5 = vshrl.u32 %v7444_v16, 16  ;;  %v7594_v16 = vrot.slane %v7592_v9, 5 }
 0x59d   : > { %v6565_v15 = vpop.f32.mrf.mxu0  ;;  %v6595_v2 = vadd.f32 %v6562_v61, %v6401_v30  ;;  %v7584_v61 = vrot.slane %v7582_v38, 5  ;;  %v7588_v6 = vrot.slane %v7586_v5, 4  ;;  %v7681_v30 = vpack.c.b16 %v7670_v41, %v7669_v55 }
 0x59e   : > { %v7597_v38 = vshrl.u32 %v7446_v21, 16  ;;  %v7600_v5 = vshll.u32 %v7446_v21, 16 }
 0x59f   : > { %v13111_v12 = vadd.f32 %v13073_v48, %v6595_v2  ;;  %7386 = vmatmul.bf16.gmra.mxu3 %v9532_v34  ;;  %v9306_v48 = vrot.slane %v7811_v11, 9  ;;  %v7589_v37 = vor.u32 %v7588_v6, %v7584_v61  ;;  %v7812_v11 = vld [vmem:[#allocation2 + $0x60] sm:$0xe] }
 0x5a0   : > { %7764 = vmatmul.bf16.gmra.mxu0 %v7680_v36  ;;  %v13127_v4 = vpop.f32.mrf.mxu1  ;;  %v9533_v36 = vld [vmem:[#allocation2 + $0x48] sm:$0xff]  ;;  %v7599_v6 = vrot.slane %v7597_v38, 4 }
 0x5a1   : > { %v7876_v43 = vsel %vm11523_vm1, %v9306_v48, %v7875_v33  ;;  %v7606_v33 = vshll.u32 %v7447_v24, 16  ;;  %v7884_v48 = vrot.slane %v7882_v26, 4 }
 0x5a2   : > { %v6371_v59 = vpop.f32.mrf.mxu3  ;;  %v7921_v40 = vunpack.c.l.b16 %v7876_v43  ;;  %v7813_v43 = vld [vmem:[#allocation2 + $0x6c] sm:$0xe] }
 0x5a3   : > { %v6402_v50 = vadd.f32 %v6371_v59, %v12946_v52  ;;  %v7579_v52 = vor.u32 %v7578_v45, %v7575_v58  ;;  %v13139_v59 = vld [vmem:[#allocation2 + $0x70] sm:$0xf]  ;;  %v9307_v58 = vrot.slane %v7812_v11, 9 }
 0x5a4   : > { %v7932_v17 = vpack.c.b16 %v7922_v46, %v7921_v40  ;;  %v7889_v35 = vrot.slane %v13139_v59, 5  ;;  %v7886_v40 = vsel %vm11523_vm1, %v7884_v48, %v7885_v0  ;;  %v9308_v46 = vrot.slane %v7813_v43, 9  ;;  %v7449_v48 = vld [vmem:[#allocation2 + $0x6c] sm:$0xf]  ;;  %v7178_v43 = vpop.f32.mrf.mxu2 }
 0x5a5   : > { %v6567_v13 = vpop.f32.mrf.mxu0  ;;  %v6596_v28 = vadd.f32 %v6565_v15, %v6402_v50  ;;  %v7580_v3 = vrot.slane %v7579_v52, 4  ;;  %v7590_v15 = vrot.slane %v7589_v37, 4  ;;  %v7924_v52 = vunpack.c.l.b16 %v7886_v40 }
 0x5a6   : > { %v7891_v55 = vrot.slane %v7889_v35, 4  ;;  %v7602_v37 = vrot.slane %v7600_v5, 5 }
 0x5a7   : > { %v13125_v53 = vadd.f32 %v13087_v19, %v6596_v28  ;;  %8024 = vmatmul.bf16.gmra.mxu1 %v7932_v17  ;;  %v7585_v10 = vsel %vm11473_vm14, %v7580_v3, %v7584_v61  ;;  %v7595_v14 = vsel %vm11473_vm14, %v7590_v15, %v7594_v16  ;;  %v7883_v28 = vsel %vm11523_vm1, %v9307_v58, %v7882_v26 }
 0x5a8   : > { %v7671_v45 = vunpack.c.l.b16 %v7585_v10  ;;  %v7672_v61 = vunpack.c.l.b16 %v7595_v14  ;;  %v7923_v9 = vunpack.c.l.b16 %v7883_v28  ;;  %v7608_v17 = vrot.slane %v7606_v33, 5  ;;  %v9534_v14 = vld [vmem:[#allocation2 + $0x54] sm:$0xff] }
 0x5a9   : > { %v7603_v38 = vor.u32 %v7602_v37, %v7599_v6  ;;  %v7616_v33 = vshll.u32 %v7448_v22, 16  ;;  %v7634_v6 = vshrl.u32 %v13139_v59, 16 }
 0x5aa   : > { %v6373_v54 = vpop.f32.mrf.mxu3  ;;  %v7933_v3 = vpack.c.b16 %v7924_v52, %v7923_v9 }
 0x5ab   : > { %v6403_v34 = vadd.f32 %v6373_v54, %v12962_v56  ;;  %v13137_v56 = vpop.f32.mrf.mxu1  ;;  %v7612_v54 = vrot.slane %v7610_v42, 4  ;;  %v7604_v57 = vrot.slane %v7603_v38, 4  ;;  %v7636_v52 = vrot.slane %v7634_v6, 4 }
 0x5ad   : > { %v6570_v2 = vpop.f32.mrf.mxu0  ;;  %v6597_v20 = vadd.f32 %v6567_v13, %v6403_v34  ;;  %v13143_v13 = vld [vmem:[#allocation2 + $0x74] sm:$0x1]  ;;  %v7613_v5 = vor.u32 %v7612_v54, %v7608_v17 }
 0x5af   : > { %v13131_v19 = vadd.f32 %v13093_v29, %v6597_v20  ;;  %7391 = vmatmul.bf16.gmra.mxu3 %v9533_v36  ;;  %v7682_v20 = vpack.c.b16 %v7672_v61, %v7671_v45  ;;  %v7614_v11 = vrot.slane %v7613_v5, 4  ;;  %v7621_v45 = vshrl.u32 %v7449_v48, 16 }
 0x5b0   : > { %7769 = vmatmul.bf16.gmra.mxu0 %v7681_v30  ;;  %v7890_v30 = vsel %vm11523_vm1, %v9308_v46, %v7889_v35  ;;  %v7609_v35 = vsel %vm11473_vm14, %v7604_v57, %v7608_v17  ;;  %v7630_v61 = vshll.u32 %v13139_v59, 16  ;;  %v9535_v17 = vld [vmem:[#allocation2 + $0x60] sm:$0xff] }
 0x5b1   : > { %v7925_v16 = vunpack.c.l.b16 %v7890_v30  ;;  %v7673_v40 = vunpack.c.l.b16 %v7609_v35 }
 0x5b2   : > { %v6376_v29 = vpop.f32.mrf.mxu3  ;;  %v7632_v9 = vrot.slane %v7630_v61, 5 }
 0x5b3   : > { %v6404_v50 = vadd.f32 %v6376_v29, %v12973_v60  ;;  %v7892_v60 = vrot.slane %v13143_v13, 5  ;;  %v13155_v36 = vpop.f32.mrf.mxu1  ;;  %v7618_v29 = vrot.slane %v7616_v33, 5 }
 0x5b4   : > { %v7637_v59 = vor.u32 %v7636_v52, %v7632_v9 }
 0x5b5   : > { %v6572_v62 = vpop.f32.mrf.mxu0  ;;  %v6598_v41 = vadd.f32 %v6570_v2, %v6404_v50  ;;  %v7893_v15 = vsel %vm11523_vm1, %v7891_v55, %v7892_v60  ;;  %v7619_v22 = vsel %vm11473_vm14, %v7614_v11, %v7618_v29  ;;  %v7623_v55 = vrot.slane %v7621_v45, 4 }
 0x5b6   : > { %v7926_v2 = vunpack.c.l.b16 %v7893_v15  ;;  %v7640_v15 = vshll.u32 %v13143_v13, 16 }
 0x5b7   : > { %v13153_v34 = vadd.f32 %v13107_v18, %v6598_v41  ;;  %8029 = vmatmul.bf16.gmra.mxu1 %v7933_v3 }
 0x5b8   : > { %v7934_v24 = vpack.c.b16 %v7926_v2, %v7925_v16 }
 0x5ba   : > { %v6378_v21 = vpop.f32.mrf.mxu3  ;;  %8034 = vmatmul.bf16.vlgmr.msra.gmra.mxu2 %v7934_v24  ;;  %v7642_v24 = vrot.slane %v7640_v15, 5 }
 0x5bb   : > { %v6405_v10 = vadd.f32 %v6378_v21, %v12989_v49  ;;  %v6960_v58 = vpop.f32.mrf.mxu1 }
 0x5bd   : > { %v6575_v18 = vpop.f32.mrf.mxu0  ;;  %v6599_v42 = vadd.f32 %v6572_v62, %v6405_v10 }
 0x5bf   : > { %v13161_v26 = vadd.f32 %v13113_v51, %v6599_v42  ;;  %7396 = vmatmul.bf16.gmra.mxu3 %v9534_v14  ;;  %v7624_v51 = vshll.u32 %v7449_v48, 16 }
 0x5c0   : > { %7774 = vmatmul.bf16.gmra.mxu0 %v7682_v20  ;;  %v7638_v20 = vrot.slane %v7637_v59, 4 }
 0x5c1   : > { %v7626_v41 = vrot.slane %v7624_v51, 5 }
 0x5c2   : > { %v6381_v0 = vpop.f32.mrf.mxu3  ;;  %v7643_v13 = vsel %vm11473_vm14, %v7638_v20, %v7642_v24  ;;  %v13512_v24 = vld [vmem:[#allocation44_spill] sm:$0xff] }
 0x5c3   : > { %v6406_v49 = vadd.f32 %v6381_v0, %v13000_v1  ;;  %v7674_v1 = vunpack.c.l.b16 %v7619_v22  ;;  %v6963_v46 = vpop.f32.mrf.mxu1  ;;  %v7627_v3 = vor.u32 %v7626_v41, %v7623_v55  ;;  %v7676_v42 = vunpack.c.l.b16 %v7643_v13  ;;  %v9536_v0 = vld [vmem:[#allocation2 + $0x6c] sm:$0xff] }
 0x5c5   : > { %v6577_v50 = vpop.f32.mrf.mxu0  ;;  %v6600_v62 = vadd.f32 %v6575_v18, %v6406_v49  ;;  %v7683_v54 = vpack.c.b16 %v7674_v1, %v7673_v40  ;;  %v7628_v21 = vrot.slane %v7627_v3, 4 }
 0x5c7   : > { %v13171_v28 = vadd.f32 %v13127_v4, %v6600_v62  ;;  %v7180_v4 = vpop.f32.mrf.mxu2  ;;  %v7633_v5 = vsel %vm11473_vm14, %v7628_v21, %v7632_v9  ;;  %v7218_v9 = vadd.f32 %v7178_v43, %v13065_v47 }
 0x5c8   : > { %v7675_v18 = vunpack.c.l.b16 %v7633_v5 }
 0x5ca   : > { %v6383_v60 = vpop.f32.mrf.mxu3 }
 0x5cb   : > { %v6407_v37 = vadd.f32 %v6383_v60, %v13016_v39  ;;  %v6965_v10 = vpop.f32.mrf.mxu1 }
 0x5cd   : > { %v6580_v30 = vpop.f32.mrf.mxu0  ;;  %v6601_v16 = vadd.f32 %v6577_v50, %v6407_v37 }
 0x5cf   : > { %v13176_v2 = vadd.f32 %v13137_v56, %v6601_v16  ;;  %7401 = vmatmul.bf16.gmra.mxu3 %v9535_v17  ;;  %v7183_v57 = vpop.f32.mrf.mxu2 }
 0x5d0   : > { %7779 = vmatmul.bf16.gmra.mxu0 %v7683_v54  ;;  %v7220_v47 = vadd.f32 %v7183_v57, %v13085_v31 }
 0x5d2   : > { %v6386_v14 = vpop.f32.mrf.mxu3 }
 0x5d3   : > { %v6408_v39 = vadd.f32 %v6386_v14, %v13022_v23  ;;  %v8000_v29 = vpop.f32.mrf.mxu1  ;;  %v7684_v23 = vpack.c.b16 %v7676_v42, %v7675_v18 }
 0x5d5   : > { %v6582_v38 = vpop.f32.mrf.mxu0  ;;  %v6602_v33 = vadd.f32 %v6580_v30, %v6408_v39  ;;  %v7219_v30 = vadd.f32 %v7180_v4, %v13071_v44 }
 0x5d7   : > { %v13184_v56 = vadd.f32 %v13155_v36, %v6602_v33  ;;  %v7185_v50 = vpop.f32.mrf.mxu2  ;;  %v13513_v33 = vld [vmem:[#allocation14_spill] sm:$0xff] }
 0x5d8   : > { %v7221_v13 = vadd.f32 %v7185_v50, %v13091_v7 }
 0x5da   : > { %v6388_v11 = vpop.f32.mrf.mxu3 }
 0x5db   : > { %v6409_v48 = vadd.f32 %v6388_v11, %v13035_v8  ;;  %v8002_v51 = vpop.f32.mrf.mxu1 }
 0x5dd   : > { %v6585_v49 = vpop.f32.mrf.mxu0  ;;  %v6603_v35 = vadd.f32 %v6582_v38, %v6409_v48 }
 0x5df   : > { %v13187_v22 = vadd.f32 %v6960_v58, %v6603_v35  ;;  %7406 = vmatmul.bf16.gmra.mxu3 %v9536_v0  ;;  %v7188_v1 = vpop.f32.mrf.mxu2 }
 0x5e0   : > { %7784 = vmatmul.bf16.gmra.mxu0 %v7684_v23  ;;  %v7222_v23 = vadd.f32 %v7188_v1, %v13105_v63 }
 0x5e2   : > { %v6391_v25 = vpop.f32.mrf.mxu3 }
 0x5e3   : > { %v6410_v36 = vadd.f32 %v6391_v25, %v13039_v27  ;;  %v8005_v58 = vpop.f32.mrf.mxu1 }
 0x5e5   : > { %v6587_v45 = vpop.f32.mrf.mxu0  ;;  %v6604_v61 = vadd.f32 %v6585_v49, %v6410_v36  ;;  %v13514_v49 = vld [vmem:[#allocation8_spill] sm:$0xff] }
 0x5e7   : > { %v13190_v6 = vadd.f32 %v6963_v46, %v6604_v61  ;;  %v7190_v17 = vpop.f32.mrf.mxu2 }
 0x5ea   : > { %v6393_v62 = vpop.f32.mrf.mxu3 }
 0x5eb   : > { %v6411_v8 = vadd.f32 %v6393_v62, %v13051_v32  ;;  %v8007_v54 = vpop.f32.mrf.mxu1  ;;  %v13511_v32 = vld [vmem:[#allocation11_spill] sm:$0xff]  ;;  %v7223_v62 = vadd.f32 %v7190_v17, %v13111_v12 }
 0x5ed   : > { %v7750_v40 = vpop.f32.mrf.mxu0  ;;  %v6605_v55 = vadd.f32 %v6587_v45, %v6411_v8  ;;  %v13515_v8 = vld [vmem:[#allocation7_spill] sm:$0xff] }
 0x5ef   : > { %v13193_v41 = vadd.f32 %v6965_v10, %v6605_v55  ;;  %v7193_v43 = vpop.f32.mrf.mxu2 }
 0x5f2   : > { %v7372_v52 = vpop.f32.mrf.mxu3 }
 0x5f3   : > { %v7412_v60 = vadd.f32 %v7372_v52, %v7218_v9  ;;  %v8010_v39 = vpop.f32.mrf.mxu1 }
 0x5f5   : > { %v7752_v27 = vpop.f32.mrf.mxu0  ;;  %v7790_v37 = vadd.f32 %v7750_v40, %v7412_v60 }
 0x5f7   : > { %v8040_v46 = vadd.f32 %v8000_v29, %v7790_v37  ;;  %v7195_v11 = vpop.f32.mrf.mxu2  ;;  %v13516_v37 = vld [vmem:[#allocation5_spill] sm:$0xff] }
 0x5f9   : > { %v8056_v3 = vadd.f32 %v8040_v46, %v13511_v32 }
 0x5fa   : > { %v7374_v59 = vpop.f32.mrf.mxu3 }
 0x5fb   : > { %8072 = vst [vmem:[%s9785_s19] sm:$0xff] %v8056_v3  ;;  %v7413_v15 = vadd.f32 %v7374_v59, %v7219_v30  ;;  %v8012_v57 = vpop.f32.mrf.mxu1  ;;  %v7225_v3 = vadd.f32 %v7195_v11, %v13131_v19 }
 0x5fd   : > { %v7755_v16 = vpop.f32.mrf.mxu0  ;;  %v7791_v21 = vadd.f32 %v7752_v27, %v7413_v15  ;;  %v7224_v27 = vadd.f32 %v7193_v43, %v13125_v53  ;;  %v13517_v15 = vld [vmem:[#allocation15_spill] sm:$0xff] }
 0x5ff   : > { %v8041_v20 = vadd.f32 %v8002_v51, %v7791_v21  ;;  %v7198_v7 = vpop.f32.mrf.mxu2 }
 0x601   : > { %v8057_v10 = vadd.f32 %v8041_v20, %v13512_v24 }
 0x602   : > { %v7377_v14 = vpop.f32.mrf.mxu3 }
 0x603   : > { %8073 = vst [vmem:[%s9785_s19 + $0x8] sm:$0xff] %v8057_v10  ;;  %v7414_v38 = vadd.f32 %v7377_v14, %v7220_v47  ;;  %v8015_v51 = vpop.f32.mrf.mxu1  ;;  %v7226_v10 = vadd.f32 %v7198_v7, %v13153_v34  ;;  %v13518_v14 = vld [vmem:[#allocation9_spill] sm:$0xff] }
 0x605   : > { %v7757_v5 = vpop.f32.mrf.mxu0  ;;  %v7792_v44 = vadd.f32 %v7755_v16, %v7414_v38 }
 0x607   : > { %v8042_v4 = vadd.f32 %v8005_v58, %v7792_v44  ;;  %v7200_v1 = vpop.f32.mrf.mxu2 }
 0x609   : > { %v8058_v18 = vadd.f32 %v8042_v4, %v13513_v33 }
 0x60a   : > { %v7379_v42 = vpop.f32.mrf.mxu3 }
 0x60b   : > { %8074 = vst [vmem:[%s9785_s19 + $0x10] sm:$0xff] %v8058_v18  ;;  %v7415_v29 = vadd.f32 %v7379_v42, %v7221_v13  ;;  %v8017_v60 = vpop.f32.mrf.mxu1  ;;  %v7227_v18 = vadd.f32 %v7200_v1, %v13161_v26  ;;  %v13519_v42 = vld [vmem:[#allocation35_spill] sm:$0xff] }
 0x60d   : > { %v7760_v31 = vpop.f32.mrf.mxu0  ;;  %v7793_v48 = vadd.f32 %v7757_v5, %v7415_v29 }
 0x60f   : > { %v8043_v0 = vadd.f32 %v8007_v54, %v7793_v48  ;;  %v7203_v59 = vpop.f32.mrf.mxu2 }
 0x611   : > { %v8059_v35 = vadd.f32 %v8043_v0, %v13514_v49  ;;  %v7228_v49 = vadd.f32 %v7203_v59, %v13171_v28 }
 0x612   : > { %v7382_v25 = vpop.f32.mrf.mxu3 }
 0x613   : > { %8075 = vst [vmem:[%s9785_s19 + $0x18] sm:$0xff] %v8059_v35  ;;  %v7416_v36 = vadd.f32 %v7382_v25, %v7222_v23  ;;  %v13520_v35 = vld [vmem:[#allocation28_spill] sm:$0xff] }
 0x614   : > { %v8020_v20 = vpop.f32.mrf.mxu1 }
 0x615   : > { %v7762_v45 = vpop.f32.mrf.mxu0  ;;  %v7794_v50 = vadd.f32 %v7760_v31, %v7416_v36 }
 0x617   : > { %v8044_v61 = vadd.f32 %v8010_v39, %v7794_v50  ;;  %v7205_v5 = vpop.f32.mrf.mxu2 }
 0x619   : > { %v8060_v40 = vadd.f32 %v8044_v61, %v13515_v8  ;;  %v13521_v8 = vld [vmem:[#allocation6_spill] sm:$0xff] }
 0x61a   : > { %v7384_v55 = vpop.f32.mrf.mxu3 }
 0x61b   : > { %8076 = vst [vmem:[%s9785_s19 + $0x20] sm:$0xff] %v8060_v40  ;;  %v7417_v58 = vadd.f32 %v7384_v55, %v7223_v62  ;;  %v7229_v62 = vadd.f32 %v7205_v5, %v13176_v2 }
 0x61c   : > { %v8022_v4 = vpop.f32.mrf.mxu1 }
 0x61d   : > { %v7765_v9 = vpop.f32.mrf.mxu0  ;;  %v7795_v63 = vadd.f32 %v7762_v45, %v7417_v58 }
 0x61f   : > { %v8045_v52 = vadd.f32 %v8012_v57, %v7795_v63  ;;  %v7208_v34 = vpop.f32.mrf.mxu2 }
 0x620   : > { %v7230_v1 = vadd.f32 %v7208_v34, %v13184_v56 }
 0x621   : > { %v8061_v46 = vadd.f32 %v8045_v52, %v13516_v37 }
 0x622   : > { %v7387_v54 = vpop.f32.mrf.mxu3 }
 0x623   : > { %8077 = vst [vmem:[%s9785_s19 + $0x28] sm:$0xff] %v8061_v46  ;;  %v7418_v30 = vadd.f32 %v7387_v54, %v7224_v27 }
 0x624   : > { %v8025_v0 = vpop.f32.mrf.mxu1 }
 0x625   : > { %v7767_v32 = vpop.f32.mrf.mxu0  ;;  %v7796_v12 = vadd.f32 %v7765_v9, %v7418_v30 }
 0x627   : > { %v8046_v17 = vadd.f32 %v8015_v51, %v7796_v12  ;;  %v7210_v50 = vpop.f32.mrf.mxu2 }
 0x628   : > { %v7231_v12 = vadd.f32 %v7210_v50, %v13187_v22 }
 0x629   : > { %v8062_v16 = vadd.f32 %v8046_v17, %v13517_v15  ;;  %v13523_v17 = vld [vmem:[#allocation33_spill] sm:$0xff] }
 0x62a   : > { %v7389_v21 = vpop.f32.mrf.mxu3 }
 0x62b   : > { %8078 = vst [vmem:[%s9785_s19 + $0x30] sm:$0xff] %v8062_v16  ;;  %v7419_v47 = vadd.f32 %v7389_v21, %v7225_v3 }
 0x62c   : > { %v8027_v61 = vpop.f32.mrf.mxu1 }
 0x62d   : > { %v7770_v24 = vpop.f32.mrf.mxu0  ;;  %v7797_v53 = vadd.f32 %v7767_v32, %v7419_v47 }
 0x62f   : > { %v8047_v43 = vadd.f32 %v8017_v60, %v7797_v53  ;;  %v7213_v52 = vpop.f32.mrf.mxu2  ;;  %v13522_v60 = vld [vmem:[#allocation19_spill] sm:$0xff] }
 0x630   : > { %v7232_v47 = vadd.f32 %v7213_v52, %v13190_v6 }
 0x631   : > { %v8063_v39 = vadd.f32 %v8047_v43, %v13518_v14 }
 0x632   : > { %v7392_v38 = vpop.f32.mrf.mxu3 }
 0x633   : > { %8079 = vst [vmem:[%s9785_s19 + $0x38] sm:$0xff] %v8063_v39  ;;  %v7420_v44 = vadd.f32 %v7392_v38, %v7226_v10 }
 0x634   : > { %v8030_v46 = vpop.f32.mrf.mxu1 }
 0x635   : > { %v7772_v19 = vpop.f32.mrf.mxu0  ;;  %v7798_v13 = vadd.f32 %v7770_v24, %v7420_v44  ;;  %v13524_v24 = vld [vmem:[#allocation13_spill] sm:$0xff]  ;;  %v13525_v44 = vld [vmem:[#allocation18_spill] sm:$0xff] }
 0x637   : > { %v8048_v33 = vadd.f32 %v8020_v20, %v7798_v13  ;;  %v7215_v16 = vpop.f32.mrf.mxu2 }
 0x638   : > { %v7233_v5 = vadd.f32 %v7215_v16, %v13193_v41 }
 0x639   : > { %v8064_v11 = vadd.f32 %v8048_v33, %v13519_v42 }
 0x63a   : > { %v7394_v29 = vpop.f32.mrf.mxu3 }
 0x63b   : > { %8080 = vst [vmem:[%s9785_s19 + $0x40] sm:$0xff] %v8064_v11  ;;  %v7421_v31 = vadd.f32 %v7394_v29, %v7227_v18  ;;  %v13526_v11 = vld [vmem:[#allocation34_spill] sm:$0xff] }
 0x63c   : > { %v8032_v56 = vpop.f32.mrf.mxu1 }
 0x63d   : > { %v7775_v57 = vpop.f32.mrf.mxu0  ;;  %v7799_v48 = vadd.f32 %v7772_v19, %v7421_v31 }
 0x63f   : > { %v8049_v23 = vadd.f32 %v8022_v4, %v7799_v48  ;;  %v8035_v22 = vpop.f32.mrf.mxu2 }
 0x641   : > { %v8065_v25 = vadd.f32 %v8049_v23, %v13520_v35 }
 0x642   : > { %v7397_v36 = vpop.f32.mrf.mxu3 }
 0x643   : > { %8081 = vst [vmem:[%s9785_s19 + $0x48] sm:$0xff] %v8065_v25  ;;  %v7422_v45 = vadd.f32 %v7397_v36, %v7228_v49 }
 0x645   : > { %v7777_v7 = vpop.f32.mrf.mxu0  ;;  %v7800_v26 = vadd.f32 %v7775_v57, %v7422_v45 }
 0x647   : > { %v8050_v51 = vadd.f32 %v8025_v0, %v7800_v26  ;;  %v8037_v6 = vpop.f32.mrf.mxu2 }
 0x649   : > { %v8066_v40 = vadd.f32 %v8050_v51, %v13521_v8 }
 0x64a   : > { %v7399_v55 = vpop.f32.mrf.mxu3 }
 0x64b   : > { %8082 = vst [vmem:[%s9785_s19 + $0x50] sm:$0xff] %v8066_v40  ;;  %v7423_v58 = vadd.f32 %v7399_v55, %v7229_v62 }
 0x64d   : > { %v7801_v9 = vadd.f32 %v7777_v7, %v7423_v58  ;;  %v7780_v28 = vpop.f32.mrf.mxu0 }
 0x64f   : > { %v8051_v63 = vadd.f32 %v8027_v61, %v7801_v9 }
 0x651   : > { %v8067_v27 = vadd.f32 %v8051_v63, %v13522_v60 }
 0x652   : > { %v7402_v37 = vpop.f32.mrf.mxu3 }
 0x653   : > { %8083 = vst [vmem:[%s9785_s19 + $0x58] sm:$0xff] %v8067_v27  ;;  %v7424_v54 = vadd.f32 %v7402_v37, %v7230_v1 }
 0x655   : > { %v7802_v30 = vadd.f32 %v7780_v28, %v7424_v54  ;;  %v7782_v32 = vpop.f32.mrf.mxu0 }
 0x657   : > { %v8052_v2 = vadd.f32 %v8030_v46, %v7802_v30 }
 0x659   : > { %v8068_v3 = vadd.f32 %v8052_v2, %v13523_v17 }
 0x65a   : > { %v7404_v59 = vpop.f32.mrf.mxu3 }
 0x65b   : > { %8084 = vst [vmem:[%s9785_s19 + $0x60] sm:$0xff] %v8068_v3  ;;  %v7425_v15 = vadd.f32 %v7404_v59, %v7231_v12 }
 0x65d   : > { %v7803_v21 = vadd.f32 %v7782_v32, %v7425_v15  ;;  %v7785_v43 = vpop.f32.mrf.mxu0 }
 0x65f   : > { %v8053_v20 = vadd.f32 %v8032_v56, %v7803_v21 }
 0x661   : > { %v8069_v53 = vadd.f32 %v8053_v20, %v13524_v24 }
 0x662   : > { %v7407_v10 = vpop.f32.mrf.mxu3 }
 0x663   : > { %8085 = vst [vmem:[%s9785_s19 + $0x68] sm:$0xff] %v8069_v53  ;;  %v7426_v14 = vadd.f32 %v7407_v10, %v7232_v47 }
 0x665   : > { %v7804_v39 = vadd.f32 %v7785_v43, %v7426_v14  ;;  %v7787_v33 = vpop.f32.mrf.mxu0 }
 0x667   : > { %v8054_v38 = vadd.f32 %v8035_v22, %v7804_v39 }
 0x669   : > { %v8070_v19 = vadd.f32 %v8054_v38, %v13525_v44 }
 0x66a   : > { %v7409_v4 = vpop.f32.mrf.mxu3 }
 0x66b   : > { %8086 = vst [vmem:[%s9785_s19 + $0x70] sm:$0xff] %v8070_v19  ;;  %v7427_v13 = vadd.f32 %v7409_v4, %v7233_v5 }
 0x66d   : > { %v7805_v18 = vadd.f32 %v7787_v33, %v7427_v13 }
 0x66f   : > { %v8055_v42 = vadd.f32 %v8037_v6, %v7805_v18 }
 0x671   : > { %v8071_v29 = vadd.f32 %v8055_v42, %v13526_v11 }
 0x673   : > { %8087 = vst [vmem:[%s9785_s19 + $0x78] sm:$0xff] %v8071_v29 }
 0x674 PF: > { %s20_s17 = sadd.s32 1, %s9675_s17   ;;  %s13527_s22 = sld [smem:[#allocation3_spill]] }
 0x675   : > { %p17_p10 = scmp.ge.s32.totalorder %s20_s17, 6   ;;  %s13528_s13 = smov %s9667_s15 }
 0x676   : > { %s13529_s14 = smov %s9671_s16  ;;  %s13530_s15 = smov %s13533_s18 }
 0x677   :  { %19 = sbr.rel (!%p17_p10) target bundleno = 3 (0x3), region = 132 }
 0x67a   : > { %s13531_s16 = smov %s13527_s22 }

</bundles_post_ra>
